<compile_context>
chip_gen: v6e
topology: v6e:2x2x1
jax: 0.10.0
libtpu: 0.0.40
codegen_flags: <defaults>
</compile_context>

<pallas_src>
import functools

import jax
import jax.numpy as jnp
from jax.experimental import pallas as pl
from jax.experimental.pallas import tpu as pltpu

KERNEL_SIZES = (15, 25, 51, 65)
KSIZE = 65                         # unified temporal kernel width
NB1 = 8 * len(KERNEL_SIZES)        # 32
NB2 = 12 * len(KERNEL_SIZES)       # 48
DSEP = 24                          # pointwise/sep-conv output channels == embed dim
NHEADS = 3
DPROJ = 32

_COL_ORDER = ('bn1s', 'bn1b', 'bn2s', 'bn2b', 'bn3s', 'bn3b',
              'bne1s', 'bne1b', 'bne2s', 'bne2b')
_ROW_ORDER = ('bqkv', 'bo', 'ln1w', 'ln1b', 'bnps', 'bnpb',
              'bf1', 'ln2w', 'ln2b', 'bf2')


def _elu(x):
    # alpha = 1.0; clamp the exp argument so the unselected branch stays finite.
    return jnp.where(x > 0, x, jnp.exp(jnp.minimum(x, 0.0)) - 1.0)


# ---------------------------------------------------------------------------
# Fused forward kernel (one batch element per grid step).
# ---------------------------------------------------------------------------
def _ufe_kernel(x_ref, w1_ref, w2_ref, wdw_ref, wpw_ref, pe_ref, wqkv_ref,
                wo_ref, w31_ref, w32_ref, wp_ref, wf1_ref, wf2_ref,
                col_ref, row_ref, logits_ref, feat_ref,
                *, C, T, L, W, col_offs, row_offs):
    f32 = jnp.float32
    cb = col_ref[...]                                  # (Ncol, 1) packed column params
    rb = row_ref[...]                                  # (1, Nrow) packed row params

    def col(name):
        o, n = col_offs[name]
        return cb[o:o + n, :]

    def row(name):
        o, n = row_offs[name]
        return rb[:, o:o + n]

    # ---------------- CNN front-end (all channels at once, lane dim = C*L) ----
    xrow = x_ref[0]                                    # (1, C*L), per-channel padded
    # im2col hoisted out of any channel loop: 65 row slices -> (KSIZE, W)
    pat = jnp.concatenate([xrow[:, j:j + W] for j in range(KSIZE)], axis=0)
    y = jnp.dot(w1_ref[...], pat, preferred_element_type=f32)      # (NB1, W)
    y = _elu(y * col('bn1s') + col('bn1b'))
    z = jnp.dot(w2_ref[...], y, preferred_element_type=f32)        # (NB2, W)
    z = _elu(z * col('bn2s') + col('bn2b'))
    # depthwise (C,1) conv: weighted sum of the lane-aligned per-channel chunks.
    zw = z * wdw_ref[...]                              # (NB2, W), zeros on pad lanes
    dw = zw[:, 0:T]
    for c in range(1, C):
        dw = dw + zw[:, c * L:c * L + T]               # (NB2, T)
    pw = jnp.dot(wpw_ref[...], dw, preferred_element_type=f32)     # (DSEP, T)
    s = 2.0 * _elu(pw * col('bn3s') + col('bn3b'))     # avg+max pool on (1,T) == 2*x
    seq = s + pe_ref[...]                              # (DSEP, T), pos_enc folded in

    # ---------------- MultiheadAttention (3 heads) + residual + LayerNorm -----
    x_td = jnp.transpose(seq)                          # (T, DSEP)  (in-VMEM only)
    qkv = jnp.dot(x_td, wqkv_ref[...], preferred_element_type=f32) + row('bqkv')
    hd = DSEP // NHEADS
    q3 = jnp.stack([qkv[:, h * hd:(h + 1) * hd] for h in range(NHEADS)], axis=0)
    k3 = jnp.stack([qkv[:, DSEP + h * hd:DSEP + (h + 1) * hd]
                    for h in range(NHEADS)], axis=0)
    v3 = jnp.stack([qkv[:, 2 * DSEP + h * hd:2 * DSEP + (h + 1) * hd]
                    for h in range(NHEADS)], axis=0)   # each (NHEADS, T, hd)
    # 1/sqrt(hd) already folded into the Q columns of wqkv / bqkv at init time.
    s3 = jnp.einsum('htd,hsd->hts', q3, k3, preferred_element_type=f32)
    s3 = s3 - jnp.max(s3, axis=-1, keepdims=True)
    p3 = jnp.exp(s3)
    p3 = p3 / jnp.sum(p3, axis=-1, keepdims=True)
    o3 = jnp.einsum('hts,hsd->htd', p3, v3, preferred_element_type=f32)
    attn = jnp.concatenate([o3[h] for h in range(NHEADS)], axis=1)   # (T, DSEP)
    attn = jnp.dot(attn, wo_ref[...], preferred_element_type=f32) + row('bo')
    res = x_td + attn                                  # attn_dropout identity (inference)
    mu = jnp.mean(res, axis=-1, keepdims=True)
    var = jnp.mean((res - mu) ** 2, axis=-1, keepdims=True)
    y_td = (res - mu) * jax.lax.rsqrt(var + 1e-5) * row('ln1w') + row('ln1b')

    # ---------------- Conv1d encoder (k=3, pad=1) x2 + mean pool + heads -------
    h0 = jnp.transpose(y_td)                           # (DSEP, T)
    t_idx = jax.lax.broadcasted_iota(jnp.int32, (1, T), 1)
    mask_l = (t_idx > 0).astype(f32)                   # zero the wrapped t=0 column
    mask_r = (t_idx < T - 1).astype(f32)               # zero the wrapped t=T-1 column

    def conv3(h, w3, sname, bname):
        hl = pltpu.roll(h, shift=1, axis=1) * mask_l       # h[:, t-1], zero padded
        hr = pltpu.roll(h, shift=T - 1, axis=1) * mask_r   # h[:, t+1], zero padded
        stacked = jnp.concatenate([hl, h, hr], axis=0)     # (3*DSEP, T)
        out = jnp.dot(w3, stacked, preferred_element_type=f32)   # one K=72 matmul
        return _elu(out * col(sname) + col(bname))

    h1 = conv3(h0, w31_ref[...], 'bne1s', 'bne1b')
    h2 = conv3(h1, w32_ref[...], 'bne2s', 'bne2b')

    feat24 = jnp.transpose(jnp.mean(h2, axis=1, keepdims=True))   # (1, DSEP)
    proj = jnp.dot(feat24, wp_ref[...], preferred_element_type=f32)   # (1, DPROJ)
    proj = _elu(proj * row('bnps') + row('bnpb'))
    hfc = jnp.dot(proj, wf1_ref[...], preferred_element_type=f32) + row('bf1')
    mu2 = jnp.mean(hfc, axis=-1, keepdims=True)
    var2 = jnp.mean((hfc - mu2) ** 2, axis=-1, keepdims=True)
    hfc = (hfc - mu2) * jax.lax.rsqrt(var2 + 1e-5) * row('ln2w') + row('ln2b')
    hfc = _elu(hfc)
    logits = jnp.dot(hfc, wf2_ref[...], preferred_element_type=f32) + row('bf2')

    logits_ref[0] = logits                             # (1, n_classes)
    feat_ref[0] = proj                                 # (1, DPROJ)


# ---------------------------------------------------------------------------
# pallas_call wrapper
# ---------------------------------------------------------------------------
def _full_spec(a):
    nd = a.ndim
    return pl.BlockSpec(a.shape, lambda b, _nd=nd: (0,) * _nd)


def _pack_vectors(p, order):
    offs, off, arrs = {}, 0, []
    for name in order:
        v = p[name]
        offs[name] = (off, int(v.shape[0]))
        arrs.append(v)
        off += int(v.shape[0])
    return jnp.concatenate(arrs), offs


def ufe_forward(x, p, n_classes):
    B, C, T = x.shape
    pad = (KSIZE - 1) // 2
    L = ((T + KSIZE - 1 + 127) // 128) * 128           # per-channel padded length
    W = (C - 1) * L + T                                # patch-matrix width

    # Per-channel zero padding then flatten so all channels live in the lane dim.
    xflat = jnp.pad(x, ((0, 0), (0, 0), (pad, L - T - pad))).reshape(B, 1, C * L)

    # Positional encoding (added only when T < max_len, matching the PyTorch `<`).
    if T < p['pos_enc'].shape[1]:
        pe_dt = jnp.transpose(p['pos_enc'][0, :T, :])  # (DSEP, T)
    else:
        pe_dt = jnp.zeros((DSEP, T), jnp.float32)

    # Depthwise weights expanded onto the gapped (C*L-wide) lane layout.
    wdw_rep = jnp.zeros((NB2, C, L), jnp.float32)
    wdw_rep = wdw_rep.at[:, :, :T].set(
        jnp.broadcast_to(p['wdw'][:, :, None], (NB2, C, T)))
    wdw_rep = wdw_rep.reshape(NB2, C * L)[:, :W]

    # Pack the many tiny affine/bias params into one column pack and one row pack.
    col_vec, col_offs = _pack_vectors(p, _COL_ORDER)
    row_vec, row_offs = _pack_vectors(p, _ROW_ORDER)
    col_pack = col_vec.reshape(-1, 1)
    row_pack = row_vec.reshape(1, -1)

    mats = (p['w1'], p['w2'], wdw_rep, p['wpw'], pe_dt, p['wqkv_t'], p['wo_t'],
            p['w3_1'], p['w3_2'], p['wp_t'], p['wf1_t'], p['wf2_t'],
            col_pack, row_pack)

    kernel = functools.partial(_ufe_kernel, C=C, T=T, L=L, W=W,
                               col_offs=col_offs, row_offs=row_offs)

    logits3, feat3 = pl.pallas_call(
        kernel,
        out_shape=(jax.ShapeDtypeStruct((B, 1, n_classes), jnp.float32),
                   jax.ShapeDtypeStruct((B, 1, DPROJ), jnp.float32)),
        grid=(B,),
        in_specs=[pl.BlockSpec((1, 1, C * L), lambda b: (b, 0, 0))]
                 + [_full_spec(a) for a in mats],
        out_specs=(pl.BlockSpec((1, 1, n_classes), lambda b: (b, 0, 0)),
                   pl.BlockSpec((1, 1, DPROJ), lambda b: (b, 0, 0))),
        compiler_params=pltpu.CompilerParams(dimension_semantics=("parallel",)),
    )(xflat, *mats)
    # TODO(synk): for large B, block several batch elements per grid step to enlarge
    # the matmul M dims further; unnecessary at the toy B used here.
    return logits3[:, 0, :], feat3[:, 0, :]


# ---------------------------------------------------------------------------
# Deterministic parameter initialization (synthetic; eval-mode BN folded to affine)
# ---------------------------------------------------------------------------
def init_params(key, in_chans, n_classes):
    keys = iter(jax.random.split(key, 128))

    def nxt():
        return next(keys)

    def normal(shape, scale=0.1):
        return scale * jax.random.normal(nxt(), shape, jnp.float32)

    def bn_affine(n):
        gamma = 1.0 + 0.1 * jax.random.normal(nxt(), (n,), jnp.float32)
        beta = 0.1 * jax.random.normal(nxt(), (n,), jnp.float32)
        mean = 0.1 * jax.random.normal(nxt(), (n,), jnp.float32)
        var = 1.0 + 0.2 * jax.random.uniform(nxt(), (n,), jnp.float32)
        scale = gamma / jnp.sqrt(var + 1e-5)
        return scale, beta - mean * scale

    p = {}
    # Temporal branches -> unified 65-tap conv + block-diagonal 1x1.
    w1 = jnp.zeros((NB1, KSIZE), jnp.float32)
    w2 = jnp.zeros((NB2, NB1), jnp.float32)
    bn1s, bn1b, bn2s, bn2b = [], [], [], []
    for i, k in enumerate(KERNEL_SIZES):
        wk = normal((8, k), scale=1.0 / float(k) ** 0.5)
        off = (KSIZE - k) // 2
        w1 = w1.at[8 * i:8 * (i + 1), off:off + k].set(wk)
        s, b = bn_affine(8); bn1s.append(s); bn1b.append(b)
        w11 = normal((12, 8), scale=1.0 / 8.0 ** 0.5)
        w2 = w2.at[12 * i:12 * (i + 1), 8 * i:8 * (i + 1)].set(w11)
        s, b = bn_affine(12); bn2s.append(s); bn2b.append(b)
    p['w1'] = w1
    p['w2'] = w2
    p['bn1s'] = jnp.concatenate(bn1s)
    p['bn1b'] = jnp.concatenate(bn1b)
    p['bn2s'] = jnp.concatenate(bn2s)
    p['bn2b'] = jnp.concatenate(bn2b)
    p['wdw'] = normal((NB2, in_chans), scale=1.0 / float(in_chans) ** 0.5)
    p['wpw'] = normal((DSEP, NB2), scale=1.0 / float(NB2) ** 0.5)
    p['bn3s'], p['bn3b'] = bn_affine(DSEP)

    p['pos_enc'] = normal((1, 256, DSEP), scale=1.0)   # nn.Parameter(torch.randn)

    # MultiheadAttention (embed 24, 3 heads); fused QKV, pre-transposed, with the
    # 1/sqrt(head_dim) softmax scale folded into the Q weights and bias.
    hd = DSEP // NHEADS
    qscale = jnp.concatenate([jnp.full((DSEP,), 1.0 / float(hd) ** 0.5, jnp.float32),
                              jnp.ones((2 * DSEP,), jnp.float32)])
    in_proj_w = normal((3 * DSEP, DSEP), scale=1.0 / float(DSEP) ** 0.5)
    in_proj_b = normal((3 * DSEP,), scale=0.1)
    p['wqkv_t'] = in_proj_w.T * qscale[None, :]
    p['bqkv'] = in_proj_b * qscale
    p['wo_t'] = normal((DSEP, DSEP), scale=1.0 / float(DSEP) ** 0.5).T
    p['bo'] = normal((DSEP,), 0.1)
    p['ln1w'] = 1.0 + 0.1 * jax.random.normal(nxt(), (DSEP,), jnp.float32)
    p['ln1b'] = normal((DSEP,), 0.1)

    # Encoder: Conv1d(24,24,3,pad=1) x2 + BN, taps concatenated into (24, 72).
    we1 = normal((DSEP, DSEP, 3), scale=1.0 / (3.0 * DSEP) ** 0.5)
    we2 = normal((DSEP, DSEP, 3), scale=1.0 / (3.0 * DSEP) ** 0.5)
    p['w3_1'] = jnp.concatenate([we1[:, :, 0], we1[:, :, 1], we1[:, :, 2]], axis=1)
    p['w3_2'] = jnp.concatenate([we2[:, :, 0], we2[:, :, 1], we2[:, :, 2]], axis=1)
    p['bne1s'], p['bne1b'] = bn_affine(DSEP)
    p['bne2s'], p['bne2b'] = bn_affine(DSEP)

    # fc_project: Linear(24,32,bias=False) + BatchNorm1d(32).
    p['wp_t'] = normal((DPROJ, DSEP), scale=1.0 / float(DSEP) ** 0.5).T
    p['bnps'], p['bnpb'] = bn_affine(DPROJ)

    # fc_classify: Linear(32,32)+b, LayerNorm(32), ELU, Linear(32,n_classes)+b.
    p['wf1_t'] = normal((DPROJ, DPROJ), scale=1.0 / float(DPROJ) ** 0.5).T
    p['bf1'] = normal((DPROJ,), 0.1)
    p['ln2w'] = 1.0 + 0.1 * jax.random.normal(nxt(), (DPROJ,), jnp.float32)
    p['ln2b'] = normal((DPROJ,), 0.1)
    p['wf2_t'] = normal((n_classes, DPROJ), scale=1.0 / float(DPROJ) ** 0.5).T
    p['bf2'] = normal((n_classes,), 0.1)
    return p


if __name__ == "__main__":
    # TODO(synk): Dropout/Dropout2d are identity and BatchNorm uses running stats
    # (inference-mode forward); training-mode stochasticity is out of scope.
    # TODO(synk): bf16 MXU casting of the front-end matmuls (v6e/v7x) not applied to
    # preserve f32 numerics of the reference feature extractor.
    B, C, T, n_classes = 2, 4, 128, 4
    key = jax.random.PRNGKey(0)
    kx, kp = jax.random.split(key)
    x = jax.random.normal(kx, (B, C, T), jnp.float32)
    params = init_params(kp, C, n_classes)

    fwd = jax.jit(lambda xx: ufe_forward(xx, params, n_classes))
    logits, feat = fwd(x)
    jax.block_until_ready((logits, feat))
    assert logits.shape == (B, n_classes), logits.shape
    assert feat.shape == (B, DPROJ), feat.shape
    print("KERNEL_OK")
</pallas_src>

<mosaic_0001>
module attributes {stable_mosaic.version = 11 : i64} {
  func.func @_ufe_kernel(%arg0: i32, %arg1: memref<1x1x1024xf32, #tpu.memory_space<vmem>>, %arg2: memref<32x65xf32, #tpu.memory_space<vmem>>, %arg3: memref<48x32xf32, #tpu.memory_space<vmem>>, %arg4: memref<48x896xf32, #tpu.memory_space<vmem>>, %arg5: memref<24x48xf32, #tpu.memory_space<vmem>>, %arg6: memref<24x128xf32, #tpu.memory_space<vmem>>, %arg7: memref<24x72xf32, #tpu.memory_space<vmem>>, %arg8: memref<24x24xf32, #tpu.memory_space<vmem>>, %arg9: memref<24x72xf32, #tpu.memory_space<vmem>>, %arg10: memref<24x72xf32, #tpu.memory_space<vmem>>, %arg11: memref<24x32xf32, #tpu.memory_space<vmem>>, %arg12: memref<32x32xf32, #tpu.memory_space<vmem>>, %arg13: memref<32x4xf32, #tpu.memory_space<vmem>>, %arg14: memref<304x1xf32, #tpu.memory_space<vmem>>, %arg15: memref<1x308xf32, #tpu.memory_space<vmem>>, %arg16: memref<1x1x4xf32, #tpu.memory_space<vmem>>, %arg17: memref<1x1x32xf32, #tpu.memory_space<vmem>>) attributes {dimension_semantics = [#tpu.dimension_semantics<parallel>], iteration_bounds = array<i64: 2>, scalar_prefetch = 0 : i64, scratch_operands = 0 : i64, tpu.core_type = #tpu.core_type<tc>, window_params = [{transform_indices = @transform_0, window_bounds = array<i64: 1, 1, 1024>}, {pipeline_mode = #tpu.pipeline_mode<synchronous>, transform_indices = @transform_1, window_bounds = array<i64: 32, 65>}, {pipeline_mode = #tpu.pipeline_mode<synchronous>, transform_indices = @transform_2, window_bounds = array<i64: 48, 32>}, {pipeline_mode = #tpu.pipeline_mode<synchronous>, transform_indices = @transform_3, window_bounds = array<i64: 48, 896>}, {pipeline_mode = #tpu.pipeline_mode<synchronous>, transform_indices = @transform_4, window_bounds = array<i64: 24, 48>}, {pipeline_mode = #tpu.pipeline_mode<synchronous>, transform_indices = @transform_5, window_bounds = array<i64: 24, 128>}, {pipeline_mode = #tpu.pipeline_mode<synchronous>, transform_indices = @transform_6, window_bounds = array<i64: 24, 72>}, {pipeline_mode = #tpu.pipeline_mode<synchronous>, transform_indices = @transform_7, window_bounds = array<i64: 24, 24>}, {pipeline_mode = #tpu.pipeline_mode<synchronous>, transform_indices = @transform_8, window_bounds = array<i64: 24, 72>}, {pipeline_mode = #tpu.pipeline_mode<synchronous>, transform_indices = @transform_9, window_bounds = array<i64: 24, 72>}, {pipeline_mode = #tpu.pipeline_mode<synchronous>, transform_indices = @transform_10, window_bounds = array<i64: 24, 32>}, {pipeline_mode = #tpu.pipeline_mode<synchronous>, transform_indices = @transform_11, window_bounds = array<i64: 32, 32>}, {pipeline_mode = #tpu.pipeline_mode<synchronous>, transform_indices = @transform_12, window_bounds = array<i64: 32, 4>}, {pipeline_mode = #tpu.pipeline_mode<synchronous>, transform_indices = @transform_13, window_bounds = array<i64: 304, 1>}, {pipeline_mode = #tpu.pipeline_mode<synchronous>, transform_indices = @transform_14, window_bounds = array<i64: 1, 308>}, {transform_indices = @transform_15, window_bounds = array<i64: 1, 1, 4>}, {transform_indices = @transform_16, window_bounds = array<i64: 1, 1, 32>}]} {
    %c0 = arith.constant 0 : index
    %c0_0 = arith.constant 0 : index
    %0 = vector.load %arg14[%c0, %c0_0] : memref<304x1xf32, #tpu.memory_space<vmem>>, vector<304x1xf32>
    %c0_1 = arith.constant 0 : index
    %c0_2 = arith.constant 0 : index
    %1 = vector.load %arg15[%c0_1, %c0_2] : memref<1x308xf32, #tpu.memory_space<vmem>>, vector<1x308xf32>
    %c0_3 = arith.constant 0 : index
    %c0_4 = arith.constant 0 : index
    %c0_5 = arith.constant 0 : index
    %2 = vector.load %arg1[%c0_3, %c0_4, %c0_5] : memref<1x1x1024xf32, #tpu.memory_space<vmem>>, vector<1x1x1024xf32>
    %3 = vector.shape_cast %2 : vector<1x1x1024xf32> to vector<1x1024xf32>
    %4 = vector.extract_strided_slice %3 {offsets = [0, 0], sizes = [1, 896], strides = [1, 1]} : vector<1x1024xf32> to vector<1x896xf32>
    %5 = vector.extract_strided_slice %3 {offsets = [0, 1], sizes = [1, 896], strides = [1, 1]} : vector<1x1024xf32> to vector<1x896xf32>
    %6 = vector.extract_strided_slice %3 {offsets = [0, 2], sizes = [1, 896], strides = [1, 1]} : vector<1x1024xf32> to vector<1x896xf32>
    %7 = vector.extract_strided_slice %3 {offsets = [0, 3], sizes = [1, 896], strides = [1, 1]} : vector<1x1024xf32> to vector<1x896xf32>
    %8 = vector.extract_strided_slice %3 {offsets = [0, 4], sizes = [1, 896], strides = [1, 1]} : vector<1x1024xf32> to vector<1x896xf32>
    %9 = vector.extract_strided_slice %3 {offsets = [0, 5], sizes = [1, 896], strides = [1, 1]} : vector<1x1024xf32> to vector<1x896xf32>
    %10 = vector.extract_strided_slice %3 {offsets = [0, 6], sizes = [1, 896], strides = [1, 1]} : vector<1x1024xf32> to vector<1x896xf32>
    %11 = vector.extract_strided_slice %3 {offsets = [0, 7], sizes = [1, 896], strides = [1, 1]} : vector<1x1024xf32> to vector<1x896xf32>
    %12 = vector.extract_strided_slice %3 {offsets = [0, 8], sizes = [1, 896], strides = [1, 1]} : vector<1x1024xf32> to vector<1x896xf32>
    %13 = vector.extract_strided_slice %3 {offsets = [0, 9], sizes = [1, 896], strides = [1, 1]} : vector<1x1024xf32> to vector<1x896xf32>
    %14 = vector.extract_strided_slice %3 {offsets = [0, 10], sizes = [1, 896], strides = [1, 1]} : vector<1x1024xf32> to vector<1x896xf32>
    %15 = vector.extract_strided_slice %3 {offsets = [0, 11], sizes = [1, 896], strides = [1, 1]} : vector<1x1024xf32> to vector<1x896xf32>
    %16 = vector.extract_strided_slice %3 {offsets = [0, 12], sizes = [1, 896], strides = [1, 1]} : vector<1x1024xf32> to vector<1x896xf32>
    %17 = vector.extract_strided_slice %3 {offsets = [0, 13], sizes = [1, 896], strides = [1, 1]} : vector<1x1024xf32> to vector<1x896xf32>
    %18 = vector.extract_strided_slice %3 {offsets = [0, 14], sizes = [1, 896], strides = [1, 1]} : vector<1x1024xf32> to vector<1x896xf32>
    %19 = vector.extract_strided_slice %3 {offsets = [0, 15], sizes = [1, 896], strides = [1, 1]} : vector<1x1024xf32> to vector<1x896xf32>
    %20 = vector.extract_strided_slice %3 {offsets = [0, 16], sizes = [1, 896], strides = [1, 1]} : vector<1x1024xf32> to vector<1x896xf32>
    %21 = vector.extract_strided_slice %3 {offsets = [0, 17], sizes = [1, 896], strides = [1, 1]} : vector<1x1024xf32> to vector<1x896xf32>
    %22 = vector.extract_strided_slice %3 {offsets = [0, 18], sizes = [1, 896], strides = [1, 1]} : vector<1x1024xf32> to vector<1x896xf32>
    %23 = vector.extract_strided_slice %3 {offsets = [0, 19], sizes = [1, 896], strides = [1, 1]} : vector<1x1024xf32> to vector<1x896xf32>
    %24 = vector.extract_strided_slice %3 {offsets = [0, 20], sizes = [1, 896], strides = [1, 1]} : vector<1x1024xf32> to vector<1x896xf32>
    %25 = vector.extract_strided_slice %3 {offsets = [0, 21], sizes = [1, 896], strides = [1, 1]} : vector<1x1024xf32> to vector<1x896xf32>
    %26 = vector.extract_strided_slice %3 {offsets = [0, 22], sizes = [1, 896], strides = [1, 1]} : vector<1x1024xf32> to vector<1x896xf32>
    %27 = vector.extract_strided_slice %3 {offsets = [0, 23], sizes = [1, 896], strides = [1, 1]} : vector<1x1024xf32> to vector<1x896xf32>
    %28 = vector.extract_strided_slice %3 {offsets = [0, 24], sizes = [1, 896], strides = [1, 1]} : vector<1x1024xf32> to vector<1x896xf32>
    %29 = vector.extract_strided_slice %3 {offsets = [0, 25], sizes = [1, 896], strides = [1, 1]} : vector<1x1024xf32> to vector<1x896xf32>
    %30 = vector.extract_strided_slice %3 {offsets = [0, 26], sizes = [1, 896], strides = [1, 1]} : vector<1x1024xf32> to vector<1x896xf32>
    %31 = vector.extract_strided_slice %3 {offsets = [0, 27], sizes = [1, 896], strides = [1, 1]} : vector<1x1024xf32> to vector<1x896xf32>
    %32 = vector.extract_strided_slice %3 {offsets = [0, 28], sizes = [1, 896], strides = [1, 1]} : vector<1x1024xf32> to vector<1x896xf32>
    %33 = vector.extract_strided_slice %3 {offsets = [0, 29], sizes = [1, 896], strides = [1, 1]} : vector<1x1024xf32> to vector<1x896xf32>
    %34 = vector.extract_strided_slice %3 {offsets = [0, 30], sizes = [1, 896], strides = [1, 1]} : vector<1x1024xf32> to vector<1x896xf32>
    %35 = vector.extract_strided_slice %3 {offsets = [0, 31], sizes = [1, 896], strides = [1, 1]} : vector<1x1024xf32> to vector<1x896xf32>
    %36 = vector.extract_strided_slice %3 {offsets = [0, 32], sizes = [1, 896], strides = [1, 1]} : vector<1x1024xf32> to vector<1x896xf32>
    %37 = vector.extract_strided_slice %3 {offsets = [0, 33], sizes = [1, 896], strides = [1, 1]} : vector<1x1024xf32> to vector<1x896xf32>
    %38 = vector.extract_strided_slice %3 {offsets = [0, 34], sizes = [1, 896], strides = [1, 1]} : vector<1x1024xf32> to vector<1x896xf32>
    %39 = vector.extract_strided_slice %3 {offsets = [0, 35], sizes = [1, 896], strides = [1, 1]} : vector<1x1024xf32> to vector<1x896xf32>
    %40 = vector.extract_strided_slice %3 {offsets = [0, 36], sizes = [1, 896], strides = [1, 1]} : vector<1x1024xf32> to vector<1x896xf32>
    %41 = vector.extract_strided_slice %3 {offsets = [0, 37], sizes = [1, 896], strides = [1, 1]} : vector<1x1024xf32> to vector<1x896xf32>
    %42 = vector.extract_strided_slice %3 {offsets = [0, 38], sizes = [1, 896], strides = [1, 1]} : vector<1x1024xf32> to vector<1x896xf32>
    %43 = vector.extract_strided_slice %3 {offsets = [0, 39], sizes = [1, 896], strides = [1, 1]} : vector<1x1024xf32> to vector<1x896xf32>
    %44 = vector.extract_strided_slice %3 {offsets = [0, 40], sizes = [1, 896], strides = [1, 1]} : vector<1x1024xf32> to vector<1x896xf32>
    %45 = vector.extract_strided_slice %3 {offsets = [0, 41], sizes = [1, 896], strides = [1, 1]} : vector<1x1024xf32> to vector<1x896xf32>
    %46 = vector.extract_strided_slice %3 {offsets = [0, 42], sizes = [1, 896], strides = [1, 1]} : vector<1x1024xf32> to vector<1x896xf32>
    %47 = vector.extract_strided_slice %3 {offsets = [0, 43], sizes = [1, 896], strides = [1, 1]} : vector<1x1024xf32> to vector<1x896xf32>
    %48 = vector.extract_strided_slice %3 {offsets = [0, 44], sizes = [1, 896], strides = [1, 1]} : vector<1x1024xf32> to vector<1x896xf32>
    %49 = vector.extract_strided_slice %3 {offsets = [0, 45], sizes = [1, 896], strides = [1, 1]} : vector<1x1024xf32> to vector<1x896xf32>
    %50 = vector.extract_strided_slice %3 {offsets = [0, 46], sizes = [1, 896], strides = [1, 1]} : vector<1x1024xf32> to vector<1x896xf32>
    %51 = vector.extract_strided_slice %3 {offsets = [0, 47], sizes = [1, 896], strides = [1, 1]} : vector<1x1024xf32> to vector<1x896xf32>
    %52 = vector.extract_strided_slice %3 {offsets = [0, 48], sizes = [1, 896], strides = [1, 1]} : vector<1x1024xf32> to vector<1x896xf32>
    %53 = vector.extract_strided_slice %3 {offsets = [0, 49], sizes = [1, 896], strides = [1, 1]} : vector<1x1024xf32> to vector<1x896xf32>
    %54 = vector.extract_strided_slice %3 {offsets = [0, 50], sizes = [1, 896], strides = [1, 1]} : vector<1x1024xf32> to vector<1x896xf32>
    %55 = vector.extract_strided_slice %3 {offsets = [0, 51], sizes = [1, 896], strides = [1, 1]} : vector<1x1024xf32> to vector<1x896xf32>
    %56 = vector.extract_strided_slice %3 {offsets = [0, 52], sizes = [1, 896], strides = [1, 1]} : vector<1x1024xf32> to vector<1x896xf32>
    %57 = vector.extract_strided_slice %3 {offsets = [0, 53], sizes = [1, 896], strides = [1, 1]} : vector<1x1024xf32> to vector<1x896xf32>
    %58 = vector.extract_strided_slice %3 {offsets = [0, 54], sizes = [1, 896], strides = [1, 1]} : vector<1x1024xf32> to vector<1x896xf32>
    %59 = vector.extract_strided_slice %3 {offsets = [0, 55], sizes = [1, 896], strides = [1, 1]} : vector<1x1024xf32> to vector<1x896xf32>
    %60 = vector.extract_strided_slice %3 {offsets = [0, 56], sizes = [1, 896], strides = [1, 1]} : vector<1x1024xf32> to vector<1x896xf32>
    %61 = vector.extract_strided_slice %3 {offsets = [0, 57], sizes = [1, 896], strides = [1, 1]} : vector<1x1024xf32> to vector<1x896xf32>
    %62 = vector.extract_strided_slice %3 {offsets = [0, 58], sizes = [1, 896], strides = [1, 1]} : vector<1x1024xf32> to vector<1x896xf32>
    %63 = vector.extract_strided_slice %3 {offsets = [0, 59], sizes = [1, 896], strides = [1, 1]} : vector<1x1024xf32> to vector<1x896xf32>
    %64 = vector.extract_strided_slice %3 {offsets = [0, 60], sizes = [1, 896], strides = [1, 1]} : vector<1x1024xf32> to vector<1x896xf32>
    %65 = vector.extract_strided_slice %3 {offsets = [0, 61], sizes = [1, 896], strides = [1, 1]} : vector<1x1024xf32> to vector<1x896xf32>
    %66 = vector.extract_strided_slice %3 {offsets = [0, 62], sizes = [1, 896], strides = [1, 1]} : vector<1x1024xf32> to vector<1x896xf32>
    %67 = vector.extract_strided_slice %3 {offsets = [0, 63], sizes = [1, 896], strides = [1, 1]} : vector<1x1024xf32> to vector<1x896xf32>
    %68 = vector.extract_strided_slice %3 {offsets = [0, 64], sizes = [1, 896], strides = [1, 1]} : vector<1x1024xf32> to vector<1x896xf32>
    %69 = tpu.concatenate %4, %5, %6, %7, %8, %9, %10, %11, %12, %13, %14, %15, %16, %17, %18, %19 in 0 : vector<1x896xf32>, vector<1x896xf32>, vector<1x896xf32>, vector<1x896xf32>, vector<1x896xf32>, vector<1x896xf32>, vector<1x896xf32>, vector<1x896xf32>, vector<1x896xf32>, vector<1x896xf32>, vector<1x896xf32>, vector<1x896xf32>, vector<1x896xf32>, vector<1x896xf32>, vector<1x896xf32>, vector<1x896xf32> -> vector<16x896xf32>
    %70 = tpu.concatenate %20, %21, %22, %23, %24, %25, %26, %27, %28, %29, %30, %31, %32, %33, %34, %35 in 0 : vector<1x896xf32>, vector<1x896xf32>, vector<1x896xf32>, vector<1x896xf32>, vector<1x896xf32>, vector<1x896xf32>, vector<1x896xf32>, vector<1x896xf32>, vector<1x896xf32>, vector<1x896xf32>, vector<1x896xf32>, vector<1x896xf32>, vector<1x896xf32>, vector<1x896xf32>, vector<1x896xf32>, vector<1x896xf32> -> vector<16x896xf32>
    %71 = tpu.concatenate %36, %37, %38, %39, %40, %41, %42, %43, %44, %45, %46, %47, %48, %49, %50, %51 in 0 : vector<1x896xf32>, vector<1x896xf32>, vector<1x896xf32>, vector<1x896xf32>, vector<1x896xf32>, vector<1x896xf32>, vector<1x896xf32>, vector<1x896xf32>, vector<1x896xf32>, vector<1x896xf32>, vector<1x896xf32>, vector<1x896xf32>, vector<1x896xf32>, vector<1x896xf32>, vector<1x896xf32>, vector<1x896xf32> -> vector<16x896xf32>
    %72 = tpu.concatenate %52, %53, %54, %55, %56, %57, %58, %59, %60, %61, %62, %63, %64, %65, %66, %67 in 0 : vector<1x896xf32>, vector<1x896xf32>, vector<1x896xf32>, vector<1x896xf32>, vector<1x896xf32>, vector<1x896xf32>, vector<1x896xf32>, vector<1x896xf32>, vector<1x896xf32>, vector<1x896xf32>, vector<1x896xf32>, vector<1x896xf32>, vector<1x896xf32>, vector<1x896xf32>, vector<1x896xf32>, vector<1x896xf32> -> vector<16x896xf32>
    %73 = tpu.concatenate %69, %70, %71, %72, %68 in 0 : vector<16x896xf32>, vector<16x896xf32>, vector<16x896xf32>, vector<16x896xf32>, vector<1x896xf32> -> vector<65x896xf32>
    %c0_6 = arith.constant 0 : index
    %c0_7 = arith.constant 0 : index
    %74 = vector.load %arg2[%c0_6, %c0_7] : memref<32x65xf32, #tpu.memory_space<vmem>>, vector<32x65xf32>
    %cst = arith.constant dense<0.000000e+00> : vector<32x896xf32>
    %75 = tpu.matmul %74, %73, %cst {dimension_numbers = #tpu.dot_dimension_numbers<[1], [0], [0], [1], [0, 0, 1, 1], [], []>} : vector<32x65xf32>, vector<65x896xf32>, vector<32x896xf32> -> vector<32x896xf32>
    %76 = vector.extract_strided_slice %0 {offsets = [0, 0], sizes = [32, 1], strides = [1, 1]} : vector<304x1xf32> to vector<32x1xf32>
    %77 = vector.broadcast %76 : vector<32x1xf32> to vector<32x896xf32>
    %78 = arith.mulf %75, %77 : vector<32x896xf32>
    %79 = vector.extract_strided_slice %0 {offsets = [32, 0], sizes = [32, 1], strides = [1, 1]} : vector<304x1xf32> to vector<32x1xf32>
    %80 = vector.broadcast %79 : vector<32x1xf32> to vector<32x896xf32>
    %81 = arith.addf %78, %80 : vector<32x896xf32>
    %cst_8 = arith.constant 0.000000e+00 : f32
    %82 = vector.broadcast %cst_8 : f32 to vector<32x896xf32>
    %83 = arith.cmpf ogt, %81, %82 : vector<32x896xf32>
    %cst_9 = arith.constant 0.000000e+00 : f32
    %84 = vector.broadcast %cst_9 : f32 to vector<32x896xf32>
    %85 = arith.minimumf %81, %84 : vector<32x896xf32>
    %86 = math.exp %85 : vector<32x896xf32>
    %cst_10 = arith.constant 1.000000e+00 : f32
    %87 = vector.broadcast %cst_10 : f32 to vector<32x896xf32>
    %88 = arith.subf %86, %87 : vector<32x896xf32>
    %89 = arith.select %83, %81, %88 : vector<32x896xi1>, vector<32x896xf32>
    %c0_11 = arith.constant 0 : index
    %c0_12 = arith.constant 0 : index
    %90 = vector.load %arg3[%c0_11, %c0_12] : memref<48x32xf32, #tpu.memory_space<vmem>>, vector<48x32xf32>
    %cst_13 = arith.constant dense<0.000000e+00> : vector<48x896xf32>
    %91 = tpu.matmul %90, %89, %cst_13 {dimension_numbers = #tpu.dot_dimension_numbers<[1], [0], [0], [1], [0, 0, 1, 1], [], []>} : vector<48x32xf32>, vector<32x896xf32>, vector<48x896xf32> -> vector<48x896xf32>
    %92 = vector.extract_strided_slice %0 {offsets = [64, 0], sizes = [48, 1], strides = [1, 1]} : vector<304x1xf32> to vector<48x1xf32>
    %93 = vector.broadcast %92 : vector<48x1xf32> to vector<48x896xf32>
    %94 = arith.mulf %91, %93 : vector<48x896xf32>
    %95 = vector.extract_strided_slice %0 {offsets = [112, 0], sizes = [48, 1], strides = [1, 1]} : vector<304x1xf32> to vector<48x1xf32>
    %96 = vector.broadcast %95 : vector<48x1xf32> to vector<48x896xf32>
    %97 = arith.addf %94, %96 : vector<48x896xf32>
    %cst_14 = arith.constant 0.000000e+00 : f32
    %98 = vector.broadcast %cst_14 : f32 to vector<48x896xf32>
    %99 = arith.cmpf ogt, %97, %98 : vector<48x896xf32>
    %cst_15 = arith.constant 0.000000e+00 : f32
    %100 = vector.broadcast %cst_15 : f32 to vector<48x896xf32>
    %101 = arith.minimumf %97, %100 : vector<48x896xf32>
    %102 = math.exp %101 : vector<48x896xf32>
    %cst_16 = arith.constant 1.000000e+00 : f32
    %103 = vector.broadcast %cst_16 : f32 to vector<48x896xf32>
    %104 = arith.subf %102, %103 : vector<48x896xf32>
    %105 = arith.select %99, %97, %104 : vector<48x896xi1>, vector<48x896xf32>
    %c0_17 = arith.constant 0 : index
    %c0_18 = arith.constant 0 : index
    %106 = vector.load %arg4[%c0_17, %c0_18] : memref<48x896xf32, #tpu.memory_space<vmem>>, vector<48x896xf32>
    %107 = arith.mulf %105, %106 : vector<48x896xf32>
    %108 = vector.extract_strided_slice %107 {offsets = [0, 0], sizes = [48, 128], strides = [1, 1]} : vector<48x896xf32> to vector<48x128xf32>
    %109 = vector.extract_strided_slice %107 {offsets = [0, 256], sizes = [48, 128], strides = [1, 1]} : vector<48x896xf32> to vector<48x128xf32>
    %110 = arith.addf %108, %109 : vector<48x128xf32>
    %111 = vector.extract_strided_slice %107 {offsets = [0, 512], sizes = [48, 128], strides = [1, 1]} : vector<48x896xf32> to vector<48x128xf32>
    %112 = arith.addf %110, %111 : vector<48x128xf32>
    %113 = vector.extract_strided_slice %107 {offsets = [0, 768], sizes = [48, 128], strides = [1, 1]} : vector<48x896xf32> to vector<48x128xf32>
    %114 = arith.addf %112, %113 : vector<48x128xf32>
    %c0_19 = arith.constant 0 : index
    %c0_20 = arith.constant 0 : index
    %115 = vector.load %arg5[%c0_19, %c0_20] : memref<24x48xf32, #tpu.memory_space<vmem>>, vector<24x48xf32>
    %cst_21 = arith.constant dense<0.000000e+00> : vector<24x128xf32>
    %116 = tpu.matmul %115, %114, %cst_21 {dimension_numbers = #tpu.dot_dimension_numbers<[1], [0], [0], [1], [0, 0, 1, 1], [], []>} : vector<24x48xf32>, vector<48x128xf32>, vector<24x128xf32> -> vector<24x128xf32>
    %117 = vector.extract_strided_slice %0 {offsets = [160, 0], sizes = [24, 1], strides = [1, 1]} : vector<304x1xf32> to vector<24x1xf32>
    %118 = vector.broadcast %117 : vector<24x1xf32> to vector<24x128xf32>
    %119 = arith.mulf %116, %118 : vector<24x128xf32>
    %120 = vector.extract_strided_slice %0 {offsets = [184, 0], sizes = [24, 1], strides = [1, 1]} : vector<304x1xf32> to vector<24x1xf32>
    %121 = vector.broadcast %120 : vector<24x1xf32> to vector<24x128xf32>
    %122 = arith.addf %119, %121 : vector<24x128xf32>
    %cst_22 = arith.constant 0.000000e+00 : f32
    %123 = vector.broadcast %cst_22 : f32 to vector<24x128xf32>
    %124 = arith.cmpf ogt, %122, %123 : vector<24x128xf32>
    %cst_23 = arith.constant 0.000000e+00 : f32
    %125 = vector.broadcast %cst_23 : f32 to vector<24x128xf32>
    %126 = arith.minimumf %122, %125 : vector<24x128xf32>
    %127 = math.exp %126 : vector<24x128xf32>
    %cst_24 = arith.constant 1.000000e+00 : f32
    %128 = vector.broadcast %cst_24 : f32 to vector<24x128xf32>
    %129 = arith.subf %127, %128 : vector<24x128xf32>
    %130 = arith.select %124, %122, %129 : vector<24x128xi1>, vector<24x128xf32>
    %cst_25 = arith.constant 2.000000e+00 : f32
    %131 = vector.broadcast %cst_25 : f32 to vector<24x128xf32>
    %132 = arith.mulf %131, %130 : vector<24x128xf32>
    %c0_26 = arith.constant 0 : index
    %c0_27 = arith.constant 0 : index
    %133 = vector.load %arg6[%c0_26, %c0_27] : memref<24x128xf32, #tpu.memory_space<vmem>>, vector<24x128xf32>
    %134 = arith.addf %132, %133 : vector<24x128xf32>
    %135 = tpu.transpose %134, [1, 0] : vector<24x128xf32> -> vector<128x24xf32>
    %c0_28 = arith.constant 0 : index
    %c0_29 = arith.constant 0 : index
    %136 = vector.load %arg7[%c0_28, %c0_29] : memref<24x72xf32, #tpu.memory_space<vmem>>, vector<24x72xf32>
    %cst_30 = arith.constant dense<0.000000e+00> : vector<128x72xf32>
    %137 = tpu.matmul %135, %136, %cst_30 {dimension_numbers = #tpu.dot_dimension_numbers<[1], [0], [0], [1], [0, 0, 1, 1], [], []>} : vector<128x24xf32>, vector<24x72xf32>, vector<128x72xf32> -> vector<128x72xf32>
    %138 = vector.extract_strided_slice %1 {offsets = [0, 0], sizes = [1, 72], strides = [1, 1]} : vector<1x308xf32> to vector<1x72xf32>
    %139 = vector.broadcast %138 : vector<1x72xf32> to vector<128x72xf32>
    %140 = arith.addf %137, %139 : vector<128x72xf32>
    %141 = vector.extract_strided_slice %140 {offsets = [0, 0], sizes = [128, 8], strides = [1, 1]} : vector<128x72xf32> to vector<128x8xf32>
    %142 = vector.extract_strided_slice %140 {offsets = [0, 8], sizes = [128, 8], strides = [1, 1]} : vector<128x72xf32> to vector<128x8xf32>
    %143 = vector.extract_strided_slice %140 {offsets = [0, 16], sizes = [128, 8], strides = [1, 1]} : vector<128x72xf32> to vector<128x8xf32>
    %144 = vector.shape_cast %141 : vector<128x8xf32> to vector<1x128x8xf32>
    %145 = vector.shape_cast %142 : vector<128x8xf32> to vector<1x128x8xf32>
    %146 = vector.shape_cast %143 : vector<128x8xf32> to vector<1x128x8xf32>
    %147 = tpu.concatenate %144, %145, %146 in 0 : vector<1x128x8xf32>, vector<1x128x8xf32>, vector<1x128x8xf32> -> vector<3x128x8xf32>
    %148 = vector.extract_strided_slice %140 {offsets = [0, 24], sizes = [128, 8], strides = [1, 1]} : vector<128x72xf32> to vector<128x8xf32>
    %149 = vector.extract_strided_slice %140 {offsets = [0, 32], sizes = [128, 8], strides = [1, 1]} : vector<128x72xf32> to vector<128x8xf32>
    %150 = vector.extract_strided_slice %140 {offsets = [0, 40], sizes = [128, 8], strides = [1, 1]} : vector<128x72xf32> to vector<128x8xf32>
    %151 = vector.shape_cast %148 : vector<128x8xf32> to vector<1x128x8xf32>
    %152 = vector.shape_cast %149 : vector<128x8xf32> to vector<1x128x8xf32>
    %153 = vector.shape_cast %150 : vector<128x8xf32> to vector<1x128x8xf32>
    %154 = tpu.concatenate %151, %152, %153 in 0 : vector<1x128x8xf32>, vector<1x128x8xf32>, vector<1x128x8xf32> -> vector<3x128x8xf32>
    %155 = vector.extract_strided_slice %140 {offsets = [0, 48], sizes = [128, 8], strides = [1, 1]} : vector<128x72xf32> to vector<128x8xf32>
    %156 = vector.extract_strided_slice %140 {offsets = [0, 56], sizes = [128, 8], strides = [1, 1]} : vector<128x72xf32> to vector<128x8xf32>
    %157 = vector.extract_strided_slice %140 {offsets = [0, 64], sizes = [128, 8], strides = [1, 1]} : vector<128x72xf32> to vector<128x8xf32>
    %158 = vector.shape_cast %155 : vector<128x8xf32> to vector<1x128x8xf32>
    %159 = vector.shape_cast %156 : vector<128x8xf32> to vector<1x128x8xf32>
    %160 = vector.shape_cast %157 : vector<128x8xf32> to vector<1x128x8xf32>
    %161 = tpu.concatenate %158, %159, %160 in 0 : vector<1x128x8xf32>, vector<1x128x8xf32>, vector<1x128x8xf32> -> vector<3x128x8xf32>
    "tpu.trace_start"() <{level = 10 : i32, message = "htd,hsd->hts"}> : () -> ()
    %cst_31 = arith.constant dense<0.000000e+00> : vector<3x128x128xf32>
    %162 = tpu.matmul %147, %154, %cst_31 {dimension_numbers = #tpu.dot_dimension_numbers<[2], [2], [1], [1], [0, 0, 0, 1, 1, 1], [0], [0]>} : vector<3x128x8xf32>, vector<3x128x8xf32>, vector<3x128x128xf32> -> vector<3x128x128xf32>
    "tpu.trace_stop"() : () -> ()
    %cst_32 = arith.constant dense<0xFF800000> : vector<3x128xf32>
    %163 = vector.multi_reduction <maximumf>, %162, %cst_32 [2] : vector<3x128x128xf32> to vector<3x128xf32>
    %164 = vector.shape_cast %163 : vector<3x128xf32> to vector<3x128x1xf32>
    %165 = vector.broadcast %164 : vector<3x128x1xf32> to vector<3x128x128xf32>
    %166 = arith.subf %162, %165 : vector<3x128x128xf32>
    %167 = math.exp %166 : vector<3x128x128xf32>
    %cst_33 = arith.constant dense<0.000000e+00> : vector<3x128xf32>
    %168 = vector.multi_reduction <add>, %167, %cst_33 [2] : vector<3x128x128xf32> to vector<3x128xf32>
    %169 = vector.shape_cast %168 : vector<3x128xf32> to vector<3x128x1xf32>
    %170 = vector.broadcast %169 : vector<3x128x1xf32> to vector<3x128x128xf32>
    %171 = arith.divf %167, %170 : vector<3x128x128xf32>
    "tpu.trace_start"() <{level = 10 : i32, message = "hts,hsd->htd"}> : () -> ()
    %cst_34 = arith.constant dense<0.000000e+00> : vector<3x128x8xf32>
    %172 = tpu.matmul %171, %161, %cst_34 {dimension_numbers = #tpu.dot_dimension_numbers<[2], [1], [1], [2], [0, 0, 0, 1, 1, 2], [0], [0]>} : vector<3x128x128xf32>, vector<3x128x8xf32>, vector<3x128x8xf32> -> vector<3x128x8xf32>
    "tpu.trace_stop"() : () -> ()
    %173 = vector.extract_strided_slice %172 {offsets = [0, 0, 0], sizes = [1, 128, 8], strides = [1, 1, 1]} : vector<3x128x8xf32> to vector<1x128x8xf32>
    %174 = vector.shape_cast %173 : vector<1x128x8xf32> to vector<128x8xf32>
    %175 = vector.extract_strided_slice %172 {offsets = [1, 0, 0], sizes = [1, 128, 8], strides = [1, 1, 1]} : vector<3x128x8xf32> to vector<1x128x8xf32>
    %176 = vector.shape_cast %175 : vector<1x128x8xf32> to vector<128x8xf32>
    %177 = vector.extract_strided_slice %172 {offsets = [2, 0, 0], sizes = [1, 128, 8], strides = [1, 1, 1]} : vector<3x128x8xf32> to vector<1x128x8xf32>
    %178 = vector.shape_cast %177 : vector<1x128x8xf32> to vector<128x8xf32>
    %179 = tpu.concatenate %174, %176, %178 in 1 : vector<128x8xf32>, vector<128x8xf32>, vector<128x8xf32> -> vector<128x24xf32>
    %c0_35 = arith.constant 0 : index
    %c0_36 = arith.constant 0 : index
    %180 = vector.load %arg8[%c0_35, %c0_36] : memref<24x24xf32, #tpu.memory_space<vmem>>, vector<24x24xf32>
    %cst_37 = arith.constant dense<0.000000e+00> : vector<128x24xf32>
    %181 = tpu.matmul %179, %180, %cst_37 {dimension_numbers = #tpu.dot_dimension_numbers<[1], [0], [0], [1], [0, 0, 1, 1], [], []>} : vector<128x24xf32>, vector<24x24xf32>, vector<128x24xf32> -> vector<128x24xf32>
    %182 = vector.extract_strided_slice %1 {offsets = [0, 72], sizes = [1, 24], strides = [1, 1]} : vector<1x308xf32> to vector<1x24xf32>
    %183 = vector.broadcast %182 : vector<1x24xf32> to vector<128x24xf32>
    %184 = arith.addf %181, %183 : vector<128x24xf32>
    %185 = arith.addf %135, %184 : vector<128x24xf32>
    %cst_38 = arith.constant dense<0.000000e+00> : vector<128xf32>
    %186 = vector.multi_reduction <add>, %185, %cst_38 [1] : vector<128x24xf32> to vector<128xf32>
    %187 = vector.shape_cast %186 : vector<128xf32> to vector<128x1xf32>
    %cst_39 = arith.constant 2.400000e+01 : f32
    %188 = vector.broadcast %cst_39 : f32 to vector<128x1xf32>
    %189 = arith.divf %187, %188 : vector<128x1xf32>
    %190 = vector.broadcast %189 : vector<128x1xf32> to vector<128x24xf32>
    %191 = arith.subf %185, %190 : vector<128x24xf32>
    %192 = arith.mulf %191, %191 : vector<128x24xf32>
    %cst_40 = arith.constant dense<0.000000e+00> : vector<128xf32>
    %193 = vector.multi_reduction <add>, %192, %cst_40 [1] : vector<128x24xf32> to vector<128xf32>
    %194 = vector.shape_cast %193 : vector<128xf32> to vector<128x1xf32>
    %cst_41 = arith.constant 2.400000e+01 : f32
    %195 = vector.broadcast %cst_41 : f32 to vector<128x1xf32>
    %196 = arith.divf %194, %195 : vector<128x1xf32>
    %197 = vector.broadcast %189 : vector<128x1xf32> to vector<128x24xf32>
    %198 = arith.subf %185, %197 : vector<128x24xf32>
    %cst_42 = arith.constant 9.99999974E-6 : f32
    %199 = vector.broadcast %cst_42 : f32 to vector<128x1xf32>
    %200 = arith.addf %196, %199 : vector<128x1xf32>
    %201 = math.rsqrt %200 : vector<128x1xf32>
    %202 = vector.broadcast %201 : vector<128x1xf32> to vector<128x24xf32>
    %203 = arith.mulf %198, %202 : vector<128x24xf32>
    %204 = vector.extract_strided_slice %1 {offsets = [0, 96], sizes = [1, 24], strides = [1, 1]} : vector<1x308xf32> to vector<1x24xf32>
    %205 = vector.broadcast %204 : vector<1x24xf32> to vector<128x24xf32>
    %206 = arith.mulf %203, %205 : vector<128x24xf32>
    %207 = vector.extract_strided_slice %1 {offsets = [0, 120], sizes = [1, 24], strides = [1, 1]} : vector<1x308xf32> to vector<1x24xf32>
    %208 = vector.broadcast %207 : vector<1x24xf32> to vector<128x24xf32>
    %209 = arith.addf %206, %208 : vector<128x24xf32>
    %210 = tpu.transpose %209, [1, 0] : vector<128x24xf32> -> vector<24x128xf32>
    %211 = tpu.iota {dimensions = array<i32: 1>} : vector<1x128xi32>
    %c0_i32 = arith.constant 0 : i32
    %212 = vector.broadcast %c0_i32 : i32 to vector<1x128xi32>
    %213 = arith.cmpi sgt, %211, %212 : vector<1x128xi32>
    %214 = arith.extui %213 : vector<1x128xi1> to vector<1x128xi32>
    %215 = arith.sitofp %214 : vector<1x128xi32> to vector<1x128xf32>
    %c127_i32 = arith.constant 127 : i32
    %216 = vector.broadcast %c127_i32 : i32 to vector<1x128xi32>
    %217 = arith.cmpi slt, %211, %216 : vector<1x128xi32>
    %218 = arith.extui %217 : vector<1x128xi1> to vector<1x128xi32>
    %219 = arith.sitofp %218 : vector<1x128xi32> to vector<1x128xf32>
    %c0_43 = arith.constant 0 : index
    %c0_44 = arith.constant 0 : index
    %220 = vector.load %arg9[%c0_43, %c0_44] : memref<24x72xf32, #tpu.memory_space<vmem>>, vector<24x72xf32>
    %c1_i32 = arith.constant 1 : i32
    %221 = tpu.dynamic_rotate %210 by %c1_i32 dim 1 : vector<24x128xf32>, i32 -> vector<24x128xf32>
    %222 = vector.broadcast %215 : vector<1x128xf32> to vector<24x128xf32>
    %223 = arith.mulf %221, %222 : vector<24x128xf32>
    %c127_i32_45 = arith.constant 127 : i32
    %224 = tpu.dynamic_rotate %210 by %c127_i32_45 dim 1 : vector<24x128xf32>, i32 -> vector<24x128xf32>
    %225 = vector.broadcast %219 : vector<1x128xf32> to vector<24x128xf32>
    %226 = arith.mulf %224, %225 : vector<24x128xf32>
    %227 = tpu.concatenate %223, %210, %226 in 0 : vector<24x128xf32>, vector<24x128xf32>, vector<24x128xf32> -> vector<72x128xf32>
    %cst_46 = arith.constant dense<0.000000e+00> : vector<24x128xf32>
    %228 = tpu.matmul %220, %227, %cst_46 {dimension_numbers = #tpu.dot_dimension_numbers<[1], [0], [0], [1], [0, 0, 1, 1], [], []>} : vector<24x72xf32>, vector<72x128xf32>, vector<24x128xf32> -> vector<24x128xf32>
    %229 = vector.extract_strided_slice %0 {offsets = [208, 0], sizes = [24, 1], strides = [1, 1]} : vector<304x1xf32> to vector<24x1xf32>
    %230 = vector.broadcast %229 : vector<24x1xf32> to vector<24x128xf32>
    %231 = arith.mulf %228, %230 : vector<24x128xf32>
    %232 = vector.extract_strided_slice %0 {offsets = [232, 0], sizes = [24, 1], strides = [1, 1]} : vector<304x1xf32> to vector<24x1xf32>
    %233 = vector.broadcast %232 : vector<24x1xf32> to vector<24x128xf32>
    %234 = arith.addf %231, %233 : vector<24x128xf32>
    %cst_47 = arith.constant 0.000000e+00 : f32
    %235 = vector.broadcast %cst_47 : f32 to vector<24x128xf32>
    %236 = arith.cmpf ogt, %234, %235 : vector<24x128xf32>
    %cst_48 = arith.constant 0.000000e+00 : f32
    %237 = vector.broadcast %cst_48 : f32 to vector<24x128xf32>
    %238 = arith.minimumf %234, %237 : vector<24x128xf32>
    %239 = math.exp %238 : vector<24x128xf32>
    %cst_49 = arith.constant 1.000000e+00 : f32
    %240 = vector.broadcast %cst_49 : f32 to vector<24x128xf32>
    %241 = arith.subf %239, %240 : vector<24x128xf32>
    %242 = arith.select %236, %234, %241 : vector<24x128xi1>, vector<24x128xf32>
    %c0_50 = arith.constant 0 : index
    %c0_51 = arith.constant 0 : index
    %243 = vector.load %arg10[%c0_50, %c0_51] : memref<24x72xf32, #tpu.memory_space<vmem>>, vector<24x72xf32>
    %c1_i32_52 = arith.constant 1 : i32
    %244 = tpu.dynamic_rotate %242 by %c1_i32_52 dim 1 : vector<24x128xf32>, i32 -> vector<24x128xf32>
    %245 = vector.broadcast %215 : vector<1x128xf32> to vector<24x128xf32>
    %246 = arith.mulf %244, %245 : vector<24x128xf32>
    %c127_i32_53 = arith.constant 127 : i32
    %247 = tpu.dynamic_rotate %242 by %c127_i32_53 dim 1 : vector<24x128xf32>, i32 -> vector<24x128xf32>
    %248 = vector.broadcast %219 : vector<1x128xf32> to vector<24x128xf32>
    %249 = arith.mulf %247, %248 : vector<24x128xf32>
    %250 = tpu.concatenate %246, %242, %249 in 0 : vector<24x128xf32>, vector<24x128xf32>, vector<24x128xf32> -> vector<72x128xf32>
    %cst_54 = arith.constant dense<0.000000e+00> : vector<24x128xf32>
    %251 = tpu.matmul %243, %250, %cst_54 {dimension_numbers = #tpu.dot_dimension_numbers<[1], [0], [0], [1], [0, 0, 1, 1], [], []>} : vector<24x72xf32>, vector<72x128xf32>, vector<24x128xf32> -> vector<24x128xf32>
    %252 = vector.extract_strided_slice %0 {offsets = [256, 0], sizes = [24, 1], strides = [1, 1]} : vector<304x1xf32> to vector<24x1xf32>
    %253 = vector.broadcast %252 : vector<24x1xf32> to vector<24x128xf32>
    %254 = arith.mulf %251, %253 : vector<24x128xf32>
    %255 = vector.extract_strided_slice %0 {offsets = [280, 0], sizes = [24, 1], strides = [1, 1]} : vector<304x1xf32> to vector<24x1xf32>
    %256 = vector.broadcast %255 : vector<24x1xf32> to vector<24x128xf32>
    %257 = arith.addf %254, %256 : vector<24x128xf32>
    %cst_55 = arith.constant 0.000000e+00 : f32
    %258 = vector.broadcast %cst_55 : f32 to vector<24x128xf32>
    %259 = arith.cmpf ogt, %257, %258 : vector<24x128xf32>
    %cst_56 = arith.constant 0.000000e+00 : f32
    %260 = vector.broadcast %cst_56 : f32 to vector<24x128xf32>
    %261 = arith.minimumf %257, %260 : vector<24x128xf32>
    %262 = math.exp %261 : vector<24x128xf32>
    %cst_57 = arith.constant 1.000000e+00 : f32
    %263 = vector.broadcast %cst_57 : f32 to vector<24x128xf32>
    %264 = arith.subf %262, %263 : vector<24x128xf32>
    %265 = arith.select %259, %257, %264 : vector<24x128xi1>, vector<24x128xf32>
    %cst_58 = arith.constant dense<0.000000e+00> : vector<24xf32>
    %266 = vector.multi_reduction <add>, %265, %cst_58 [1] : vector<24x128xf32> to vector<24xf32>
    %267 = vector.shape_cast %266 : vector<24xf32> to vector<24x1xf32>
    %cst_59 = arith.constant 1.280000e+02 : f32
    %268 = vector.broadcast %cst_59 : f32 to vector<24x1xf32>
    %269 = arith.divf %267, %268 : vector<24x1xf32>
    %270 = tpu.transpose %269, [1, 0] : vector<24x1xf32> -> vector<1x24xf32>
    %c0_60 = arith.constant 0 : index
    %c0_61 = arith.constant 0 : index
    %271 = vector.load %arg11[%c0_60, %c0_61] : memref<24x32xf32, #tpu.memory_space<vmem>>, vector<24x32xf32>
    %cst_62 = arith.constant dense<0.000000e+00> : vector<1x32xf32>
    %272 = tpu.matmul %270, %271, %cst_62 {dimension_numbers = #tpu.dot_dimension_numbers<[1], [0], [0], [1], [0, 0, 1, 1], [], []>} : vector<1x24xf32>, vector<24x32xf32>, vector<1x32xf32> -> vector<1x32xf32>
    %273 = vector.extract_strided_slice %1 {offsets = [0, 144], sizes = [1, 32], strides = [1, 1]} : vector<1x308xf32> to vector<1x32xf32>
    %274 = arith.mulf %272, %273 : vector<1x32xf32>
    %275 = vector.extract_strided_slice %1 {offsets = [0, 176], sizes = [1, 32], strides = [1, 1]} : vector<1x308xf32> to vector<1x32xf32>
    %276 = arith.addf %274, %275 : vector<1x32xf32>
    %cst_63 = arith.constant 0.000000e+00 : f32
    %277 = vector.broadcast %cst_63 : f32 to vector<1x32xf32>
    %278 = arith.cmpf ogt, %276, %277 : vector<1x32xf32>
    %cst_64 = arith.constant 0.000000e+00 : f32
    %279 = vector.broadcast %cst_64 : f32 to vector<1x32xf32>
    %280 = arith.minimumf %276, %279 : vector<1x32xf32>
    %281 = math.exp %280 : vector<1x32xf32>
    %cst_65 = arith.constant 1.000000e+00 : f32
    %282 = vector.broadcast %cst_65 : f32 to vector<1x32xf32>
    %283 = arith.subf %281, %282 : vector<1x32xf32>
    %284 = arith.select %278, %276, %283 : vector<1x32xi1>, vector<1x32xf32>
    %c0_66 = arith.constant 0 : index
    %c0_67 = arith.constant 0 : index
    %285 = vector.load %arg12[%c0_66, %c0_67] : memref<32x32xf32, #tpu.memory_space<vmem>>, vector<32x32xf32>
    %cst_68 = arith.constant dense<0.000000e+00> : vector<1x32xf32>
    %286 = tpu.matmul %284, %285, %cst_68 {dimension_numbers = #tpu.dot_dimension_numbers<[1], [0], [0], [1], [0, 0, 1, 1], [], []>} : vector<1x32xf32>, vector<32x32xf32>, vector<1x32xf32> -> vector<1x32xf32>
    %287 = vector.extract_strided_slice %1 {offsets = [0, 208], sizes = [1, 32], strides = [1, 1]} : vector<1x308xf32> to vector<1x32xf32>
    %288 = arith.addf %286, %287 : vector<1x32xf32>
    %cst_69 = arith.constant dense<0.000000e+00> : vector<1xf32>
    %289 = vector.multi_reduction <add>, %288, %cst_69 [1] : vector<1x32xf32> to vector<1xf32>
    %290 = vector.shape_cast %289 : vector<1xf32> to vector<1x1xf32>
    %cst_70 = arith.constant 3.200000e+01 : f32
    %291 = vector.broadcast %cst_70 : f32 to vector<1x1xf32>
    %292 = arith.divf %290, %291 : vector<1x1xf32>
    %293 = vector.broadcast %292 : vector<1x1xf32> to vector<1x32xf32>
    %294 = arith.subf %288, %293 : vector<1x32xf32>
    %295 = arith.mulf %294, %294 : vector<1x32xf32>
    %cst_71 = arith.constant dense<0.000000e+00> : vector<1xf32>
    %296 = vector.multi_reduction <add>, %295, %cst_71 [1] : vector<1x32xf32> to vector<1xf32>
    %297 = vector.shape_cast %296 : vector<1xf32> to vector<1x1xf32>
    %cst_72 = arith.constant 3.200000e+01 : f32
    %298 = vector.broadcast %cst_72 : f32 to vector<1x1xf32>
    %299 = arith.divf %297, %298 : vector<1x1xf32>
    %300 = vector.broadcast %292 : vector<1x1xf32> to vector<1x32xf32>
    %301 = arith.subf %288, %300 : vector<1x32xf32>
    %cst_73 = arith.constant 9.99999974E-6 : f32
    %302 = vector.broadcast %cst_73 : f32 to vector<1x1xf32>
    %303 = arith.addf %299, %302 : vector<1x1xf32>
    %304 = math.rsqrt %303 : vector<1x1xf32>
    %305 = vector.broadcast %304 : vector<1x1xf32> to vector<1x32xf32>
    %306 = arith.mulf %301, %305 : vector<1x32xf32>
    %307 = vector.extract_strided_slice %1 {offsets = [0, 240], sizes = [1, 32], strides = [1, 1]} : vector<1x308xf32> to vector<1x32xf32>
    %308 = arith.mulf %306, %307 : vector<1x32xf32>
    %309 = vector.extract_strided_slice %1 {offsets = [0, 272], sizes = [1, 32], strides = [1, 1]} : vector<1x308xf32> to vector<1x32xf32>
    %310 = arith.addf %308, %309 : vector<1x32xf32>
    %cst_74 = arith.constant 0.000000e+00 : f32
    %311 = vector.broadcast %cst_74 : f32 to vector<1x32xf32>
    %312 = arith.cmpf ogt, %310, %311 : vector<1x32xf32>
    %cst_75 = arith.constant 0.000000e+00 : f32
    %313 = vector.broadcast %cst_75 : f32 to vector<1x32xf32>
    %314 = arith.minimumf %310, %313 : vector<1x32xf32>
    %315 = math.exp %314 : vector<1x32xf32>
    %cst_76 = arith.constant 1.000000e+00 : f32
    %316 = vector.broadcast %cst_76 : f32 to vector<1x32xf32>
    %317 = arith.subf %315, %316 : vector<1x32xf32>
    %318 = arith.select %312, %310, %317 : vector<1x32xi1>, vector<1x32xf32>
    %c0_77 = arith.constant 0 : index
    %c0_78 = arith.constant 0 : index
    %319 = vector.load %arg13[%c0_77, %c0_78] : memref<32x4xf32, #tpu.memory_space<vmem>>, vector<32x4xf32>
    %cst_79 = arith.constant dense<0.000000e+00> : vector<1x4xf32>
    %320 = tpu.matmul %318, %319, %cst_79 {dimension_numbers = #tpu.dot_dimension_numbers<[1], [0], [0], [1], [0, 0, 1, 1], [], []>} : vector<1x32xf32>, vector<32x4xf32>, vector<1x4xf32> -> vector<1x4xf32>
    %321 = vector.extract_strided_slice %1 {offsets = [0, 304], sizes = [1, 4], strides = [1, 1]} : vector<1x308xf32> to vector<1x4xf32>
    %322 = arith.addf %320, %321 : vector<1x4xf32>
    %c0_80 = arith.constant 0 : index
    %c0_81 = arith.constant 0 : index
    %c0_82 = arith.constant 0 : index
    %323 = vector.load %arg16[%c0_80, %c0_81, %c0_82] : memref<1x1x4xf32, #tpu.memory_space<vmem>>, vector<1x1x4xf32>
    %324 = vector.shape_cast %323 : vector<1x1x4xf32> to vector<1x4xf32>
    %325 = vector.shape_cast %322 : vector<1x4xf32> to vector<1x1x4xf32>
    tpu.vector_store %arg16[%c0_80, %c0_81, %c0_82], %325 {strides = array<i32>} : memref<1x1x4xf32, #tpu.memory_space<vmem>>, vector<1x1x4xf32>,
    %c0_83 = arith.constant 0 : index
    %c0_84 = arith.constant 0 : index
    %c0_85 = arith.constant 0 : index
    %326 = vector.load %arg17[%c0_83, %c0_84, %c0_85] : memref<1x1x32xf32, #tpu.memory_space<vmem>>, vector<1x1x32xf32>
    %327 = vector.shape_cast %326 : vector<1x1x32xf32> to vector<1x32xf32>
    %328 = vector.shape_cast %284 : vector<1x32xf32> to vector<1x1x32xf32>
    tpu.vector_store %arg17[%c0_83, %c0_84, %c0_85], %328 {strides = array<i32>} : memref<1x1x32xf32, #tpu.memory_space<vmem>>, vector<1x1x32xf32>,
    return
  }
  func.func @transform_0(%arg0: i32) -> (i32, i32, i32) {
    %c0_i32 = arith.constant 0 : i32
    %c0_i32_0 = arith.constant 0 : i32
    %c0_i32_1 = arith.constant 0 : i32
    return %arg0, %c0_i32, %c0_i32_0 : i32, i32, i32
  }
  func.func @transform_1(%arg0: i32) -> (i32, i32) {
    %c0_i32 = arith.constant 0 : i32
    %c0_i32_0 = arith.constant 0 : i32
    %c0_i32_1 = arith.constant 0 : i32
    return %c0_i32, %c0_i32_0 : i32, i32
  }
  func.func @transform_2(%arg0: i32) -> (i32, i32) {
    %c0_i32 = arith.constant 0 : i32
    %c0_i32_0 = arith.constant 0 : i32
    %c0_i32_1 = arith.constant 0 : i32
    return %c0_i32, %c0_i32_0 : i32, i32
  }
  func.func @transform_3(%arg0: i32) -> (i32, i32) {
    %c0_i32 = arith.constant 0 : i32
    %c0_i32_0 = arith.constant 0 : i32
    %c0_i32_1 = arith.constant 0 : i32
    return %c0_i32, %c0_i32_0 : i32, i32
  }
  func.func @transform_4(%arg0: i32) -> (i32, i32) {
    %c0_i32 = arith.constant 0 : i32
    %c0_i32_0 = arith.constant 0 : i32
    %c0_i32_1 = arith.constant 0 : i32
    return %c0_i32, %c0_i32_0 : i32, i32
  }
  func.func @transform_5(%arg0: i32) -> (i32, i32) {
    %c0_i32 = arith.constant 0 : i32
    %c0_i32_0 = arith.constant 0 : i32
    %c0_i32_1 = arith.constant 0 : i32
    return %c0_i32, %c0_i32_0 : i32, i32
  }
  func.func @transform_6(%arg0: i32) -> (i32, i32) {
    %c0_i32 = arith.constant 0 : i32
    %c0_i32_0 = arith.constant 0 : i32
    %c0_i32_1 = arith.constant 0 : i32
    return %c0_i32, %c0_i32_0 : i32, i32
  }
  func.func @transform_7(%arg0: i32) -> (i32, i32) {
    %c0_i32 = arith.constant 0 : i32
    %c0_i32_0 = arith.constant 0 : i32
    %c0_i32_1 = arith.constant 0 : i32
    return %c0_i32, %c0_i32_0 : i32, i32
  }
  func.func @transform_8(%arg0: i32) -> (i32, i32) {
    %c0_i32 = arith.constant 0 : i32
    %c0_i32_0 = arith.constant 0 : i32
    %c0_i32_1 = arith.constant 0 : i32
    return %c0_i32, %c0_i32_0 : i32, i32
  }
  func.func @transform_9(%arg0: i32) -> (i32, i32) {
    %c0_i32 = arith.constant 0 : i32
    %c0_i32_0 = arith.constant 0 : i32
    %c0_i32_1 = arith.constant 0 : i32
    return %c0_i32, %c0_i32_0 : i32, i32
  }
  func.func @transform_10(%arg0: i32) -> (i32, i32) {
    %c0_i32 = arith.constant 0 : i32
    %c0_i32_0 = arith.constant 0 : i32
    %c0_i32_1 = arith.constant 0 : i32
    return %c0_i32, %c0_i32_0 : i32, i32
  }
  func.func @transform_11(%arg0: i32) -> (i32, i32) {
    %c0_i32 = arith.constant 0 : i32
    %c0_i32_0 = arith.constant 0 : i32
    %c0_i32_1 = arith.constant 0 : i32
    return %c0_i32, %c0_i32_0 : i32, i32
  }
  func.func @transform_12(%arg0: i32) -> (i32, i32) {
    %c0_i32 = arith.constant 0 : i32
    %c0_i32_0 = arith.constant 0 : i32
    %c0_i32_1 = arith.constant 0 : i32
    return %c0_i32, %c0_i32_0 : i32, i32
  }
  func.func @transform_13(%arg0: i32) -> (i32, i32) {
    %c0_i32 = arith.constant 0 : i32
    %c0_i32_0 = arith.constant 0 : i32
    %c0_i32_1 = arith.constant 0 : i32
    return %c0_i32, %c0_i32_0 : i32, i32
  }
  func.func @transform_14(%arg0: i32) -> (i32, i32) {
    %c0_i32 = arith.constant 0 : i32
    %c0_i32_0 = arith.constant 0 : i32
    %c0_i32_1 = arith.constant 0 : i32
    return %c0_i32, %c0_i32_0 : i32, i32
  }
  func.func @transform_15(%arg0: i32) -> (i32, i32, i32) {
    %c0_i32 = arith.constant 0 : i32
    %c0_i32_0 = arith.constant 0 : i32
    %c0_i32_1 = arith.constant 0 : i32
    return %arg0, %c0_i32, %c0_i32_0 : i32, i32, i32
  }
  func.func @transform_16(%arg0: i32) -> (i32, i32, i32) {
    %c0_i32 = arith.constant 0 : i32
    %c0_i32_0 = arith.constant 0 : i32
    %c0_i32_1 = arith.constant 0 : i32
    return %arg0, %c0_i32, %c0_i32_0 : i32, i32, i32
  }
}

</mosaic_0001>

<bundles_post_ra>
// kernel: _lambda_.1
= control target key start
LH: loop header
LB: loop body
LE: loop exit
PB: predicated region body
PF: predicated region fallthrough
CT: control target
= control target key end

     0   :  { %s12515_s0 = inlined_call_operand.vmem [shape: f32[2,1,1024], index: 0, kind: input, shape index: {}]   ;;  %s12516_s1 = inlined_call_operand.hbm [shape: f32[32,65], index: 1, kind: input, shape index: {}]   ;;  %s12517_s2 = inlined_call_operand.vmem [shape: f32[48,32], index: 2, kind: input, shape index: {}]   ;;  %s12518_s3 = inlined_call_operand.hbm [shape: f32[48,896], index: 3, kind: input, shape index: {}]   ;;  %s12519_s4 = inlined_call_operand.hbm [shape: f32[24,48], index: 4, kind: input, shape index: {}]   ;;  %s12520_s5 = inlined_call_operand.hbm [shape: f32[24,128], index: 5, kind: input, shape index: {}]   ;;  %s12521_s6 = inlined_call_operand.hbm [shape: f32[24,72], index: 6, kind: input, shape index: {}]   ;;  %s12522_s7 = inlined_call_operand.hbm [shape: f32[24,24], index: 7, kind: input, shape index: {}]   ;;  %s12523_s8 = inlined_call_operand.hbm [shape: f32[24,72], index: 8, kind: input, shape index: {}]   ;;  %s12524_s9 = inlined_call_operand.hbm [shape: f32[24,72], index: 9, kind: input, shape index: {}]   ;;  %s12525_s10 = inlined_call_operand.hbm [shape: f32[24,32], index: 10, kind: input, shape index: {}]   ;;  %s12526_s11 = inlined_call_operand.hbm [shape: f32[32,32], index: 11, kind: input, shape index: {}]   ;;  %s12527_s12 = inlined_call_operand.vmem [shape: f32[32,4], index: 12, kind: input, shape index: {}]   ;;  %s12528_s13 = inlined_call_operand.hbm [shape: f32[304,1], index: 13, kind: input, shape index: {}]   ;;  %s12529_s14 = inlined_call_operand.hbm [shape: f32[1,308], index: 14, kind: input, shape index: {}]   ;;  %s12530_s15 = inlined_call_operand.hbm [shape: f32[2,1,4], index: 15, kind: output, shape index: {0}]   ;;  %s12531_s16 = inlined_call_operand.hbm [shape: f32[2,1,32], index: 16, kind: output, shape index: {1}]  }
   0x1   :  { %12610 = sst [smem:[#allocation72_spill]] %s12515_s0 }
   0x2   :  { %12611 = sst [smem:[#allocation73_spill]] %s12516_s1 }
   0x3   :  { %12612 = sst [smem:[#allocation74_spill]] %s12530_s15 }
   0x4   :  { %12613 = sst [smem:[#allocation75_spill]] %s12531_s16 }
   0x5   :  { %22 = vsyncpa [#allocation3], 0 }
   0x6   :  { %23 = vsyncpa [#allocation6], 0 }
   0x7   :  { %24 = vsyncpa [#allocation9], 0 }
   0x8   :  { %25 = vsyncpa [#allocation12], 0 }
   0x9   :  { %26 = vsyncpa [#allocation15], 0 }
   0xa   :  { %27 = vsyncpa [#allocation18], 0 }
   0xb   :  { %28 = vsyncpa [#allocation21], 0 }
   0xc   :  { %29 = vsyncpa [#allocation4], 0 }
   0xd   :  { %31 = vsyncpa [#allocation4 + $0x1], 0 }
   0xe   :  { %32 = vsyncpa [#allocation24], 0 }
   0xf   :  { %34 = vsyncpa [#allocation24 + $0x1], 0  ;;  %s8983_s21 = smov 0   ;;  %s8985_s22 = smov 0  }
  0x10   :  { %s8987_s23 = smov 0   ;;  %s8989_s24 = smov 0  }
  0x11 LB: > { %12614 = sst [smem:[#allocation34_spill]] %s8837_s21  ;;  %s9004_s25 = sadd.s32 4294967295, %s8849_s24   ;;  %s8849_s24 = sphi %s8989_s24, %s12797_s24   ;;  %s8845_s23 = sphi %s8987_s23, %s12799_s23   ;;  %s8841_s22 = sphi %s8985_s22, %s12801_s22   ;;  %s8837_s21 = sphi %s8983_s21, %s12800_s21  }
  0x12   : > { %12615 = sst [smem:[#allocation35_spill]] %s8845_s23  ;;  %s6738_s26 = sadd.s32 4294967294, %s8849_s24  }
  0x13   : > { %12616 = sst [smem:[#allocation36_spill]] %s8849_s24  ;;  %s9008_s27 = sadd.s32 1, %s8849_s24  }
  0x14   : > { %12617 = sst [smem:[#allocation37_spill]] %s9008_s27  ;;  %s367_s28 = sadd.s32 1, %s8845_s23 }
  0x15   : > { %s364_s29 = ssub.s32 %s8849_s24, %s9008_s27  ;;  %p377_p0 = scmp.ne.s32.totalorder %s8845_s23, %s8841_s22 }
  0x16   : > { %p365_p1 = scmp.eq.s32.totalorder %s364_s29, 0  ;;  %p378_p2 = scmp.eq.s32.totalorder %s9004_s25, 1 }
  0x17   : > { %p383_p3 = scmp.ne.s32.totalorder %s8841_s22, %s8837_s21  ;;  %p384_p4 = scmp.eq.s32.totalorder %s6738_s26, 1 }
  0x18   : > { %s9019_s30 = scalar_select %p365_p1, %s8845_s23, %s367_s28  }
  0x19   : > { %p9021_p5 = por %p378_p2, %p377_p0  ;;  %p9025_p6 = por %p384_p4, %p383_p3 }
  0x1a   : > { %12618 = sst [smem:[#allocation38_spill]] %s9019_s30  ;;  %p6739_p7 = scmp.ge.s32.totalorder %s8849_s24, 1 }
  0x1b   : > { %s12620_s17 = scalar_select %p9025_p6, 1, 0 }
  0x1c   : > { %p417_p8 = scmp.lt.s32.totalorder %s8849_s24, 3  ;;  %p12540_p9 = scmp.eq.s32.totalorder %s9004_s25, 0 }
  0x1d   : > { %12621 = sst [smem:[#allocation39_spill]] %s12620_s17  ;;  %s8851_s19 = smov [#allocation5]  }
  0x1e   : > { %p9032_p10 = pnand %p6739_p7, %p417_p8  ;;  %s445_s20 = sshll.u32 %s8851_s19, 4  ;;  %s446_s20 = int_to_ptr.vmem [resolvable:$true] %s445_s20 }
  0x1f   : > { %s8852_s28 = smov [#allocation8]   ;;  %s8430_s23 = scalar_lea.vmem %s446_s20, 5376 }
  0x20   : > { %p7918_p11 = pneg %p9032_p10  ;;  %s471_s29 = sshll.u32 %s8852_s28, 4  ;;  %s472_s29 = int_to_ptr.vmem [resolvable:$true] %s471_s29 }
  0x21   : > { %p8431_p0 = scmp.ne.s32.totalorder %s446_s20, %s8430_s23  ;;  %p8438_p3 = scmp.lt.s32.totalorder %s446_s20, %s446_s20 }
  0x22   : > { %p9040_p12 = pnand %p12540_p9, %p7918_p11  ;;  %p8439_p4 = scmp.lt.s32.totalorder %s8430_s23, %s8430_s23 }
  0x24   : > { %p9046_p13 = pneg %p9040_p12  ;;  %p8440_p7 = por %p8439_p4, %p8438_p3 }
  0x26   : > { %p8433_p1 = pnand %p8431_p0, %p9046_p13 }
  0x28   : > { %p8434_p2 = pneg %p8433_p1 }
  0x2a   : > { %p8441_p8 = pnand %p8440_p7, %p8434_p2 }
  0x2c   : > { %8444 = shalt.err (!%p8441_p8)
}
  0x2d   : > { %s8853_s19 = smov 896   ;;  %s8854_s28 = smov 56  }
  0x2e   : > { %7924 = dma.hbm_to_vmem [thread:$0]  (!%p9040_p12), %s12518_s3, 5376, %s446_s20, [#allocation6], %s8853_s19, %s8853_s19, %s8854_s28  }
  0x2f   : > { %s8855_s21 = smov [#allocation11]   ;;  %s8456_s15 = scalar_lea.vmem %s472_s29, 384 }
  0x30   : > { %s497_s24 = sshll.u32 %s8855_s21, 4  ;;  %p8457_p11 = scmp.ne.s32.totalorder %s472_s29, %s8456_s15  ;;  %s498_s24 = int_to_ptr.vmem [resolvable:$true] %s497_s24 }
  0x31   : > { %p8464_p3 = scmp.lt.s32.totalorder %s472_s29, %s472_s29  ;;  %p8465_p2 = scmp.lt.s32.totalorder %s8456_s15, %s8456_s15 }
  0x32   : > { %p8459_p0 = pnand %p8457_p11, %p9046_p13 }
  0x33   : > { %p8466_p4 = por %p8465_p2, %p8464_p3 }
  0x34   : > { %p8460_p1 = pneg %p8459_p0 }
  0x36   : > { %p8467_p7 = pnand %p8466_p4, %p8460_p1 }
  0x38   : > { %8470 = shalt.err (!%p8467_p7)
}
  0x39   : > { %s8856_s23 = smov 128   ;;  %s8857_s16 = smov 8  }
  0x3a   : > { %7930 = dma.hbm_to_vmem [thread:$0]  (!%p9040_p12), %s12520_s5, 384, %s472_s29, [#allocation9], %s8856_s23, %s8856_s23, %s8857_s16  }
  0x3b   : > { %s8482_s17 = scalar_lea.vmem %s498_s24, 384  ;;  %p8490_p1 = scmp.lt.s32.totalorder %s498_s24, %s498_s24 }
  0x3c   : > { %p8483_p8 = scmp.ne.s32.totalorder %s498_s24, %s8482_s17  ;;  %p8491_p3 = scmp.lt.s32.totalorder %s8482_s17, %s8482_s17 }
  0x3e   : > { %p8485_p11 = pnand %p8483_p8, %p9046_p13  ;;  %p8492_p2 = por %p8491_p3, %p8490_p1 }
  0x40   : > { %p8486_p0 = pneg %p8485_p11 }
  0x42   : > { %p8493_p4 = pnand %p8492_p2, %p8486_p0 }
  0x44   : > { %8496 = shalt.err (!%p8493_p4)
}
  0x45   : > { %7936 = dma.hbm_to_vmem [thread:$0]  (!%p9040_p12), %s12522_s7, 384, %s498_s24, [#allocation12], %s8856_s23, %s8856_s23, %s8857_s16  }
  0x46   : > { %s8858_s29 = smov [#allocation14]   ;;  %s8859_s28 = smov [#allocation17]  }
  0x47   : > { %s523_s19 = sshll.u32 %s8858_s29, 4  ;;  %s549_s27 = sshll.u32 %s8859_s28, 4  ;;  %s524_s19 = int_to_ptr.vmem [resolvable:$true] %s523_s19  ;;  %s550_s27 = int_to_ptr.vmem [resolvable:$true] %s549_s27 }
  0x48   : > { %s8508_s21 = scalar_lea.vmem %s524_s19, 384  ;;  %p8516_p0 = scmp.lt.s32.totalorder %s524_s19, %s524_s19 }
  0x49   : > { %p8509_p7 = scmp.ne.s32.totalorder %s524_s19, %s8508_s21  ;;  %p8517_p1 = scmp.lt.s32.totalorder %s8508_s21, %s8508_s21 }
  0x4b   : > { %p8511_p8 = pnand %p8509_p7, %p9046_p13  ;;  %p8518_p3 = por %p8517_p1, %p8516_p0 }
  0x4d   : > { %p8512_p11 = pneg %p8511_p8 }
  0x4f   : > { %p8519_p2 = pnand %p8518_p3, %p8512_p11 }
  0x51   : > { %8522 = shalt.err (!%p8519_p2)
}
  0x52   : > { %7942 = dma.hbm_to_vmem [thread:$0]  (!%p9040_p12), %s12524_s9, 384, %s524_s19, [#allocation15], %s8856_s23, %s8856_s23, %s8857_s16  }
  0x53   : > { %s8534_s15 = scalar_lea.vmem %s550_s27, 512  ;;  %p8542_p9 = scmp.lt.s32.totalorder %s550_s27, %s550_s27 }
  0x54   : > { %p8535_p4 = scmp.ne.s32.totalorder %s550_s27, %s8534_s15  ;;  %p8543_p0 = scmp.lt.s32.totalorder %s8534_s15, %s8534_s15 }
  0x56   : > { %p8537_p7 = pnand %p8535_p4, %p9046_p13  ;;  %p8544_p11 = por %p8543_p0, %p8542_p9 }
  0x58   : > { %p8538_p8 = pneg %p8537_p7 }
  0x5a   : > { %p8545_p1 = pnand %p8544_p11, %p8538_p8 }
  0x5c   : > { %8548 = shalt.err (!%p8545_p1)
}
  0x5d   : > { %7948 = dma.hbm_to_vmem [thread:$0]  (!%p9040_p12), %s12526_s11, 512, %s550_s27, [#allocation18], %s8856_s23, %s8856_s23, %s8857_s16  }
  0x5e   : > { %s8860_s19 = smov [#allocation2]   ;;  %s8861_s21 = smov [#allocation7]  }
  0x5f   : > { %s429_s28 = sshll.u32 %s8860_s19, 4  ;;  %s458_s24 = sshll.u32 %s8861_s21, 4  ;;  %s430_s28 = int_to_ptr.vmem [resolvable:$true] %s429_s28  ;;  %s459_s24 = int_to_ptr.vmem [resolvable:$true] %s458_s24 }
  0x60   : > { %s8560_s17 = scalar_lea.vmem %s430_s28, 512  ;;  %p8568_p4 = scmp.lt.s32.totalorder %s430_s28, %s430_s28 }
  0x61   : > { %p8561_p3 = scmp.ne.s32.totalorder %s430_s28, %s8560_s17  ;;  %p8569_p7 = scmp.lt.s32.totalorder %s8560_s17, %s8560_s17 }
  0x63   : > { %p8563_p9 = pnand %p8561_p3, %p9046_p13  ;;  %p8570_p8 = por %p8569_p7, %p8568_p4 }
  0x65   : > { %p8564_p2 = pneg %p8563_p9 }
  0x67   : > { %p8571_p0 = pnand %p8570_p8, %p8564_p2 }
  0x69   : > { %8574 = shalt.err (!%p8571_p0)
}
  0x6a   : > { %s12625_s1 = sld [smem:[#allocation73_spill]]  ;;  %s8586_s20 = scalar_lea.vmem %s459_s24, 384 }
  0x6b   : > { %p8587_p11 = scmp.ne.s32.totalorder %s459_s24, %s8586_s20  ;;  %p8594_p9 = scmp.lt.s32.totalorder %s459_s24, %s459_s24 }
  0x6c   : > { %p8595_p4 = scmp.lt.s32.totalorder %s8586_s20, %s8586_s20 }
  0x6d   : > { %p8589_p1 = pnand %p8587_p11, %p9046_p13 }
  0x6e   : > { %p8596_p2 = por %p8595_p4, %p8594_p9 }
  0x6f   : > { %p8590_p3 = pneg %p8589_p1 }
  0x70   : > { %7921 = dma.hbm_to_vmem [thread:$0]  (!%p9040_p12), %s12625_s1, 512, %s430_s28, [#allocation3], %s8856_s23, %s8856_s23, %s8857_s16  }
  0x71   : > { %p8597_p7 = pnand %p8596_p2, %p8590_p3 }
  0x73   : > { %8600 = shalt.err (!%p8597_p7)
}
  0x74   : > { %7927 = dma.hbm_to_vmem [thread:$0]  (!%p9040_p12), %s12519_s4, 384, %s459_s24, [#allocation6], %s8856_s23, %s8856_s23, %s8857_s16  }
  0x75   : > { %s8862_s28 = smov [#allocation10]   ;;  %s8863_s17 = smov [#allocation13]  }
  0x76   : > { %s484_s21 = sshll.u32 %s8862_s28, 4  ;;  %s510_s27 = sshll.u32 %s8863_s17, 4  ;;  %s485_s21 = int_to_ptr.vmem [resolvable:$true] %s484_s21  ;;  %s511_s27 = int_to_ptr.vmem [resolvable:$true] %s510_s27 }
  0x77   : > { %s8612_s15 = scalar_lea.vmem %s485_s21, 384  ;;  %p8620_p1 = scmp.lt.s32.totalorder %s485_s21, %s485_s21 }
  0x78   : > { %p8613_p8 = scmp.ne.s32.totalorder %s485_s21, %s8612_s15  ;;  %p8621_p3 = scmp.lt.s32.totalorder %s8612_s15, %s8612_s15 }
  0x7a   : > { %p8615_p0 = pnand %p8613_p8, %p9046_p13  ;;  %p8622_p9 = por %p8621_p3, %p8620_p1 }
  0x7c   : > { %p8616_p11 = pneg %p8615_p0 }
  0x7e   : > { %p8623_p4 = pnand %p8622_p9, %p8616_p11 }
  0x80   : > { %8626 = shalt.err (!%p8623_p4)
}
  0x81   : > { %7933 = dma.hbm_to_vmem [thread:$0]  (!%p9040_p12), %s12521_s6, 384, %s485_s21, [#allocation9], %s8856_s23, %s8856_s23, %s8857_s16  }
  0x82   : > { %s8638_s29 = scalar_lea.vmem %s511_s27, 384  ;;  %p8646_p0 = scmp.lt.s32.totalorder %s511_s27, %s511_s27 }
  0x83   : > { %p8639_p2 = scmp.ne.s32.totalorder %s511_s27, %s8638_s29  ;;  %p8647_p1 = scmp.lt.s32.totalorder %s8638_s29, %s8638_s29 }
  0x85   : > { %p8641_p7 = pnand %p8639_p2, %p9046_p13  ;;  %p8648_p11 = por %p8647_p1, %p8646_p0 }
  0x87   : > { %p8642_p8 = pneg %p8641_p7 }
  0x89   : > { %p8649_p3 = pnand %p8648_p11, %p8642_p8 }
  0x8b   : > { %8652 = shalt.err (!%p8649_p3)
}
  0x8c   : > { %7939 = dma.hbm_to_vmem [thread:$0]  (!%p9040_p12), %s12523_s8, 384, %s511_s27, [#allocation12], %s8856_s23, %s8856_s23, %s8857_s16  }
  0x8d   : > { %s8864_s21 = smov [#allocation16]   ;;  %s8865_s15 = smov [#allocation19]  }
  0x8e   : > { %s536_s17 = sshll.u32 %s8864_s21, 4  ;;  %s565_s24 = sshll.u32 %s8865_s15, 4  ;;  %s537_s17 = int_to_ptr.vmem [resolvable:$true] %s536_s17  ;;  %s566_s24 = int_to_ptr.vmem [resolvable:$true] %s565_s24 }
  0x8f   : > { %s8664_s20 = scalar_lea.vmem %s537_s17, 384  ;;  %p8672_p7 = scmp.lt.s32.totalorder %s537_s17, %s537_s17 }
  0x90   : > { %p8665_p9 = scmp.ne.s32.totalorder %s537_s17, %s8664_s20  ;;  %p8673_p8 = scmp.lt.s32.totalorder %s8664_s20, %s8664_s20 }
  0x92   : > { %p8667_p4 = pnand %p8665_p9, %p9046_p13  ;;  %p8674_p0 = por %p8673_p8, %p8672_p7 }
  0x94   : > { %p8668_p2 = pneg %p8667_p4 }
  0x96   : > { %p8675_p1 = pnand %p8674_p0, %p8668_p2 }
  0x98   : > { %8678 = shalt.err (!%p8675_p1)
}
  0x99   : > { %7945 = dma.hbm_to_vmem [thread:$0]  (!%p9040_p12), %s12525_s10, 384, %s537_s17, [#allocation15], %s8856_s23, %s8856_s23, %s8857_s16  }
  0x9a   : > { %s8690_s19 = scalar_lea.vmem %s566_s24, 4864  ;;  %p8698_p4 = scmp.lt.s32.totalorder %s566_s24, %s566_s24 }
  0x9b   : > { %p8691_p11 = scmp.ne.s32.totalorder %s566_s24, %s8690_s19  ;;  %p8699_p7 = scmp.lt.s32.totalorder %s8690_s19, %s8690_s19 }
  0x9d   : > { %p8693_p3 = pnand %p8691_p11, %p9046_p13  ;;  %p8700_p2 = por %p8699_p7, %p8698_p4 }
  0x9f   : > { %p8694_p9 = pneg %p8693_p3 }
  0xa1   : > { %p8701_p8 = pnand %p8700_p2, %p8694_p9 }
  0xa3   : > { %8704 = shalt.err (!%p8701_p8)
}
  0xa4   : > { %7951 = dma.hbm_to_vmem [thread:$0]  (!%p9040_p12), %s12528_s13, 4864, %s566_s24, [#allocation18], %s8856_s23, %s8856_s23, %s8857_s16  }
  0xa5   : > { %s8866_s17 = smov [#allocation20]  }
  0xa6   : > { %s579_s15 = sshll.u32 %s8866_s17, 4  ;;  %s580_s15 = int_to_ptr.vmem [resolvable:$true] %s579_s15 }
  0xa7   : > { %s8716_s20 = scalar_lea.vmem %s580_s15, 48  ;;  %s8723_s27 = scalar_lea.vmem %s580_s15, 64 }
  0xa8   : > { %p8717_p0 = scmp.ne.s32.totalorder %s580_s15, %s8716_s20  ;;  %p8724_p3 = scmp.lt.s32.totalorder %s580_s15, %s580_s15 }
  0xa9   : > { %p8725_p9 = scmp.lt.s32.totalorder %s8723_s27, %s8716_s20 }
  0xaa   : > { %p8719_p1 = pnand %p8717_p0, %p9046_p13 }
  0xab   : > { %p8726_p4 = por %p8725_p9, %p8724_p3 }
  0xac   : > { %p8720_p11 = pneg %p8719_p1 }
  0xae   : > { %p8727_p7 = pnand %p8726_p4, %p8720_p11 }
  0xb0   : > { %8730 = shalt.err (!%p8727_p7)
}
  0xb1   : > { %7954 = dma.hbm_to_vmem [thread:$0]  (!%p9040_p12), %s12529_s14, 48, %s580_s15, [#allocation21]  }
  0xb2   : > { %599 = sbr.rel (%p9032_p10) target bundleno = 5616 (0x15f0), region = 80 }
  0xb7   : > { %p12626_p2 = scmp.eq.s32.totalorder %s9004_s25, 0 }
  0xb9   : > { %8800 = dma.done.wait (%p12626_p2), [#allocation3], 512   ;;  %p12627_p13 = pmov %p12626_p2 }
  0xba   : > { %p12628_p8 = pmov %p12626_p2 }
  0xbb   : > { %8802 = vsyncadd (%p12627_p13), [#allocation3], 4294966784 }
  0xbc   : > { %8804 = dma.done.wait (%p12628_p8), [#allocation6], 5760   ;;  %p12629_p0 = pmov %p12626_p2 }
  0xbe   : > { %8806 = vsyncadd (%p12629_p0), [#allocation6], 4294961536  ;;  %p12630_p1 = pmov %p12629_p0 }
  0xbf   : > { %p12631_p12 = pmov %p12629_p0 }
  0xc0   : > { %8808 = dma.done.wait (%p12630_p1), [#allocation9], 768  }
  0xc1   : > { %8810 = vsyncadd (%p12631_p12), [#allocation9], 4294966528  ;;  %p12632_p10 = pmov %p12629_p0 }
  0xc2   : > { %p12633_p11 = pmov %p12629_p0 }
  0xc3   : > { %8812 = dma.done.wait (%p12632_p10), [#allocation12], 768  }
  0xc4   : > { %8814 = vsyncadd (%p12633_p11), [#allocation12], 4294966528  ;;  %p12634_p3 = pmov %p12629_p0 }
  0xc5   : > { %p12635_p9 = pmov %p12629_p0 }
  0xc6   : > { %8816 = dma.done.wait (%p12634_p3), [#allocation15], 768  }
  0xc7   : > { %8818 = vsyncadd (%p12635_p9), [#allocation15], 4294966528  ;;  %p12636_p4 = pmov %p12629_p0 }
  0xc8   : > { %p12637_p7 = pmov %p12629_p0 }
  0xc9   : > { %8820 = dma.done.wait (%p12636_p4), [#allocation18], 5376  }
  0xca   : > { %8822 = vsyncadd (%p12637_p7), [#allocation18], 4294961920  ;;  %p12638_p2 = pmov %p12629_p0 }
  0xcb   : > { %p12639_p13 = pmov %p12629_p0 }
  0xcc   : > { %8824 = dma.done.wait (%p12638_p2), [#allocation21], 48  }
  0xcd   : > { %8826 = vsyncadd (%p12639_p13), [#allocation21], 4294967248  ;;  %p695_p8 = scmp.lt.s32.totalorder %s9004_s25, 1  ;;  %v12546_v0 = vlaneseq  ;;  %s12641_s23 = sld [smem:[#allocation72_spill]]  ;;  %vm12565_vm0 = vcmask 982016   ;;  %vm12560_vm1 = vcmask 973824  }
  0xce   : > { %s8867_s28 = smov 120   ;;  %s8868_s21 = smov 119   ;;  %vm1244_vm2 = vcmask 1040384   ;;  %vm12566_vm3 = vcmask 965632   ;;  %vm1252_vm4 = vcmask 1041408   ;;  %vm12567_vm5 = vcmask 1039360  }
  0xcf   : > { %s696_s16 = scalar_select %p695_p8, %s9004_s25, 1  ;;  %v9197_v1 = vshrl.u32 %v12546_v0, 7  ;;  %vm1105_vm6 = vcmask 957440   ;;  %vm1260_vm7 = vcmask 1042432   ;;  %vm12569_vm8 = vcmask 1031168  }
  0xd0   : > { %s8869_s17 = smov 118   ;;  %s8870_s15 = smov 127   ;;  %vm12568_vm9 = vcmask 949248   ;;  %vm1268_vm10 = vcmask 1043456   ;;  %vm12570_vm11 = vcmask 1022976   ;;  %vm1167_vm12 = vcmask 941056  }
  0xd1   : > { %12640 = vst [vmem:[#allocation40_spill] sm:$0xff] %v9197_v1  ;;  %s6766_s30 = sshll.u32 %s696_s16, 3  ;;  %v754_v2 = vsub.s32 3, %v9197_v1  ;;  %v12547_v3 = vsub.s32 1, %v9197_v1  ;;  %v762_v4 = vsub.s32 5, %v9197_v1  ;;  %v758_v5 = vsub.s32 4, %v9197_v1 }
  0xd2   : > { %v12545_v6 = vsub.s32 2, %v9197_v1  ;;  %v12548_v13 = vsub.s32 0, %v9197_v1  ;;  %s8871_s20 = smov 117   ;;  %s8872_s27 = smov 126   ;;  %v777_v15 = vsub.s32 7, %v9197_v1  ;;  %v766_v16 = vsub.s32 6, %v9197_v1 }
  0xd3   : > { %s698_s24 = scalar_lea.vmem %s12641_s23, %s6766_s30  ;;  %s8873_s29 = smov 116   ;;  %vm1198_vm13 = vcmask 932864   ;;  %vm12574_vm15 = vcmask 1014784   ;;  %vm1229_vm14 = vcmask 924672  }
  0xd4   : > { %v738_v7 = vld [vmem:[%s698_s24] sm:$0xff]  ;;  %s12543_s19 = smov 125   ;;  %s8875_s16 = smov 115  }
  0xd5   : > { %v9207_v8 = vrot.slane %v738_v7, %v754_v2  ;;  %v9211_v9 = vrot.slane %v738_v7, %v12547_v3  ;;  %v9213_v10 = vrot.slane %v738_v7, %v762_v4  ;;  %v9215_v11 = vrot.slane %v738_v7, %v758_v5  ;;  %s8876_s30 = smov 124   ;;  %s12541_s18 = smov 114  }
  0xd6   : > { %v9223_v12 = vrot.slane %v738_v7, %v12545_v6  ;;  %v9236_v14 = vrot.slane %v738_v7, %v12548_v13  ;;  %v9280_v17 = vrot.slane %v738_v7, %v777_v15  ;;  %v9282_v18 = vrot.slane %v738_v7, %v766_v16  ;;  %s8878_s26 = smov 123   ;;  %s8879_s23 = smov 113  }
  0xd7   : > { %12642 = vst [vmem:[#allocation41_spill] sm:$0xff] %v9207_v8  ;;  %12643 = vst [vmem:[#allocation42_spill] sm:$0xff] %v9213_v10  ;;  %1002 = vrot.lane.b32.xlu1 %v9207_v8, %s8867_s28  ;;  %998 = vrot.lane.b32.xlu0 %v9211_v9, %s8867_s28  ;;  %s8880_s24 = smov 122  }
  0xd8   : > { %12644 = vst [vmem:[#allocation43_spill] sm:$0xff] %v9215_v11 }
  0xdb   : > { %1029 = vrot.lane.b32.xlu1 %v9211_v9, %s8868_s21  ;;  %1000 = vrot.lane.b32.xlu0 %v9223_v12, %s8867_s28 }
  0xdf   : > { %1033 = vrot.lane.b32.xlu1 %v9207_v8, %s8868_s21  ;;  %1031 = vrot.lane.b32.xlu0 %v9223_v12, %s8868_s21 }
  0xe3   : > { %1027 = vrot.lane.b32.xlu1 %v9236_v14, %s8868_s21  ;;  %996 = vrot.lane.b32.xlu0 %v9236_v14, %s8867_s28 }
  0xe7   : > { %1062 = vrot.lane.b32.xlu1 %v9223_v12, %s8869_s17  ;;  %1060 = vrot.lane.b32.xlu0 %v9211_v9, %s8869_s17 }
  0xeb   : > { %781 = vrot.lane.b32.xlu1 %v9211_v9, %s8870_s15  ;;  %1064 = vrot.lane.b32.xlu0 %v9207_v8, %s8869_s17 }
  0xef   : > { %785 = vrot.lane.b32.xlu1 %v9207_v8, %s8870_s15  ;;  %783 = vrot.lane.b32.xlu0 %v9223_v12, %s8870_s15 }
  0xf3   : > { %1091 = vrot.lane.b32.xlu1 %v9211_v9, %s8871_s20  ;;  %1058 = vrot.lane.b32.xlu0 %v9236_v14, %s8869_s17 }
  0xf7   : > { %1095 = vrot.lane.b32.xlu1 %v9207_v8, %s8871_s20  ;;  %1093 = vrot.lane.b32.xlu0 %v9223_v12, %s8871_s20 }
  0xfb   : > { %812 = vrot.lane.b32.xlu1 %v9211_v9, %s8872_s27  ;;  %779 = vrot.lane.b32.xlu0 %v9236_v14, %s8870_s15 }
  0xff   : > { %816 = vrot.lane.b32.xlu1 %v9207_v8, %s8872_s27  ;;  %814 = vrot.lane.b32.xlu0 %v9223_v12, %s8872_s27 }
 0x103   : > { %1122 = vrot.lane.b32.xlu1 %v9211_v9, %s8873_s29  ;;  %1089 = vrot.lane.b32.xlu0 %v9236_v14, %s8871_s20 }
 0x107   : > { %1126 = vrot.lane.b32.xlu1 %v9207_v8, %s8873_s29  ;;  %1124 = vrot.lane.b32.xlu0 %v9223_v12, %s8873_s29 }
 0x10b   : > { %843 = vrot.lane.b32.xlu1 %v9211_v9, %s12543_s19  ;;  %810 = vrot.lane.b32.xlu0 %v9236_v14, %s8872_s27 }
 0x10f   : > { %847 = vrot.lane.b32.xlu1 %v9207_v8, %s12543_s19  ;;  %845 = vrot.lane.b32.xlu0 %v9223_v12, %s12543_s19 }
 0x113   : > { %1153 = vrot.lane.b32.xlu1 %v9211_v9, %s8875_s16  ;;  %1120 = vrot.lane.b32.xlu0 %v9236_v14, %s8873_s29 }
 0x117   : > { %1157 = vrot.lane.b32.xlu1 %v9207_v8, %s8875_s16  ;;  %1155 = vrot.lane.b32.xlu0 %v9223_v12, %s8875_s16 }
 0x11b   : > { %874 = vrot.lane.b32.xlu1 %v9211_v9, %s8876_s30  ;;  %841 = vrot.lane.b32.xlu0 %v9236_v14, %s12543_s19 }
 0x11f   : > { %878 = vrot.lane.b32.xlu1 %v9207_v8, %s8876_s30  ;;  %876 = vrot.lane.b32.xlu0 %v9223_v12, %s8876_s30 }
 0x123   : > { %1184 = vrot.lane.b32.xlu1 %v9211_v9, %s12541_s18  ;;  %1151 = vrot.lane.b32.xlu0 %v9236_v14, %s8875_s16 }
 0x127   : > { %1188 = vrot.lane.b32.xlu1 %v9207_v8, %s12541_s18  ;;  %1186 = vrot.lane.b32.xlu0 %v9223_v12, %s12541_s18 }
 0x12b   : > { %905 = vrot.lane.b32.xlu1 %v9211_v9, %s8878_s26  ;;  %872 = vrot.lane.b32.xlu0 %v9236_v14, %s8876_s30 }
 0x12f   : > { %909 = vrot.lane.b32.xlu1 %v9207_v8, %s8878_s26  ;;  %907 = vrot.lane.b32.xlu0 %v9223_v12, %s8878_s26 }
 0x133   : > { %1215 = vrot.lane.b32.xlu1 %v9211_v9, %s8879_s23  ;;  %1182 = vrot.lane.b32.xlu0 %v9236_v14, %s12541_s18  ;;  %s8881_s18 = smov 121  }
 0x137   : > { %1219 = vrot.lane.b32.xlu1 %v9207_v8, %s8879_s23  ;;  %1217 = vrot.lane.b32.xlu0 %v9223_v12, %s8879_s23 }
 0x13b   : > { %936 = vrot.lane.b32.xlu1 %v9211_v9, %s8880_s24  ;;  %903 = vrot.lane.b32.xlu0 %v9236_v14, %s8878_s26 }
 0x13f   : > { %940 = vrot.lane.b32.xlu1 %v9207_v8, %s8880_s24  ;;  %938 = vrot.lane.b32.xlu0 %v9223_v12, %s8880_s24 }
 0x143   : > { %934 = vrot.lane.b32.xlu1 %v9236_v14, %s8880_s24  ;;  %1213 = vrot.lane.b32.xlu0 %v9236_v14, %s8879_s23 }
 0x147   : > { %969 = vrot.lane.b32.xlu1 %v9223_v12, %s8881_s18  ;;  %967 = vrot.lane.b32.xlu0 %v9211_v9, %s8881_s18 }
 0x149   : > { %v9348_v19 = vpop.permute.xlu1 %1002  ;;  %v9350_v20 = vpop.permute.xlu0 %998 }
 0x14a   : > { %12645 = vst [vmem:[#allocation44_spill] sm:$0xff] %v9348_v19 }
 0x14b   : > { %965 = vrot.lane.b32.xlu1 %v9236_v14, %s8881_s18  ;;  %971 = vrot.lane.b32.xlu0 %v9207_v8, %s8881_s18 }
 0x14d   : > { %v9356_v21 = vpop.permute.xlu1 %1029  ;;  %v9358_v22 = vpop.permute.xlu0 %1000 }
 0x14f   : > { %1006 = vrot.lane.b32.xlu1 %v9213_v10, %s8867_s28  ;;  %1004 = vrot.lane.b32.xlu0 %v9215_v11, %s8867_s28 }
 0x151   : > { %v9364_v23 = vpop.permute.xlu1 %1033  ;;  %v9366_v24 = vpop.permute.xlu0 %1031 }
 0x152   : > { %12646 = vst [vmem:[#allocation45_spill] sm:$0xff] %v9364_v23  ;;  %v1045_v8 = vsel %vm12560_vm1, %v9356_v21, %v9366_v24 }
 0x153   : > { %1037 = vrot.lane.b32.xlu1 %v9213_v10, %s8868_s21  ;;  %1035 = vrot.lane.b32.xlu0 %v9215_v11, %s8868_s21 }
 0x155   : > { %v9372_v25 = vpop.permute.xlu1 %1027  ;;  %v9374_v26 = vpop.permute.xlu0 %996 }
 0x157   : > { %1068 = vrot.lane.b32.xlu1 %v9213_v10, %s8869_s17  ;;  %1066 = vrot.lane.b32.xlu0 %v9215_v11, %s8869_s17 }
 0x159   : > { %v9380_v27 = vpop.permute.xlu1 %1062  ;;  %v9382_v28 = vpop.permute.xlu0 %1060 }
 0x15b   : > { %789 = vrot.lane.b32.xlu1 %v9213_v10, %s8870_s15  ;;  %787 = vrot.lane.b32.xlu0 %v9215_v11, %s8870_s15 }
 0x15d   : > { %v9388_v29 = vpop.permute.xlu1 %781  ;;  %v9390_v30 = vpop.permute.xlu0 %1064 }
 0x15e   : > { %12647 = vst [vmem:[#allocation46_spill] sm:$0xff] %v9390_v30 }
 0x15f   : > { %1099 = vrot.lane.b32.xlu1 %v9213_v10, %s8871_s20  ;;  %1097 = vrot.lane.b32.xlu0 %v9215_v11, %s8871_s20 }
 0x161   : > { %v9396_v31 = vpop.permute.xlu1 %785  ;;  %v9398_v32 = vpop.permute.xlu0 %783 }
 0x162   : > { %12648 = vst [vmem:[#allocation47_spill] sm:$0xff] %v9396_v31 }
 0x163   : > { %820 = vrot.lane.b32.xlu1 %v9213_v10, %s8872_s27  ;;  %818 = vrot.lane.b32.xlu0 %v9215_v11, %s8872_s27 }
 0x165   : > { %v9404_v33 = vpop.permute.xlu1 %1091  ;;  %v9406_v34 = vpop.permute.xlu0 %1058 }
 0x167   : > { %1130 = vrot.lane.b32.xlu1 %v9213_v10, %s8873_s29  ;;  %1128 = vrot.lane.b32.xlu0 %v9215_v11, %s8873_s29 }
 0x169   : > { %v9412_v35 = vpop.permute.xlu1 %1095  ;;  %v9414_v36 = vpop.permute.xlu0 %1093 }
 0x16b   : > { %851 = vrot.lane.b32.xlu1 %v9213_v10, %s12543_s19  ;;  %849 = vrot.lane.b32.xlu0 %v9215_v11, %s12543_s19  ;;  %s12649_s19 = smov 114  }
 0x16d   : > { %v9420_v37 = vpop.permute.xlu1 %812  ;;  %v9422_v38 = vpop.permute.xlu0 %779 }
 0x16f   : > { %1161 = vrot.lane.b32.xlu1 %v9213_v10, %s8875_s16  ;;  %1159 = vrot.lane.b32.xlu0 %v9215_v11, %s8875_s16 }
 0x171   : > { %v9428_v39 = vpop.permute.xlu1 %816  ;;  %v9430_v40 = vpop.permute.xlu0 %814 }
 0x173   : > { %882 = vrot.lane.b32.xlu1 %v9213_v10, %s8876_s30  ;;  %880 = vrot.lane.b32.xlu0 %v9215_v11, %s8876_s30 }
 0x175   : > { %v9436_v41 = vpop.permute.xlu1 %1122  ;;  %v9438_v42 = vpop.permute.xlu0 %1089 }
 0x177   : > { %1192 = vrot.lane.b32.xlu1 %v9213_v10, %s12649_s19  ;;  %1190 = vrot.lane.b32.xlu0 %v9215_v11, %s12649_s19 }
 0x179   : > { %v9444_v43 = vpop.permute.xlu1 %1126  ;;  %v9446_v44 = vpop.permute.xlu0 %1124 }
 0x17b   : > { %913 = vrot.lane.b32.xlu1 %v9213_v10, %s8878_s26  ;;  %911 = vrot.lane.b32.xlu0 %v9215_v11, %s8878_s26 }
 0x17d   : > { %v9452_v45 = vpop.permute.xlu1 %843  ;;  %v9454_v46 = vpop.permute.xlu0 %810 }
 0x17f   : > { %1223 = vrot.lane.b32.xlu1 %v9213_v10, %s8879_s23  ;;  %1221 = vrot.lane.b32.xlu0 %v9215_v11, %s8879_s23 }
 0x181   : > { %v9460_v47 = vpop.permute.xlu1 %847  ;;  %v9462_v48 = vpop.permute.xlu0 %845 }
 0x183   : > { %944 = vrot.lane.b32.xlu1 %v9213_v10, %s8880_s24  ;;  %942 = vrot.lane.b32.xlu0 %v9215_v11, %s8880_s24 }
 0x185   : > { %v9468_v49 = vpop.permute.xlu1 %1153  ;;  %v9470_v50 = vpop.permute.xlu0 %1120 }
 0x187   : > { %975 = vrot.lane.b32.xlu1 %v9213_v10, %s8881_s18  ;;  %973 = vrot.lane.b32.xlu0 %v9215_v11, %s8881_s18 }
 0x189   : > { %v9476_v51 = vpop.permute.xlu1 %1157  ;;  %v9478_v52 = vpop.permute.xlu0 %1155 }
 0x18b   : > { %1010 = vrot.lane.b32.xlu1 %v9280_v17, %s8867_s28  ;;  %1008 = vrot.lane.b32.xlu0 %v9282_v18, %s8867_s28 }
 0x18d   : > { %v9484_v53 = vpop.permute.xlu1 %874  ;;  %v9486_v54 = vpop.permute.xlu0 %841 }
 0x18f   : > { %1041 = vrot.lane.b32.xlu1 %v9280_v17, %s8868_s21  ;;  %1039 = vrot.lane.b32.xlu0 %v9282_v18, %s8868_s21  ;;  %s12651_s21 = smov 125  }
 0x191   : > { %v9492_v55 = vpop.permute.xlu1 %878  ;;  %v9494_v56 = vpop.permute.xlu0 %876 }
 0x193   : > { %1072 = vrot.lane.b32.xlu1 %v9280_v17, %s8869_s17  ;;  %1070 = vrot.lane.b32.xlu0 %v9282_v18, %s8869_s17  ;;  %s8882_s17 = smov 64  }
 0x195   : > { %v9500_v57 = vpop.permute.xlu1 %1184  ;;  %v9502_v58 = vpop.permute.xlu0 %1151 }
 0x197   : > { %793 = vrot.lane.b32.xlu1 %v9280_v17, %s8870_s15  ;;  %791 = vrot.lane.b32.xlu0 %v9282_v18, %s8870_s15 }
 0x199   : > { %v9508_v59 = vpop.permute.xlu1 %1188  ;;  %v9510_v60 = vpop.permute.xlu0 %1186 }
 0x19b   : > { %1103 = vrot.lane.b32.xlu1 %v9280_v17, %s8871_s20  ;;  %1101 = vrot.lane.b32.xlu0 %v9282_v18, %s8871_s20  ;;  %s8883_s20 = smov 80  }
 0x19d   : > { %v9516_v61 = vpop.permute.xlu1 %905  ;;  %v9518_v62 = vpop.permute.xlu0 %872 }
 0x19e   : > { %12650 = vst [vmem:[#allocation48_spill] sm:$0xff] %v9518_v62  ;;  %v1013_v62 = vsel %vm12565_vm0, %v9374_v26, %v9350_v20  ;;  %v797_v26 = vsel %vm12567_vm5, %v9388_v29, %v9398_v32 }
 0x19f   : > { %824 = vrot.lane.b32.xlu1 %v9280_v17, %s8872_s27  ;;  %822 = vrot.lane.b32.xlu0 %v9282_v18, %s8872_s27  ;;  %s8884_s27 = smov 96  }
 0x1a1   : > { %v9524_v63 = vpop.permute.xlu1 %909  ;;  %v9526_v2 = vpop.permute.xlu0 %907 }
 0x1a3   : > { %1134 = vrot.lane.b32.xlu1 %v9280_v17, %s8873_s29  ;;  %1132 = vrot.lane.b32.xlu0 %v9282_v18, %s8873_s29  ;;  %s8885_s29 = smov 112  }
 0x1a5   : > { %v9532_v4 = vpop.permute.xlu1 %1215  ;;  %v9534_v5 = vpop.permute.xlu0 %1182 }
 0x1a7   : > { %855 = vrot.lane.b32.xlu1 %v9280_v17, %s12651_s21  ;;  %853 = vrot.lane.b32.xlu0 %v9282_v18, %s12651_s21  ;;  %s12418_s21 = sand.u32 1, %s8841_s22  }
 0x1a9   : > { %v9540_v7 = vpop.permute.xlu1 %1219  ;;  %v9542_v15 = vpop.permute.xlu0 %1217 }
 0x1ab   : > { %1165 = vrot.lane.b32.xlu1 %v9280_v17, %s8875_s16  ;;  %1163 = vrot.lane.b32.xlu0 %v9282_v18, %s8875_s16  ;;  %s6513_s16 = scalar_lea.sflag [#allocation24], %s12418_s21 }
 0x1ad   : > { %v9548_v16 = vpop.permute.xlu1 %936  ;;  %v9550_v6 = vpop.permute.xlu0 %903 }
 0x1ae   : > { %12652 = vst [vmem:[#allocation49_spill] sm:$0xff] %v9550_v6  ;;  %v1044_v6 = vsel %vm12560_vm1, %v9372_v25, %v9356_v21  ;;  %v1077_v21 = vsel %vm12566_vm3, %v9380_v27, %v9390_v30  ;;  %v1015_v25 = vsel %vm12565_vm0, %v9358_v22, %v9348_v19  ;;  %v1075_v19 = vsel %vm12566_vm3, %v9406_v34, %v9382_v28 }
 0x1af   : > { %886 = vrot.lane.b32.xlu1 %v9280_v17, %s8876_s30  ;;  %884 = vrot.lane.b32.xlu0 %v9282_v18, %s8876_s30  ;;  %v829_v34 = vsel %vm12569_vm8, %v9430_v40, %v9428_v39  ;;  %s8889_s30 = smov 104  }
 0x1b1   : > { %v9556_v0 = vpop.permute.xlu1 %940  ;;  %v9558_v3 = vpop.permute.xlu0 %938 }
 0x1b2   : > { %12653 = vst [vmem:[#allocation50_spill] sm:$0xff] %v9556_v0  ;;  %v1014_v0 = vsel %vm12565_vm0, %v9350_v20, %v9358_v22  ;;  %v798_v20 = vsel %vm12567_vm5, %v9398_v32, %v9396_v31  ;;  %v1300_v22 = vsel %vm1244_vm2, %v1013_v62, %v1044_v6  ;;  %v1107_v31 = vsel %vm1105_vm6, %v9404_v33, %v9414_v36 }
 0x1b3   : > { %1196 = vrot.lane.b32.xlu1 %v9280_v17, %s12649_s19  ;;  %1194 = vrot.lane.b32.xlu0 %v9282_v18, %s12649_s19  ;;  %v1246_v6 = vsel %vm1244_vm2, %v9211_v9, %v797_v26  ;;  %vm12573_vm0 = vcmask 1006592   ;;  %v1106_v62 = vsel %vm1105_vm6, %v9438_v42, %v9404_v33  ;;  %v1139_v33 = vsel %vm12568_vm9, %v9446_v44, %v9444_v43 }
 0x1b4   : > { %v859_v26 = vsel %vm12570_vm11, %v9452_v45, %v9462_v48 }
 0x1b5   : > { %v9564_v13 = vpop.permute.xlu1 %934  ;;  %v9566_v1 = vpop.permute.xlu0 %1213 }
 0x1b6   : > { %12654 = vst [vmem:[#allocation51_spill] sm:$0xff] %v9564_v13  ;;  %v1046_v13 = vsel %vm12560_vm1, %v9366_v24, %v9364_v23  ;;  %v1076_v24 = vsel %vm12566_vm3, %v9382_v28, %v9380_v27  ;;  %vm1284_vm1 = vcmask 1045504   ;;  %v1301_v27 = vsel %vm1244_vm2, %v1014_v0, %v1045_v8 }
 0x1b7   : > { %917 = vrot.lane.b32.xlu1 %v9280_v17, %s8878_s26  ;;  %915 = vrot.lane.b32.xlu0 %v9282_v18, %s8878_s26  ;;  %v1302_v30 = vsel %vm1244_vm2, %v1015_v25, %v1046_v13  ;;  %v1308_v23 = vsel %vm1252_vm4, %v1301_v27, %v1076_v24  ;;  %v1108_v0 = vsel %vm1105_vm6, %v9414_v36, %v9412_v35  ;;  %vm1292_vm3 = vcmask 1046528   ;;  %s8892_s26 = smov 56  }
 0x1b8   : > { %v1309_v32 = vsel %vm1252_vm4, %v1302_v30, %v1077_v21  ;;  %v1247_v28 = vsel %vm1244_vm2, %v9223_v12, %v798_v20  ;;  %v828_v30 = vsel %vm12569_vm8, %v9420_v37, %v9430_v40  ;;  %v1307_v36 = vsel %vm1252_vm4, %v1300_v22, %v1075_v19 }
 0x1b9   : > { %v9572_v10 = vpop.permute.xlu1 %969  ;;  %v9574_v11 = vpop.permute.xlu0 %967  ;;  %v1138_v24 = vsel %vm12568_vm9, %v9436_v41, %v9446_v44  ;;  %v1315_v40 = vsel %vm1260_vm7, %v1308_v23, %v1107_v31  ;;  %v1316_v21 = vsel %vm1260_vm7, %v1309_v32, %v1108_v0  ;;  %v796_v19 = vsel %vm12567_vm5, %v9422_v38, %v9388_v29 }
 0x1ba   : > { %12655 = vst [vmem:[#allocation52_spill] sm:$0xff] %v9572_v10  ;;  %12656 = vst [vmem:[#allocation53_spill] sm:$0xff] %v9574_v11  ;;  %v1254_v42 = vsel %vm1252_vm4, %v1246_v6, %v828_v30  ;;  %v1255_v25 = vsel %vm1252_vm4, %v1247_v28, %v829_v34  ;;  %v1169_v23 = vsel %vm1167_vm12, %v9468_v49, %v9478_v52  ;;  %vm12572_vm5 = vcmask 998400  }
 0x1bb   : > { %1227 = vrot.lane.b32.xlu1 %v9280_v17, %s8879_s23  ;;  %1225 = vrot.lane.b32.xlu0 %v9282_v18, %s8879_s23  ;;  %v1314_v29 = vsel %vm1260_vm7, %v1307_v36, %v1106_v62  ;;  %v1322_v38 = vsel %vm1268_vm10, %v1315_v40, %v1138_v24  ;;  %v860_v44 = vsel %vm12570_vm11, %v9462_v48, %v9460_v47  ;;  %s8893_s23 = smov 32  }
 0x1bc   : > { %v1200_v27 = vsel %vm1198_vm13, %v9500_v57, %v9510_v60  ;;  %v1323_v22 = vsel %vm1268_vm10, %v1316_v21, %v1139_v33  ;;  %v1137_v32 = vsel %vm12568_vm9, %v9470_v50, %v9436_v41  ;;  %v1231_v0 = vsel %vm1229_vm14, %v9532_v4, %v9542_v15  ;;  %v12658_v33 = vld [vmem:[#allocation50_spill] sm:$0xff] }
 0x1bd   : > { %v9592_v11 = vpop.permute.xlu1 %965  ;;  %v9594_v10 = vpop.permute.xlu0 %971  ;;  %v827_v48 = vsel %vm12569_vm8, %v9454_v46, %v9420_v37  ;;  %v1262_v6 = vsel %vm1260_vm7, %v1254_v42, %v859_v26  ;;  %v1170_v41 = vsel %vm1167_vm12, %v9478_v52, %v9476_v51  ;;  %vm12657_vm9 = vcmask 1044480  }
 0x1be   : > { %v1329_v50 = vsel %vm12657_vm9, %v1322_v38, %v1169_v23  ;;  %v1263_v28 = vsel %vm1260_vm7, %v1255_v25, %v860_v44  ;;  %v1321_v52 = vsel %vm1268_vm10, %v1314_v29, %v1137_v32  ;;  %v1201_v34 = vsel %vm1198_vm13, %v9510_v60, %v9508_v59 }
 0x1bf   : > { %948 = vrot.lane.b32.xlu1 %v9280_v17, %s8880_s24  ;;  %946 = vrot.lane.b32.xlu0 %v9282_v18, %s8880_s24  ;;  %v1336_v46 = vsel %vm1284_vm1, %v1329_v50, %v1200_v27  ;;  %v1199_v36 = vsel %vm1198_vm13, %v9534_v5, %v9500_v57  ;;  %v1230_v24 = vsel %vm1229_vm14, %v9566_v1, %v9532_v4  ;;  %vm12571_vm8 = vcmask 990208   ;;  %v12661_v27 = vld [vmem:[#allocation48_spill] sm:$0xff]  ;;  %s8894_s24 = smov 1  }
 0x1c0   : > { %v9724_v62 = vsel %vm1292_vm3, %v1336_v46, %v1231_v0  ;;  %v858_v57 = vsel %vm12570_vm11, %v9486_v54, %v9452_v45  ;;  %v891_v60 = vsel %vm12574_vm15, %v9494_v56, %v9492_v55  ;;  %v921_v4 = vsel %vm12573_vm0, %v9516_v61, %v9526_v2  ;;  %vm12662_vm11 = vmmov %vm12657_vm9 }
 0x1c1   : > { %v9632_v8 = vpop.permute.xlu1 %1006  ;;  %v9634_v13 = vpop.permute.xlu0 %1004  ;;  %v953_v42 = vsel %vm12572_vm5, %v9558_v3, %v12658_v33  ;;  %v1271_v26 = vsel %vm1268_vm10, %v1263_v28, %v891_v60  ;;  %v12659_v23 = vld [vmem:[#allocation52_spill] sm:$0xff]  ;;  %v12660_v29 = vld [vmem:[#allocation53_spill] sm:$0xff] }
 0x1c2   : > { %v983_v38 = vsel %vm12571_vm8, %v12660_v29, %v12659_v23  ;;  %v984_v44 = vsel %vm12571_vm8, %v12659_v23, %v9594_v10 }
 0x1c3   : > { %979 = vrot.lane.b32.xlu1 %v9280_v17, %s8881_s18  ;;  %977 = vrot.lane.b32.xlu0 %v9282_v18, %s8881_s18  ;;  %s8891_s18 = smov 16  }
 0x1c5   : > { %v9673_v31 = vpop.permute.xlu1 %1037  ;;  %v9675_v20 = vpop.permute.xlu0 %1035 }
 0x1c7   : > { %1582 = vrot.lane.b32.xlu1 %v9223_v12, %s8882_s17  ;;  %1580 = vrot.lane.b32.xlu0 %v9211_v9, %s8882_s17  ;;  %v890_v12 = vsel %vm12574_vm15, %v9484_v53, %v9494_v56  ;;  %v1168_v9 = vsel %vm1167_vm12, %v9502_v58, %v9468_v49  ;;  %v1330_v49 = vsel %vm12657_vm9, %v1323_v22, %v1170_v41  ;;  %v12663_v41 = vld [vmem:[#allocation49_spill] sm:$0xff] }
 0x1c8   : > { %v1232_v58 = vsel %vm1229_vm14, %v9542_v15, %v9540_v7  ;;  %v1270_v5 = vsel %vm1268_vm10, %v1262_v6, %v890_v12  ;;  %v1328_v1 = vsel %vm12657_vm9, %v1321_v52, %v1168_v9  ;;  %v922_v15 = vsel %vm12573_vm0, %v9526_v2, %v9524_v63 }
 0x1c9   : > { %v9711_v30 = vpop.permute.xlu1 %1068  ;;  %v9713_v37 = vpop.permute.xlu0 %1066  ;;  %v1335_v40 = vsel %vm1284_vm1, %v1328_v1, %v1199_v36  ;;  %v1337_v54 = vsel %vm1284_vm1, %v1330_v49, %v1201_v34  ;;  %v952_v56 = vsel %vm12572_vm5, %v9548_v16, %v9558_v3  ;;  %v1245_v3 = vsel %vm1244_vm2, %v9236_v14, %v796_v19 }
 0x1ca   : > { %v9764_v25 = vsel %vm1292_vm3, %v1337_v54, %v1232_v58  ;;  %v9767_v2 = vsel %vm1292_vm3, %v1335_v40, %v1230_v24  ;;  %v889_v22 = vsel %vm12574_vm15, %v12661_v27, %v9484_v53  ;;  %v1278_v32 = vsel %vm12657_vm9, %v1270_v5, %v921_v4  ;;  %v12664_v53 = vld [vmem:[#allocation51_spill] sm:$0xff] }
 0x1cb   : > { %1578 = vrot.lane.b32.xlu0 %v9236_v14, %s8882_s17  ;;  %1535 = vrot.lane.b32.xlu1 %v9724_v62, %s8883_s20  ;;  %v1279_v0 = vsel %vm12662_vm11, %v1271_v26, %v922_v15  ;;  %v1253_v6 = vsel %vm1252_vm4, %v1245_v3, %v827_v48  ;;  %v920_v50 = vsel %vm12573_vm0, %v12663_v41, %v9516_v61  ;;  %vm12665_vm11 = vmmov %vm12657_vm9  ;;  %v12575_v54 = vmov 0.0   ;;  %v12666_v26 = vld [vmem:[#allocation45_spill] sm:$0xff] }
 0x1cc   : > { %v1286_v9 = vsel %vm1284_vm1, %v1278_v32, %v952_v56  ;;  %v1287_v14 = vsel %vm1284_vm1, %v1279_v0, %v953_v42  ;;  %v1261_v19 = vsel %vm1260_vm7, %v1253_v6, %v858_v57  ;;  %v951_v46 = vsel %vm12572_vm5, %v12664_v53, %v9548_v16  ;;  %1697 = vmatprep.mubr.f32.mxu0 %v12575_v54 }
 0x1cd   : > { %v9752_v21 = vpop.permute.xlu1 %789  ;;  %v9754_v45 = vpop.permute.xlu0 %787  ;;  %v9800_v52 = vsel %vm1292_vm3, %v1286_v9, %v983_v38  ;;  %v9803_v48 = vsel %vm1292_vm3, %v1287_v14, %v984_v44  ;;  %v1269_v61 = vsel %vm1268_vm10, %v1261_v19, %v889_v22  ;;  %v982_v34 = vsel %vm12571_vm8, %v9592_v11, %v12660_v29  ;;  %1786 = vmatprep.mubr.f32.mxu1 %v12575_v54  ;;  %v12668_v29 = vld [vmem:[#allocation46_spill] sm:$0xff]  ;;  %v12670_v44 = vld [vmem:[#allocation44_spill] sm:$0xff] }
 0x1ce   : > { %v1277_v16 = vsel %vm12665_vm11, %v1269_v61, %v920_v50  ;;  %vm12667_vm9 = vcmask 973824   ;;  %vm12669_vm11 = vcmask 965632   ;;  %vm12671_vm8 = vcmask 982016  }
 0x1cf   : > { %1537 = vrot.lane.b32.xlu0 %v9764_v25, %s8883_s20  ;;  %1533 = vrot.lane.b32.xlu1 %v9767_v2, %s8883_s20  ;;  %v1285_v36 = vsel %vm1284_vm1, %v1277_v16, %v951_v46  ;;  %v1047_v23 = vsel %vm12667_vm9, %v12666_v26, %v9675_v20  ;;  %v1078_v38 = vsel %vm12669_vm11, %v12668_v29, %v9713_v37  ;;  %vm12672_vm5 = vmmov %vm12667_vm9  ;;  %vm12674_vm0 = vcmask 949248   ;;  %v12677_v46 = vld [vmem:[#allocation41_spill] sm:$0xff] }
 0x1d0   : > { %v9820_v24 = vsel %vm1292_vm3, %v1285_v36, %v982_v34  ;;  %v1016_v3 = vsel %vm12671_vm8, %v12670_v44, %v9634_v13  ;;  %v1048_v27 = vsel %vm12672_vm5, %v9675_v20, %v9673_v31  ;;  %vm12673_vm9 = vmmov %vm12671_vm8  ;;  %v1079_v6 = vsel %vm12669_vm11, %v9713_v37, %v9711_v30 }
 0x1d1   : > { %v9791_v28 = vpop.permute.xlu1 %1099  ;;  %v1098_v12 = vpop.permute.xlu0 %1097  ;;  %v1017_v32 = vsel %vm12673_vm9, %v9634_v13, %v9632_v8  ;;  %v1303_v0 = vsel %vm1244_vm2, %v1016_v3, %v1047_v23  ;;  %vm12676_vm5 = vcmask 1039360   ;;  %vm12679_vm8 = vcmask 949248  }
 0x1d2   : > { %v1109_v22 = vsel %vm1105_vm6, %v9412_v35, %v1098_v12  ;;  %v1310_v20 = vsel %vm1252_vm4, %v1303_v0, %v1078_v38  ;;  %v12675_v35 = vld [vmem:[#allocation47_spill] sm:$0xff]  ;;  %v1110_v13 = vsel %vm1105_vm6, %v1098_v12, %v9791_v28  ;;  %v1304_v37 = vsel %vm1244_vm2, %v1017_v32, %v1048_v27 }
 0x1d3   : > { %1519 = vrot.lane.b32.xlu0 %v9800_v52, %s8883_s20  ;;  %1521 = vrot.lane.b32.xlu1 %v9803_v48, %s8883_s20  ;;  %v799_v14 = vsel %vm12676_vm5, %v12675_v35, %v9754_v45  ;;  %v1317_v53 = vsel %vm1260_vm7, %v1310_v20, %v1109_v22  ;;  %v1311_v61 = vsel %vm1252_vm4, %v1304_v37, %v1079_v6  ;;  %vm12680_vm9 = vcmask 1044480   ;;  %v12683_v22 = vld [vmem:[#allocation43_spill] sm:$0xff] }
 0x1d4   : > { %v1318_v16 = vsel %vm1260_vm7, %v1311_v61, %v1110_v13  ;;  %vm12681_vm11 = vcmask 1031168  }
 0x1d5   : > { %v9815_v49 = vpop.permute.xlu1 %820  ;;  %v9817_v58 = vpop.permute.xlu0 %818 }
 0x1d7   : > { %1517 = vrot.lane.b32.xlu0 %v9820_v24, %s8883_s20  ;;  %1474 = vrot.lane.b32.xlu1 %v9724_v62, %s8884_s27 }
 0x1d9   : > { %v9826_v11 = vpop.permute.xlu1 %1130  ;;  %v1129_v57 = vpop.permute.xlu0 %1128 }
 0x1da   : > { %v1140_v41 = vsel %vm12674_vm0, %v9444_v43, %v1129_v57  ;;  %vm12678_vm0 = vmmov %vm12676_vm5 }
 0x1db   : > { %1476 = vrot.lane.b32.xlu0 %v9764_v25, %s8884_s27  ;;  %1472 = vrot.lane.b32.xlu1 %v9767_v2, %s8884_s27  ;;  %v800_v12 = vsel %vm12678_vm0, %v9754_v45, %v9752_v21  ;;  %v1324_v34 = vsel %vm1268_vm10, %v1317_v53, %v1140_v41  ;;  %v830_v45 = vsel %vm12681_vm11, %v9428_v39, %v9817_v58  ;;  %vm12682_vm5 = vmmov %vm12681_vm11  ;;  %vm12684_vm0 = vcmask 1022976  }
 0x1dc   : > { %vm12686_vm11 = vcmask 1006592  }
 0x1dd   : > { %v9832_v60 = vpop.permute.xlu1 %851  ;;  %v850_v5 = vpop.permute.xlu0 %849 }
 0x1df   : > { %1458 = vrot.lane.b32.xlu0 %v9800_v52, %s8884_s27  ;;  %1460 = vrot.lane.b32.xlu1 %v9803_v48, %s8884_s27 }
 0x1e1   : > { %v9838_v1 = vpop.permute.xlu1 %1161  ;;  %v1160_v4 = vpop.permute.xlu0 %1159 }
 0x1e2   : > { %v1171_v19 = vsel %vm1167_vm12, %v9476_v51, %v1160_v4  ;;  %v1141_v51 = vsel %vm12679_vm8, %v1129_v57, %v9826_v11  ;;  %v1172_v36 = vsel %vm1167_vm12, %v1160_v4, %v9838_v1  ;;  %v831_v4 = vsel %vm12682_vm5, %v9817_v58, %v9815_v49  ;;  %vm12685_vm8 = vmmov %vm12684_vm0 }
 0x1e3   : > { %1456 = vrot.lane.b32.xlu0 %v9820_v24, %s8884_s27  ;;  %1413 = vrot.lane.b32.xlu1 %v9724_v62, %s8885_s29  ;;  %v1331_v26 = vsel %vm12680_vm9, %v1324_v34, %v1171_v19  ;;  %v1325_v3 = vsel %vm1268_vm10, %v1318_v16, %v1141_v51  ;;  %v862_v58 = vsel %vm12685_vm8, %v850_v5, %v9832_v60  ;;  %vm12687_vm5 = vmmov %vm12686_vm11 }
 0x1e4   : > { %v1332_v32 = vsel %vm12680_vm9, %v1325_v3, %v1172_v36  ;;  %v12693_v3 = vld [vmem:[#allocation42_spill] sm:$0xff] }
 0x1e5   : > { %v9844_v15 = vpop.permute.xlu1 %882  ;;  %v881_v40 = vpop.permute.xlu0 %880 }
 0x1e6   : > { %v892_v6 = vsel %vm12574_vm15, %v9492_v55, %v881_v40  ;;  %v893_v41 = vsel %vm12574_vm15, %v881_v40, %v9844_v15 }
 0x1e7   : > { %1415 = vrot.lane.b32.xlu0 %v9764_v25, %s8885_s29  ;;  %1411 = vrot.lane.b32.xlu1 %v9767_v2, %s8885_s29 }
 0x1e9   : > { %v9852_v56 = vpop.permute.xlu1 %1192  ;;  %v1191_v42 = vpop.permute.xlu0 %1190 }
 0x1ea   : > { %v1202_v43 = vsel %vm1198_vm13, %v9508_v59, %v1191_v42  ;;  %v1248_v59 = vsel %vm1244_vm2, %v12677_v46, %v799_v14  ;;  %v1203_v57 = vsel %vm1198_vm13, %v1191_v42, %v9852_v56  ;;  %v861_v42 = vsel %vm12684_vm0, %v9460_v47, %v850_v5 }
 0x1eb   : > { %1397 = vrot.lane.b32.xlu0 %v9800_v52, %s8885_s29  ;;  %1399 = vrot.lane.b32.xlu1 %v9803_v48, %s8885_s29  ;;  %v1338_v44 = vsel %vm1284_vm1, %v1331_v26, %v1202_v43  ;;  %v1256_v0 = vsel %vm1252_vm4, %v1248_v59, %v830_v45  ;;  %v1339_v47 = vsel %vm1284_vm1, %v1332_v32, %v1203_v57  ;;  %vm12688_vm0 = vcmask 998400  }
 0x1ec   : > { %v1264_v55 = vsel %vm1260_vm7, %v1256_v0, %v861_v42  ;;  %vm12689_vm8 = vmmov %vm12688_vm0 }
 0x1ed   : > { %v9881_v50 = vpop.permute.xlu1 %913  ;;  %v912_v9 = vpop.permute.xlu0 %911 }
 0x1ee   : > { %v923_v14 = vsel %vm12686_vm11, %v9524_v63, %v912_v9  ;;  %v924_v13 = vsel %vm12687_vm5, %v912_v9, %v9881_v50  ;;  %v1272_v63 = vsel %vm1268_vm10, %v1264_v55, %v892_v6  ;;  %vm12690_vm11 = vmmov %vm12680_vm9  ;;  %vm12691_vm5 = vcmask 990208  }
 0x1ef   : > { %1395 = vrot.lane.b32.xlu0 %v9820_v24, %s8885_s29  ;;  %1584 = vrot.lane.b32.xlu1 %v12677_v46, %s8882_s17  ;;  %v1280_v43 = vsel %vm12680_vm9, %v1272_v63, %v923_v14 }
 0x1f1   : > { %v9912_v23 = vpop.permute.xlu1 %1223  ;;  %v1222_v29 = vpop.permute.xlu0 %1221 }
 0x1f2   : > { %v1233_v38 = vsel %vm1229_vm14, %v9540_v7, %v1222_v29  ;;  %v1234_v27 = vsel %vm1229_vm14, %v1222_v29, %v9912_v23  ;;  %v1249_v7 = vsel %vm1244_vm2, %v12683_v22, %v800_v12 }
 0x1f3   : > { %1586 = vrot.lane.b32.xlu0 %v12683_v22, %s8882_s17  ;;  %v9931_v39 = vsel %vm1292_vm3, %v1338_v44, %v1233_v38  ;;  %v1257_v5 = vsel %vm1252_vm4, %v1249_v7, %v831_v4  ;;  %v9956_v19 = vsel %vm1292_vm3, %v1339_v47, %v1234_v27 }
 0x1f4   : > { %1539 = vrot.lane.b32.xlu1 %v9931_v39, %s8883_s20  ;;  %v1265_v40 = vsel %vm1260_vm7, %v1257_v5, %v862_v58 }
 0x1f5   : > { %v9947_v20 = vpop.permute.xlu1 %944  ;;  %v943_v35 = vpop.permute.xlu0 %942  ;;  %v1273_v9 = vsel %vm1268_vm10, %v1265_v40, %v893_v41 }
 0x1f6   : > { %v954_v37 = vsel %vm12688_vm0, %v12658_v33, %v943_v35  ;;  %v955_v53 = vsel %vm12689_vm8, %v943_v35, %v9947_v20  ;;  %v1281_v46 = vsel %vm12690_vm11, %v1273_v9, %v924_v13  ;;  %vm12692_vm0 = vmmov %vm12691_vm5  ;;  %vm12694_vm8 = vcmask 973824  }
 0x1f7   : > { %1541 = vrot.lane.b32.xlu0 %v9956_v19, %s8883_s20  ;;  %v1289_v34 = vsel %vm1284_vm1, %v1281_v46, %v955_v53  ;;  %v1288_v59 = vsel %vm1284_vm1, %v1280_v43, %v954_v37  ;;  %vm12695_vm9 = vmmov %vm12694_vm8  ;;  %vm12696_vm11 = vcmask 965632  }
 0x1f9   : > { %v9970_v61 = vpop.permute.xlu1 %975  ;;  %v974_v12 = vpop.permute.xlu0 %973 }
 0x1fa   : > { %v985_v33 = vsel %vm12691_vm5, %v9594_v10, %v974_v12  ;;  %v986_v51 = vsel %vm12692_vm0, %v974_v12, %v9970_v61  ;;  %vm12697_vm5 = vmmov %vm12696_vm11  ;;  %vm12698_vm0 = vcmask 982016  }
 0x1fb   : > { %v9979_v16 = vsel %vm1292_vm3, %v1289_v34, %v986_v51  ;;  %v9982_v36 = vsel %vm1292_vm3, %v1288_v59, %v985_v33  ;;  %vm12699_vm15 = vmmov %vm12698_vm0 }
 0x1fc   : > { %1525 = vrot.lane.b32.xlu0 %v9979_v16, %s8883_s20  ;;  %1523 = vrot.lane.b32.xlu1 %v9982_v36, %s8883_s20 }
 0x1fd   : > { %v9988_v10 = vpop.permute.xlu1 %1010  ;;  %v1009_v26 = vpop.permute.xlu0 %1008 }
 0x1fe   : > { %v1018_v63 = vsel %vm12698_vm0, %v9632_v8, %v1009_v26  ;;  %v1019_v9 = vsel %vm12699_vm15, %v1009_v26, %v9988_v10 }
 0x200   : > { %1480 = vrot.lane.b32.xlu0 %v9956_v19, %s8884_s27  ;;  %1478 = vrot.lane.b32.xlu1 %v9931_v39, %s8884_s27 }
 0x201   : > { %v9994_v29 = vpop.permute.xlu1 %1041  ;;  %v1040_v45 = vpop.permute.xlu0 %1039 }
 0x202   : > { %v1049_v55 = vsel %vm12694_vm8, %v9673_v31, %v1040_v45  ;;  %v1050_v40 = vsel %vm12695_vm9, %v1040_v45, %v9994_v29  ;;  %vm12700_vm8 = vcmask 949248  }
 0x203   : > { %v1305_v46 = vsel %vm1244_vm2, %v1018_v63, %v1049_v55  ;;  %v1306_v12 = vsel %vm1244_vm2, %v1019_v9, %v1050_v40  ;;  %vm12701_vm9 = vmmov %vm12700_vm8 }
 0x204   : > { %1464 = vrot.lane.b32.xlu0 %v9979_v16, %s8884_s27  ;;  %1462 = vrot.lane.b32.xlu1 %v9982_v36, %s8884_s27 }
 0x205   : > { %v10000_v57 = vpop.permute.xlu1 %1072  ;;  %v1071_v38 = vpop.permute.xlu0 %1070 }
 0x206   : > { %v1080_v37 = vsel %vm12696_vm11, %v9711_v30, %v1071_v38  ;;  %v1081_v53 = vsel %vm12697_vm5, %v1071_v38, %v10000_v57  ;;  %vm12706_vm5 = vcmask 1044480  }
 0x207   : > { %v1312_v34 = vsel %vm1252_vm4, %v1305_v46, %v1080_v37  ;;  %vm12707_vm0 = vmmov %vm12706_vm5 }
 0x208   : > { %1419 = vrot.lane.b32.xlu0 %v9956_v19, %s8885_s29  ;;  %1417 = vrot.lane.b32.xlu1 %v9931_v39, %s8885_s29 }
 0x209   : > { %v10006_v44 = vpop.permute.xlu1 %793  ;;  %v792_v4 = vpop.permute.xlu0 %791 }
 0x20c   : > { %1590 = vrot.lane.b32.xlu0 %v9282_v18, %s8882_s17  ;;  %1588 = vrot.lane.b32.xlu1 %v12693_v3, %s8882_s17 }
 0x20d   : > { %v10012_v27 = vpop.permute.xlu1 %1103  ;;  %v1102_v22 = vpop.permute.xlu0 %1101 }
 0x20e   : > { %v1111_v43 = vsel %vm1105_vm6, %v9791_v28, %v1102_v22  ;;  %v1112_v31 = vsel %vm1105_vm6, %v1102_v22, %v10012_v27  ;;  %v1313_v28 = vsel %vm1252_vm4, %v1306_v12, %v1081_v53  ;;  %vm12702_vm6 = vcmask 1039360  }
 0x20f   : > { %v1319_v45 = vsel %vm1260_vm7, %v1312_v34, %v1111_v43  ;;  %vm12703_vm15 = vmmov %vm12702_vm6 }
 0x210   : > { %1403 = vrot.lane.b32.xlu0 %v9979_v16, %s8885_s29  ;;  %1401 = vrot.lane.b32.xlu1 %v9982_v36, %s8885_s29  ;;  %v802_v55 = vsel %vm12703_vm15, %v792_v4, %v10006_v44 }
 0x211   : > { %v10018_v7 = vpop.permute.xlu1 %824  ;;  %v823_v42 = vpop.permute.xlu0 %822 }
 0x215   : > { %v10020_v58 = vpop.permute.xlu1 %1134  ;;  %v1133_v32 = vpop.permute.xlu0 %1132 }
 0x216   : > { %v1142_v30 = vsel %vm12700_vm8, %v9826_v11, %v1133_v32  ;;  %v1143_v33 = vsel %vm12701_vm9, %v1133_v32, %v10020_v58  ;;  %v1320_v11 = vsel %vm1260_vm7, %v1313_v28, %v1112_v31  ;;  %v801_v32 = vsel %vm12702_vm6, %v9752_v21, %v792_v4 }
 0x217   : > { %v1250_v46 = vsel %vm1244_vm2, %v12693_v3, %v801_v32  ;;  %vm12712_vm6 = vcmask 1006592  }
 0x218   : > { %vm12713_vm15 = vmmov %vm12712_vm6 }
 0x219   : > { %v10022_v0 = vpop.permute.xlu1 %855  ;;  %v854_v6 = vpop.permute.xlu0 %853 }
 0x21d   : > { %v10024_v41 = vpop.permute.xlu1 %1165  ;;  %v1164_v35 = vpop.permute.xlu0 %1163 }
 0x21e   : > { %v1173_v59 = vsel %vm1167_vm12, %v9838_v1, %v1164_v35  ;;  %v1174_v26 = vsel %vm1167_vm12, %v1164_v35, %v10024_v41  ;;  %v1326_v1 = vsel %vm1268_vm10, %v1319_v45, %v1142_v30  ;;  %v1327_v35 = vsel %vm1268_vm10, %v1320_v11, %v1143_v33 }
 0x21f   : > { %vm12704_vm12 = vcmask 1031168  }
 0x220   : > { %v832_v40 = vsel %vm12704_vm12, %v9815_v49, %v823_v42  ;;  %vm12705_vm11 = vmmov %vm12704_vm12  ;;  %vm12714_vm12 = vcmask 998400  }
 0x221   : > { %v10026_v47 = vpop.permute.xlu1 %886  ;;  %v885_v5 = vpop.permute.xlu0 %884  ;;  %v833_v37 = vsel %vm12705_vm11, %v823_v42, %v10018_v7  ;;  %vm12715_vm11 = vmmov %vm12714_vm12 }
 0x225   : > { %v10028_v14 = vpop.permute.xlu1 %1196  ;;  %v1195_v13 = vpop.permute.xlu0 %1194 }
 0x226   : > { %v1204_v38 = vsel %vm1198_vm13, %v9852_v56, %v1195_v13  ;;  %v1205_v22 = vsel %vm1198_vm13, %v1195_v13, %v10028_v14  ;;  %v1333_v56 = vsel %vm12706_vm5, %v1326_v1, %v1173_v59  ;;  %v1334_v13 = vsel %vm12707_vm0, %v1327_v35, %v1174_v26  ;;  %vm12716_vm5 = vmmov %vm12707_vm0 }
 0x227   : > { %v1341_v63 = vsel %vm1284_vm1, %v1334_v13, %v1205_v22  ;;  %v1340_v49 = vsel %vm1284_vm1, %v1333_v56, %v1204_v38  ;;  %vm12708_vm13 = vcmask 1022976  }
 0x228   : > { %v863_v42 = vsel %vm12708_vm13, %v9832_v60, %v854_v6  ;;  %vm12709_vm8 = vmmov %vm12708_vm13  ;;  %v1258_v60 = vsel %vm1252_vm4, %v1250_v46, %v832_v40  ;;  %vm12717_vm13 = vcmask 990208  }
 0x229   : > { %v10052_v8 = vpop.permute.xlu1 %917  ;;  %v916_v51 = vpop.permute.xlu0 %915  ;;  %v864_v12 = vsel %vm12709_vm8, %v854_v6, %v10022_v0  ;;  %v1266_v6 = vsel %vm1260_vm7, %v1258_v60, %v863_v42  ;;  %vm12718_vm8 = vmmov %vm12717_vm13 }
 0x22a   : > { %v925_v28 = vsel %vm12712_vm6, %v9881_v50, %v916_v51  ;;  %v926_v59 = vsel %vm12713_vm15, %v916_v51, %v10052_v8  ;;  %vm12719_vm6 = vmmov %vm12707_vm0  ;;  %vm1488_vm15 = vcmask 785408  }
 0x22d   : > { %v10078_v53 = vpop.permute.xlu1 %1227  ;;  %v1226_v21 = vpop.permute.xlu0 %1225 }
 0x22e   : > { %v1235_v4 = vsel %vm1229_vm14, %v9912_v23, %v1226_v21  ;;  %v1236_v9 = vsel %vm1229_vm14, %v1226_v21, %v10078_v53  ;;  %v1251_v23 = vsel %vm1244_vm2, %v9282_v18, %v802_v55  ;;  %vm12710_vm14 = vcmask 1014784  }
 0x22f   : > { %v10089_v43 = vsel %vm1292_vm3, %v1341_v63, %v1236_v9  ;;  %v10092_v31 = vsel %vm1292_vm3, %v1340_v49, %v1235_v4  ;;  %v1259_v30 = vsel %vm1252_vm4, %v1251_v23, %v833_v37  ;;  %v894_v33 = vsel %vm12710_vm14, %v9844_v15, %v885_v5  ;;  %vm12711_vm9 = vmmov %vm12710_vm14 }
 0x230   : > { %1545 = vrot.lane.b32.xlu0 %v10089_v43, %s8883_s20  ;;  %1543 = vrot.lane.b32.xlu1 %v10092_v31, %s8883_s20  ;;  %v895_v3 = vsel %vm12711_vm9, %v885_v5, %v10026_v47  ;;  %v1267_v26 = vsel %vm1260_vm7, %v1259_v30, %v864_v12  ;;  %v8887_v5 = vmov 0   ;;  %v1274_v11 = vsel %vm1268_vm10, %v1266_v6, %v894_v33 }
 0x231   : > { %v10110_v18 = vpop.permute.xlu1 %948  ;;  %v947_v34 = vpop.permute.xlu0 %946  ;;  %8065 = vset.pattern.permute.xlu1 %v8887_v5  ;;  %8064 = vset.pattern.permute.xlu0 %v8887_v5  ;;  %v1275_v38 = vsel %vm1268_vm10, %v1267_v26, %v895_v3  ;;  %v1282_v50 = vsel %vm12716_vm5, %v1274_v11, %v925_v28  ;;  %vm1594_vm14 = vcmask 523264   ;;  %vm1549_vm9 = vcmask 654336   ;;  %v702_v11 = vld [vmem:[#allocation19 + $0x18] sm:$0xff] }
 0x232   : > { %v956_v45 = vsel %vm12714_vm12, %v9947_v20, %v947_v34  ;;  %v957_v15 = vsel %vm12715_vm11, %v947_v34, %v10110_v18  ;;  %v1283_v22 = vsel %vm12707_vm0, %v1275_v38, %v926_v59  ;;  %v1372_v23 = vsel %vm1244_vm2, %v9988_v10, %v9994_v29 }
 0x233   : > { %v1291_v55 = vsel %vm1284_vm1, %v1283_v22, %v957_v15  ;;  %v1290_v35 = vsel %vm1284_vm1, %v1282_v50, %v956_v45  ;;  %v1373_v30 = vsel %vm1252_vm4, %v1372_v23, %v10000_v57  ;;  %v1365_v10 = vsel %vm1244_vm2, %v9280_v17, %v10006_v44 }
 0x234   : > { %v1374_v3 = vsel %vm1260_vm7, %v1373_v30, %v10012_v27  ;;  %v1366_v27 = vsel %vm1252_vm4, %v1365_v10, %v10018_v7  ;;  %vm12720_vm4 = vmmov %vm12707_vm0  ;;  %v712_v10 = vld [vmem:[#allocation19 + $0x68] sm:$0xff] }
 0x235   : > { %v10126_v51 = vpop.permute.xlu1 %979  ;;  %v978_v32 = vpop.permute.xlu0 %977  ;;  %v1375_v34 = vsel %vm1268_vm10, %v1374_v3, %v10020_v58  ;;  %v1367_v59 = vsel %vm1260_vm7, %v1366_v27, %v10022_v0 }
 0x236   : > { %v987_v20 = vsel %vm12717_vm13, %v9970_v61, %v978_v32  ;;  %v988_v1 = vsel %vm12718_vm8, %v978_v32, %v10126_v51  ;;  %v1376_v29 = vsel %vm12719_vm6, %v1375_v34, %v10024_v41  ;;  %v1368_v44 = vsel %vm1268_vm10, %v1367_v59, %v10026_v47  ;;  %v709_v59 = vld [vmem:[#allocation19 + $0x50] sm:$0xff] }
 0x237   : > { %v10135_v40 = vsel %vm1292_vm3, %v1291_v55, %v988_v1  ;;  %v10138_v37 = vsel %vm1292_vm3, %v1290_v35, %v987_v20  ;;  %v1377_v58 = vsel %vm1284_vm1, %v1376_v29, %v10028_v14  ;;  %v1369_v7 = vsel %vm12720_vm4, %v1368_v44, %v10052_v8  ;;  %v700_v20 = vld [vmem:[#allocation19 + $0x8] sm:$0xff]  ;;  %v710_v29 = vld [vmem:[#allocation19 + $0x58] sm:$0xff] }
 0x238   : > { %1529 = vrot.lane.b32.xlu0 %v10135_v40, %s8883_s20  ;;  %1527 = vrot.lane.b32.xlu1 %v10138_v37, %s8883_s20  ;;  %v1378_v26 = vsel %vm1292_vm3, %v1377_v58, %v10078_v53  ;;  %v1370_v0 = vsel %vm1284_vm1, %v1369_v7, %v10110_v18  ;;  %vm1427_vm1 = vcmask 916480   ;;  %vm2255_vm8 = vcmask 261120  }
 0x239   : > { %v10144_v56 = vpop.permute.xlu1 %1582  ;;  %v1581_v61 = vpop.permute.xlu0 %1580  ;;  %v1371_v47 = vsel %vm1292_vm3, %v1370_v0, %v10126_v51  ;;  %v701_v51 = vld [vmem:[#allocation19 + $0x10] sm:$0xff]  ;;  %vm1606_vm3 = vcmask 531456  }
 0x23a   : > { %v1596_v13 = vsel %vm1594_vm14, %v1581_v61, %v10144_v56  ;;  %v717_v0 = vld [vmem:[#allocation19 + $0x90] sm:$0xff] }
 0x23b   : > { %6767 = vmatprep.subr.msk.mxu0 %vm1244_vm2, %v1596_v13 }
 0x23c   : > { %1484 = vrot.lane.b32.xlu0 %v10089_v43, %s8884_s27  ;;  %1482 = vrot.lane.b32.xlu1 %v10092_v31, %s8884_s27 }
 0x23d   : > { %v1536_v21 = vpop.permute.xlu1 %1535  ;;  %v1579_v63 = vpop.permute.xlu0 %1578 }
 0x23e   : > { %v1595_v4 = vsel %vm1594_vm14, %v1579_v63, %v1581_v61  ;;  %v706_v61 = vld [vmem:[#allocation19 + $0x38] sm:$0xff] }
 0x23f   : > { %6768 = vmatpush1.msk.msra.mxu0 %vm1244_vm2, %v1595_v4  ;;  %v705_v4 = vld [vmem:[#allocation19 + $0x30] sm:$0xff] }
 0x240   : > { %1468 = vrot.lane.b32.xlu0 %v10135_v40, %s8884_s27  ;;  %1466 = vrot.lane.b32.xlu1 %v10138_v37, %s8884_s27 }
 0x241   : > { %v1534_v9 = vpop.permute.xlu1 %1533  ;;  %v10159_v49 = vpop.permute.xlu0 %1537 }
 0x242   : > { %v1558_v42 = vsel %vm1549_vm9, %v1536_v21, %v10159_v49  ;;  %v1557_v46 = vsel %vm1549_vm9, %v1534_v9, %v1536_v21  ;;  %v699_v21 = vld [vmem:[#allocation19] sm:$0xff] }
 0x243   : > { %1649 = vmatprep.subr.mxu0 %v1558_v42 }
 0x244   : > { %1423 = vrot.lane.b32.xlu0 %v10089_v43, %s8885_s29  ;;  %1421 = vrot.lane.b32.xlu1 %v10092_v31, %s8885_s29 }
 0x245   : > { %1650 = vmatpush1.msra.mxu0 %v1557_v46  ;;  %v10171_v12 = vpop.permute.xlu1 %1521  ;;  %v1520_v60 = vpop.permute.xlu0 %1519  ;;  %v703_v46 = vld [vmem:[#allocation19 + $0x20] sm:$0xff] }
 0x246   : > { %v1551_v33 = vsel %vm1549_vm9, %v1520_v60, %v10171_v12 }
 0x247   : > { %1651 = vmatprep.subr.mxu0 %v1551_v33  ;;  %v704_v33 = vld [vmem:[#allocation19 + $0x28] sm:$0xff] }
 0x248   : > { %1407 = vrot.lane.b32.xlu0 %v10135_v40, %s8885_s29  ;;  %1405 = vrot.lane.b32.xlu1 %v10138_v37, %s8885_s29 }
 0x249   : > { %v1475_v57 = vpop.permute.xlu1 %1474  ;;  %v1518_v6 = vpop.permute.xlu0 %1517 }
 0x24a   : > { %v1550_v28 = vsel %vm1549_vm9, %v1518_v6, %v1520_v60  ;;  %v10239_v60 = vld [vmem:[#allocation2] sm:$0xff] }
 0x24b   : > { %1652 = vmatpush1.msra.mxu0 %v1550_v28  ;;  %v718_v28 = vld [vmem:[#allocation19 + $0x98] sm:$0xff] }
 0x24c   : > { %1547 = vrot.lane.b32.xlu0 %v1378_v26, %s8883_s20  ;;  %1592 = vrot.lane.b32.xlu1 %v9280_v17, %s8882_s17  ;;  %s694_s17 = scalar_lea.vmem [#allocation23], %s12418_s21 }
 0x24d   : > { %v1473_v41 = vpop.permute.xlu1 %1472  ;;  %v10206_v14 = vpop.permute.xlu0 %1476  ;;  %s6538_s19 = sshll.u32 %s694_s17, 4  ;;  %s6539_s19 = int_to_ptr.vmem [resolvable:$true] %s6538_s19 }
 0x24e   : > { %v1497_v53 = vsel %vm1488_vm15, %v1475_v57, %v10206_v14  ;;  %v1496_v45 = vsel %vm1488_vm15, %v1473_v41, %v1475_v57  ;;  %v10263_v57 = vld [vmem:[#allocation2 + $0x10] sm:$0xff] }
 0x24f   : > { %1653 = vmatprep.subr.mxu0 %v1497_v53  ;;  %v708_v53 = vld [vmem:[#allocation19 + $0x48] sm:$0xff] }
 0x250   : > { %1486 = vrot.lane.b32.xlu0 %v1378_v26, %s8884_s27  ;;  %1531 = vrot.lane.b32.xlu1 %v1371_v47, %s8883_s20 }
 0x251   : > { %1654 = vmatpush1.msra.mxu0 %v1496_v45  ;;  %v10217_v17 = vpop.permute.xlu1 %1460  ;;  %v1459_v8 = vpop.permute.xlu0 %1458 }
 0x252   : > { %v1490_v18 = vsel %vm1488_vm15, %v1459_v8, %v10217_v17 }
 0x253   : > { %1655 = vmatprep.subr.mxu0 %v1490_v18  ;;  %v716_v18 = vld [vmem:[#allocation19 + $0x88] sm:$0xff] }
 0x254   : > { %1425 = vrot.lane.b32.xlu0 %v1378_v26, %s8885_s29  ;;  %1470 = vrot.lane.b32.xlu1 %v1371_v47, %s8884_s27  ;;  %v10274_v26 = vld [vmem:[#allocation2 + $0x18] sm:$0xff] }
 0x255   : > { %v1414_v15 = vpop.permute.xlu1 %1413  ;;  %v1457_v5 = vpop.permute.xlu0 %1456 }
 0x256   : > { %v1489_v38 = vsel %vm1488_vm15, %v1457_v5, %v1459_v8 }
 0x257   : > { %1656 = vmatpush1.msra.mxu0 %v1489_v38 }
 0x258   : > { %1409 = vrot.lane.b32.xlu1 %v1371_v47, %s8885_s29  ;;  %2002 = vperm.xlu0 %8064, %v702_v11  }
 0x259   : > { %v1412_v50 = vpop.permute.xlu1 %1411  ;;  %v10225_v22 = vpop.permute.xlu0 %1415 }
 0x25a   : > { %v1436_v32 = vsel %vm1427_vm1, %v1414_v15, %v10225_v22  ;;  %v1435_v55 = vsel %vm1427_vm1, %v1412_v50, %v1414_v15  ;;  %v707_v15 = vld [vmem:[#allocation19 + $0x40] sm:$0xff] }
 0x25b   : > { %1657 = vmatprep.subr.mxu0 %v1436_v32  ;;  %v713_v32 = vld [vmem:[#allocation19 + $0x70] sm:$0xff] }
 0x25c   : > { %1658 = vmatpush1.msra.mxu0 %v1435_v55  ;;  %1997 = vperm.xlu1 %8065, %v701_v51   ;;  %v715_v51 = vld [vmem:[#allocation19 + $0x80] sm:$0xff] }
 0x25d   : > { %v10230_v1 = vpop.permute.xlu1 %1399  ;;  %v1398_v35 = vpop.permute.xlu0 %1397  ;;  %1992 = vperm.xlu0 %8064, %v700_v20  }
 0x25e   : > { %v1429_v13 = vsel %vm1427_vm1, %v1398_v35, %v10230_v1 }
 0x25f   : > { %1659 = vmatprep.subr.mxu0 %v1429_v13  ;;  %v720_v13 = vld [vmem:[#allocation19 + $0xa8] sm:$0xff] }
 0x260   : > { %2050 = vperm.xlu1 %8065, %v706_v61   ;;  %v714_v61 = vld [vmem:[#allocation19 + $0x78] sm:$0xff] }
 0x261   : > { %v1396_v63 = vpop.permute.xlu0 %1395  ;;  %1987 = vperm.xlu0 %8064, %v699_v21   ;;  %v1585_v9 = vpop.permute.xlu1 %1584 }
 0x262   : > { %v1428_v42 = vsel %vm1427_vm1, %v1396_v63, %v1398_v35 }
 0x263   : > { %1660 = vmatpush1.msra.mxu0 %v1428_v42  ;;  %v721_v42 = vld [vmem:[#allocation19 + $0xb0] sm:$0xff] }
 0x264   : > { %1661 = vmatprep.subr.mxu0 %v9724_v62  ;;  %2045 = vperm.xlu1 %8065, %v705_v4   ;;  %v1597_v62 = vsel %vm1594_vm14, %v10144_v56, %v1585_v9 }
 0x265   : > { %1662 = vmatpush1.msra.mxu0 %v9767_v2  ;;  %v10237_v23 = vpop.permute.xlu0 %1586  ;;  %2035 = vperm.xlu0 %8064, %v703_v46   ;;  %v711_v2 = vld [vmem:[#allocation19 + $0x60] sm:$0xff]  ;;  %v722_v46 = vld [vmem:[#allocation19 + $0xb8] sm:$0xff] }
 0x266   : > { %1663 = vmatprep.subr.mxu0 %v9800_v52  ;;  %v1598_v30 = vsel %vm1594_vm14, %v1585_v9, %v10237_v23  ;;  %v1540_v3 = vpop.permute.xlu1 %1539  ;;  %v10254_v52 = vld [vmem:[#allocation2 + $0x8] sm:$0xff]  ;;  %v719_v9 = vld [vmem:[#allocation19 + $0xa0] sm:$0xff] }
 0x267   : > { %1664 = vmatpush1.msra.mxu0 %v9820_v24  ;;  %6773 = vmatprep.subr.msk.mxu1 %vm1244_vm2, %v1598_v30  ;;  %v1559_v56 = vsel %vm1549_vm9, %v10159_v49, %v1540_v3 }
 0x268   : > { %6769 = vmatmul.mubr.msk.f32.vlgmr.msra.gmra.mxu0 %vm1606_vm3, %v10239_v60  ;;  %6774 = vmatpush1.msk.msra.mxu1 %vm1244_vm2, %v1597_v62 }
 0x269   : > { %v10251_v34 = vpop.permute.xlu0 %1541  ;;  %1703 = vmatprep.mubr.f32.mxu0 %v12575_v54  ;;  %2040 = vperm.xlu1 %8065, %v704_v33  }
 0x26a   : > { %v1560_v24 = vsel %vm1549_vm9, %v1540_v3, %v10251_v34  ;;  %2676 = vperm.xlu0 %8064, %v711_v2  }
 0x26b   : > { %1738 = vmatprep.subr.mxu1 %v1560_v24 }
 0x26c   : > { %6770 = vmatmul.mubr.msk.f32.gmra.mxu0 %vm1606_vm3, %v10254_v52  ;;  %1739 = vmatpush1.msra.mxu1 %v1559_v56 }
 0x26d   : > { %1709 = vmatprep.mubr.f32.mxu0 %v12575_v54  ;;  %2681 = vperm.xlu1 %8065, %v712_v10  }
 0x26e   : > { %v1524_v6 = vpop.permute.xlu1 %1523  ;;  %v10265_v27 = vpop.permute.xlu0 %1525  ;;  %2671 = vperm.xlu0 %8064, %v710_v29  }
 0x26f   : > { %v1553_v58 = vsel %vm1549_vm9, %v1524_v6, %v10265_v27  ;;  %v1552_v49 = vsel %vm1549_vm9, %v10171_v12, %v1524_v6 }
 0x270   : > { %6771 = vmatmul.mubr.msk.f32.gmra.mxu0 %vm1606_vm3, %v10263_v57  ;;  %1740 = vmatprep.subr.mxu1 %v1553_v58 }
 0x271   : > { %1741 = vmatpush1.msra.mxu1 %v1552_v49  ;;  %1715 = vmatprep.mubr.f32.mxu0 %v12575_v54 }
 0x272   : > { %v1479_v44 = vpop.permute.xlu1 %1478  ;;  %v10276_v7 = vpop.permute.xlu0 %1480  ;;  %2735 = vperm.xlu1 %8065, %v718_v28   ;;  %2666 = vperm.xlu0 %8064, %v709_v59  }
 0x273   : > { %v1499_v41 = vsel %vm1488_vm15, %v1479_v44, %v10276_v7  ;;  %v1498_v12 = vsel %vm1488_vm15, %v10206_v14, %v1479_v44 }
 0x274   : > { %6772 = vmatmul.mubr.msk.f32.gmra.mxu0 %vm1606_vm3, %v10274_v26  ;;  %1742 = vmatprep.subr.mxu1 %v1499_v41 }
 0x275   : > { %1743 = vmatpush1.msra.mxu1 %v1498_v12  ;;  %1875 = vmatprep.mubr.f32.mxu0 %v12575_v54 }
 0x276   : > { %v1463_v45 = vpop.permute.xlu1 %1462  ;;  %v10285_v47 = vpop.permute.xlu0 %1464  ;;  %2730 = vperm.xlu1 %8065, %v717_v0   ;;  %2661 = vperm.xlu0 %8064, %v708_v53  }
 0x277   : > { %v1492_v8 = vsel %vm1488_vm15, %v1463_v45, %v10285_v47  ;;  %v1491_v14 = vsel %vm1488_vm15, %v10217_v17, %v1463_v45 }
 0x278   : > { %1744 = vmatprep.subr.mxu1 %v1492_v8 }
 0x279   : > { %1745 = vmatpush1.msra.mxu1 %v1491_v14 }
 0x27a   : > { %v1418_v5 = vpop.permute.xlu1 %1417  ;;  %v10291_v11 = vpop.permute.xlu0 %1419  ;;  %2725 = vperm.xlu1 %8065, %v716_v18   ;;  %2656 = vperm.xlu0 %8064, %v707_v15  }
 0x27b   : > { %v1438_v38 = vsel %vm1427_vm1, %v1418_v5, %v10291_v11  ;;  %v1437_v50 = vsel %vm1427_vm1, %v10225_v22, %v1418_v5 }
 0x27c   : > { %1746 = vmatprep.subr.mxu1 %v1438_v38 }
 0x27d   : > { %1747 = vmatpush1.msra.mxu1 %v1437_v50 }
 0x27e   : > { %v1589_v17 = vpop.permute.xlu1 %1588  ;;  %v10297_v55 = vpop.permute.xlu0 %1590  ;;  %2720 = vperm.xlu1 %8065, %v715_v51   ;;  %2710 = vperm.xlu0 %8064, %v713_v32  }
 0x27f   : > { %v1599_v20 = vsel %vm1594_vm14, %v10237_v23, %v1589_v17  ;;  %v1600_v35 = vsel %vm1594_vm14, %v1589_v17, %v10297_v55  ;;  %v724_v23 = vld [vmem:[#allocation19 + $0xc8] sm:$0xff] }
 0x280   : > { %6779 = vmatprep.subr.msk.mxu0 %vm1244_vm2, %v1600_v35 }
 0x281   : > { %6780 = vmatpush1.msk.msra.mxu0 %vm1244_vm2, %v1599_v20 }
 0x282   : > { %v1402_v22 = vpop.permute.xlu1 %1401  ;;  %v10305_v21 = vpop.permute.xlu0 %1403  ;;  %2715 = vperm.xlu1 %8065, %v714_v61   ;;  %3072 = vperm.xlu0 %8064, %v720_v13  }
 0x283   : > { %v1431_v63 = vsel %vm1427_vm1, %v1402_v22, %v10305_v21  ;;  %v1430_v4 = vsel %vm1427_vm1, %v10230_v1, %v1402_v22  ;;  %v723_v1 = vld [vmem:[#allocation19 + $0xc0] sm:$0xff] }
 0x284   : > { %1748 = vmatprep.subr.mxu1 %v1431_v63 }
 0x285   : > { %1749 = vmatpush1.msra.mxu1 %v1430_v4 }
 0x286   : > { %1750 = vmatprep.subr.mxu1 %v9931_v39  ;;  %3067 = vperm.xlu1 %8065, %v719_v9  }
 0x287   : > { %1751 = vmatpush1.msra.mxu1 %v9764_v25  ;;  %3077 = vperm.xlu0 %8064, %v721_v42  }
 0x288   : > { %1752 = vmatprep.subr.mxu1 %v9982_v36 }
 0x289   : > { %1753 = vmatpush1.msra.mxu1 %v9803_v48 }
 0x28a   : > { %6775 = vmatmul.mubr.msk.f32.vlgmr.msra.gmra.mxu1 %vm1606_vm3, %v10239_v60  ;;  %3085 = vperm.xlu1 %8065, %v722_v46  }
 0x28b   : > { %1792 = vmatprep.mubr.f32.mxu1 %v12575_v54  ;;  %3095 = vperm.xlu0 %8064, %v724_v23  }
 0x28e   : > { %6776 = vmatmul.mubr.msk.f32.gmra.mxu1 %vm1606_vm3, %v10254_v52  ;;  %3090 = vperm.xlu1 %8065, %v723_v1  }
 0x28f   : > { %1798 = vmatprep.mubr.f32.mxu1 %v12575_v54 }
 0x292   : > { %6777 = vmatmul.mubr.msk.f32.gmra.mxu1 %vm1606_vm3, %v10263_v57 }
 0x293   : > { %1804 = vmatprep.mubr.f32.mxu1 %v12575_v54 }
 0x296   : > { %6778 = vmatmul.mubr.msk.f32.gmra.mxu1 %vm1606_vm3, %v10274_v26 }
 0x297   : > { %7341 = vmatprep.mubr.msk.f32.mxu1 %vm1606_vm3, %v10239_v60 }
 0x2a2   : > { %v1544_v25 = vpop.permute.xlu1 %1543  ;;  %v1546_v48 = vpop.permute.xlu0 %1545 }
 0x2a3   : > { %v1562_v39 = vsel %vm1549_vm9, %v1544_v25, %v1546_v48  ;;  %v1561_v36 = vsel %vm1549_vm9, %v10251_v34, %v1544_v25 }
 0x2a4   : > { %1827 = vmatprep.subr.mxu0 %v1562_v39 }
 0x2a5   : > { %1828 = vmatpush1.msra.mxu0 %v1561_v36 }
 0x2aa   : > { %v1528_v30 = vpop.permute.xlu1 %1527  ;;  %v1530_v33 = vpop.permute.xlu0 %1529 }
 0x2ab   : > { %v1555_v62 = vsel %vm1549_vm9, %v1528_v30, %v1530_v33  ;;  %v1554_v2 = vsel %vm1549_vm9, %v10265_v27, %v1528_v30 }
 0x2ac   : > { %1829 = vmatprep.subr.mxu0 %v1555_v62 }
 0x2ad   : > { %1830 = vmatpush1.msra.mxu0 %v1554_v2 }
 0x2ae   : > { %v1483_v3 = vpop.permute.xlu1 %1482  ;;  %v1485_v24 = vpop.permute.xlu0 %1484 }
 0x2af   : > { %v1501_v10 = vsel %vm1488_vm15, %v1483_v3, %v1485_v24  ;;  %v1500_v56 = vsel %vm1488_vm15, %v10276_v7, %v1483_v3 }
 0x2b0   : > { %1831 = vmatprep.subr.mxu0 %v1501_v10 }
 0x2b1   : > { %1832 = vmatpush1.msra.mxu0 %v1500_v56 }
 0x2b2   : > { %v1467_v34 = vpop.permute.xlu1 %1466  ;;  %v1469_v29 = vpop.permute.xlu0 %1468 }
 0x2b3   : > { %v1494_v6 = vsel %vm1488_vm15, %v1467_v34, %v1469_v29  ;;  %v1493_v58 = vsel %vm1488_vm15, %v10285_v47, %v1467_v34 }
 0x2b4   : > { %1833 = vmatprep.subr.mxu0 %v1494_v6 }
 0x2b5   : > { %1834 = vmatpush1.msra.mxu0 %v1493_v58 }
 0x2b6   : > { %v1422_v27 = vpop.permute.xlu1 %1421  ;;  %v1424_v49 = vpop.permute.xlu0 %1423 }
 0x2b7   : > { %v1440_v28 = vsel %vm1427_vm1, %v1422_v27, %v1424_v49  ;;  %v1439_v59 = vsel %vm1427_vm1, %v10291_v11, %v1422_v27 }
 0x2b8   : > { %1835 = vmatprep.subr.mxu0 %v1440_v28 }
 0x2b9   : > { %1836 = vmatpush1.msra.mxu0 %v1439_v59 }
 0x2ba   : > { %v1406_v44 = vpop.permute.xlu1 %1405  ;;  %v1408_v7 = vpop.permute.xlu0 %1407 }
 0x2bb   : > { %v1433_v41 = vsel %vm1427_vm1, %v1406_v44, %v1408_v7  ;;  %v1432_v12 = vsel %vm1427_vm1, %v10305_v21, %v1406_v44 }
 0x2bc   : > { %1837 = vmatprep.subr.mxu0 %v1433_v41 }
 0x2bd   : > { %1838 = vmatpush1.msra.mxu0 %v1432_v12 }
 0x2be   : > { %v1593_v0 = vpop.permute.xlu1 %1592  ;;  %1839 = vmatprep.subr.mxu0 %v10092_v31  ;;  %v1548_v53 = vpop.permute.xlu0 %1547 }
 0x2bf   : > { %v1601_v45 = vsel %vm1594_vm14, %v10297_v55, %v1593_v0  ;;  %1840 = vmatpush1.msra.mxu0 %v9956_v19  ;;  %v1563_v47 = vsel %vm1549_vm9, %v1546_v48, %v1548_v53 }
 0x2c0   : > { %1841 = vmatprep.subr.mxu0 %v10138_v37  ;;  %7323 = vmatprep.subr.msk.mxu1 %vm1244_vm2, %v1601_v45 }
 0x2c1   : > { %1842 = vmatpush1.msra.mxu0 %v9979_v16  ;;  %7324 = vmatpush3.msk.msra.mxu1 %vm1244_vm2, %v1601_v45 }
 0x2c2   : > { %v1532_v8 = vpop.permute.xlu1 %1531  ;;  %6781 = vmatmul.mubr.msk.f32.vlgmr.msra.gmra.mxu0 %vm1606_vm3, %v10239_v60  ;;  %7325 = vmatprep.subr.mxu1 %v1563_v47  ;;  %v1487_v31 = vpop.permute.xlu0 %1486 }
 0x2c3   : > { %7326 = vmatpush3.msra.mxu1 %v1563_v47  ;;  %v1556_v14 = vsel %vm1549_vm9, %v1530_v33, %v1532_v8  ;;  %1881 = vmatprep.mubr.f32.mxu0 %v12575_v54  ;;  %v1502_v19 = vsel %vm1488_vm15, %v1485_v24, %v1487_v31 }
 0x2c4   : > { %7327 = vmatprep.subr.mxu1 %v1556_v14 }
 0x2c5   : > { %7328 = vmatpush3.msra.mxu1 %v1556_v14 }
 0x2c6   : > { %v1471_v16 = vpop.permute.xlu1 %1470  ;;  %6782 = vmatmul.mubr.msk.f32.gmra.mxu0 %vm1606_vm3, %v10254_v52  ;;  %7329 = vmatprep.subr.mxu1 %v1502_v19  ;;  %v1426_v37 = vpop.permute.xlu0 %1425 }
 0x2c7   : > { %7330 = vmatpush3.msra.mxu1 %v1502_v19  ;;  %v1495_v60 = vsel %vm1488_vm15, %v1469_v29, %v1471_v16  ;;  %1887 = vmatprep.mubr.f32.mxu0 %v12575_v54  ;;  %v1441_v18 = vsel %vm1427_vm1, %v1424_v49, %v1426_v37 }
 0x2c8   : > { %7331 = vmatprep.subr.mxu1 %v1495_v60 }
 0x2c9   : > { %7332 = vmatpush3.msra.mxu1 %v1495_v60 }
 0x2ca   : > { %v1410_v15 = vpop.permute.xlu1 %1409  ;;  %6783 = vmatmul.mubr.msk.f32.gmra.mxu0 %vm1606_vm3, %v10263_v57  ;;  %7333 = vmatprep.subr.mxu1 %v1441_v18 }
 0x2cb   : > { %7334 = vmatpush3.msra.mxu1 %v1441_v18  ;;  %v1434_v5 = vsel %vm1427_vm1, %v1408_v7, %v1410_v15  ;;  %1893 = vmatprep.mubr.f32.mxu0 %v12575_v54 }
 0x2cc   : > { %7335 = vmatprep.subr.mxu1 %v1434_v5 }
 0x2cd   : > { %7336 = vmatpush3.msra.mxu1 %v1434_v5 }
 0x2ce   : > { %6784 = vmatmul.mubr.msk.f32.gmra.mxu0 %vm1606_vm3, %v10274_v26  ;;  %7337 = vmatprep.subr.mxu1 %v10089_v43 }
 0x2cf   : > { %7338 = vmatpush3.msra.mxu1 %v10089_v43  ;;  %2433 = vmatprep.mubr.f32.mxu0 %v12575_v54 }
 0x2d0   : > { %7339 = vmatprep.subr.mxu1 %v10135_v40 }
 0x2d1   : > { %7340 = vmatpush3.msra.mxu1 %v10135_v40 }
 0x2d2   : > { %7342 = vmatmul.mubr.msk.f32.vlgmr.msra.gmra.mxu1 %vm1606_vm3, %v10254_v52 }
 0x2d3   : > { %7344 = vmatprep.mubr.msk.f32.mxu1 %vm1606_vm3, %v10263_v57  ;;  %v10383_v11 = vpop.permute.xlu0 %2002 }
 0x2d6   : > { %7345 = vmatmul.mubr.msk.f32.gmra.mxu1 %vm1606_vm3, %v10274_v26 }
 0x2d7   : > { %2338 = vmatprep.mubr.f32.mxu1 %v12575_v54  ;;  %v10385_v43 = vpop.permute.xlu1 %1997 }
 0x2d8   : > { %v10387_v38 = vpop.permute.xlu0 %1992 }
 0x2db   : > { %v10389_v50 = vpop.permute.xlu1 %2050 }
 0x2dc   : > { %v10391_v40 = vpop.permute.xlu0 %1987 }
 0x2df   : > { %v10393_v52 = vpop.permute.xlu1 %2045 }
 0x2e0   : > { %v10395_v57 = vpop.permute.xlu0 %2035 }
 0x2e4   : > { %v10401_v35 = vpop.permute.xlu1 %2040 }
 0x328   : > { %v1699_v51 = vpop.f32.mrf.mxu0 }
 0x329   : > { %v2005_v21 = vmul.f32 %v10391_v40, %v1699_v51 }
 0x32a   : > { %v1701_v32 = vpop.f32.mrf.mxu0 }
 0x32b   : > { %v2006_v26 = vmul.f32 %v10391_v40, %v1701_v32  ;;  %v10420_v39 = vadd.f32 %v10395_v57, %v2005_v21 }
 0x32c   : > { %v1705_v17 = vpop.f32.mrf.mxu0 }
 0x32d   : > { %v10399_v55 = vadd.f32 %v10395_v57, %v2006_v26  ;;  %v2012_v61 = vmul.f32 %v10387_v38, %v1705_v17  ;;  %v2109_v6 = vmin.f32 %v10420_v39, 0.0  ;;  %vm2081_vm13 = vcmp.gt.f32.partialorder %v10420_v39, 0.0 }
 0x32e   : > { %v1707_v20 = vpop.f32.mrf.mxu0 }
 0x32f   : > { %v2013_v13 = vmul.f32 %v10387_v38, %v1707_v20  ;;  %v2110_v9 = vmin.f32 %v10399_v55, 0.0  ;;  %v10412_v46 = vadd.f32 %v10401_v35, %v2012_v61  ;;  %v2137_v7 = vmul.f32 1.442695, %v2109_v6 }
 0x330   : > { %v1711_v22 = vpop.f32.mrf.mxu0  ;;  %vm2082_vm0 = vcmp.gt.f32.partialorder %v10399_v55, 0.0 }
 0x331   : > { %v2019_v63 = vmul.f32 %v10385_v43, %v1711_v22  ;;  %v10408_v4 = vadd.f32 %v10401_v35, %v2013_v13  ;;  %v2139_v62 = vmul.f32 1.442695, %v2110_v9  ;;  %v2116_v24 = vmin.f32 %v10412_v46, 0.0 }
 0x332   : > { %v1713_v42 = vpop.f32.mrf.mxu0  ;;  %vm2088_vm5 = vcmp.gt.f32.partialorder %v10412_v46, 0.0 }
 0x333   : > { %v2020_v23 = vmul.f32 %v10385_v43, %v1713_v42  ;;  %v10416_v1 = vadd.f32 %v10393_v52, %v2019_v63  ;;  %v2117_v25 = vmin.f32 %v10408_v4, 0.0  ;;  %8066 = vpow2.f32 %v2139_v62 }
 0x334   : > { %v1717_v48 = vpop.f32.mrf.mxu0  ;;  %v2151_v28 = vmul.f32 1.442695, %v2116_v24  ;;  %vm2089_vm11 = vcmp.gt.f32.partialorder %v10408_v4, 0.0 }
 0x335   : > { %v2026_v36 = vmul.f32 %v10383_v11, %v1717_v48  ;;  %v2068_v30 = vadd.f32 %v10393_v52, %v2020_v23  ;;  %v2123_v33 = vmin.f32 %v10416_v1, 0.0  ;;  %v2153_v3 = vmul.f32 1.442695, %v2117_v25 }
 0x336   : > { %v1719_v2 = vpop.f32.mrf.mxu0  ;;  %vm2095_vm12 = vcmp.gt.f32.partialorder %v10416_v1, 0.0 }
 0x337   : > { %v2027_v10 = vmul.f32 %v10383_v11, %v1719_v2  ;;  %v2074_v56 = vadd.f32 %v10389_v50, %v2026_v36  ;;  %v2124_v34 = vmin.f32 %v2068_v30, 0.0  ;;  %v2165_v29 = vmul.f32 1.442695, %v2123_v33 }
 0x338   : > { %8068 = vpow2.f32 %v2153_v3  ;;  %vm2096_vm10 = vcmp.gt.f32.partialorder %v2068_v30, 0.0 }
 0x339   : > { %v2075_v58 = vadd.f32 %v10389_v50, %v2027_v10  ;;  %v2130_v27 = vmin.f32 %v2074_v56, 0.0  ;;  %v2167_v49 = vmul.f32 1.442695, %v2124_v34  ;;  %vm2102_vm2 = vcmp.gt.f32.partialorder %v2074_v56, 0.0 }
 0x33b   : > { %v2131_v59 = vmin.f32 %v2075_v58, 0.0  ;;  %v2179_v44 = vmul.f32 1.442695, %v2130_v27  ;;  %8070 = vpow2.f32 %v2167_v49  ;;  %vm2103_vm7 = vcmp.gt.f32.partialorder %v2075_v58, 0.0 }
 0x33c   : > { %8072 = vpow2.f32 %v2165_v29 }
 0x33d   : > { %v2181_v41 = vmul.f32 1.442695, %v2131_v59  ;;  %8074 = vpow2.f32 %v2179_v44 }
 0x33e   : > { %8076 = vpow2.f32 %v2151_v28 }
 0x33f   : > { %8078 = vpow2.f32 %v2181_v41 }
 0x340   : > { %8080 = vpow2.f32 %v2137_v7  ;;  %v8067_v12 = vpop.eup %8066 }
 0x341   : > { %v6791_v22 = vadd.f32 -1.0, %v8067_v12  ;;  %v10485_v12 = vld [vmem:[%s12517_s2 + $0x8] sm:$0xff] }
 0x343   : > { %v2222_v62 = vsel %vm2082_vm0, %v10399_v55, %v6791_v22 }
 0x345   : > { %v8069_v0 = vpop.eup %8068 }
 0x346   : > { %v6798_v51 = vadd.f32 -1.0, %v8069_v0 }
 0x348   : > { %v8071_v53 = vpop.eup %8070  ;;  %v2229_v25 = vsel %vm2089_vm11, %v10408_v4, %v6798_v51 }
 0x349   : > { %v8073_v45 = vpop.eup %8072  ;;  %v6805_v19 = vadd.f32 -1.0, %v8071_v53 }
 0x34a   : > { %v8075_v47 = vpop.eup %8074  ;;  %v1788_v8 = vpop.f32.mrf.mxu1  ;;  %v6804_v60 = vadd.f32 -1.0, %v8073_v45 }
 0x34b   : > { %v8077_v31 = vpop.eup %8076  ;;  %v6811_v14 = vadd.f32 -1.0, %v8075_v47  ;;  %v2236_v13 = vsel %vm2096_vm10, %v2068_v30, %v6805_v19  ;;  %v2007_v48 = vmul.f32 %v10391_v40, %v1788_v8 }
 0x34c   : > { %v8079_v16 = vpop.eup %8078  ;;  %v1790_v37 = vpop.f32.mrf.mxu1  ;;  %v6797_v17 = vadd.f32 -1.0, %v8077_v31  ;;  %v2235_v9 = vsel %vm2095_vm12, %v10416_v1, %v6804_v60 }
 0x34d   : > { %v8081_v18 = vpop.eup %8080  ;;  %v2008_v15 = vmul.f32 %v10391_v40, %v1790_v37  ;;  %v6812_v5 = vadd.f32 -1.0, %v8079_v16  ;;  %v2242_v26 = vsel %vm2102_vm2, %v2074_v56, %v6811_v14  ;;  %v10462_v56 = vld [vmem:[%s12517_s2] sm:$0xff]  ;;  %v10465_v55 = vadd.f32 %v10395_v57, %v2007_v48  ;;  %v10495_v16 = vld [vmem:[%s12517_s2 + $0x10] sm:$0xff] }
 0x34e   : > { %v1794_v32 = vpop.f32.mrf.mxu1  ;;  %v6790_v42 = vadd.f32 -1.0, %v8081_v18  ;;  %v2228_v30 = vsel %vm2088_vm5, %v10412_v46, %v6797_v17  ;;  %v10503_v18 = vld [vmem:[%s12517_s2 + $0x18] sm:$0xff] }
 0x34f   : > { %v10435_v20 = vadd.f32 %v10395_v57, %v2008_v15  ;;  %v2243_v61 = vsel %vm2103_vm7, %v2075_v58, %v6812_v5  ;;  %v2014_v21 = vmul.f32 %v10387_v38, %v1794_v32  ;;  %v2111_v0 = vmin.f32 %v10465_v55, 0.0  ;;  %v10511_v15 = vld [vmem:[%s12517_s2 + $0x20] sm:$0xff]  ;;  %v10519_v32 = vld [vmem:[%s12517_s2 + $0x28] sm:$0xff] }
 0x350   : > { %v1796_v63 = vpop.f32.mrf.mxu1  ;;  %2298 = vmatprep.subr.mxu1 %v2243_v61  ;;  %v2221_v24 = vsel %vm2081_vm13, %v10420_v39, %v6790_v42  ;;  %vm2083_vm2 = vcmp.gt.f32.partialorder %v10465_v55, 0.0 }
 0x351   : > { %v2015_v23 = vmul.f32 %v10387_v38, %v1796_v63  ;;  %2299 = vmatpush1.msra.mxu1 %v2242_v26  ;;  %v2112_v1 = vmin.f32 %v10435_v20, 0.0  ;;  %v10453_v4 = vadd.f32 %v10401_v35, %v2014_v21  ;;  %v2141_v37 = vmul.f32 1.442695, %v2111_v0 }
 0x352   : > { %v1800_v36 = vpop.f32.mrf.mxu1  ;;  %2300 = vmatprep.subr.mxu1 %v2236_v13  ;;  %vm2084_vm3 = vcmp.gt.f32.partialorder %v10435_v20, 0.0 }
 0x353   : > { %v10449_v33 = vadd.f32 %v10401_v35, %v2015_v23  ;;  %2301 = vmatpush1.msra.mxu1 %v2235_v9  ;;  %v2021_v2 = vmul.f32 %v10385_v43, %v1800_v36  ;;  %v2143_v39 = vmul.f32 1.442695, %v2112_v1  ;;  %v2118_v27 = vmin.f32 %v10453_v4, 0.0 }
 0x354   : > { %v1802_v3 = vpop.f32.mrf.mxu1  ;;  %2302 = vmatprep.subr.mxu1 %v2229_v25  ;;  %vm2090_vm1 = vcmp.gt.f32.partialorder %v10453_v4, 0.0 }
 0x355   : > { %v2119_v10 = vmin.f32 %v10449_v33, 0.0  ;;  %v2022_v46 = vmul.f32 %v10385_v43, %v1802_v3  ;;  %2303 = vmatpush1.msra.mxu1 %v2228_v30  ;;  %v10468_v34 = vadd.f32 %v10393_v52, %v2021_v2  ;;  %8082 = vpow2.f32 %v2143_v39 }
 0x356   : > { %v1806_v29 = vpop.f32.mrf.mxu1  ;;  %2304 = vmatprep.subr.mxu1 %v2222_v62  ;;  %v2155_v31 = vmul.f32 1.442695, %v2118_v27  ;;  %vm2091_vm4 = vcmp.gt.f32.partialorder %v10449_v33, 0.0 }
 0x357   : > { %v10471_v6 = vadd.f32 %v10393_v52, %v2022_v46  ;;  %v2028_v58 = vmul.f32 %v10383_v11, %v1806_v29  ;;  %2305 = vmatpush1.msra.mxu1 %v2221_v24  ;;  %v2157_v49 = vmul.f32 1.442695, %v2119_v10  ;;  %v2125_v28 = vmin.f32 %v10468_v34, 0.0 }
 0x358   : > { %v1808_v59 = vpop.f32.mrf.mxu1  ;;  %6818 = vmatmul.mubr.msk.f32.vlgmr.msra.gmra.mxu1 %vm2255_vm8, %v10462_v56  ;;  %vm2097_vm15 = vcmp.gt.f32.partialorder %v10468_v34, 0.0 }
 0x359   : > { %v2126_v44 = vmin.f32 %v10471_v6, 0.0  ;;  %v2076_v7 = vadd.f32 %v10389_v50, %v2028_v58  ;;  %v2029_v41 = vmul.f32 %v10383_v11, %v1808_v59  ;;  %2343 = vmatprep.mubr.f32.mxu1 %v12575_v54  ;;  %v2169_v53 = vmul.f32 1.442695, %v2125_v28 }
 0x35a   : > { %8084 = vpow2.f32 %v2157_v49  ;;  %vm2098_vm6 = vcmp.gt.f32.partialorder %v10471_v6, 0.0 }
 0x35b   : > { %v2171_v45 = vmul.f32 1.442695, %v2126_v44  ;;  %v2132_v47 = vmin.f32 %v2076_v7, 0.0  ;;  %v2077_v8 = vadd.f32 %v10389_v50, %v2029_v41  ;;  %vm2104_vm14 = vcmp.gt.f32.partialorder %v2076_v7, 0.0 }
 0x35c   : > { %6819 = vmatmul.mubr.msk.f32.gmra.mxu1 %vm2255_vm8, %v10485_v12 }
 0x35d   : > { %8086 = vpow2.f32 %v2171_v45  ;;  %v2183_v14 = vmul.f32 1.442695, %v2132_v47  ;;  %v2133_v19 = vmin.f32 %v2077_v8, 0.0  ;;  %2348 = vmatprep.mubr.f32.mxu1 %v12575_v54  ;;  %vm2105_vm9 = vcmp.gt.f32.partialorder %v2077_v8, 0.0 }
 0x35e   : > { %8088 = vpow2.f32 %v2169_v53 }
 0x35f   : > { %8090 = vpow2.f32 %v2183_v14  ;;  %v2185_v60 = vmul.f32 1.442695, %v2133_v19 }
 0x360   : > { %8092 = vpow2.f32 %v2155_v31  ;;  %6820 = vmatmul.mubr.msk.f32.gmra.mxu1 %vm2255_vm8, %v10495_v16 }
 0x361   : > { %8094 = vpow2.f32 %v2185_v60  ;;  %2353 = vmatprep.mubr.f32.mxu1 %v12575_v54 }
 0x362   : > { %8096 = vpow2.f32 %v2141_v37  ;;  %v8083_v5 = vpop.eup %8082 }
 0x363   : > { %v6793_v62 = vadd.f32 -1.0, %v8083_v5 }
 0x364   : > { %6821 = vmatmul.mubr.msk.f32.gmra.mxu1 %vm2255_vm8, %v10503_v18 }
 0x365   : > { %2358 = vmatprep.mubr.f32.mxu1 %v12575_v54  ;;  %v2224_v46 = vsel %vm2084_vm3, %v10435_v20, %v6793_v62 }
 0x367   : > { %v8085_v51 = vpop.eup %8084 }
 0x368   : > { %6822 = vmatmul.mubr.msk.f32.gmra.mxu1 %vm2255_vm8, %v10511_v15  ;;  %v6800_v25 = vadd.f32 -1.0, %v8085_v51 }
 0x369   : > { %2363 = vmatprep.mubr.f32.mxu1 %v12575_v54 }
 0x36a   : > { %v8087_v26 = vpop.eup %8086  ;;  %v2231_v24 = vsel %vm2091_vm4, %v10449_v33, %v6800_v25 }
 0x36b   : > { %v8089_v17 = vpop.eup %8088  ;;  %v6807_v21 = vadd.f32 -1.0, %v8087_v26 }
 0x36c   : > { %v8091_v61 = vpop.eup %8090  ;;  %6823 = vmatmul.mubr.msk.f32.gmra.mxu1 %vm2255_vm8, %v10519_v32  ;;  %v6806_v9 = vadd.f32 -1.0, %v8089_v17 }
 0x36d   : > { %v8093_v13 = vpop.eup %8092  ;;  %v6813_v22 = vadd.f32 -1.0, %v8091_v61  ;;  %2528 = vmatprep.mubr.f32.mxu1 %v12575_v54  ;;  %v2238_v1 = vsel %vm2098_vm6, %v10471_v6, %v6807_v21 }
 0x36e   : > { %v8095_v63 = vpop.eup %8094  ;;  %v6799_v36 = vadd.f32 -1.0, %v8093_v13  ;;  %v2237_v2 = vsel %vm2097_vm15, %v10468_v34, %v6806_v9 }
 0x36f   : > { %v8097_v42 = vpop.eup %8096  ;;  %v6814_v23 = vadd.f32 -1.0, %v8095_v63  ;;  %v2244_v48 = vsel %vm2104_vm14, %v2076_v7, %v6813_v22 }
 0x370   : > { %v6792_v3 = vadd.f32 -1.0, %v8097_v42  ;;  %v2230_v10 = vsel %vm2090_vm1, %v10453_v4, %v6799_v36  ;;  %vm8888_vm1 = vmmov 0  }
 0x371   : > { %v2245_v30 = vsel %vm2105_vm9, %v2077_v8, %v6814_v23 }
 0x372   : > { %2393 = vmatprep.subr.mxu0 %v2245_v30  ;;  %v2223_v29 = vsel %vm2083_vm2, %v10465_v55, %v6792_v3 }
 0x373   : > { %2394 = vmatpush1.msra.mxu0 %v2244_v48 }
 0x374   : > { %2395 = vmatprep.subr.mxu0 %v2238_v1 }
 0x375   : > { %2396 = vmatpush1.msra.mxu0 %v2237_v2 }
 0x376   : > { %2397 = vmatprep.subr.mxu0 %v2231_v24 }
 0x377   : > { %2398 = vmatpush1.msra.mxu0 %v2230_v10 }
 0x378   : > { %2399 = vmatprep.subr.mxu0 %v2224_v46 }
 0x379   : > { %2400 = vmatpush1.msra.mxu0 %v2223_v29 }
 0x37a   : > { %6824 = vmatmul.mubr.msk.f32.vlgmr.msra.gmra.mxu0 %vm2255_vm8, %v10462_v56 }
 0x37b   : > { %2438 = vmatprep.mubr.f32.mxu0 %v12575_v54 }
 0x37e   : > { %6825 = vmatmul.mubr.msk.f32.gmra.mxu0 %vm2255_vm8, %v10485_v12 }
 0x37f   : > { %2443 = vmatprep.mubr.f32.mxu0 %v12575_v54 }
 0x382   : > { %v1877_v33 = vpop.f32.mrf.mxu0  ;;  %6826 = vmatmul.mubr.msk.f32.gmra.mxu0 %vm2255_vm8, %v10495_v16 }
 0x383   : > { %2448 = vmatprep.mubr.f32.mxu0 %v12575_v54  ;;  %v2009_v49 = vmul.f32 %v10391_v40, %v1877_v33 }
 0x384   : > { %v1879_v20 = vpop.f32.mrf.mxu0 }
 0x385   : > { %v2010_v39 = vmul.f32 %v10391_v40, %v1879_v20  ;;  %v10579_v31 = vadd.f32 %v10395_v57, %v2009_v49 }
 0x386   : > { %v1883_v4 = vpop.f32.mrf.mxu0  ;;  %6827 = vmatmul.mubr.msk.f32.gmra.mxu0 %vm2255_vm8, %v10503_v18 }
 0x387   : > { %2453 = vmatprep.mubr.f32.mxu0 %v12575_v54  ;;  %v2016_v6 = vmul.f32 %v10387_v38, %v1883_v4  ;;  %v10562_v41 = vadd.f32 %v10395_v57, %v2010_v39  ;;  %v2113_v9 = vmin.f32 %v10579_v31, 0.0  ;;  %vm2085_vm9 = vcmp.gt.f32.partialorder %v10579_v31, 0.0 }
 0x388   : > { %v1885_v55 = vpop.f32.mrf.mxu0 }
 0x389   : > { %v2017_v34 = vmul.f32 %v10387_v38, %v1885_v55  ;;  %v10565_v0 = vadd.f32 %v10401_v35, %v2016_v6  ;;  %v2114_v26 = vmin.f32 %v10562_v41, 0.0  ;;  %v2145_v10 = vmul.f32 1.442695, %v2113_v9 }
 0x38a   : > { %v1889_v58 = vpop.f32.mrf.mxu0  ;;  %6828 = vmatmul.mubr.msk.f32.gmra.mxu0 %vm2255_vm8, %v10511_v15  ;;  %vm2086_vm13 = vcmp.gt.f32.partialorder %v10562_v41, 0.0 }
 0x38b   : > { %v10554_v27 = vadd.f32 %v10401_v35, %v2017_v34  ;;  %2458 = vmatprep.mubr.f32.mxu0 %v12575_v54  ;;  %v2023_v28 = vmul.f32 %v10385_v43, %v1889_v58  ;;  %v2120_v17 = vmin.f32 %v10565_v0, 0.0  ;;  %v2147_v30 = vmul.f32 1.442695, %v2114_v26 }
 0x38c   : > { %v1891_v59 = vpop.f32.mrf.mxu0  ;;  %vm2092_vm0 = vcmp.gt.f32.partialorder %v10565_v0, 0.0 }
 0x38d   : > { %v2121_v44 = vmin.f32 %v10554_v27, 0.0  ;;  %v2024_v7 = vmul.f32 %v10385_v43, %v1891_v59  ;;  %v10568_v53 = vadd.f32 %v10393_v52, %v2023_v28  ;;  %v2159_v1 = vmul.f32 1.442695, %v2120_v17 }
 0x38e   : > { %v1895_v45 = vpop.f32.mrf.mxu0  ;;  %6829 = vmatmul.mubr.msk.f32.gmra.mxu0 %vm2255_vm8, %v10519_v32  ;;  %vm2093_vm5 = vcmp.gt.f32.partialorder %v10554_v27, 0.0 }
 0x38f   : > { %v10573_v47 = vadd.f32 %v10393_v52, %v2024_v7  ;;  %v2030_v8 = vmul.f32 %v10383_v11, %v1895_v45  ;;  %7355 = vmatprep.mubr.msk.f32.mxu0 %vm2255_vm8, %v10462_v56  ;;  %v2127_v14 = vmin.f32 %v10568_v53, 0.0  ;;  %v2161_v37 = vmul.f32 1.442695, %v2121_v44 }
 0x390   : > { %v1897_v19 = vpop.f32.mrf.mxu0  ;;  %vm2099_vm11 = vcmp.gt.f32.partialorder %v10568_v53, 0.0 }
 0x391   : > { %v2128_v60 = vmin.f32 %v10573_v47, 0.0  ;;  %v10584_v5 = vadd.f32 %v10389_v50, %v2030_v8  ;;  %v2031_v51 = vmul.f32 %v10383_v11, %v1897_v19  ;;  %v2173_v42 = vmul.f32 1.442695, %v2127_v14 }
 0x392   : > { %v7343_v61 = vpop.f32.mrf.mxu1  ;;  %8098 = vpow2.f32 %v2161_v37  ;;  %vm2100_vm12 = vcmp.gt.f32.partialorder %v10573_v47, 0.0 }
 0x393   : > { %v2175_v13 = vmul.f32 1.442695, %v2128_v60  ;;  %v2134_v22 = vmin.f32 %v10584_v5, 0.0  ;;  %v2079_v21 = vadd.f32 %v10389_v50, %v2031_v51  ;;  %v2018_v63 = vmul.f32 %v7343_v61, %v10387_v38 }
 0x394   : > { %v1966_v23 = vpop.f32.mrf.mxu1  ;;  %vm2106_vm10 = vcmp.gt.f32.partialorder %v10584_v5, 0.0 }
 0x395   : > { %v2187_v25 = vmul.f32 1.442695, %v2134_v22  ;;  %v2135_v48 = vmin.f32 %v2079_v21, 0.0  ;;  %v10594_v36 = vadd.f32 %v10401_v35, %v2018_v63  ;;  %8100 = vpow2.f32 %v2175_v13 }
 0x396   : > { %v2011_v62 = vmul.f32 %v10391_v40, %v1966_v23  ;;  %v7346_v2 = vpop.f32.mrf.mxu1  ;;  %vm2107_vm7 = vcmp.gt.f32.partialorder %v2079_v21, 0.0 }
 0x397   : > { %8102 = vpow2.f32 %v2187_v25  ;;  %v2189_v3 = vmul.f32 1.442695, %v2135_v48  ;;  %v2122_v38 = vmin.f32 %v10594_v36, 0.0  ;;  %v2032_v24 = vmul.f32 %v7346_v2, %v10383_v11 }
 0x398   : > { %8104 = vpow2.f32 %v2173_v42  ;;  %v10600_v46 = vadd.f32 %v10395_v57, %v2011_v62  ;;  %v1976_v29 = vpop.f32.mrf.mxu1  ;;  %vm2094_vm15 = vcmp.gt.f32.partialorder %v10594_v36, 0.0 }
 0x399   : > { %8106 = vpow2.f32 %v2189_v3  ;;  %v2080_v35 = vadd.f32 %v10389_v50, %v2032_v24  ;;  %v2025_v33 = vmul.f32 %v10385_v43, %v1976_v29  ;;  %v2163_v40 = vmul.f32 1.442695, %v2122_v38 }
 0x39a   : > { %8108 = vpow2.f32 %v2159_v1  ;;  %v2115_v20 = vmin.f32 %v10600_v46, 0.0  ;;  %vm2087_vm4 = vcmp.gt.f32.partialorder %v10600_v46, 0.0 }
 0x39b   : > { %8110 = vpow2.f32 %v2147_v30  ;;  %v2136_v4 = vmin.f32 %v2080_v35, 0.0  ;;  %v10606_v55 = vadd.f32 %v10393_v52, %v2025_v33  ;;  %vm2108_vm14 = vcmp.gt.f32.partialorder %v2080_v35, 0.0 }
 0x39c   : > { %8112 = vpow2.f32 %v2145_v10  ;;  %v2149_v11 = vmul.f32 1.442695, %v2115_v20 }
 0x39d   : > { %v2191_v34 = vmul.f32 1.442695, %v2136_v4  ;;  %v2129_v57 = vmin.f32 %v10606_v55, 0.0  ;;  %8114 = vpow2.f32 %v2163_v40  ;;  %vm2101_vm6 = vcmp.gt.f32.partialorder %v10606_v55, 0.0 }
 0x39f   : > { %8116 = vpow2.f32 %v2191_v34  ;;  %v2177_v39 = vmul.f32 1.442695, %v2129_v57  ;;  %v8099_v43 = vpop.eup %8098 }
 0x3a0   : > { %8118 = vpow2.f32 %v2149_v11  ;;  %v6802_v19 = vadd.f32 -1.0, %v8099_v43 }
 0x3a1   : > { %8120 = vpow2.f32 %v2177_v39 }
 0x3a2   : > { %v8101_v50 = vpop.eup %8100 }
 0x3a3   : > { %v6809_v52 = vadd.f32 -1.0, %v8101_v50 }
 0x3a4   : > { %v8103_v6 = vpop.eup %8102 }
 0x3a5   : > { %v8105_v58 = vpop.eup %8104  ;;  %v6815_v28 = vadd.f32 -1.0, %v8103_v6  ;;  %v2240_v26 = vsel %vm2100_vm12, %v10573_v47, %v6809_v52 }
 0x3a6   : > { %v8107_v49 = vpop.eup %8106  ;;  %v6808_v45 = vadd.f32 -1.0, %v8105_v58 }
 0x3a7   : > { %v8109_v59 = vpop.eup %8108  ;;  %v6816_v44 = vadd.f32 -1.0, %v8107_v49  ;;  %v2246_v37 = vsel %vm2106_vm10, %v10584_v5, %v6815_v28  ;;  %v2233_v5 = vsel %vm2093_vm5, %v10554_v27, %v6802_v19 }
 0x3a8   : > { %v8111_v7 = vpop.eup %8110  ;;  %v6801_v60 = vadd.f32 -1.0, %v8109_v59  ;;  %v2239_v13 = vsel %vm2099_vm11, %v10568_v53, %v6808_v45 }
 0x3a9   : > { %v8113_v8 = vpop.eup %8112  ;;  %v2247_v14 = vsel %vm2107_vm7, %v2079_v21, %v6816_v44  ;;  %v6795_v17 = vadd.f32 -1.0, %v8111_v7 }
 0x3aa   : > { %2488 = vmatprep.subr.mxu1 %v2247_v14  ;;  %v8115_v51 = vpop.eup %8114  ;;  %v6794_v22 = vadd.f32 -1.0, %v8113_v8  ;;  %v2232_v47 = vsel %vm2092_vm0, %v10565_v0, %v6801_v60 }
 0x3ab   : > { %2489 = vmatpush1.msra.mxu1 %v2246_v37  ;;  %v2226_v53 = vsel %vm2086_vm13, %v10562_v41, %v6795_v17  ;;  %v6803_v25 = vadd.f32 -1.0, %v8115_v51 }
 0x3ac   : > { %v8117_v61 = vpop.eup %8116  ;;  %2490 = vmatprep.subr.mxu1 %v2240_v26  ;;  %v2225_v27 = vsel %vm2085_vm9, %v10579_v31, %v6794_v22 }
 0x3ad   : > { %v8119_v21 = vpop.eup %8118  ;;  %2491 = vmatpush1.msra.mxu1 %v2239_v13  ;;  %v6817_v63 = vadd.f32 -1.0, %v8117_v61  ;;  %v2234_v41 = vsel %vm2094_vm15, %v10594_v36, %v6803_v25 }
 0x3ae   : > { %v8121_v9 = vpop.eup %8120  ;;  %2492 = vmatprep.subr.mxu1 %v2233_v5  ;;  %v6796_v48 = vadd.f32 -1.0, %v8119_v21 }
 0x3af   : > { %2493 = vmatpush1.msra.mxu1 %v2232_v47  ;;  %v2248_v42 = vsel %vm2108_vm14, %v2080_v35, %v6817_v63  ;;  %v6810_v23 = vadd.f32 -1.0, %v8121_v9 }
 0x3b0   : > { %2494 = vmatprep.subr.mxu1 %v2226_v53  ;;  %7347 = vmatprep.subr.mxu0 %v2248_v42  ;;  %v2227_v31 = vsel %vm2087_vm4, %v10600_v46, %v6796_v48 }
 0x3b1   : > { %2495 = vmatpush1.msra.mxu1 %v2225_v27  ;;  %7348 = vmatpush3.msra.mxu0 %v2248_v42  ;;  %v2241_v0 = vsel %vm2101_vm6, %v10606_v55, %v6810_v23 }
 0x3b2   : > { %6830 = vmatmul.mubr.msk.f32.vlgmr.msra.gmra.mxu1 %vm2255_vm8, %v10462_v56  ;;  %7349 = vmatprep.subr.mxu0 %v2241_v0  ;;  %v10657_v56 = vpop.permute.xlu0 %2676 }
 0x3b3   : > { %7350 = vmatpush3.msra.mxu0 %v2241_v0  ;;  %2533 = vmatprep.mubr.f32.mxu1 %v12575_v54 }
 0x3b4   : > { %7351 = vmatprep.subr.mxu0 %v2234_v41 }
 0x3b5   : > { %7352 = vmatpush3.msra.mxu0 %v2234_v41 }
 0x3b6   : > { %6831 = vmatmul.mubr.msk.f32.gmra.mxu1 %vm2255_vm8, %v10485_v12  ;;  %7353 = vmatprep.subr.mxu0 %v2227_v31 }
 0x3b7   : > { %7354 = vmatpush3.msra.mxu0 %v2227_v31  ;;  %2538 = vmatprep.mubr.f32.mxu1 %v12575_v54 }
 0x3b8   : > { %7356 = vmatmul.mubr.msk.f32.vlgmr.msra.gmra.mxu0 %vm2255_vm8, %v10485_v12  ;;  %7364 = vmatprep.subr.mxu0 %v12575_v54  ;;  %v10659_v12 = vpop.permute.xlu1 %2681 }
 0x3b9   : > { %7358 = vmatprep.mubr.msk.f32.mxu0 %vm2255_vm8, %v10495_v16 }
 0x3ba   : > { %6832 = vmatmul.mubr.msk.f32.gmra.mxu1 %vm2255_vm8, %v10495_v16  ;;  %v10661_v16 = vpop.permute.xlu0 %2671 }
 0x3bb   : > { %2543 = vmatprep.mubr.f32.mxu1 %v12575_v54 }
 0x3bc   : > { %7359 = vmatmul.mubr.msk.f32.gmra.mxu0 %vm2255_vm8, %v10503_v18  ;;  %v10663_v30 = vpop.permute.xlu1 %2735 }
 0x3bd   : > { %7361 = vmatprep.mubr.msk.f32.mxu0 %vm2255_vm8, %v10511_v15 }
 0x3be   : > { %6833 = vmatmul.mubr.msk.f32.gmra.mxu1 %vm2255_vm8, %v10503_v18  ;;  %v10665_v62 = vpop.permute.xlu0 %2666 }
 0x3bf   : > { %2548 = vmatprep.mubr.f32.mxu1 %v12575_v54 }
 0x3c0   : > { %7362 = vmatmul.mubr.msk.f32.gmra.mxu0 %vm2255_vm8, %v10519_v32  ;;  %v10667_v3 = vpop.permute.xlu1 %2730 }
 0x3c1   : > { %7376 = vmatprep.mubr.msk.f32.mxu0 %vm8888_vm1, %v12575_v54 }
 0x3c2   : > { %6834 = vmatmul.mubr.msk.f32.gmra.mxu1 %vm2255_vm8, %v10511_v15  ;;  %v10669_v24 = vpop.permute.xlu0 %2661 }
 0x3c3   : > { %2553 = vmatprep.mubr.f32.mxu1 %v12575_v54 }
 0x3c4   : > { %v10671_v46 = vpop.permute.xlu1 %2725 }
 0x3c6   : > { %6835 = vmatmul.mubr.msk.f32.gmra.mxu1 %vm2255_vm8, %v10519_v32  ;;  %v10675_v35 = vpop.permute.xlu0 %2656 }
 0x3c8   : > { %v10680_v4 = vpop.permute.xlu1 %2720 }
 0x3ca   : > { %v10682_v11 = vpop.permute.xlu0 %2710 }
 0x3cc   : > { %v10688_v39 = vpop.permute.xlu1 %2715 }
 0x418   : > { %v2340_v18 = vpop.f32.mrf.mxu1 }
 0x419   : > { %v2684_v20 = vmul.f32 %v10675_v35, %v2340_v18 }
 0x41a   : > { %v2342_v36 = vpop.f32.mrf.mxu1 }
 0x41b   : > { %v2738_v34 = vadd.f32 %v10682_v11, %v2684_v20 }
 0x41c   : > { %v2345_v1 = vpop.f32.mrf.mxu1 }
 0x41d   : > { %v2688_v57 = vmul.f32 %v10669_v24, %v2345_v1  ;;  %v2786_v43 = vmin.f32 %v2738_v34, 0.0  ;;  %vm2762_vm3 = vcmp.gt.f32.partialorder %v2738_v34, 0.0 }
 0x41e   : > { %v2347_v2 = vpop.f32.mrf.mxu1 }
 0x41f   : > { %v10691_v50 = vadd.f32 %v10688_v39, %v2688_v57  ;;  %v2810_v58 = vmul.f32 1.442695, %v2786_v43 }
 0x420   : > { %v2350_v15 = vpop.f32.mrf.mxu1 }
 0x421   : > { %v2692_v6 = vmul.f32 %v10665_v62, %v2350_v15  ;;  %v2790_v49 = vmin.f32 %v10691_v50, 0.0  ;;  %8122 = vpow2.f32 %v2810_v58  ;;  %vm2766_vm7 = vcmp.gt.f32.partialorder %v10691_v50, 0.0 }
 0x422   : > { %v2352_v38 = vpop.f32.mrf.mxu1 }
 0x423   : > { %v10697_v59 = vadd.f32 %v10680_v4, %v2692_v6  ;;  %v2818_v45 = vmul.f32 1.442695, %v2790_v49  ;;  %v2907_v6 = vld [vmem:[#allocation5 + $0x10] sm:$0xff] }
 0x424   : > { %v2355_v32 = vpop.f32.mrf.mxu1 }
 0x425   : > { %v2696_v28 = vmul.f32 %v10661_v16, %v2355_v32  ;;  %v2794_v19 = vmin.f32 %v10697_v59, 0.0  ;;  %8124 = vpow2.f32 %v2818_v45  ;;  %v2910_v45 = vld [vmem:[#allocation5 + $0x38] sm:$0xff]  ;;  %vm2770_vm12 = vcmp.gt.f32.partialorder %v10697_v59, 0.0 }
 0x426   : > { %v2357_v10 = vpop.f32.mrf.mxu1 }
 0x427   : > { %v10701_v8 = vadd.f32 %v10671_v46, %v2696_v28  ;;  %v2826_v22 = vmul.f32 1.442695, %v2794_v19 }
 0x428   : > { %v10673_v29 = vpop.f32.mrf.mxu1 }
 0x429   : > { %v2798_v17 = vmin.f32 %v10701_v8, 0.0  ;;  %vm2774_vm5 = vcmp.gt.f32.partialorder %v10701_v8, 0.0 }
 0x42a   : > { %v2362_v33 = vpop.f32.mrf.mxu1 }
 0x42b   : > { %v2834_v47 = vmul.f32 1.442695, %v2798_v17 }
 0x42c   : > { %v10677_v40 = vpop.f32.mrf.mxu1 }
 0x42e   : > { %v2367_v55 = vpop.f32.mrf.mxu1  ;;  %v8123_v41 = vpop.eup %8122 }
 0x42f   : > { %v6842_v2 = vadd.f32 -1.0, %v8123_v41  ;;  %v2906_v55 = vld [vmem:[#allocation5] sm:$0xff]  ;;  %v2919_v41 = vld [vmem:[#allocation5 + $0xb8] sm:$0xff] }
 0x431   : > { %v2882_v20 = vsel %vm2762_vm3, %v2738_v34, %v6842_v2 }
 0x432   : > { %v8125_v38 = vpop.eup %8124 }
 0x433   : > { %v6846_v57 = vadd.f32 -1.0, %v8125_v38 }
 0x43a   : > { %v2435_v44 = vpop.f32.mrf.mxu0 }
 0x43b   : > { %v2685_v52 = vmul.f32 %v10675_v35, %v2435_v44  ;;  %v2930_v44 = vmul.f32 %v2906_v55, %v2882_v20 }
 0x43c   : > { %v2437_v7 = vpop.f32.mrf.mxu0 }
 0x43d   : > { %v2739_v14 = vadd.f32 %v10682_v11, %v2685_v52  ;;  %v2886_v7 = vsel %vm2766_vm7, %v10691_v50, %v6846_v57 }
 0x43e   : > { %v2440_v37 = vpop.f32.mrf.mxu0  ;;  %v2934_v17 = vmul.f32 %v2910_v45, %v2886_v7 }
 0x43f   : > { %v2787_v60 = vmin.f32 %v2739_v14, 0.0  ;;  %v2689_v51 = vmul.f32 %v10669_v24, %v2440_v37  ;;  %vm2763_vm2 = vcmp.gt.f32.partialorder %v2739_v14, 0.0  ;;  %v2911_v37 = vld [vmem:[#allocation5 + $0x48] sm:$0xff] }
 0x440   : > { %v2442_v26 = vpop.f32.mrf.mxu0 }
 0x441   : > { %v2812_v61 = vmul.f32 1.442695, %v2787_v60  ;;  %v2743_v13 = vadd.f32 %v10688_v39, %v2689_v51 }
 0x442   : > { %v2445_v21 = vpop.f32.mrf.mxu0 }
 0x443   : > { %8126 = vpow2.f32 %v2812_v61  ;;  %v2791_v5 = vmin.f32 %v2743_v13, 0.0  ;;  %v2693_v63 = vmul.f32 %v10665_v62, %v2445_v21  ;;  %vm2767_vm10 = vcmp.gt.f32.partialorder %v2743_v13, 0.0 }
 0x444   : > { %v2447_v9 = vpop.f32.mrf.mxu0  ;;  %8128 = vpow2.f32 %v2826_v22 }
 0x445   : > { %v2820_v53 = vmul.f32 1.442695, %v2791_v5  ;;  %v2747_v42 = vadd.f32 %v10680_v4, %v2693_v63  ;;  %v2914_v5 = vld [vmem:[#allocation5 + $0x70] sm:$0xff]  ;;  %v2915_v9 = vld [vmem:[#allocation5 + $0x80] sm:$0xff] }
 0x446   : > { %v2450_v23 = vpop.f32.mrf.mxu0 }
 0x447   : > { %8130 = vpow2.f32 %v2820_v53  ;;  %v2697_v25 = vmul.f32 %v10661_v16, %v2450_v23  ;;  %v2795_v27 = vmin.f32 %v2747_v42, 0.0  ;;  %vm2771_vm11 = vcmp.gt.f32.partialorder %v2747_v42, 0.0 }
 0x448   : > { %v2452_v0 = vpop.f32.mrf.mxu0  ;;  %8132 = vpow2.f32 %v2834_v47 }
 0x449   : > { %v2751_v48 = vadd.f32 %v10671_v46, %v2697_v25  ;;  %v2828_v31 = vmul.f32 1.442695, %v2795_v27  ;;  %v2918_v25 = vld [vmem:[#allocation5 + $0xa8] sm:$0xff] }
 0x44a   : > { %v2455_v18 = vpop.f32.mrf.mxu0 }
 0x44b   : > { %v2799_v36 = vmin.f32 %v2751_v48, 0.0  ;;  %8134 = vpow2.f32 %v2828_v31  ;;  %vm2775_vm0 = vcmp.gt.f32.partialorder %v2751_v48, 0.0 }
 0x44c   : > { %v2457_v1 = vpop.f32.mrf.mxu0 }
 0x44d   : > { %v2836_v15 = vmul.f32 1.442695, %v2799_v36 }
 0x44e   : > { %v2460_v32 = vpop.f32.mrf.mxu0 }
 0x44f   : > { %8136 = vpow2.f32 %v2836_v15  ;;  %v2700_v15 = vmul.f32 %v10657_v56, %v10673_v29  ;;  %v2705_v38 = vmul.f32 %v10659_v12, %v2460_v32 }
 0x450   : > { %v8127_v10 = vpop.eup %8126  ;;  %v2462_v33 = vpop.f32.mrf.mxu0 }
 0x451   : > { %v6843_v43 = vadd.f32 -1.0, %v8127_v10  ;;  %v8129_v58 = vpop.eup %8128  ;;  %v10731_v10 = vadd.f32 %v10667_v3, %v2700_v15  ;;  %v2704_v33 = vmul.f32 %v10659_v12, %v10677_v40  ;;  %v10739_v55 = vadd.f32 %v10663_v30, %v2705_v38 }
 0x452   : > { %v6850_v51 = vadd.f32 -1.0, %v8129_v58 }
 0x453   : > { %v2883_v49 = vsel %vm2763_vm2, %v2739_v14, %v6843_v43  ;;  %v2802_v29 = vmin.f32 %v10731_v10, 0.0  ;;  %v2807_v40 = vmin.f32 %v10739_v55, 0.0  ;;  %vm2783_vm14 = vcmp.gt.f32.partialorder %v10739_v55, 0.0 }
 0x454   : > { %v8131_v28 = vpop.eup %8130  ;;  %v2931_v52 = vmul.f32 %v2907_v6, %v2883_v49  ;;  %v2890_v21 = vsel %vm2770_vm12, %v10697_v59, %v6850_v51  ;;  %vm2778_vm9 = vcmp.gt.f32.partialorder %v10731_v10, 0.0 }
 0x455   : > { %v6847_v19 = vadd.f32 -1.0, %v8131_v28  ;;  %v8133_v60 = vpop.eup %8132  ;;  %v2938_v23 = vmul.f32 %v2914_v5, %v2890_v21 }
 0x456   : > { %v10714_v34 = vadd.f32 %v2931_v52, %v2930_v44  ;;  %v6854_v14 = vadd.f32 -1.0, %v8133_v60  ;;  %v2842_v52 = vmul.f32 1.442695, %v2802_v29 }
 0x457   : > { %v2887_v26 = vsel %vm2767_vm10, %v2743_v13, %v6847_v19 }
 0x458   : > { %v2935_v61 = vmul.f32 %v2911_v37, %v2887_v26  ;;  %v8135_v22 = vpop.eup %8134  ;;  %v2894_v13 = vsel %vm2774_vm5, %v10701_v8, %v6854_v14  ;;  %v2852_v26 = vmul.f32 1.442695, %v2807_v40  ;;  %8138 = vpow2.f32 %v2842_v52 }
 0x459   : > { %v6851_v50 = vadd.f32 -1.0, %v8135_v22  ;;  %v2942_v36 = vmul.f32 %v2918_v25, %v2894_v13 }
 0x45a   : > { %v10718_v63 = vadd.f32 %v2935_v61, %v2934_v17 }
 0x45b   : > { %v2891_v53 = vsel %vm2771_vm11, %v2747_v42, %v6851_v50  ;;  %v2701_v42 = vmul.f32 %v10657_v56, %v2455_v18  ;;  %v10743_v18 = vadd.f32 %v10663_v30, %v2704_v33 }
 0x45c   : > { %v8137_v47 = vpop.eup %8136  ;;  %v2939_v27 = vmul.f32 %v2915_v9, %v2891_v53 }
 0x45d   : > { %v6855_v0 = vadd.f32 -1.0, %v8137_v47  ;;  %v2806_v7 = vmin.f32 %v10743_v18, 0.0  ;;  %vm2782_vm6 = vcmp.gt.f32.partialorder %v10743_v18, 0.0 }
 0x45e   : > { %v10722_v31 = vadd.f32 %v2939_v27, %v2938_v23 }
 0x45f   : > { %v2895_v59 = vsel %vm2775_vm0, %v2751_v48, %v6855_v0  ;;  %v10736_v48 = vadd.f32 %v10667_v3, %v2701_v42  ;;  %v2850_v5 = vmul.f32 1.442695, %v2806_v7 }
 0x460   : > { %v2943_v1 = vmul.f32 %v2919_v41, %v2895_v59 }
 0x461   : > { %v2803_v32 = vmin.f32 %v10736_v48, 0.0  ;;  %vm2779_vm13 = vcmp.gt.f32.partialorder %v10736_v48, 0.0 }
 0x462   : > { %v10724_v2 = vadd.f32 %v2943_v1, %v2942_v36 }
 0x463   : > { %v2844_v45 = vmul.f32 1.442695, %v2803_v32 }
 0x465   : > { %8140 = vpow2.f32 %v2844_v45 }
 0x466   : > { %8142 = vpow2.f32 %v2852_v26 }
 0x467   : > { %8144 = vpow2.f32 %v2850_v5 }
 0x472   : > { %v2530_v8 = vpop.f32.mrf.mxu1 }
 0x473   : > { %v2686_v43 = vmul.f32 %v10675_v35, %v2530_v8 }
 0x474   : > { %v2532_v20 = vpop.f32.mrf.mxu1 }
 0x475   : > { %v10751_v19 = vadd.f32 %v10682_v11, %v2686_v43 }
 0x476   : > { %v2535_v57 = vpop.f32.mrf.mxu1 }
 0x477   : > { %v2690_v49 = vmul.f32 %v10669_v24, %v2535_v57  ;;  %v2788_v9 = vmin.f32 %v10751_v19, 0.0  ;;  %vm2764_vm4 = vcmp.gt.f32.partialorder %v10751_v19, 0.0 }
 0x478   : > { %v2537_v6 = vpop.f32.mrf.mxu1  ;;  %v7357_v58 = vpop.f32.mrf.mxu0 }
 0x479   : > { %v10755_v17 = vadd.f32 %v10688_v39, %v2690_v49  ;;  %v2691_v36 = vmul.f32 %v7357_v58, %v10669_v24  ;;  %v2814_v42 = vmul.f32 1.442695, %v2788_v9 }
 0x47a   : > { %v2540_v28 = vpop.f32.mrf.mxu1  ;;  %v2625_v44 = vpop.f32.mrf.mxu0 }
 0x47b   : > { %v2694_v37 = vmul.f32 %v10665_v62, %v2540_v28  ;;  %v2792_v23 = vmin.f32 %v10755_v17, 0.0  ;;  %v2687_v20 = vmul.f32 %v10675_v35, %v2625_v44  ;;  %v10789_v43 = vadd.f32 %v10688_v39, %v2691_v36 }
 0x47c   : > { %v2542_v60 = vpop.f32.mrf.mxu1  ;;  %v7360_v51 = vpop.f32.mrf.mxu0  ;;  %8146 = vpow2.f32 %v2814_v42  ;;  %vm2768_vm3 = vcmp.gt.f32.partialorder %v10755_v17, 0.0 }
 0x47d   : > { %v10758_v61 = vadd.f32 %v10680_v4, %v2694_v37  ;;  %v2699_v22 = vmul.f32 %v7360_v51, %v10661_v16  ;;  %v2822_v33 = vmul.f32 1.442695, %v2792_v23  ;;  %v10799_v28 = vadd.f32 %v10682_v11, %v2687_v20 }
 0x47e   : > { %v2545_v14 = vpop.f32.mrf.mxu1  ;;  %v2635_v21 = vpop.f32.mrf.mxu0  ;;  %v2793_v37 = vmin.f32 %v10789_v43, 0.0  ;;  %vm2769_vm2 = vcmp.gt.f32.partialorder %v10789_v43, 0.0 }
 0x47f   : > { %v2698_v50 = vmul.f32 %v10661_v16, %v2545_v14  ;;  %v2796_v25 = vmin.f32 %v10758_v61, 0.0  ;;  %v10769_v27 = vadd.f32 %v10671_v46, %v2699_v22  ;;  %v2695_v0 = vmul.f32 %v10665_v62, %v2635_v21 }
 0x480   : > { %v2547_v47 = vpop.f32.mrf.mxu1  ;;  %v7363_v53 = vpop.f32.mrf.mxu0  ;;  %8148 = vpow2.f32 %v2822_v33  ;;  %v2789_v11 = vmin.f32 %v10799_v28, 0.0  ;;  %v2824_v14 = vmul.f32 1.442695, %v2793_v37  ;;  %vm2772_vm7 = vcmp.gt.f32.partialorder %v10758_v61, 0.0 }
 0x481   : > { %v10765_v13 = vadd.f32 %v10671_v46, %v2698_v50  ;;  %v2707_v16 = vmul.f32 %v7363_v53, %v10659_v12  ;;  %v10777_v38 = vadd.f32 %v10680_v4, %v2695_v0  ;;  %v2830_v24 = vmul.f32 1.442695, %v2796_v25  ;;  %v2923_v0 = vld [vmem:[#allocation5 + $0xf0] sm:$0xff] }
 0x482   : > { %v2550_v41 = vpop.f32.mrf.mxu1  ;;  %v2645_v59 = vpop.f32.mrf.mxu0  ;;  %v2801_v29 = vmin.f32 %v10769_v27, 0.0  ;;  %v2816_v9 = vmul.f32 1.442695, %v2789_v11  ;;  %vm2777_vm10 = vcmp.gt.f32.partialorder %v10769_v27, 0.0 }
 0x483   : > { %v2800_v1 = vmin.f32 %v10765_v13, 0.0  ;;  %v2702_v15 = vmul.f32 %v10657_v56, %v2550_v41  ;;  %v10780_v46 = vadd.f32 %v10663_v30, %v2707_v16  ;;  %v2703_v62 = vmul.f32 %v10657_v56, %v2645_v59  ;;  %v2927_v41 = vld [vmem:[#allocation5 + $0x128] sm:$0xff] }
 0x484   : > { %v2552_v8 = vpop.f32.mrf.mxu1  ;;  %v2797_v56 = vmin.f32 %v10777_v38, 0.0  ;;  %8150 = vpow2.f32 %v2830_v24  ;;  %v2840_v52 = vmul.f32 1.442695, %v2801_v29  ;;  %vm2776_vm12 = vcmp.gt.f32.partialorder %v10765_v13, 0.0 }
 0x485   : > { %v10785_v57 = vadd.f32 %v10667_v3, %v2702_v15  ;;  %v2838_v4 = vmul.f32 1.442695, %v2800_v1  ;;  %v2809_v6 = vmin.f32 %v10780_v46, 0.0  ;;  %v10795_v35 = vadd.f32 %v10667_v3, %v2703_v62  ;;  %v8139_v3 = vpop.eup %8138  ;;  %v2922_v15 = vld [vmem:[#allocation5 + $0xe0] sm:$0xff]  ;;  %v2926_v62 = vld [vmem:[#allocation5 + $0x118] sm:$0xff] }
 0x486   : > { %v2555_v32 = vpop.f32.mrf.mxu1  ;;  %v2832_v60 = vmul.f32 1.442695, %v2797_v56  ;;  %v8141_v51 = vpop.eup %8140  ;;  %v6858_v47 = vadd.f32 -1.0, %v8139_v3  ;;  %v2920_v3 = vld [vmem:[#allocation5 + $0xc8] sm:$0xff]  ;;  %vm2785_vm11 = vcmp.gt.f32.partialorder %v10780_v46, 0.0 }
 0x487   : > { %v2804_v58 = vmin.f32 %v10785_v57, 0.0  ;;  %v2706_v40 = vmul.f32 %v10659_v12, %v2555_v32  ;;  %v2856_v39 = vmul.f32 1.442695, %v2809_v6  ;;  %v2805_v7 = vmin.f32 %v10795_v35, 0.0  ;;  %v8143_v22 = vpop.eup %8142 }
 0x488   : > { %v2557_v49 = vpop.f32.mrf.mxu1  ;;  %8152 = vpow2.f32 %v2838_v4  ;;  %v6859_v5 = vadd.f32 -1.0, %v8141_v51  ;;  %v6863_v50 = vadd.f32 -1.0, %v8143_v22  ;;  %v2898_v1 = vsel %vm2778_vm9, %v10731_v10, %v6858_v47  ;;  %v2928_v51 = vld [vmem:[#allocation5 + $0x138] sm:$0xff] }
 0x489   : > { %v2846_v44 = vmul.f32 1.442695, %v2804_v58  ;;  %v10803_v45 = vadd.f32 %v10663_v30, %v2706_v40  ;;  %v2848_v12 = vmul.f32 1.442695, %v2805_v7  ;;  %v8145_v30 = vpop.eup %8144  ;;  %vm2780_vm15 = vcmp.gt.f32.partialorder %v10785_v57, 0.0 }
 0x48a   : > { %v6862_v53 = vadd.f32 -1.0, %v8145_v30  ;;  %v8147_v23 = vpop.eup %8146  ;;  %v2899_v25 = vsel %vm2779_vm13, %v10736_v48, %v6859_v5  ;;  %v2903_v16 = vsel %vm2783_vm14, %v10739_v55, %v6863_v50  ;;  %v2946_v55 = vmul.f32 %v2922_v15, %v2898_v1  ;;  %v2929_v30 = vld [vmem:[#allocation5 + $0x148] sm:$0xff] }
 0x48b   : > { %8154 = vpow2.f32 %v2846_v44  ;;  %v2808_v26 = vmin.f32 %v10803_v45, 0.0  ;;  %v2947_v33 = vmul.f32 %v2923_v0, %v2899_v25  ;;  %v2951_v48 = vmul.f32 %v2927_v41, %v2903_v16  ;;  %v2916_v0 = vld [vmem:[#allocation5 + $0x90] sm:$0xff] }
 0x48c   : > { %8156 = vpow2.f32 %v2856_v39  ;;  %v2902_v42 = vsel %vm2782_vm6, %v10743_v18, %v6862_v53  ;;  %v2924_v39 = vld [vmem:[#allocation5 + $0x100] sm:$0xff]  ;;  %vm2784_vm5 = vcmp.gt.f32.partialorder %v10803_v45, 0.0  ;;  %vm2781_vm0 = vcmp.gt.f32.partialorder %v10795_v35, 0.0 }
 0x48d   : > { %8158 = vpow2.f32 %v2840_v52  ;;  %v2854_v21 = vmul.f32 1.442695, %v2808_v26  ;;  %v8149_v59 = vpop.eup %8148  ;;  %v2950_v29 = vmul.f32 %v2926_v62, %v2902_v42  ;;  %v2958_v56 = vadd.f32 %v2947_v33, %v2946_v55  ;;  %v2917_v62 = vld [vmem:[#allocation5 + $0xa0] sm:$0xff] }
 0x48e   : > { %8160 = vpow2.f32 %v2848_v12  ;;  %v6848_v52 = vadd.f32 -1.0, %v8149_v59  ;;  %vm2773_vm13 = vcmp.gt.f32.partialorder %v10777_v38, 0.0  ;;  %vm2765_vm14 = vcmp.gt.f32.partialorder %v10799_v28, 0.0 }
 0x48f   : > { %8162 = vpow2.f32 %v2832_v60  ;;  %v2959_v40 = vadd.f32 %v2951_v48, %v2950_v29  ;;  %vm2975_vm9 = vcmask 392192  }
 0x490   : > { %8164 = vpow2.f32 %v2854_v21 }
 0x491   : > { %8166 = vpow2.f32 %v2824_v14  ;;  %v8151_v36 = vpop.eup %8150 }
 0x492   : > { %8168 = vpow2.f32 %v2816_v9  ;;  %v6852_v7 = vadd.f32 -1.0, %v8151_v36  ;;  %v2912_v9 = vld [vmem:[#allocation5 + $0x58] sm:$0xff] }
 0x494   : > { %v2892_v25 = vsel %vm2772_vm7, %v10758_v61, %v6852_v7  ;;  %v2921_v61 = vld [vmem:[#allocation5 + $0xd8] sm:$0xff]  ;;  %vm5322_vm7 = vcmask 130048  }
 0x495   : > { %v8153_v8 = vpop.eup %8152 }
 0x496   : > { %v6856_v6 = vadd.f32 -1.0, %v8153_v8  ;;  %v2908_v8 = vld [vmem:[#allocation5 + $0x20] sm:$0xff] }
 0x498   : > { %v8155_v20 = vpop.eup %8154  ;;  %v2896_v37 = vsel %vm2776_vm12, %v10765_v13, %v6856_v6  ;;  %v2888_v13 = vsel %vm2768_vm3, %v10755_v17, %v6848_v52  ;;  %vm3169_vm3 = vcmask 195584  }
 0x499   : > { %v8157_v24 = vpop.eup %8156  ;;  %v6860_v32 = vadd.f32 -1.0, %v8155_v20  ;;  %v2944_v47 = vmul.f32 %v2920_v3, %v2896_v37  ;;  %v2936_v36 = vmul.f32 %v2912_v9, %v2888_v13 }
 0x49a   : > { %v8159_v4 = vpop.eup %8158  ;;  %v6865_v18 = vadd.f32 -1.0, %v8157_v24  ;;  %v2913_v24 = vld [vmem:[#allocation5 + $0x68] sm:$0xff] }
 0x49b   : > { %v8161_v58 = vpop.eup %8160  ;;  %v2900_v49 = vsel %vm2780_vm15, %v10785_v57, %v6860_v32  ;;  %v6844_v57 = vadd.f32 -1.0, %v8147_v23  ;;  %v6857_v22 = vadd.f32 -1.0, %v8159_v4  ;;  %v2963_v20 = vadd.f32 %v10724_v2, %v2944_v47  ;;  %v2909_v4 = vld [vmem:[#allocation5 + $0x30] sm:$0xff] }
 0x49c   : > { %v8163_v10 = vpop.eup %8162  ;;  %v6861_v60 = vadd.f32 -1.0, %v8161_v58  ;;  %v2948_v26 = vmul.f32 %v2924_v39, %v2900_v49  ;;  %v2905_v21 = vsel %vm2785_vm11, %v10780_v46, %v6865_v18  ;;  %v2972_v49 = vld [vmem:[#allocation7] sm:$0xff]  ;;  %v3068_v39 = vpop.permute.xlu1 %3067  ;;  %vm5869_vm11 = vcmask 588800  }
 0x49d   : > { %v8165_v44 = vpop.eup %8164  ;;  %v6853_v14 = vadd.f32 -1.0, %v8163_v10  ;;  %v2884_v17 = vsel %vm2764_vm4, %v10751_v19, %v6844_v57  ;;  %v2953_v16 = vmul.f32 %v2929_v30, %v2905_v21  ;;  %v2897_v15 = vsel %vm2777_vm10, %v10769_v27, %v6857_v22 }
 0x49e   : > { %v6864_v12 = vadd.f32 -1.0, %v8165_v44  ;;  %v8167_v11 = vpop.eup %8166  ;;  %v2901_v46 = vsel %vm2781_vm0, %v10795_v35, %v6861_v60  ;;  %v2964_v59 = vadd.f32 %v2958_v56, %v2948_v26  ;;  %v2940_v35 = vmul.f32 %v2916_v0, %v2892_v25  ;;  %v3073_v44 = vpop.permute.xlu0 %3072 }
 0x49f   : > { %v8169_v50 = vpop.eup %8168  ;;  %v6849_v23 = vadd.f32 -1.0, %v8167_v11  ;;  %v2893_v42 = vsel %vm2773_vm13, %v10777_v38, %v6853_v14  ;;  %v2945_v55 = vmul.f32 %v2921_v61, %v2897_v15  ;;  %v2932_v32 = vmul.f32 %v2908_v8, %v2884_v17  ;;  %v3122_v17 = vld [vmem:[#allocation8] sm:$0xff] }
 0x4a0   : > { %v2904_v5 = vsel %vm2784_vm5, %v10803_v45, %v6864_v12  ;;  %v2925_v45 = vld [vmem:[#allocation5 + $0x110] sm:$0xff]  ;;  %v6845_v1 = vadd.f32 -1.0, %v8169_v50  ;;  %v2941_v29 = vmul.f32 %v2917_v62, %v2893_v42  ;;  %v2962_v58 = vadd.f32 %v10722_v31, %v2940_v35  ;;  %v2974_v31 = vld [vmem:[#allocation7 + $0x10] sm:$0xff]  ;;  %v3086_v52 = vpop.permute.xlu1 %3085 }
 0x4a1   : > { %v2952_v53 = vmul.f32 %v2928_v51, %v2904_v5  ;;  %v2949_v33 = vmul.f32 %v2925_v45, %v2901_v46  ;;  %v2889_v19 = vsel %vm2769_vm2, %v10789_v43, %v6849_v23  ;;  %v2969_v2 = vadd.f32 %v2963_v20, %v2945_v55  ;;  %v3123_v42 = vld [vmem:[#allocation8 + $0x8] sm:$0xff]  ;;  %v3124_v20 = vld [vmem:[#allocation8 + $0x10] sm:$0xff] }
 0x4a2   : > { %v2885_v38 = vsel %vm2765_vm14, %v10799_v28, %v6845_v1  ;;  %v2937_v6 = vmul.f32 %v2913_v24, %v2889_v19  ;;  %v2961_v43 = vadd.f32 %v10718_v63, %v2936_v36  ;;  %v2960_v28 = vadd.f32 %v10714_v34, %v2932_v32  ;;  %v2973_v63 = vld [vmem:[#allocation7 + $0x8] sm:$0xff]  ;;  %v3162_v34 = vld [vmem:[#allocation10 + $0x10] sm:$0xff]  ;;  %v3078_v12 = vpop.permute.xlu0 %3077  ;;  %v3160_v36 = vld [vmem:[#allocation10] sm:$0xff] }
 0x4a3   : > { %v2965_v41 = vadd.f32 %v2959_v40, %v2952_v53  ;;  %v2970_v27 = vadd.f32 %v2964_v59, %v2949_v33  ;;  %v2933_v56 = vmul.f32 %v2909_v4, %v2885_v38  ;;  %v2968_v40 = vadd.f32 %v2962_v58, %v2941_v29  ;;  %7385 = vmatprep.subr.mxu1 %v3162_v34  ;;  %v3161_v59 = vld [vmem:[#allocation10 + $0x8] sm:$0xff] }
 0x4a4   : > { %v2967_v10 = vadd.f32 %v2961_v43, %v2937_v6  ;;  %7386 = vmatpush3.msra.mxu1 %v3162_v34  ;;  %v3091_v26 = vpop.permute.xlu1 %3090  ;;  %v12737_v34 = vld [vmem:[#allocation40_spill] sm:$0xff]  ;;  %vm3475_vm2 = vcmask 64512  }
 0x4a5   : > { %v2971_v48 = vadd.f32 %v2965_v41, %v2953_v16  ;;  %v2966_v18 = vadd.f32 %v2960_v28, %v2933_v56  ;;  %7387 = vmatprep.subr.mxu1 %v3161_v59 }
 0x4a6   : > { %v3096_v13 = vpop.permute.xlu0 %3095  ;;  %7388 = vmatpush3.msra.mxu1 %v3161_v59 }
 0x4a7   : > { %7365 = vmatpush3.msra.mxu0 %v2971_v48  ;;  %7389 = vmatprep.subr.mxu1 %v3160_v36 }
 0x4a8   : > { %7366 = vmatprep.subr.mxu0 %v12575_v54  ;;  %7390 = vmatpush3.msra.mxu1 %v3160_v36 }
 0x4a9   : > { %7367 = vmatpush3.msra.mxu0 %v2970_v27 }
 0x4aa   : > { %7368 = vmatprep.subr.mxu0 %v12575_v54 }
 0x4ab   : > { %7369 = vmatpush3.msra.mxu0 %v2969_v2 }
 0x4ac   : > { %7370 = vmatprep.subr.mxu0 %v12575_v54 }
 0x4ad   : > { %7371 = vmatpush3.msra.mxu0 %v2968_v40 }
 0x4ae   : > { %7372 = vmatprep.subr.mxu0 %v12575_v54 }
 0x4af   : > { %7373 = vmatpush3.msra.mxu0 %v2967_v10 }
 0x4b0   : > { %7374 = vmatprep.subr.mxu0 %v12575_v54 }
 0x4b1   : > { %7375 = vmatpush3.msra.mxu0 %v2966_v18 }
 0x4b2   : > { %7377 = vmatmul.mubr.msk.f32.vlgmr.msra.gmra.mxu0 %vm2975_vm9, %v2972_v49 }
 0x4b3   : > { %7379 = vmatprep.mubr.msk.f32.mxu0 %vm8888_vm1, %v12575_v54 }
 0x4b6   : > { %7380 = vmatmul.mubr.msk.f32.gmra.mxu0 %vm2975_vm9, %v2973_v63  ;;  %v737_v63 = vld [vmem:[#allocation20] sm:$0x7] }
 0x4b7   : > { %7382 = vmatprep.mubr.msk.f32.mxu0 %vm8888_vm1, %v12575_v54 }
 0x4ba   : > { %7383 = vmatmul.mubr.msk.f32.gmra.mxu0 %vm2975_vm9, %v2974_v31 }
 0x572   : > { %v3051_v7 = vpop.f32.mrf.mxu0 }
 0x573   : > { %v3080_v37 = vmul.f32 %v3068_v39, %v3051_v7  ;;  %v12738_v39 = vsub.s32 0, %v12737_v34 }
 0x574   : > { %v7378_v3 = vpop.f32.mrf.mxu0 }
 0x575   : > { %v3098_v60 = vadd.f32 %v3086_v52, %v3080_v37 }
 0x576   : > { %v3056_v51 = vpop.f32.mrf.mxu0 }
 0x577   : > { %v3104_v11 = vmin.f32 %v3098_v60, 0.0  ;;  %v3081_v57 = vmul.f32 %v3073_v44, %v3056_v51  ;;  %vm3101_vm6 = vcmp.gt.f32.partialorder %v3098_v60, 0.0  ;;  %v10929_v44 = vrot.slane %v737_v63, %v12738_v39 }
 0x578   : > { %v7381_v22 = vpop.f32.mrf.mxu0 }
 0x579   : > { %v3107_v14 = vmul.f32 1.442695, %v3104_v11  ;;  %v3099_v21 = vadd.f32 %v3091_v26, %v3081_v57  ;;  %12739 = vst [vmem:[#allocation57_spill] sm:$0xff] %v10929_v44 }
 0x57a   : > { %v3061_v30 = vpop.f32.mrf.mxu0 }
 0x57b   : > { %8170 = vpow2.f32 %v3107_v14  ;;  %v3105_v5 = vmin.f32 %v3099_v21, 0.0  ;;  %v3082_v50 = vmul.f32 %v3078_v12, %v3061_v30  ;;  %vm3102_vm15 = vcmp.gt.f32.partialorder %v3099_v21, 0.0 }
 0x57c   : > { %v7384_v9 = vpop.f32.mrf.mxu0 }
 0x57d   : > { %v3109_v47 = vmul.f32 1.442695, %v3105_v5  ;;  %v3100_v53 = vadd.f32 %v3096_v13, %v3082_v50 }
 0x57f   : > { %8172 = vpow2.f32 %v3109_v47  ;;  %v3106_v23 = vmin.f32 %v3100_v53, 0.0  ;;  %vm3103_vm4 = vcmp.gt.f32.partialorder %v3100_v53, 0.0 }
 0x581   : > { %v3111_v25 = vmul.f32 1.442695, %v3106_v23 }
 0x583   : > { %8174 = vpow2.f32 %v3111_v25 }
 0x588   : > { %v8171_v0 = vpop.eup %8170 }
 0x589   : > { %v6869_v46 = vadd.f32 -1.0, %v8171_v0 }
 0x58b   : > { %v3116_v45 = vsel %vm3101_vm6, %v3098_v60, %v6869_v46 }
 0x58c   : > { %v8173_v16 = vpop.eup %8172  ;;  %v3119_v41 = vmul.f32 2.0, %v3116_v45 }
 0x58d   : > { %v6870_v1 = vadd.f32 -1.0, %v8173_v16 }
 0x58e   : > { %v3125_v15 = vadd.f32 %v3122_v17, %v3119_v41 }
 0x58f   : > { %v3117_v61 = vsel %vm3102_vm15, %v3099_v21, %v6870_v1 }
 0x590   : > { %v8175_v62 = vpop.eup %8174  ;;  %v3120_v8 = vmul.f32 2.0, %v3117_v61  ;;  %3128 = vxpose.xlu1.b32.start [1/3] (short) %v3125_v15, 128 }
 0x591   : > { %v6871_v35 = vadd.f32 -1.0, %v8175_v62 }
 0x592   : > { %v3126_v33 = vadd.f32 %v3123_v42, %v3120_v8 }
 0x593   : > { %v3118_v48 = vsel %vm3103_vm4, %v3100_v53, %v6871_v35 }
 0x594   : > { %v3121_v19 = vmul.f32 2.0, %v3118_v48  ;;  %3129 = vxpose.xlu1.b32.cont [2/3] (short) %v3126_v33, 128 }
 0x596   : > { %v3127_v24 = vadd.f32 %v3124_v20, %v3121_v19 }
 0x598   : > { %3130 = vxpose.xlu1.b32.end [3/3] (short) %v3127_v24, 128 }
 0x60c   : > { %v10863_v55 = vpop.trf.xlu1 }
 0x60d   : > { %12721 = vst [vmem:[#allocation50_spill] sm:$0xff] %v10863_v55  ;;  %7391 = vmatprep.mubr.msk.f32.mxu1 %vm3169_vm3, %v10863_v55 }
 0x610   : > { %v10867_v29 = vpop.trf.xlu1 }
 0x611   : > { %12722 = vst [vmem:[#allocation52_spill] sm:$0xff] %v10867_v29  ;;  %7392 = vmatmul.mubr.msk.f32.vlgmr.msra.gmra.mxu1 %vm3169_vm3, %v10867_v29 }
 0x614   : > { %v10871_v27 = vpop.trf.xlu1 }
 0x615   : > { %12723 = vst [vmem:[#allocation53_spill] sm:$0xff] %v10871_v27  ;;  %7394 = vmatprep.mubr.msk.f32.mxu1 %vm3169_vm3, %v10871_v27 }
 0x618   : > { %v10875_v32 = vpop.trf.xlu1 }
 0x619   : > { %12724 = vst [vmem:[#allocation48_spill] sm:$0xff] %v10875_v32  ;;  %7395 = vmatmul.mubr.msk.f32.gmra.mxu1 %vm3169_vm3, %v10875_v32 }
 0x61c   : > { %v10879_v38 = vpop.trf.xlu1 }
 0x61d   : > { %12725 = vst [vmem:[#allocation49_spill] sm:$0xff] %v10879_v38  ;;  %7397 = vmatprep.mubr.msk.f32.mxu1 %vm3169_vm3, %v10879_v38 }
 0x620   : > { %v10883_v4 = vpop.trf.xlu1 }
 0x621   : > { %12726 = vst [vmem:[#allocation51_spill] sm:$0xff] %v10883_v4  ;;  %7398 = vmatmul.mubr.msk.f32.gmra.mxu1 %vm3169_vm3, %v10883_v4 }
 0x624   : > { %v10887_v6 = vpop.trf.xlu1 }
 0x625   : > { %12727 = vst [vmem:[#allocation45_spill] sm:$0xff] %v10887_v6  ;;  %7400 = vmatprep.mubr.msk.f32.mxu1 %vm3169_vm3, %v10887_v6 }
 0x628   : > { %v10891_v2 = vpop.trf.xlu1 }
 0x629   : > { %12728 = vst [vmem:[#allocation46_spill] sm:$0xff] %v10891_v2  ;;  %7401 = vmatmul.mubr.msk.f32.gmra.mxu1 %vm3169_vm3, %v10891_v2 }
 0x62c   : > { %v10895_v58 = vpop.trf.xlu1 }
 0x62d   : > { %12729 = vst [vmem:[#allocation44_spill] sm:$0xff] %v10895_v58  ;;  %7403 = vmatprep.mubr.msk.f32.mxu1 %vm3169_vm3, %v10895_v58 }
 0x630   : > { %v10899_v43 = vpop.trf.xlu1 }
 0x631   : > { %12730 = vst [vmem:[#allocation47_spill] sm:$0xff] %v10899_v43  ;;  %7404 = vmatmul.mubr.msk.f32.gmra.mxu1 %vm3169_vm3, %v10899_v43 }
 0x634   : > { %v10903_v56 = vpop.trf.xlu1 }
 0x635   : > { %12731 = vst [vmem:[#allocation41_spill] sm:$0xff] %v10903_v56  ;;  %7406 = vmatprep.mubr.msk.f32.mxu1 %vm3169_vm3, %v10903_v56 }
 0x638   : > { %v10907_v40 = vpop.trf.xlu1 }
 0x639   : > { %12732 = vst [vmem:[#allocation43_spill] sm:$0xff] %v10907_v40  ;;  %7407 = vmatmul.mubr.msk.f32.gmra.mxu1 %vm3169_vm3, %v10907_v40 }
 0x63c   : > { %v10911_v10 = vpop.trf.xlu1 }
 0x63d   : > { %12733 = vst [vmem:[#allocation42_spill] sm:$0xff] %v10911_v10  ;;  %7409 = vmatprep.mubr.msk.f32.mxu1 %vm3169_vm3, %v10911_v10 }
 0x640   : > { %v10915_v28 = vpop.trf.xlu1 }
 0x641   : > { %12734 = vst [vmem:[#allocation54_spill] sm:$0xff] %v10915_v28  ;;  %7410 = vmatmul.mubr.msk.f32.gmra.mxu1 %vm3169_vm3, %v10915_v28 }
 0x644   : > { %v10919_v18 = vpop.trf.xlu1 }
 0x645   : > { %12735 = vst [vmem:[#allocation55_spill] sm:$0xff] %v10919_v18  ;;  %7412 = vmatprep.mubr.msk.f32.mxu1 %vm3169_vm3, %v10919_v18 }
 0x648   : > { %v10923_v49 = vpop.trf.xlu1 }
 0x649   : > { %12736 = vst [vmem:[#allocation56_spill] sm:$0xff] %v10923_v49  ;;  %7413 = vmatmul.mubr.msk.f32.gmra.mxu1 %vm3169_vm3, %v10923_v49 }
 0x6d1   : > { %v7393_v31 = vpop.f32.mrf.mxu1 }
 0x6d2   : > { %v10991_v0 = vadd.f32 %v7393_v31, %v10929_v44 }
 0x6d3   : > { %v3284_v52 = vpop.f32.mrf.mxu1 }
 0x6d4   : > { %v10932_v7 = vadd.f32 %v3284_v52, %v10929_v44 }
 0x6d6   : > { %7447 = vmatprep.mubr.msk.f32.mxu0 %vm3475_vm2, %v10932_v7 }
 0x6d9   : > { %v7396_v37 = vpop.f32.mrf.mxu1 }
 0x6da   : > { %v10973_v23 = vadd.f32 %v7396_v37, %v10929_v44 }
 0x6db   : > { %v3294_v3 = vpop.f32.mrf.mxu1 }
 0x6dc   : > { %v10966_v53 = vadd.f32 %v3294_v3, %v10929_v44 }
 0x6e1   : > { %v7399_v60 = vpop.f32.mrf.mxu1 }
 0x6e2   : > { %v10952_v9 = vadd.f32 %v7399_v60, %v10929_v44 }
 0x6e3   : > { %v3304_v12 = vpop.f32.mrf.mxu1 }
 0x6e4   : > { %v10959_v47 = vadd.f32 %v3304_v12, %v10929_v44 }
 0x6e9   : > { %v7402_v51 = vpop.f32.mrf.mxu1 }
 0x6ea   : > { %v11018_v17 = vadd.f32 %v7402_v51, %v10929_v44 }
 0x6eb   : > { %v3314_v11 = vpop.f32.mrf.mxu1 }
 0x6ec   : > { %v11027_v16 = vadd.f32 %v3314_v11, %v10929_v44 }
 0x6f1   : > { %v7405_v57 = vpop.f32.mrf.mxu1 }
 0x6f2   : > { %v10996_v46 = vadd.f32 %v7405_v57, %v10929_v44 }
 0x6f3   : > { %v3324_v26 = vpop.f32.mrf.mxu1 }
 0x6f4   : > { %v11009_v45 = vadd.f32 %v3324_v26, %v10929_v44 }
 0x6f9   : > { %v7408_v22 = vpop.f32.mrf.mxu1 }
 0x6fa   : > { %v10937_v14 = vadd.f32 %v7408_v22, %v10929_v44 }
 0x6fb   : > { %v3334_v21 = vpop.f32.mrf.mxu1 }
 0x6fc   : > { %3465 = vrot.lane.b32.xlu0 %v10937_v14, %s8889_s30  ;;  %v10978_v25 = vadd.f32 %v3334_v21, %v10929_v44 }
 0x701   : > { %v7411_v30 = vpop.f32.mrf.mxu1 }
 0x702   : > { %v10942_v5 = vadd.f32 %v7411_v30, %v10929_v44 }
 0x703   : > { %v3344_v50 = vpop.f32.mrf.mxu1 }
 0x704   : > { %v10945_v13 = vadd.f32 %v3344_v50, %v10929_v44  ;;  %3469 = vrot.lane.b32.xlu0 %v10942_v5, %s8889_s30 }
 0x706   : > { %3435 = vrot.lane.b32.xlu1 %v10945_v13, %s8885_s29 }
 0x708   : > { %3405 = vrot.lane.b32.xlu0 %v10942_v5, %s8867_s28 }
 0x709   : > { %v7414_v41 = vpop.f32.mrf.mxu1 }
 0x70a   : > { %3421 = vrot.lane.b32.xlu1 %v10952_v9, %s8885_s29  ;;  %v11034_v59 = vadd.f32 %v7414_v41, %v10929_v44 }
 0x70b   : > { %v3354_v36 = vpop.f32.mrf.mxu1 }
 0x70c   : > { %3437 = vrot.lane.b32.xlu0 %v10942_v5, %s8885_s29  ;;  %v11043_v1 = vadd.f32 %v3354_v36, %v10929_v44 }
 0x70e   : > { %3387 = vrot.lane.b32.xlu1 %v10959_v47, %s8867_s28 }
 0x710   : > { %3467 = vrot.lane.b32.xlu0 %v10945_v13, %s8889_s30 }
 0x712   : > { %3447 = vrot.lane.b32.xlu1 %v10966_v53, %s8889_s30 }
 0x714   : > { %3403 = vrot.lane.b32.xlu0 %v10945_v13, %s8867_s28 }
 0x716   : > { %3417 = vrot.lane.b32.xlu1 %v10973_v23, %s8885_s29 }
 0x718   : > { %3463 = vrot.lane.b32.xlu0 %v10978_v25, %s8889_s30 }
 0x71a   : > { %3383 = vrot.lane.b32.xlu1 %v10966_v53, %s8867_s28 }
 0x71c   : > { %3401 = vrot.lane.b32.xlu0 %v10937_v14, %s8867_s28 }
 0x71e   : > { %3443 = vrot.lane.b32.xlu1 %v10932_v7, %s8889_s30 }
 0x720   : > { %3433 = vrot.lane.b32.xlu0 %v10937_v14, %s8885_s29 }
 0x722   : > { %3413 = vrot.lane.b32.xlu1 %v10991_v0, %s8885_s29 }
 0x724   : > { %3461 = vrot.lane.b32.xlu0 %v10996_v46, %s8889_s30 }
 0x726   : > { %3411 = vrot.lane.b32.xlu1 %v10932_v7, %s8885_s29 }
 0x728   : > { %3399 = vrot.lane.b32.xlu0 %v10978_v25, %s8867_s28 }
 0x72c   : > { %3431 = vrot.lane.b32.xlu0 %v10978_v25, %s8885_s29 }
 0x730   : > { %3459 = vrot.lane.b32.xlu0 %v11009_v45, %s8889_s30 }
 0x734   : > { %3397 = vrot.lane.b32.xlu0 %v10996_v46, %s8867_s28 }
 0x738   : > { %3429 = vrot.lane.b32.xlu0 %v10996_v46, %s8885_s29 }
 0x73c   : > { %3457 = vrot.lane.b32.xlu0 %v11018_v17, %s8889_s30 }
 0x740   : > { %3395 = vrot.lane.b32.xlu0 %v11009_v45, %s8867_s28 }
 0x744   : > { %3427 = vrot.lane.b32.xlu0 %v11009_v45, %s8885_s29 }
 0x748   : > { %3455 = vrot.lane.b32.xlu0 %v11027_v16, %s8889_s30 }
 0x74c   : > { %3393 = vrot.lane.b32.xlu0 %v11018_v17, %s8867_s28 }
 0x750   : > { %3473 = vrot.lane.b32.xlu0 %v11034_v59, %s8889_s30 }
 0x754   : > { %3409 = vrot.lane.b32.xlu0 %v11034_v59, %s8867_s28 }
 0x758   : > { %3441 = vrot.lane.b32.xlu0 %v11034_v59, %s8885_s29 }
 0x75c   : > { %3471 = vrot.lane.b32.xlu0 %v11043_v1, %s8889_s30 }
 0x760   : > { %3407 = vrot.lane.b32.xlu0 %v11043_v1, %s8867_s28 }
 0x764   : > { %3439 = vrot.lane.b32.xlu0 %v11043_v1, %s8885_s29 }
 0x768   : > { %3425 = vrot.lane.b32.xlu0 %v11018_v17, %s8885_s29 }
 0x76c   : > { %3453 = vrot.lane.b32.xlu0 %v10952_v9, %s8889_s30 }
 0x76e   : > { %v3466_v15 = vpop.permute.xlu0 %3465 }
 0x770   : > { %3391 = vrot.lane.b32.xlu0 %v11027_v16, %s8867_s28 }
 0x774   : > { %3423 = vrot.lane.b32.xlu0 %v11027_v16, %s8885_s29 }
 0x776   : > { %v3470_v61 = vpop.permute.xlu0 %3469 }
 0x778   : > { %3451 = vrot.lane.b32.xlu0 %v10959_v47, %s8889_s30  ;;  %v11136_v41 = vpop.permute.xlu1 %3435 }
 0x77a   : > { %v11061_v42 = vpop.permute.xlu0 %3405 }
 0x77c   : > { %3389 = vrot.lane.b32.xlu0 %v10952_v9, %s8867_s28 }
 0x77e   : > { %v11065_v62 = vpop.permute.xlu0 %3437 }
 0x780   : > { %3449 = vrot.lane.b32.xlu0 %v10973_v23, %s8889_s30 }
 0x782   : > { %v3468_v8 = vpop.permute.xlu0 %3467 }
 0x784   : > { %3419 = vrot.lane.b32.xlu0 %v10959_v47, %s8885_s29 }
 0x786   : > { %v11071_v35 = vpop.permute.xlu0 %3403 }
 0x788   : > { %3385 = vrot.lane.b32.xlu0 %v10973_v23, %s8867_s28 }
 0x78a   : > { %v3464_v33 = vpop.permute.xlu0 %3463 }
 0x78c   : > { %3445 = vrot.lane.b32.xlu0 %v10991_v0, %s8889_s30 }
 0x78e   : > { %v11077_v48 = vpop.permute.xlu0 %3401 }
 0x790   : > { %3415 = vrot.lane.b32.xlu0 %v10966_v53, %s8885_s29 }
 0x792   : > { %v11081_v20 = vpop.permute.xlu0 %3433 }
 0x794   : > { %3381 = vrot.lane.b32.xlu0 %v10991_v0, %s8867_s28 }
 0x796   : > { %v3462_v19 = vpop.permute.xlu0 %3461 }
 0x798   : > { %3379 = vrot.lane.b32.xlu0 %v10932_v7, %s8867_s28  ;;  %s8890_s28 = smov 8  }
 0x79a   : > { %v11087_v24 = vpop.permute.xlu0 %3399 }
 0x79e   : > { %v11089_v63 = vpop.permute.xlu0 %3431 }
 0x7a2   : > { %v3460_v31 = vpop.permute.xlu0 %3459 }
 0x7a6   : > { %v11091_v39 = vpop.permute.xlu0 %3397 }
 0x7aa   : > { %v11093_v52 = vpop.permute.xlu0 %3429 }
 0x7ae   : > { %v3458_v37 = vpop.permute.xlu0 %3457 }
 0x7b2   : > { %v11095_v3 = vpop.permute.xlu0 %3395 }
 0x7b6   : > { %v11097_v60 = vpop.permute.xlu0 %3427 }
 0x7ba   : > { %v3456_v12 = vpop.permute.xlu0 %3455 }
 0x7be   : > { %v11099_v51 = vpop.permute.xlu0 %3393 }
 0x7c2   : > { %v3474_v11 = vpop.permute.xlu0 %3473 }
 0x7c3   : > { %7415 = vmatprep.subr.msk.mxu0 %vm3475_vm2, %v3474_v11 }
 0x7c4   : > { %7416 = vmatpush3.xpose.msk.msra.mxu0 %vm3475_vm2, %v3474_v11 }
 0x7c6   : > { %v11103_v57 = vpop.permute.xlu0 %3409 }
 0x7c7   : > { %3715 = vrot.lane.b32.xlu0 %v11103_v57, %s8889_s30 }
 0x7ca   : > { %v11107_v26 = vpop.permute.xlu0 %3441 }
 0x7cb   : > { %3956 = vrot.lane.b32.xlu1 %v11107_v26, %s8889_s30 }
 0x7ce   : > { %v3472_v22 = vpop.permute.xlu0 %3471 }
 0x7cf   : > { %7417 = vmatprep.subr.msk.mxu0 %vm3475_vm2, %v3472_v22 }
 0x7d0   : > { %7418 = vmatpush3.xpose.msk.msra.mxu0 %vm3475_vm2, %v3472_v22 }
 0x7d1   : > { %7419 = vmatprep.subr.msk.mxu0 %vm3475_vm2, %v3470_v61 }
 0x7d2   : > { %v11114_v21 = vpop.permute.xlu0 %3407 }
 0x7d3   : > { %3713 = vrot.lane.b32.xlu0 %v11114_v21, %s8889_s30 }
 0x7d4   : > { %7420 = vmatpush3.xpose.msk.msra.mxu0 %vm3475_vm2, %v3470_v61 }
 0x7d5   : > { %7421 = vmatprep.subr.msk.mxu0 %vm3475_vm2, %v3468_v8 }
 0x7d6   : > { %v11120_v30 = vpop.permute.xlu0 %3439 }
 0x7d7   : > { %3711 = vrot.lane.b32.xlu0 %v11061_v42, %s8889_s30  ;;  %3954 = vrot.lane.b32.xlu1 %v11120_v30, %s8889_s30 }
 0x7d8   : > { %7422 = vmatpush3.xpose.msk.msra.mxu0 %vm3475_vm2, %v3468_v8 }
 0x7d9   : > { %7423 = vmatprep.subr.msk.mxu0 %vm3475_vm2, %v3466_v15 }
 0x7da   : > { %v11128_v50 = vpop.permute.xlu0 %3425 }
 0x7db   : > { %3709 = vrot.lane.b32.xlu0 %v11071_v35, %s8889_s30  ;;  %3952 = vrot.lane.b32.xlu1 %v11065_v62, %s8889_s30 }
 0x7dc   : > { %7424 = vmatpush3.xpose.msk.msra.mxu0 %vm3475_vm2, %v3466_v15  ;;  %v11151_v15 = vpop.permute.xlu1 %3421 }
 0x7dd   : > { %7425 = vmatprep.subr.msk.mxu0 %vm3475_vm2, %v3464_v33 }
 0x7de   : > { %v3454_v36 = vpop.permute.xlu0 %3453 }
 0x7df   : > { %3707 = vrot.lane.b32.xlu0 %v11077_v48, %s8889_s30  ;;  %3950 = vrot.lane.b32.xlu1 %v11136_v41, %s8889_s30 }
 0x7e0   : > { %7426 = vmatpush3.xpose.msk.msra.mxu0 %vm3475_vm2, %v3464_v33  ;;  %v11162_v11 = vpop.permute.xlu1 %3387 }
 0x7e1   : > { %7427 = vmatprep.subr.msk.mxu0 %vm3475_vm2, %v3462_v19 }
 0x7e2   : > { %v11144_v61 = vpop.permute.xlu0 %3391 }
 0x7e3   : > { %3705 = vrot.lane.b32.xlu0 %v11087_v24, %s8889_s30  ;;  %3948 = vrot.lane.b32.xlu1 %v11081_v20, %s8889_s30 }
 0x7e4   : > { %7428 = vmatpush3.xpose.msk.msra.mxu0 %vm3475_vm2, %v3462_v19 }
 0x7e5   : > { %7429 = vmatprep.subr.msk.mxu0 %vm3475_vm2, %v3460_v31 }
 0x7e6   : > { %v11154_v8 = vpop.permute.xlu0 %3423 }
 0x7e7   : > { %3703 = vrot.lane.b32.xlu0 %v11091_v39, %s8889_s30  ;;  %3946 = vrot.lane.b32.xlu1 %v11089_v63, %s8889_s30 }
 0x7e8   : > { %7430 = vmatpush3.xpose.msk.msra.mxu0 %vm3475_vm2, %v3460_v31  ;;  %v3448_v31 = vpop.permute.xlu1 %3447 }
 0x7e9   : > { %7431 = vmatprep.subr.msk.mxu0 %vm3475_vm2, %v3458_v37 }
 0x7ea   : > { %v3452_v33 = vpop.permute.xlu0 %3451 }
 0x7eb   : > { %3701 = vrot.lane.b32.xlu0 %v11095_v3, %s8889_s30  ;;  %3944 = vrot.lane.b32.xlu1 %v11093_v52, %s8889_s30 }
 0x7ec   : > { %7432 = vmatpush3.xpose.msk.msra.mxu0 %vm3475_vm2, %v3458_v37  ;;  %v11186_v54 = vpop.permute.xlu1 %3417 }
 0x7ed   : > { %7433 = vmatprep.subr.msk.mxu0 %vm3475_vm2, %v3456_v12 }
 0x7ee   : > { %v11170_v19 = vpop.permute.xlu0 %3389 }
 0x7ef   : > { %3699 = vrot.lane.b32.xlu0 %v11099_v51, %s8889_s30  ;;  %3942 = vrot.lane.b32.xlu1 %v11097_v60, %s8889_s30 }
 0x7f0   : > { %7434 = vmatpush3.xpose.msk.msra.mxu0 %vm3475_vm2, %v3456_v12 }
 0x7f1   : > { %7435 = vmatprep.subr.msk.mxu0 %vm3475_vm2, %v3454_v36 }
 0x7f2   : > { %v3450_v22 = vpop.permute.xlu0 %3449 }
 0x7f3   : > { %3697 = vrot.lane.b32.xlu0 %v11144_v61, %s8889_s30  ;;  %3940 = vrot.lane.b32.xlu1 %v11128_v50, %s8889_s30 }
 0x7f4   : > { %7436 = vmatpush3.xpose.msk.msra.mxu0 %vm3475_vm2, %v3454_v36  ;;  %v11201_v36 = vpop.permute.xlu1 %3383 }
 0x7f5   : > { %7437 = vmatprep.subr.msk.mxu0 %vm3475_vm2, %v3452_v33 }
 0x7f6   : > { %v11184_v37 = vpop.permute.xlu0 %3419 }
 0x7f7   : > { %3695 = vrot.lane.b32.xlu0 %v11170_v19, %s8889_s30  ;;  %3938 = vrot.lane.b32.xlu1 %v11154_v8, %s8889_s30 }
 0x7f8   : > { %7438 = vmatpush3.xpose.msk.msra.mxu0 %vm3475_vm2, %v3452_v33  ;;  %v3444_v18 = vpop.permute.xlu1 %3443 }
 0x7f9   : > { %7439 = vmatprep.subr.msk.mxu0 %vm3475_vm2, %v3450_v22 }
 0x7fa   : > { %v11194_v12 = vpop.permute.xlu0 %3385 }
 0x7fb   : > { %3936 = vrot.lane.b32.xlu1 %v11151_v15, %s8889_s30  ;;  %3693 = vrot.lane.b32.xlu0 %v11162_v11, %s8889_s30 }
 0x7fc   : > { %7440 = vmatpush3.xpose.msk.msra.mxu0 %vm3475_vm2, %v3450_v22 }
 0x7fd   : > { %7441 = vmatprep.subr.msk.mxu0 %vm3475_vm2, %v3448_v31 }
 0x7fe   : > { %v3446_v34 = vpop.permute.xlu0 %3445 }
 0x7ff   : > { %3934 = vrot.lane.b32.xlu1 %v11184_v37, %s8889_s30  ;;  %3691 = vrot.lane.b32.xlu0 %v11194_v12, %s8889_s30 }
 0x800   : > { %7442 = vmatpush3.xpose.msk.msra.mxu0 %vm3475_vm2, %v3448_v31  ;;  %v11225_v31 = vpop.permute.xlu1 %3413 }
 0x801   : > { %7443 = vmatprep.subr.msk.mxu0 %vm3475_vm2, %v3446_v34 }
 0x802   : > { %v11210_v33 = vpop.permute.xlu0 %3415 }
 0x803   : > { %3932 = vrot.lane.b32.xlu1 %v11186_v54, %s8889_s30  ;;  %3689 = vrot.lane.b32.xlu0 %v11201_v36, %s8889_s30 }
 0x804   : > { %7444 = vmatpush3.xpose.msk.msra.mxu0 %vm3475_vm2, %v3446_v34 }
 0x805   : > { %7445 = vmatprep.subr.msk.mxu0 %vm3475_vm2, %v3444_v18 }
 0x806   : > { %v11218_v22 = vpop.permute.xlu0 %3381 }
 0x807   : > { %3930 = vrot.lane.b32.xlu1 %v11210_v33, %s8889_s30  ;;  %3687 = vrot.lane.b32.xlu0 %v11218_v22, %s8889_s30 }
 0x808   : > { %7446 = vmatpush3.xpose.msk.msra.mxu0 %vm3475_vm2, %v3444_v18  ;;  %v11239_v18 = vpop.permute.xlu1 %3411 }
 0x80a   : > { %v11227_v49 = vpop.permute.xlu0 %3379 }
 0x80b   : > { %7503 = vmatprep.mubr.msk.f32.mxu1 %vm3475_vm2, %v11227_v49  ;;  %3685 = vrot.lane.b32.xlu0 %v11227_v49, %s8889_s30 }
 0x80c   : > { %7448 = vmatmul.mubr.msk.f32.vlgmr.msra.gmra.mxu0 %vm3475_vm2, %v10991_v0  ;;  %3928 = vrot.lane.b32.xlu1 %v11225_v31, %s8889_s30 }
 0x80d   : > { %7450 = vmatprep.mubr.msk.f32.mxu0 %vm3475_vm2, %v10966_v53 }
 0x80f   : > { %4629 = vrot.lane.b32.xlu0 %v11034_v59, %s8883_s20 }
 0x810   : > { %7451 = vmatmul.mubr.msk.f32.gmra.mxu0 %vm3475_vm2, %v10973_v23  ;;  %3926 = vrot.lane.b32.xlu1 %v11239_v18, %s8889_s30  ;;  %s8731_s30 = scalar_lea.vmem %s6539_s19, 16 }
 0x811   : > { %7453 = vmatprep.mubr.msk.f32.mxu0 %vm3475_vm2, %v10959_v47  ;;  %p8732_p0 = scmp.ne.s32.totalorder %s6539_s19, %s8731_s30 }
 0x813   : > { %4625 = vrot.lane.b32.xlu0 %v10942_v5, %s8883_s20  ;;  %p8733_p1 = pnand %p8732_p0, %p9021_p5 }
 0x814   : > { %7454 = vmatmul.mubr.msk.f32.gmra.mxu0 %vm3475_vm2, %v10952_v9  ;;  %4627 = vrot.lane.b32.xlu1 %v11043_v1, %s8883_s20 }
 0x815   : > { %7456 = vmatprep.mubr.msk.f32.mxu0 %vm3475_vm2, %v11027_v16  ;;  %p8734_p12 = pneg %p8733_p1 }
 0x817   : > { %4621 = vrot.lane.b32.xlu0 %v10937_v14, %s8883_s20 }
 0x818   : > { %7457 = vmatmul.mubr.msk.f32.gmra.mxu0 %vm3475_vm2, %v11018_v17  ;;  %4623 = vrot.lane.b32.xlu1 %v10945_v13, %s8883_s20 }
 0x819   : > { %7459 = vmatprep.mubr.msk.f32.mxu0 %vm3475_vm2, %v11009_v45 }
 0x81b   : > { %4617 = vrot.lane.b32.xlu0 %v10996_v46, %s8883_s20 }
 0x81c   : > { %7460 = vmatmul.mubr.msk.f32.gmra.mxu0 %vm3475_vm2, %v10996_v46  ;;  %4619 = vrot.lane.b32.xlu1 %v10978_v25, %s8883_s20 }
 0x81d   : > { %7462 = vmatprep.mubr.msk.f32.mxu0 %vm3475_vm2, %v10978_v25 }
 0x81f   : > { %4613 = vrot.lane.b32.xlu0 %v11018_v17, %s8883_s20 }
 0x820   : > { %7463 = vmatmul.mubr.msk.f32.gmra.mxu0 %vm3475_vm2, %v10937_v14  ;;  %4615 = vrot.lane.b32.xlu1 %v11009_v45, %s8883_s20 }
 0x821   : > { %7465 = vmatprep.mubr.msk.f32.mxu0 %vm3475_vm2, %v10945_v13 }
 0x823   : > { %4609 = vrot.lane.b32.xlu0 %v10952_v9, %s8883_s20 }
 0x824   : > { %7466 = vmatmul.mubr.msk.f32.gmra.mxu0 %vm3475_vm2, %v10942_v5  ;;  %4611 = vrot.lane.b32.xlu1 %v11027_v16, %s8883_s20 }
 0x825   : > { %7468 = vmatprep.mubr.msk.f32.mxu0 %vm3475_vm2, %v11043_v1 }
 0x827   : > { %4605 = vrot.lane.b32.xlu0 %v10973_v23, %s8883_s20 }
 0x828   : > { %7469 = vmatmul.mubr.msk.f32.gmra.mxu0 %vm3475_vm2, %v11034_v59  ;;  %4607 = vrot.lane.b32.xlu1 %v10959_v47, %s8883_s20 }
 0x829   : > { %7559 = vmatprep.mubr.msk.f32.mxu0 %vm3475_vm2, %v11239_v18 }
 0x82b   : > { %4601 = vrot.lane.b32.xlu0 %v10991_v0, %s8883_s20 }
 0x82c   : > { %4603 = vrot.lane.b32.xlu1 %v10966_v53, %s8883_s20 }
 0x82f   : > { %4822 = vrot.lane.b32.xlu0 %v11103_v57, %s8883_s20 }
 0x830   : > { %4599 = vrot.lane.b32.xlu1 %v10932_v7, %s8883_s20 }
 0x833   : > { %5011 = vrot.lane.b32.xlu0 %v11065_v62, %s8883_s20 }
 0x834   : > { %5015 = vrot.lane.b32.xlu1 %v11107_v26, %s8883_s20 }
 0x837   : > { %5009 = vrot.lane.b32.xlu0 %v11136_v41, %s8883_s20 }
 0x838   : > { %4818 = vrot.lane.b32.xlu1 %v11061_v42, %s8883_s20 }
 0x839   : > { %v3716_v34 = vpop.permute.xlu0 %3715 }
 0x83a   : > { %7471 = vmatprep.subr.msk.mxu1 %vm3475_vm2, %v3716_v34 }
 0x83b   : > { %7472 = vmatpush3.xpose.msk.msra.mxu1 %vm3475_vm2, %v3716_v34  ;;  %5007 = vrot.lane.b32.xlu0 %v11081_v20, %s8883_s20 }
 0x83c   : > { %4816 = vrot.lane.b32.xlu1 %v11071_v35, %s8883_s20 }
 0x83d   : > { %v3957_v7 = vpop.permute.xlu1 %3956 }
 0x83e   : > { %7527 = vmatprep.subr.msk.mxu0 %vm3475_vm2, %v3957_v7 }
 0x83f   : > { %5005 = vrot.lane.b32.xlu0 %v11089_v63, %s8883_s20  ;;  %7528 = vmatpush3.xpose.msk.msra.mxu0 %vm3475_vm2, %v3957_v7 }
 0x840   : > { %4814 = vrot.lane.b32.xlu1 %v11077_v48, %s8883_s20 }
 0x843   : > { %5003 = vrot.lane.b32.xlu0 %v11093_v52, %s8883_s20 }
 0x844   : > { %4812 = vrot.lane.b32.xlu1 %v11087_v24, %s8883_s20 }
 0x845   : > { %v3714_v14 = vpop.permute.xlu0 %3713 }
 0x846   : > { %7473 = vmatprep.subr.msk.mxu1 %vm3475_vm2, %v3714_v14 }
 0x847   : > { %7474 = vmatpush3.xpose.msk.msra.mxu1 %vm3475_vm2, %v3714_v14  ;;  %5001 = vrot.lane.b32.xlu0 %v11097_v60, %s8883_s20 }
 0x848   : > { %4810 = vrot.lane.b32.xlu1 %v11091_v39, %s8883_s20 }
 0x849   : > { %v3712_v5 = vpop.permute.xlu0 %3711  ;;  %v3955_v13 = vpop.permute.xlu1 %3954 }
 0x84a   : > { %7475 = vmatprep.subr.msk.mxu1 %vm3475_vm2, %v3712_v5  ;;  %7529 = vmatprep.subr.msk.mxu0 %vm3475_vm2, %v3955_v13 }
 0x84b   : > { %7476 = vmatpush3.xpose.msk.msra.mxu1 %vm3475_vm2, %v3712_v5  ;;  %4999 = vrot.lane.b32.xlu0 %v11128_v50, %s8883_s20 }
 0x84c   : > { %4808 = vrot.lane.b32.xlu1 %v11095_v3, %s8883_s20  ;;  %7530 = vmatpush3.xpose.msk.msra.mxu0 %vm3475_vm2, %v3955_v13 }
 0x84d   : > { %v3710_v9 = vpop.permute.xlu0 %3709  ;;  %v3953_v47 = vpop.permute.xlu1 %3952 }
 0x84e   : > { %7477 = vmatprep.subr.msk.mxu1 %vm3475_vm2, %v3710_v9  ;;  %7531 = vmatprep.subr.msk.mxu0 %vm3475_vm2, %v3953_v47 }
 0x84f   : > { %7478 = vmatpush3.xpose.msk.msra.mxu1 %vm3475_vm2, %v3710_v9  ;;  %4997 = vrot.lane.b32.xlu0 %v11154_v8, %s8883_s20 }
 0x850   : > { %4806 = vrot.lane.b32.xlu1 %v11099_v51, %s8883_s20  ;;  %7532 = vmatpush3.xpose.msk.msra.mxu0 %vm3475_vm2, %v3953_v47 }
 0x851   : > { %v3708_v53 = vpop.permute.xlu0 %3707  ;;  %v3951_v23 = vpop.permute.xlu1 %3950 }
 0x852   : > { %7479 = vmatprep.subr.msk.mxu1 %vm3475_vm2, %v3708_v53  ;;  %7533 = vmatprep.subr.msk.mxu0 %vm3475_vm2, %v3951_v23 }
 0x853   : > { %7480 = vmatpush3.xpose.msk.msra.mxu1 %vm3475_vm2, %v3708_v53  ;;  %4995 = vrot.lane.b32.xlu0 %v11151_v15, %s8883_s20 }
 0x854   : > { %4804 = vrot.lane.b32.xlu1 %v11144_v61, %s8883_s20  ;;  %7534 = vmatpush3.xpose.msk.msra.mxu0 %vm3475_vm2, %v3951_v23 }
 0x855   : > { %v3706_v25 = vpop.permute.xlu0 %3705  ;;  %v3949_v0 = vpop.permute.xlu1 %3948 }
 0x856   : > { %7481 = vmatprep.subr.msk.mxu1 %vm3475_vm2, %v3706_v25  ;;  %7535 = vmatprep.subr.msk.mxu0 %vm3475_vm2, %v3949_v0 }
 0x857   : > { %7482 = vmatpush3.xpose.msk.msra.mxu1 %vm3475_vm2, %v3706_v25  ;;  %4993 = vrot.lane.b32.xlu0 %v11184_v37, %s8883_s20 }
 0x858   : > { %4802 = vrot.lane.b32.xlu1 %v11170_v19, %s8883_s20  ;;  %7536 = vmatpush3.xpose.msk.msra.mxu0 %vm3475_vm2, %v3949_v0 }
 0x859   : > { %v3704_v46 = vpop.permute.xlu0 %3703  ;;  %v3947_v45 = vpop.permute.xlu1 %3946 }
 0x85a   : > { %7483 = vmatprep.subr.msk.mxu1 %vm3475_vm2, %v3704_v46  ;;  %7537 = vmatprep.subr.msk.mxu0 %vm3475_vm2, %v3947_v45 }
 0x85b   : > { %7484 = vmatpush3.xpose.msk.msra.mxu1 %vm3475_vm2, %v3704_v46  ;;  %4991 = vrot.lane.b32.xlu0 %v11186_v54, %s8883_s20 }
 0x85c   : > { %4800 = vrot.lane.b32.xlu1 %v11162_v11, %s8883_s20  ;;  %7538 = vmatpush3.xpose.msk.msra.mxu0 %vm3475_vm2, %v3947_v45 }
 0x85d   : > { %v3702_v17 = vpop.permute.xlu0 %3701  ;;  %v3945_v16 = vpop.permute.xlu1 %3944 }
 0x85e   : > { %7485 = vmatprep.subr.msk.mxu1 %vm3475_vm2, %v3702_v17  ;;  %7539 = vmatprep.subr.msk.mxu0 %vm3475_vm2, %v3945_v16 }
 0x85f   : > { %7486 = vmatpush3.xpose.msk.msra.mxu1 %vm3475_vm2, %v3702_v17  ;;  %4989 = vrot.lane.b32.xlu0 %v11210_v33, %s8883_s20 }
 0x860   : > { %4798 = vrot.lane.b32.xlu1 %v11194_v12, %s8883_s20  ;;  %7540 = vmatpush3.xpose.msk.msra.mxu0 %vm3475_vm2, %v3945_v16 }
 0x861   : > { %v3700_v59 = vpop.permute.xlu0 %3699  ;;  %v3943_v1 = vpop.permute.xlu1 %3942 }
 0x862   : > { %7487 = vmatprep.subr.msk.mxu1 %vm3475_vm2, %v3700_v59  ;;  %7541 = vmatprep.subr.msk.mxu0 %vm3475_vm2, %v3943_v1 }
 0x863   : > { %7488 = vmatpush3.xpose.msk.msra.mxu1 %vm3475_vm2, %v3700_v59  ;;  %4987 = vrot.lane.b32.xlu0 %v11225_v31, %s8883_s20 }
 0x864   : > { %4796 = vrot.lane.b32.xlu1 %v11201_v36, %s8883_s20  ;;  %7542 = vmatpush3.xpose.msk.msra.mxu0 %vm3475_vm2, %v3943_v1 }
 0x865   : > { %v3698_v34 = vpop.permute.xlu0 %3697  ;;  %v3941_v7 = vpop.permute.xlu1 %3940 }
 0x866   : > { %7489 = vmatprep.subr.msk.mxu1 %vm3475_vm2, %v3698_v34  ;;  %7543 = vmatprep.subr.msk.mxu0 %vm3475_vm2, %v3941_v7 }
 0x867   : > { %7490 = vmatpush3.xpose.msk.msra.mxu1 %vm3475_vm2, %v3698_v34  ;;  %4985 = vrot.lane.b32.xlu0 %v11239_v18, %s8883_s20 }
 0x868   : > { %4794 = vrot.lane.b32.xlu1 %v11218_v22, %s8883_s20  ;;  %7544 = vmatpush3.xpose.msk.msra.mxu0 %vm3475_vm2, %v3941_v7 }
 0x869   : > { %v3696_v14 = vpop.permute.xlu0 %3695  ;;  %v3939_v5 = vpop.permute.xlu1 %3938 }
 0x86a   : > { %7491 = vmatprep.subr.msk.mxu1 %vm3475_vm2, %v3696_v14  ;;  %7545 = vmatprep.subr.msk.mxu0 %vm3475_vm2, %v3939_v5 }
 0x86b   : > { %7492 = vmatpush3.xpose.msk.msra.mxu1 %vm3475_vm2, %v3696_v14  ;;  %5013 = vrot.lane.b32.xlu0 %v11120_v30, %s8883_s20 }
 0x86c   : > { %4792 = vrot.lane.b32.xlu1 %v11227_v49, %s8883_s20  ;;  %7546 = vmatpush3.xpose.msk.msra.mxu0 %vm3475_vm2, %v3939_v5 }
 0x86d   : > { %v3694_v18 = vpop.permute.xlu0 %3693  ;;  %v3937_v13 = vpop.permute.xlu1 %3936 }
 0x86e   : > { %7493 = vmatprep.subr.msk.mxu1 %vm3475_vm2, %v3694_v18  ;;  %7547 = vmatprep.subr.msk.mxu0 %vm3475_vm2, %v3937_v13 }
 0x86f   : > { %7494 = vmatpush3.xpose.msk.msra.mxu1 %vm3475_vm2, %v3694_v18 }
 0x870   : > { %4820 = vrot.lane.b32.xlu1 %v11114_v21, %s8883_s20  ;;  %7548 = vmatpush3.xpose.msk.msra.mxu0 %vm3475_vm2, %v3937_v13 }
 0x871   : > { %v3692_v9 = vpop.permute.xlu0 %3691  ;;  %v3935_v47 = vpop.permute.xlu1 %3934 }
 0x872   : > { %7495 = vmatprep.subr.msk.mxu1 %vm3475_vm2, %v3692_v9  ;;  %7549 = vmatprep.subr.msk.mxu0 %vm3475_vm2, %v3935_v47 }
 0x873   : > { %7496 = vmatpush3.xpose.msk.msra.mxu1 %vm3475_vm2, %v3692_v9 }
 0x874   : > { %7550 = vmatpush3.xpose.msk.msra.mxu0 %vm3475_vm2, %v3935_v47 }
 0x875   : > { %v3690_v49 = vpop.permute.xlu0 %3689  ;;  %v3933_v53 = vpop.permute.xlu1 %3932 }
 0x876   : > { %7497 = vmatprep.subr.msk.mxu1 %vm3475_vm2, %v3690_v49  ;;  %7551 = vmatprep.subr.msk.mxu0 %vm3475_vm2, %v3933_v53 }
 0x877   : > { %7498 = vmatpush3.xpose.msk.msra.mxu1 %vm3475_vm2, %v3690_v49 }
 0x878   : > { %7552 = vmatpush3.xpose.msk.msra.mxu0 %vm3475_vm2, %v3933_v53 }
 0x879   : > { %v3688_v23 = vpop.permute.xlu0 %3687  ;;  %v3931_v25 = vpop.permute.xlu1 %3930 }
 0x87a   : > { %7499 = vmatprep.subr.msk.mxu1 %vm3475_vm2, %v3688_v23  ;;  %7553 = vmatprep.subr.msk.mxu0 %vm3475_vm2, %v3931_v25 }
 0x87b   : > { %7500 = vmatpush3.xpose.msk.msra.mxu1 %vm3475_vm2, %v3688_v23 }
 0x87c   : > { %7554 = vmatpush3.xpose.msk.msra.mxu0 %vm3475_vm2, %v3931_v25 }
 0x87d   : > { %v3686_v0 = vpop.permute.xlu0 %3685 }
 0x87e   : > { %v3929_v46 = vpop.permute.xlu1 %3928  ;;  %7501 = vmatprep.subr.msk.mxu1 %vm3475_vm2, %v3686_v0 }
 0x87f   : > { %7555 = vmatprep.subr.msk.mxu0 %vm3475_vm2, %v3929_v46  ;;  %7502 = vmatpush3.xpose.msk.msra.mxu1 %vm3475_vm2, %v3686_v0 }
 0x880   : > { %7556 = vmatpush3.xpose.msk.msra.mxu0 %vm3475_vm2, %v3929_v46 }
 0x881   : > { %v4630_v45 = vpop.permute.xlu0 %4629 }
 0x882   : > { %v3927_v17 = vpop.permute.xlu1 %3926  ;;  %7504 = vmatmul.mubr.msk.f32.vlgmr.msra.gmra.mxu1 %vm3475_vm2, %v11218_v22  ;;  %7583 = vmatprep.subr.mxu1 %v4630_v45 }
 0x883   : > { %7557 = vmatprep.subr.msk.mxu0 %vm3475_vm2, %v3927_v17  ;;  %7506 = vmatprep.mubr.msk.f32.mxu1 %vm3475_vm2, %v11201_v36 }
 0x884   : > { %7558 = vmatpush3.xpose.msk.msra.mxu0 %vm3475_vm2, %v3927_v17  ;;  %7584 = vmatpush3.msra.mxu1 %v4630_v45  ;;  %v12740_v17 = vmov 0.0  }
 0x885   : > { %v4626_v16 = vpop.permute.xlu0 %4625 }
 0x886   : > { %v4628_v59 = vpop.permute.xlu1 %4627  ;;  %7507 = vmatmul.mubr.msk.f32.gmra.mxu1 %vm3475_vm2, %v11194_v12 }
 0x887   : > { %7560 = vmatmul.mubr.msk.f32.vlgmr.msra.gmra.mxu0 %vm3475_vm2, %v11225_v31  ;;  %7585 = vmatprep.subr.mxu1 %v4628_v59 }
 0x888   : > { %7509 = vmatprep.mubr.msk.f32.mxu1 %vm3475_vm2, %v11162_v11  ;;  %7562 = vmatprep.mubr.msk.f32.mxu0 %vm3475_vm2, %v11210_v33 }
 0x889   : > { %7586 = vmatpush3.msra.mxu1 %v4628_v59  ;;  %v4622_v36 = vpop.permute.xlu0 %4621 }
 0x88a   : > { %7587 = vmatprep.subr.mxu1 %v4626_v16  ;;  %v4624_v22 = vpop.permute.xlu1 %4623  ;;  %7510 = vmatmul.mubr.msk.f32.gmra.mxu1 %vm3475_vm2, %v11170_v19 }
 0x88b   : > { %7588 = vmatpush3.msra.mxu1 %v4626_v16  ;;  %7563 = vmatmul.mubr.msk.f32.gmra.mxu0 %vm3475_vm2, %v11186_v54 }
 0x88c   : > { %7589 = vmatprep.subr.mxu1 %v4624_v22  ;;  %7512 = vmatprep.mubr.msk.f32.mxu1 %vm3475_vm2, %v11144_v61 }
 0x88d   : > { %7565 = vmatprep.mubr.msk.f32.mxu0 %vm3475_vm2, %v11184_v37  ;;  %7590 = vmatpush3.msra.mxu1 %v4624_v22  ;;  %v4618_v11 = vpop.permute.xlu0 %4617 }
 0x88e   : > { %7591 = vmatprep.subr.mxu1 %v4622_v36  ;;  %v4620_v12 = vpop.permute.xlu1 %4619  ;;  %7513 = vmatmul.mubr.msk.f32.gmra.mxu1 %vm3475_vm2, %v11099_v51 }
 0x88f   : > { %7592 = vmatpush3.msra.mxu1 %v4622_v36  ;;  %7566 = vmatmul.mubr.msk.f32.gmra.mxu0 %vm3475_vm2, %v11151_v15 }
 0x890   : > { %7593 = vmatprep.subr.mxu1 %v4620_v12  ;;  %7515 = vmatprep.mubr.msk.f32.mxu1 %vm3475_vm2, %v11095_v3 }
 0x891   : > { %7568 = vmatprep.mubr.msk.f32.mxu0 %vm3475_vm2, %v11154_v8  ;;  %7594 = vmatpush3.msra.mxu1 %v4620_v12  ;;  %v4614_v54 = vpop.permute.xlu0 %4613 }
 0x892   : > { %7595 = vmatprep.subr.mxu1 %v4618_v11  ;;  %v4616_v61 = vpop.permute.xlu1 %4615  ;;  %7516 = vmatmul.mubr.msk.f32.gmra.mxu1 %vm3475_vm2, %v11091_v39 }
 0x893   : > { %7596 = vmatpush3.msra.mxu1 %v4618_v11  ;;  %7569 = vmatmul.mubr.msk.f32.gmra.mxu0 %vm3475_vm2, %v11128_v50 }
 0x894   : > { %7597 = vmatprep.subr.mxu1 %v4616_v61  ;;  %7518 = vmatprep.mubr.msk.f32.mxu1 %vm3475_vm2, %v11087_v24 }
 0x895   : > { %7571 = vmatprep.mubr.msk.f32.mxu0 %vm3475_vm2, %v11097_v60  ;;  %7598 = vmatpush3.msra.mxu1 %v4616_v61  ;;  %v4610_v3 = vpop.permute.xlu0 %4609 }
 0x896   : > { %7599 = vmatprep.subr.mxu1 %v4614_v54  ;;  %v4612_v51 = vpop.permute.xlu1 %4611  ;;  %7519 = vmatmul.mubr.msk.f32.gmra.mxu1 %vm3475_vm2, %v11077_v48 }
 0x897   : > { %7600 = vmatpush3.msra.mxu1 %v4614_v54  ;;  %7572 = vmatmul.mubr.msk.f32.gmra.mxu0 %vm3475_vm2, %v11093_v52 }
 0x898   : > { %7601 = vmatprep.subr.mxu1 %v4612_v51  ;;  %7521 = vmatprep.mubr.msk.f32.mxu1 %vm3475_vm2, %v11071_v35 }
 0x899   : > { %7574 = vmatprep.mubr.msk.f32.mxu0 %vm3475_vm2, %v11089_v63  ;;  %7602 = vmatpush3.msra.mxu1 %v4612_v51  ;;  %v4606_v24 = vpop.permute.xlu0 %4605 }
 0x89a   : > { %7603 = vmatprep.subr.mxu1 %v4610_v3  ;;  %v4608_v39 = vpop.permute.xlu1 %4607  ;;  %7522 = vmatmul.mubr.msk.f32.gmra.mxu1 %vm3475_vm2, %v11061_v42 }
 0x89b   : > { %7604 = vmatpush3.msra.mxu1 %v4610_v3  ;;  %7575 = vmatmul.mubr.msk.f32.gmra.mxu0 %vm3475_vm2, %v11081_v20 }
 0x89c   : > { %7605 = vmatprep.subr.mxu1 %v4608_v39  ;;  %7524 = vmatprep.mubr.msk.f32.mxu1 %vm3475_vm2, %v11114_v21 }
 0x89d   : > { %7577 = vmatprep.mubr.msk.f32.mxu0 %vm3475_vm2, %v11136_v41  ;;  %7606 = vmatpush3.msra.mxu1 %v4608_v39  ;;  %v4602_v35 = vpop.permute.xlu0 %4601 }
 0x89e   : > { %7607 = vmatprep.subr.mxu1 %v4606_v24  ;;  %v4604_v48 = vpop.permute.xlu1 %4603  ;;  %7525 = vmatmul.mubr.msk.f32.gmra.mxu1 %vm3475_vm2, %v11103_v57 }
 0x89f   : > { %7608 = vmatpush3.msra.mxu1 %v4606_v24  ;;  %7578 = vmatmul.mubr.msk.f32.gmra.mxu0 %vm3475_vm2, %v11065_v62 }
 0x8a0   : > { %7609 = vmatprep.subr.mxu1 %v4604_v48  ;;  %7580 = vmatprep.mubr.msk.f32.mxu0 %vm3475_vm2, %v11120_v30 }
 0x8a1   : > { %7610 = vmatpush3.msra.mxu1 %v4604_v48  ;;  %v11489_v42 = vpop.permute.xlu0 %4822 }
 0x8a2   : > { %7611 = vmatprep.subr.mxu1 %v4602_v35  ;;  %v4600_v20 = vpop.permute.xlu1 %4599 }
 0x8a3   : > { %7612 = vmatpush3.msra.mxu1 %v4602_v35  ;;  %7581 = vmatmul.mubr.msk.f32.gmra.mxu0 %vm3475_vm2, %v11107_v26 }
 0x8a4   : > { %7613 = vmatprep.subr.mxu1 %v4600_v20 }
 0x8a5   : > { %7614 = vmatpush3.msra.mxu1 %v4600_v20  ;;  %v5012_v63 = vpop.permute.xlu0 %5011 }
 0x8a6   : > { %7639 = vmatprep.subr.mxu1 %v11489_v42  ;;  %v5016_v52 = vpop.permute.xlu1 %5015 }
 0x8a7   : > { %7695 = vmatprep.subr.mxu0 %v5016_v52 }
 0x8a8   : > { %7696 = vmatpush3.msra.mxu0 %v5016_v52 }
 0x8a9   : > { %v5010_v62 = vpop.permute.xlu0 %5009 }
 0x8aa   : > { %v11543_v16 = vpop.permute.xlu1 %4818 }
 0x8ad   : > { %v5008_v60 = vpop.permute.xlu0 %5007 }
 0x8ae   : > { %v11545_v59 = vpop.permute.xlu1 %4816 }
 0x8b1   : > { %v5006_v57 = vpop.permute.xlu0 %5005 }
 0x8b2   : > { %v11547_v36 = vpop.permute.xlu1 %4814 }
 0x8b5   : > { %v5004_v21 = vpop.permute.xlu0 %5003 }
 0x8b6   : > { %v11549_v22 = vpop.permute.xlu1 %4812 }
 0x8b9   : > { %v5002_v30 = vpop.permute.xlu0 %5001 }
 0x8ba   : > { %v11551_v11 = vpop.permute.xlu1 %4810 }
 0x8bd   : > { %v5000_v50 = vpop.permute.xlu0 %4999 }
 0x8be   : > { %v11553_v12 = vpop.permute.xlu1 %4808 }
 0x8c1   : > { %v4998_v41 = vpop.permute.xlu0 %4997 }
 0x8c2   : > { %v11555_v54 = vpop.permute.xlu1 %4806 }
 0x8c3   : > { %12741 = vst [vmem:[#allocation58_spill] sm:$0xff] %v11555_v54 }
 0x8c5   : > { %v4996_v15 = vpop.permute.xlu0 %4995 }
 0x8c6   : > { %v11557_v61 = vpop.permute.xlu1 %4804 }
 0x8c7   : > { %12742 = vst [vmem:[#allocation59_spill] sm:$0xff] %v11557_v61 }
 0x8c9   : > { %v4994_v8 = vpop.permute.xlu0 %4993 }
 0x8ca   : > { %v11559_v3 = vpop.permute.xlu1 %4802 }
 0x8cb   : > { %12743 = vst [vmem:[#allocation60_spill] sm:$0xff] %v11559_v3 }
 0x8cc   : > { %v11494_v19 = vpop.f32.mrf.mxu0 }
 0x8cd   : > { %4169 = vmax.xlane.f32.xlu1 %v11494_v19  ;;  %v4992_v26 = vpop.permute.xlu0 %4991 }
 0x8ce   : > { %v11497_v37 = vpop.f32.mrf.mxu0  ;;  %v11564_v24 = vpop.permute.xlu1 %4800 }
 0x8cf   : > { %4167 = vmax.xlane.f32.xlu0 %v11497_v37  ;;  %12744 = vst [vmem:[#allocation61_spill] sm:$0xff] %v11564_v24 }
 0x8d0   : > { %v11500_v33 = vpop.f32.mrf.mxu0 }
 0x8d1   : > { %v4990_v31 = vpop.permute.xlu0 %4989 }
 0x8d2   : > { %v11502_v1 = vpop.f32.mrf.mxu0 }
 0x8d3   : > { %4173 = vmax.xlane.f32.xlu0 %v11500_v33 }
 0x8d4   : > { %v11505_v34 = vpop.f32.mrf.mxu0 }
 0x8d5   : > { %4177 = vmax.xlane.f32.xlu1 %v11505_v34  ;;  %v4988_v7 = vpop.permute.xlu0 %4987 }
 0x8d6   : > { %v11508_v14 = vpop.f32.mrf.mxu0 }
 0x8d7   : > { %4171 = vmax.xlane.f32.xlu0 %v11502_v1 }
 0x8d8   : > { %v11511_v5 = vpop.f32.mrf.mxu0 }
 0x8d9   : > { %4181 = vmax.xlane.f32.xlu1 %v11511_v5  ;;  %v4986_v18 = vpop.permute.xlu0 %4985 }
 0x8da   : > { %v11514_v13 = vpop.f32.mrf.mxu0 }
 0x8db   : > { %4175 = vmax.xlane.f32.xlu0 %v11508_v14 }
 0x8dc   : > { %v11517_v9 = vpop.f32.mrf.mxu0 }
 0x8dd   : > { %4185 = vmax.xlane.f32.xlu1 %v11517_v9  ;;  %v5014_v47 = vpop.permute.xlu0 %5013 }
 0x8de   : > { %v11520_v49 = vpop.f32.mrf.mxu0  ;;  %7697 = vmatprep.subr.mxu0 %v5014_v47 }
 0x8df   : > { %4179 = vmax.xlane.f32.xlu0 %v11514_v13  ;;  %7698 = vmatpush3.msra.mxu0 %v5014_v47 }
 0x8e0   : > { %v11523_v53 = vpop.f32.mrf.mxu0  ;;  %7699 = vmatprep.subr.mxu0 %v5012_v63 }
 0x8e1   : > { %4189 = vmax.xlane.f32.xlu1 %v11523_v53  ;;  %7700 = vmatpush3.msra.mxu0 %v5012_v63  ;;  %v11576_v63 = vpop.permute.xlu1 %4798 }
 0x8e2   : > { %v11526_v23 = vpop.f32.mrf.mxu0  ;;  %7701 = vmatprep.subr.mxu0 %v5010_v62  ;;  %12745 = vst [vmem:[#allocation62_spill] sm:$0xff] %v11576_v63 }
 0x8e3   : > { %4183 = vmax.xlane.f32.xlu0 %v11520_v49  ;;  %7702 = vmatpush3.msra.mxu0 %v5010_v62 }
 0x8e4   : > { %v11529_v25 = vpop.f32.mrf.mxu0  ;;  %7703 = vmatprep.subr.mxu0 %v5008_v60 }
 0x8e5   : > { %4193 = vmax.xlane.f32.xlu1 %v11529_v25  ;;  %7704 = vmatpush3.msra.mxu0 %v5008_v60  ;;  %v11585_v60 = vpop.permute.xlu1 %4796 }
 0x8e6   : > { %v11532_v0 = vpop.f32.mrf.mxu0  ;;  %7705 = vmatprep.subr.mxu0 %v5006_v57  ;;  %12746 = vst [vmem:[#allocation63_spill] sm:$0xff] %v11585_v60 }
 0x8e7   : > { %4187 = vmax.xlane.f32.xlu0 %v11526_v23  ;;  %7706 = vmatpush3.msra.mxu0 %v5006_v57 }
 0x8e8   : > { %v11535_v46 = vpop.f32.mrf.mxu0  ;;  %7707 = vmatprep.subr.mxu0 %v5004_v21 }
 0x8e9   : > { %4197 = vmax.xlane.f32.xlu1 %v11535_v46  ;;  %7708 = vmatpush3.msra.mxu0 %v5004_v21 }
 0x8ea   : > { %7709 = vmatprep.subr.mxu0 %v5002_v30  ;;  %v11539_v45 = vpop.f32.mrf.mxu0 }
 0x8eb   : > { %4191 = vmax.xlane.f32.xlu0 %v11532_v0  ;;  %7710 = vmatpush3.msra.mxu0 %v5002_v30 }
 0x8ec   : > { %7711 = vmatprep.subr.mxu0 %v5000_v50 }
 0x8ed   : > { %7712 = vmatpush3.msra.mxu0 %v5000_v50 }
 0x8ee   : > { %7713 = vmatprep.subr.mxu0 %v4998_v41 }
 0x8ef   : > { %4195 = vmax.xlane.f32.xlu0 %v11539_v45  ;;  %7714 = vmatpush3.msra.mxu0 %v4998_v41  ;;  %v11598_v41 = vpop.permute.xlu1 %4794 }
 0x8f0   : > { %7715 = vmatprep.subr.mxu0 %v4996_v15  ;;  %12747 = vst [vmem:[#allocation64_spill] sm:$0xff] %v11598_v41 }
 0x8f1   : > { %7716 = vmatpush3.msra.mxu0 %v4996_v15 }
 0x8f2   : > { %7717 = vmatprep.subr.mxu0 %v4994_v8 }
 0x8f3   : > { %7718 = vmatpush3.msra.mxu0 %v4994_v8 }
 0x8f4   : > { %7719 = vmatprep.subr.mxu0 %v4992_v26 }
 0x8f5   : > { %7720 = vmatpush3.msra.mxu0 %v4992_v26 }
 0x8f6   : > { %7721 = vmatprep.subr.mxu0 %v4990_v31 }
 0x8f7   : > { %7722 = vmatpush3.msra.mxu0 %v4990_v31  ;;  %v11607_v31 = vpop.permute.xlu1 %4792 }
 0x8f8   : > { %7723 = vmatprep.subr.mxu0 %v4988_v7  ;;  %12748 = vst [vmem:[#allocation65_spill] sm:$0xff] %v11607_v31 }
 0x8f9   : > { %7724 = vmatpush3.msra.mxu0 %v4988_v7 }
 0x8fa   : > { %7725 = vmatprep.subr.mxu0 %v4986_v18 }
 0x8fb   : > { %7726 = vmatpush3.msra.mxu0 %v4986_v18  ;;  %v11621_v56 = vpop.permute.xlu1 %4820 }
 0x8fc   : > { %7781 = vmatprep.subr.mxu0 %v12740_v17 }
 0x942   : > { %v11561_v51 = vpop.f32.mrf.mxu1 }
 0x943   : > { %4201 = vmax.xlane.f32.xlu1 %v11561_v51 }
 0x944   : > { %v11566_v39 = vpop.f32.mrf.mxu1 }
 0x945   : > { %4199 = vmax.xlane.f32.xlu0 %v11566_v39 }
 0x946   : > { %v11571_v48 = vpop.f32.mrf.mxu1 }
 0x947   : > { %v11569_v35 = vpop.f32.mrf.mxu0 }
 0x948   : > { %4233 = vmax.xlane.f32.xlu1 %v11569_v35  ;;  %v11579_v52 = vpop.f32.mrf.mxu1 }
 0x949   : > { %v11574_v20 = vpop.f32.mrf.mxu0 }
 0x94a   : > { %4231 = vmax.xlane.f32.xlu0 %v11574_v20  ;;  %v11587_v57 = vpop.f32.mrf.mxu1 }
 0x94b   : > { %v11582_v62 = vpop.f32.mrf.mxu0 }
 0x94c   : > { %4205 = vmax.xlane.f32.xlu1 %v11571_v48  ;;  %v11593_v30 = vpop.f32.mrf.mxu1 }
 0x94d   : > { %v11590_v21 = vpop.f32.mrf.mxu0 }
 0x94e   : > { %4203 = vmax.xlane.f32.xlu0 %v11579_v52  ;;  %v11601_v15 = vpop.f32.mrf.mxu1 }
 0x94f   : > { %v11596_v50 = vpop.f32.mrf.mxu0 }
 0x950   : > { %4237 = vmax.xlane.f32.xlu1 %v11582_v62  ;;  %v11609_v7 = vpop.f32.mrf.mxu1 }
 0x951   : > { %v11604_v26 = vpop.f32.mrf.mxu0 }
 0x952   : > { %4235 = vmax.xlane.f32.xlu0 %v11590_v21  ;;  %v11615_v10 = vpop.f32.mrf.mxu1 }
 0x953   : > { %v11612_v18 = vpop.f32.mrf.mxu0 }
 0x954   : > { %4209 = vmax.xlane.f32.xlu1 %v11587_v57  ;;  %v11623_v58 = vpop.f32.mrf.mxu1 }
 0x955   : > { %v11618_v28 = vpop.f32.mrf.mxu0 }
 0x956   : > { %4207 = vmax.xlane.f32.xlu0 %v11593_v30  ;;  %v4170_v6 = vpop.xlane.xlu1 %4169  ;;  %v11629_v2 = vpop.f32.mrf.mxu1 }
 0x957   : > { %v11626_v43 = vpop.f32.mrf.mxu0  ;;  %v4264_v17 = vsub.f32 %v11494_v19, %v4170_v6 }
 0x958   : > { %v4168_v8 = vpop.xlane.xlu0 %4167  ;;  %4241 = vmax.xlane.f32.xlu1 %v11596_v50  ;;  %v11635_v27 = vpop.f32.mrf.mxu1 }
 0x959   : > { %v11632_v38 = vpop.f32.mrf.mxu0  ;;  %v4263_v29 = vsub.f32 %v11497_v37, %v4168_v8  ;;  %v4313_v3 = vmul.f32 1.442695, %v4264_v17 }
 0x95a   : > { %4239 = vmax.xlane.f32.xlu0 %v11604_v26  ;;  %v11643_v31 = vpop.f32.mrf.mxu1 }
 0x95b   : > { %v11638_v55 = vpop.f32.mrf.mxu0  ;;  %v4311_v63 = vmul.f32 1.442695, %v4263_v29 }
 0x95c   : > { %4213 = vmax.xlane.f32.xlu1 %v11601_v15  ;;  %v4174_v47 = vpop.xlane.xlu0 %4173  ;;  %v11651_v8 = vpop.f32.mrf.mxu1 }
 0x95d   : > { %v11646_v41 = vpop.f32.mrf.mxu0  ;;  %v4266_v37 = vsub.f32 %v11500_v33, %v4174_v47  ;;  %8176 = vpow2.f32 %v4311_v63 }
 0x95e   : > { %4211 = vmax.xlane.f32.xlu0 %v11609_v7  ;;  %v4178_v32 = vpop.xlane.xlu1 %4177  ;;  %8178 = vpow2.f32 %v4313_v3  ;;  %v11659_v17 = vpop.f32.mrf.mxu1 }
 0x95f   : > { %v11654_v6 = vpop.f32.mrf.mxu0 }
 0x960   : > { %4245 = vmax.xlane.f32.xlu1 %v11612_v18  ;;  %v4172_v40 = vpop.xlane.xlu0 %4171 }
 0x961   : > { %v4265_v24 = vsub.f32 %v11502_v1, %v4172_v40  ;;  %v4317_v40 = vmul.f32 1.442695, %v4266_v37  ;;  %v4268_v1 = vsub.f32 %v11505_v34, %v4178_v32  ;;  %v11662_v33 = vpop.f32.mrf.mxu0 }
 0x962   : > { %4243 = vmax.xlane.f32.xlu0 %v11618_v28  ;;  %v4182_v60 = vpop.xlane.xlu1 %4181 }
 0x963   : > { %v4315_v61 = vmul.f32 1.442695, %v4265_v24  ;;  %v11666_v24 = vpop.f32.mrf.mxu1  ;;  %v4270_v3 = vsub.f32 %v11511_v5, %v4182_v60  ;;  %v11670_v32 = vpop.f32.mrf.mxu0 }
 0x964   : > { %4217 = vmax.xlane.f32.xlu1 %v11615_v10  ;;  %v4176_v4 = vpop.xlane.xlu0 %4175 }
 0x965   : > { %v4267_v54 = vsub.f32 %v11508_v14, %v4176_v4  ;;  %8180 = vpow2.f32 %v4315_v61  ;;  %v4321_v14 = vmul.f32 1.442695, %v4268_v1  ;;  %v11676_v61 = vpop.f32.mrf.mxu0 }
 0x966   : > { %4215 = vmax.xlane.f32.xlu0 %v11623_v58  ;;  %v4186_v29 = vpop.xlane.xlu1 %4185  ;;  %8182 = vpow2.f32 %v4317_v40 }
 0x967   : > { %v4319_v47 = vmul.f32 1.442695, %v4267_v54 }
 0x968   : > { %4249 = vmax.xlane.f32.xlu1 %v11626_v43  ;;  %v4180_v44 = vpop.xlane.xlu0 %4179 }
 0x969   : > { %v4269_v63 = vsub.f32 %v11514_v13, %v4180_v44  ;;  %8184 = vpow2.f32 %v4319_v47  ;;  %v4325_v44 = vmul.f32 1.442695, %v4270_v3  ;;  %v4272_v13 = vsub.f32 %v11517_v9, %v4186_v29 }
 0x96a   : > { %4247 = vmax.xlane.f32.xlu0 %v11632_v38  ;;  %v4190_v34 = vpop.xlane.xlu1 %4189  ;;  %8186 = vpow2.f32 %v4321_v14  ;;  %v11680_v1 = vpop.eup %8176 }
 0x96b   : > { %v4323_v37 = vmul.f32 1.442695, %v4269_v63  ;;  %v4274_v47 = vsub.f32 %v11523_v53, %v4190_v34  ;;  %v11684_v9 = vpop.eup %8178 }
 0x96c   : > { %4221 = vmax.xlane.f32.xlu1 %v11629_v2  ;;  %v4184_v19 = vpop.xlane.xlu0 %4183 }
 0x96d   : > { %v4271_v54 = vsub.f32 %v11520_v49, %v4184_v19  ;;  %8188 = vpow2.f32 %v4323_v37  ;;  %v4329_v19 = vmul.f32 1.442695, %v4272_v13  ;;  %v4333_v14 = vmul.f32 1.442695, %v4274_v47 }
 0x96e   : > { %4219 = vmax.xlane.f32.xlu0 %v11635_v27  ;;  %v4194_v49 = vpop.xlane.xlu1 %4193  ;;  %8190 = vpow2.f32 %v4325_v44 }
 0x96f   : > { %v4327_v60 = vmul.f32 1.442695, %v4271_v54  ;;  %v4276_v3 = vsub.f32 %v11529_v25, %v4194_v49 }
 0x970   : > { %4253 = vmax.xlane.f32.xlu1 %v11638_v55  ;;  %v4188_v4 = vpop.xlane.xlu0 %4187 }
 0x971   : > { %v4273_v40 = vsub.f32 %v11526_v23, %v4188_v4  ;;  %8192 = vpow2.f32 %v4327_v60  ;;  %v4337_v44 = vmul.f32 1.442695, %v4276_v3 }
 0x972   : > { %4251 = vmax.xlane.f32.xlu0 %v11646_v41  ;;  %v11688_v23 = vpop.eup %8180  ;;  %8194 = vpow2.f32 %v4329_v19  ;;  %v4198_v34 = vpop.xlane.xlu1 %4197 }
 0x973   : > { %v4331_v29 = vmul.f32 1.442695, %v4273_v40  ;;  %v11692_v53 = vpop.eup %8182  ;;  %v4278_v13 = vsub.f32 %v11535_v46, %v4198_v34 }
 0x974   : > { %4225 = vmax.xlane.f32.xlu1 %v11643_v31  ;;  %v4192_v5 = vpop.xlane.xlu0 %4191 }
 0x975   : > { %v4275_v63 = vsub.f32 %v11532_v0, %v4192_v5  ;;  %8196 = vpow2.f32 %v4331_v29 }
 0x976   : > { %4223 = vmax.xlane.f32.xlu0 %v11651_v8  ;;  %v11696_v0 = vpop.eup %8184  ;;  %8198 = vpow2.f32 %v4333_v14 }
 0x977   : > { %v4335_v37 = vmul.f32 1.442695, %v4275_v63  ;;  %v11700_v25 = vpop.eup %8186 }
 0x978   : > { %4257 = vmax.xlane.f32.xlu1 %v11654_v6  ;;  %v4196_v4 = vpop.xlane.xlu0 %4195 }
 0x979   : > { %v4277_v54 = vsub.f32 %v11539_v45, %v4196_v4  ;;  %8200 = vpow2.f32 %v4335_v37  ;;  %v4341_v45 = vmul.f32 1.442695, %v4278_v13 }
 0x97a   : > { %4255 = vmax.xlane.f32.xlu0 %v11662_v33  ;;  %v11703_v60 = vpop.eup %8188  ;;  %8202 = vpow2.f32 %v4337_v44 }
 0x97b   : > { %v4339_v5 = vmul.f32 1.442695, %v4277_v54  ;;  %v11706_v40 = vpop.eup %8190 }
 0x97c   : > { %4229 = vmax.xlane.f32.xlu1 %v11659_v17 }
 0x97d   : > { %8204 = vpow2.f32 %v4339_v5 }
 0x97e   : > { %4227 = vmax.xlane.f32.xlu0 %v11666_v24  ;;  %v11709_v46 = vpop.eup %8192  ;;  %8206 = vpow2.f32 %v4341_v45 }
 0x97f   : > { %v11712_v49 = vpop.eup %8194 }
 0x980   : > { %4261 = vmax.xlane.f32.xlu1 %v11670_v32 }
 0x982   : > { %4259 = vmax.xlane.f32.xlu0 %v11676_v61  ;;  %v11715_v19 = vpop.eup %8196 }
 0x983   : > { %12749 = vst [vmem:[#allocation66_spill] sm:$0xff] %v11715_v19  ;;  %v11718_v47 = vpop.eup %8198 }
 0x984   : > { %4407 = vadd.xlane.f32.xlu1 %v11680_v1  ;;  %12750 = vst [vmem:[#allocation67_spill] sm:$0xff] %v11718_v47 }
 0x986   : > { %4409 = vadd.xlane.f32.xlu0 %v11684_v9  ;;  %v11721_v29 = vpop.eup %8200 }
 0x987   : > { %12751 = vst [vmem:[#allocation68_spill] sm:$0xff] %v11721_v29  ;;  %v11724_v63 = vpop.eup %8202 }
 0x988   : > { %4411 = vadd.xlane.f32.xlu1 %v11688_v23  ;;  %12752 = vst [vmem:[#allocation69_spill] sm:$0xff] %v11724_v63 }
 0x98a   : > { %4413 = vadd.xlane.f32.xlu0 %v11692_v53  ;;  %v11727_v4 = vpop.eup %8204 }
 0x98b   : > { %12753 = vst [vmem:[#allocation70_spill] sm:$0xff] %v11727_v4  ;;  %v11730_v14 = vpop.eup %8206 }
 0x98c   : > { %4415 = vadd.xlane.f32.xlu1 %v11696_v0  ;;  %12754 = vst [vmem:[#allocation71_spill] sm:$0xff] %v11730_v14 }
 0x98e   : > { %4417 = vadd.xlane.f32.xlu0 %v11700_v25 }
 0x990   : > { %4419 = vadd.xlane.f32.xlu1 %v11703_v60 }
 0x992   : > { %4421 = vadd.xlane.f32.xlu0 %v11706_v40 }
 0x994   : > { %4423 = vadd.xlane.f32.xlu1 %v11709_v46 }
 0x996   : > { %4425 = vadd.xlane.f32.xlu0 %v11712_v49 }
 0x998   : > { %4427 = vadd.xlane.f32.xlu1 %v11715_v19 }
 0x99a   : > { %4429 = vadd.xlane.f32.xlu0 %v11718_v47 }
 0x99c   : > { %4431 = vadd.xlane.f32.xlu1 %v11721_v29 }
 0x99e   : > { %4433 = vadd.xlane.f32.xlu0 %v11724_v63 }
 0x9a0   : > { %4435 = vadd.xlane.f32.xlu1 %v11727_v4 }
 0x9a2   : > { %4437 = vadd.xlane.f32.xlu0 %v11730_v14 }
 0x9cc   : > { %v4202_v3 = vpop.xlane.xlu1 %4201 }
 0x9cd   : > { %v4280_v34 = vsub.f32 %v11561_v51, %v4202_v3 }
 0x9ce   : > { %v4200_v37 = vpop.xlane.xlu0 %4199 }
 0x9cf   : > { %v4345_v54 = vmul.f32 1.442695, %v4280_v34  ;;  %v4279_v44 = vsub.f32 %v11566_v39, %v4200_v37 }
 0x9d1   : > { %8208 = vpow2.f32 %v4345_v54  ;;  %v4343_v13 = vmul.f32 1.442695, %v4279_v44  ;;  %v4234_v5 = vpop.xlane.xlu1 %4233 }
 0x9d2   : > { %v4296_v45 = vsub.f32 %v11569_v35, %v4234_v5 }
 0x9d3   : > { %8210 = vpow2.f32 %v4343_v13  ;;  %v4232_v63 = vpop.xlane.xlu0 %4231 }
 0x9d4   : > { %v4377_v29 = vmul.f32 1.442695, %v4296_v45  ;;  %v4295_v4 = vsub.f32 %v11574_v20, %v4232_v63 }
 0x9d5   : > { %v4206_v47 = vpop.xlane.xlu1 %4205 }
 0x9d6   : > { %8212 = vpow2.f32 %v4377_v29  ;;  %v4375_v14 = vmul.f32 1.442695, %v4295_v4  ;;  %v4282_v19 = vsub.f32 %v11571_v48, %v4206_v47 }
 0x9d7   : > { %v4204_v51 = vpop.xlane.xlu0 %4203 }
 0x9d8   : > { %v4281_v3 = vsub.f32 %v11579_v52, %v4204_v51  ;;  %8214 = vpow2.f32 %v4375_v14  ;;  %v4349_v39 = vmul.f32 1.442695, %v4282_v19 }
 0x9d9   : > { %v4238_v34 = vpop.xlane.xlu1 %4237 }
 0x9da   : > { %v4347_v37 = vmul.f32 1.442695, %v4281_v3  ;;  %v4298_v54 = vsub.f32 %v11582_v62, %v4238_v34 }
 0x9db   : > { %v4236_v35 = vpop.xlane.xlu0 %4235 }
 0x9dc   : > { %8216 = vpow2.f32 %v4347_v37  ;;  %v4297_v44 = vsub.f32 %v11590_v21, %v4236_v35  ;;  %v4381_v29 = vmul.f32 1.442695, %v4298_v54 }
 0x9dd   : > { %v4210_v13 = vpop.xlane.xlu1 %4209  ;;  %8218 = vpow2.f32 %v4349_v39 }
 0x9de   : > { %v11741_v20 = vpop.eup %8208  ;;  %v4379_v63 = vmul.f32 1.442695, %v4297_v44  ;;  %v4284_v48 = vsub.f32 %v11587_v57, %v4210_v13 }
 0x9df   : > { %v4208_v47 = vpop.xlane.xlu0 %4207  ;;  %4441 = vadd.xlane.f32.xlu0 %v11741_v20 }
 0x9e0   : > { %v11745_v52 = vpop.eup %8210  ;;  %8220 = vpow2.f32 %v4379_v63  ;;  %v4283_v62 = vsub.f32 %v11593_v30, %v4208_v47  ;;  %v4353_v21 = vmul.f32 1.442695, %v4284_v48 }
 0x9e1   : > { %v4242_v19 = vpop.xlane.xlu1 %4241  ;;  %4439 = vadd.xlane.f32.xlu1 %v11745_v52  ;;  %8222 = vpow2.f32 %v4381_v29 }
 0x9e2   : > { %v4351_v4 = vmul.f32 1.442695, %v4283_v62  ;;  %v4300_v14 = vsub.f32 %v11596_v50, %v4242_v19 }
 0x9e3   : > { %v11750_v5 = vpop.eup %8212  ;;  %v4240_v45 = vpop.xlane.xlu0 %4239 }
 0x9e4   : > { %8224 = vpow2.f32 %v4351_v4  ;;  %v4299_v57 = vsub.f32 %v11604_v26, %v4240_v45  ;;  %4473 = vadd.xlane.f32.xlu0 %v11750_v5  ;;  %v4385_v3 = vmul.f32 1.442695, %v4300_v14 }
 0x9e5   : > { %v4214_v51 = vpop.xlane.xlu1 %4213  ;;  %8226 = vpow2.f32 %v4353_v21  ;;  %v11755_v39 = vpop.eup %8214 }
 0x9e6   : > { %v4383_v30 = vmul.f32 1.442695, %v4299_v57  ;;  %v4286_v34 = vsub.f32 %v11601_v15, %v4214_v51 }
 0x9e7   : > { %v4212_v37 = vpop.xlane.xlu0 %4211 }
 0x9e8   : > { %8228 = vpow2.f32 %v4383_v30  ;;  %v4285_v50 = vsub.f32 %v11609_v7, %v4212_v37  ;;  %4471 = vadd.xlane.f32.xlu0 %v11755_v39  ;;  %v4357_v26 = vmul.f32 1.442695, %v4286_v34 }
 0x9e9   : > { %v11759_v54 = vpop.eup %8216  ;;  %v4246_v35 = vpop.xlane.xlu1 %4245  ;;  %8230 = vpow2.f32 %v4385_v3 }
 0x9ea   : > { %v4355_v44 = vmul.f32 1.442695, %v4285_v50  ;;  %v4302_v13 = vsub.f32 %v11612_v18, %v4246_v35  ;;  %4443 = vadd.xlane.f32.xlu1 %v11759_v54  ;;  %v11763_v29 = vpop.eup %8218 }
 0x9eb   : > { %v4244_v15 = vpop.xlane.xlu0 %4243 }
 0x9ec   : > { %8232 = vpow2.f32 %v4355_v44  ;;  %v4301_v63 = vsub.f32 %v11618_v28, %v4244_v15  ;;  %4445 = vadd.xlane.f32.xlu0 %v11763_v29  ;;  %v4389_v47 = vmul.f32 1.442695, %v4302_v13 }
 0x9ed   : > { %v11767_v7 = vpop.eup %8220  ;;  %v4218_v48 = vpop.xlane.xlu1 %4217  ;;  %8234 = vpow2.f32 %v4357_v26 }
 0x9ee   : > { %v4387_v62 = vmul.f32 1.442695, %v4301_v63  ;;  %v4288_v19 = vsub.f32 %v11615_v10, %v4218_v48  ;;  %4475 = vadd.xlane.f32.xlu1 %v11767_v7  ;;  %v11771_v18 = vpop.eup %8222 }
 0x9ef   : > { %v4216_v21 = vpop.xlane.xlu0 %4215 }
 0x9f0   : > { %8236 = vpow2.f32 %v4387_v62  ;;  %v4287_v4 = vsub.f32 %v11623_v58, %v4216_v21  ;;  %4477 = vadd.xlane.f32.xlu0 %v11771_v18  ;;  %v4361_v45 = vmul.f32 1.442695, %v4288_v19 }
 0x9f1   : > { %v11775_v28 = vpop.eup %8224  ;;  %v4250_v14 = vpop.xlane.xlu1 %4249  ;;  %8238 = vpow2.f32 %v4389_v47 }
 0x9f2   : > { %v4359_v57 = vmul.f32 1.442695, %v4287_v4  ;;  %v4304_v51 = vsub.f32 %v11626_v43, %v4250_v14  ;;  %4447 = vadd.xlane.f32.xlu1 %v11775_v28  ;;  %v11779_v10 = vpop.eup %8226 }
 0x9f3   : > { %v4248_v3 = vpop.xlane.xlu0 %4247 }
 0x9f4   : > { %8240 = vpow2.f32 %v4359_v57  ;;  %v4303_v30 = vsub.f32 %v11632_v38, %v4248_v3  ;;  %4449 = vadd.xlane.f32.xlu0 %v11779_v10  ;;  %v4393_v37 = vmul.f32 1.442695, %v4304_v51 }
 0x9f5   : > { %v11783_v58 = vpop.eup %8228  ;;  %v4222_v34 = vpop.xlane.xlu1 %4221  ;;  %8242 = vpow2.f32 %v4361_v45 }
 0x9f6   : > { %v4391_v50 = vmul.f32 1.442695, %v4303_v30  ;;  %v4290_v35 = vsub.f32 %v11629_v2, %v4222_v34  ;;  %4479 = vadd.xlane.f32.xlu1 %v11783_v58  ;;  %v11787_v43 = vpop.eup %8230 }
 0x9f7   : > { %v4220_v26 = vpop.xlane.xlu0 %4219 }
 0x9f8   : > { %8244 = vpow2.f32 %v4391_v50  ;;  %v4289_v44 = vsub.f32 %v11635_v27, %v4220_v26  ;;  %4481 = vadd.xlane.f32.xlu0 %v11787_v43  ;;  %v4365_v15 = vmul.f32 1.442695, %v4290_v35 }
 0x9f9   : > { %v11791_v38 = vpop.eup %8232  ;;  %v4254_v13 = vpop.xlane.xlu1 %4253  ;;  %8246 = vpow2.f32 %v4393_v37 }
 0x9fa   : > { %v4363_v63 = vmul.f32 1.442695, %v4289_v44  ;;  %v4306_v48 = vsub.f32 %v11638_v55, %v4254_v13  ;;  %4451 = vadd.xlane.f32.xlu1 %v11791_v38  ;;  %v11795_v2 = vpop.eup %8234 }
 0x9fb   : > { %v4252_v47 = vpop.xlane.xlu0 %4251 }
 0x9fc   : > { %8248 = vpow2.f32 %v4363_v63  ;;  %v4305_v62 = vsub.f32 %v11646_v41, %v4252_v47  ;;  %4453 = vadd.xlane.f32.xlu0 %v11795_v2  ;;  %v4397_v21 = vmul.f32 1.442695, %v4306_v48 }
 0x9fd   : > { %v11799_v27 = vpop.eup %8236  ;;  %v4226_v19 = vpop.xlane.xlu1 %4225  ;;  %8250 = vpow2.f32 %v4365_v15 }
 0x9fe   : > { %v4395_v4 = vmul.f32 1.442695, %v4305_v62  ;;  %v4292_v14 = vsub.f32 %v11643_v31, %v4226_v19  ;;  %4483 = vadd.xlane.f32.xlu1 %v11799_v27  ;;  %v11803_v55 = vpop.eup %8238 }
 0x9ff   : > { %v4224_v45 = vpop.xlane.xlu0 %4223 }
 0xa00   : > { %8252 = vpow2.f32 %v4395_v4  ;;  %v4291_v57 = vsub.f32 %v11651_v8, %v4224_v45  ;;  %4485 = vadd.xlane.f32.xlu0 %v11803_v55  ;;  %v4369_v3 = vmul.f32 1.442695, %v4292_v14 }
 0xa01   : > { %v11807_v41 = vpop.eup %8240  ;;  %v4258_v51 = vpop.xlane.xlu1 %4257  ;;  %8254 = vpow2.f32 %v4397_v21 }
 0xa02   : > { %v4367_v30 = vmul.f32 1.442695, %v4291_v57  ;;  %v4308_v34 = vsub.f32 %v11654_v6, %v4258_v51  ;;  %4455 = vadd.xlane.f32.xlu1 %v11807_v41  ;;  %v11811_v31 = vpop.eup %8242 }
 0xa03   : > { %v4256_v37 = vpop.xlane.xlu0 %4255 }
 0xa04   : > { %8256 = vpow2.f32 %v4367_v30  ;;  %v4307_v50 = vsub.f32 %v11662_v33, %v4256_v37  ;;  %4457 = vadd.xlane.f32.xlu0 %v11811_v31  ;;  %v4401_v26 = vmul.f32 1.442695, %v4308_v34 }
 0xa05   : > { %v11815_v8 = vpop.eup %8244  ;;  %v4230_v35 = vpop.xlane.xlu1 %4229  ;;  %8258 = vpow2.f32 %v4369_v3 }
 0xa06   : > { %v4399_v44 = vmul.f32 1.442695, %v4307_v50  ;;  %v4294_v13 = vsub.f32 %v11659_v17, %v4230_v35  ;;  %4487 = vadd.xlane.f32.xlu1 %v11815_v8  ;;  %v11819_v6 = vpop.eup %8246 }
 0xa07   : > { %v4228_v15 = vpop.xlane.xlu0 %4227 }
 0xa08   : > { %8260 = vpow2.f32 %v4399_v44  ;;  %v4293_v63 = vsub.f32 %v11666_v24, %v4228_v15  ;;  %4489 = vadd.xlane.f32.xlu0 %v11819_v6  ;;  %v4373_v47 = vmul.f32 1.442695, %v4294_v13 }
 0xa09   : > { %v11823_v33 = vpop.eup %8248  ;;  %v4262_v48 = vpop.xlane.xlu1 %4261  ;;  %8262 = vpow2.f32 %v4401_v26 }
 0xa0a   : > { %v4371_v62 = vmul.f32 1.442695, %v4293_v63  ;;  %4459 = vadd.xlane.f32.xlu1 %v11823_v33  ;;  %v11826_v19 = vpop.eup %8250  ;;  %v4310_v17 = vsub.f32 %v11670_v32, %v4262_v48 }
 0xa0b   : > { %v4260_v21 = vpop.xlane.xlu0 %4259 }
 0xa0c   : > { %8264 = vpow2.f32 %v4371_v62  ;;  %v4309_v4 = vsub.f32 %v11676_v61, %v4260_v21  ;;  %4461 = vadd.xlane.f32.xlu0 %v11826_v19  ;;  %v4405_v51 = vmul.f32 1.442695, %v4310_v17 }
 0xa0d   : > { %v11831_v24 = vpop.eup %8252  ;;  %v4408_v14 = vpop.xlane.xlu1 %4407  ;;  %8266 = vpow2.f32 %v4373_v47 }
 0xa0e   : > { %v4403_v45 = vmul.f32 1.442695, %v4309_v4  ;;  %4491 = vadd.xlane.f32.xlu1 %v11831_v24  ;;  %v11834_v57 = vpop.eup %8254  ;;  %8268 = vrcp.f32 %v4408_v14 }
 0xa0f   : > { %v4410_v3 = vpop.xlane.xlu0 %4409 }
 0xa10   : > { %8270 = vpow2.f32 %v4403_v45  ;;  %4493 = vadd.xlane.f32.xlu0 %v11834_v57 }
 0xa11   : > { %v11837_v32 = vpop.eup %8256  ;;  %8272 = vrcp.f32 %v4410_v3  ;;  %v4412_v61 = vpop.xlane.xlu1 %4411 }
 0xa12   : > { %8274 = vrcp.f32 %v4412_v61  ;;  %4463 = vadd.xlane.f32.xlu1 %v11837_v32  ;;  %v11840_v30 = vpop.eup %8258 }
 0xa13   : > { %8276 = vpow2.f32 %v4405_v51  ;;  %v4414_v34 = vpop.xlane.xlu0 %4413 }
 0xa14   : > { %8278 = vrcp.f32 %v4414_v34  ;;  %4465 = vadd.xlane.f32.xlu0 %v11840_v30 }
 0xa15   : > { %v11843_v37 = vpop.eup %8260  ;;  %v4416_v50 = vpop.xlane.xlu1 %4415 }
 0xa16   : > { %8280 = vrcp.f32 %v4416_v50  ;;  %4495 = vadd.xlane.f32.xlu1 %v11843_v37  ;;  %v11846_v35 = vpop.eup %8262 }
 0xa17   : > { %v4418_v26 = vpop.xlane.xlu0 %4417 }
 0xa18   : > { %8282 = vrcp.f32 %v4418_v26  ;;  %4497 = vadd.xlane.f32.xlu0 %v11846_v35 }
 0xa19   : > { %v11849_v44 = vpop.eup %8264  ;;  %v4420_v13 = vpop.xlane.xlu1 %4419 }
 0xa1a   : > { %8284 = vrcp.f32 %v4420_v13  ;;  %4467 = vadd.xlane.f32.xlu1 %v11849_v44  ;;  %v11852_v15 = vpop.eup %8266 }
 0xa1b   : > { %v4422_v63 = vpop.xlane.xlu0 %4421  ;;  %v8269_v48 = vpop.eup %8268 }
 0xa1c   : > { %8286 = vrcp.f32 %v4422_v63  ;;  %4469 = vadd.xlane.f32.xlu0 %v11852_v15  ;;  %v4504_v17 = vmul.f32 %v8269_v48, %v11680_v1 }
 0xa1d   : > { %v11855_v47 = vpop.eup %8270  ;;  %v4424_v62 = vpop.xlane.xlu1 %4423 }
 0xa1e   : > { %v8273_v21 = vpop.eup %8272  ;;  %8288 = vrcp.f32 %v4424_v62  ;;  %4499 = vadd.xlane.f32.xlu1 %v11855_v47  ;;  %7615 = vmatprep.mubr.f32.mxu1 %v4504_v17 }
 0xa1f   : > { %v8275_v4 = vpop.eup %8274  ;;  %v4426_v14 = vpop.xlane.xlu0 %4425  ;;  %v4506_v45 = vmul.f32 %v8273_v21, %v11684_v9 }
 0xa20   : > { %v11860_v51 = vpop.eup %8276  ;;  %8290 = vrcp.f32 %v4426_v14  ;;  %v4508_v3 = vmul.f32 %v8275_v4, %v11688_v23  ;;  %v12756_v4 = vld [vmem:[#allocation58_spill] sm:$0xff] }
 0xa21   : > { %v8279_v61 = vpop.eup %8278  ;;  %7616 = vmatmul.mubr.f32.vlgmr.msra.gmra.mxu1 %v4506_v45  ;;  %v4428_v34 = vpop.xlane.xlu1 %4427  ;;  %v12758_v45 = vld [vmem:[#allocation59_spill] sm:$0xff] }
 0xa22   : > { %7640 = vmatpush3.msra.mxu1 %v11489_v42  ;;  %8292 = vrcp.f32 %v4428_v34  ;;  %4501 = vadd.xlane.f32.xlu1 %v11860_v51  ;;  %v4510_v1 = vmul.f32 %v8279_v61, %v11692_v53  ;;  %v12761_v34 = vld [vmem:[#allocation69_spill] sm:$0xff] }
 0xa23   : > { %v8281_v50 = vpop.eup %8280  ;;  %7641 = vmatprep.subr.mxu1 %v11621_v56  ;;  %7618 = vmatprep.mubr.f32.mxu1 %v4508_v3  ;;  %v4430_v9 = vpop.xlane.xlu0 %4429 }
 0xa24   : > { %7642 = vmatpush3.msra.mxu1 %v11621_v56  ;;  %8294 = vrcp.f32 %v4430_v9  ;;  %v4512_v23 = vmul.f32 %v8281_v50, %v11696_v0  ;;  %v12762_v9 = vld [vmem:[#allocation61_spill] sm:$0xff] }
 0xa25   : > { %v8283_v26 = vpop.eup %8282  ;;  %7643 = vmatprep.subr.mxu1 %v11543_v16  ;;  %7619 = vmatmul.mubr.f32.gmra.mxu1 %v4510_v1  ;;  %v4432_v42 = vpop.xlane.xlu1 %4431 }
 0xa26   : > { %7644 = vmatpush3.msra.mxu1 %v11543_v16  ;;  %8296 = vrcp.f32 %v4432_v42  ;;  %7621 = vmatprep.mubr.f32.mxu1 %v4512_v23  ;;  %v4514_v53 = vmul.f32 %v8283_v26, %v11700_v25  ;;  %v12763_v23 = vld [vmem:[#allocation70_spill] sm:$0xff] }
 0xa27   : > { %v8285_v13 = vpop.eup %8284  ;;  %7645 = vmatprep.subr.mxu1 %v11545_v59  ;;  %v4434_v63 = vpop.xlane.xlu0 %4433 }
 0xa28   : > { %7646 = vmatpush3.msra.mxu1 %v11545_v59  ;;  %8298 = vrcp.f32 %v4434_v63  ;;  %v4516_v56 = vmul.f32 %v8285_v13, %v11703_v60  ;;  %v12765_v13 = vld [vmem:[#allocation71_spill] sm:$0xff] }
 0xa29   : > { %v8287_v0 = vpop.eup %8286  ;;  %7647 = vmatprep.subr.mxu1 %v11547_v36  ;;  %7622 = vmatmul.mubr.f32.gmra.mxu1 %v4514_v53  ;;  %v4436_v48 = vpop.xlane.xlu1 %4435  ;;  %v12764_v53 = vld [vmem:[#allocation62_spill] sm:$0xff] }
 0xa2a   : > { %7648 = vmatpush3.msra.mxu1 %v11547_v36  ;;  %8300 = vrcp.f32 %v4436_v48  ;;  %7624 = vmatprep.mubr.f32.mxu1 %v4516_v56  ;;  %v4518_v16 = vmul.f32 %v8287_v0, %v11706_v40  ;;  %v12755_v40 = vld [vmem:[#allocation66_spill] sm:$0xff]  ;;  %v12766_v56 = vld [vmem:[#allocation63_spill] sm:$0xff]  ;;  %v12767_v0 = vld [vmem:[#allocation64_spill] sm:$0xff] }
 0xa2b   : > { %v8289_v25 = vpop.eup %8288  ;;  %7649 = vmatprep.subr.mxu1 %v11549_v22  ;;  %v4438_v62 = vpop.xlane.xlu0 %4437  ;;  %v12768_v48 = vld [vmem:[#allocation65_spill] sm:$0xff] }
 0xa2c   : > { %7650 = vmatpush3.msra.mxu1 %v11549_v22  ;;  %8302 = vrcp.f32 %v4438_v62  ;;  %v4520_v59 = vmul.f32 %v8289_v25, %v11709_v46  ;;  %v12757_v46 = vld [vmem:[#allocation67_spill] sm:$0xff] }
 0xa2d   : > { %v8291_v60 = vpop.eup %8290  ;;  %7651 = vmatprep.subr.mxu1 %v11551_v11  ;;  %7625 = vmatmul.mubr.f32.gmra.mxu1 %v4518_v16 }
 0xa2e   : > { %7652 = vmatpush3.msra.mxu1 %v11551_v11  ;;  %7627 = vmatprep.mubr.f32.mxu1 %v4520_v59  ;;  %v4522_v36 = vmul.f32 %v8291_v60, %v11712_v49  ;;  %v12759_v49 = vld [vmem:[#allocation68_spill] sm:$0xff] }
 0xa2f   : > { %v8293_v17 = vpop.eup %8292  ;;  %7653 = vmatprep.subr.mxu1 %v11553_v12 }
 0xa30   : > { %7654 = vmatpush3.msra.mxu1 %v11553_v12  ;;  %v4524_v21 = vmul.f32 %v8293_v17, %v12755_v40  ;;  %v12760_v12 = vld [vmem:[#allocation60_spill] sm:$0xff] }
 0xa31   : > { %v8295_v22 = vpop.eup %8294  ;;  %7655 = vmatprep.subr.mxu1 %v12756_v4  ;;  %7628 = vmatmul.mubr.f32.gmra.mxu1 %v4522_v36 }
 0xa32   : > { %7656 = vmatpush3.msra.mxu1 %v12756_v4  ;;  %7630 = vmatprep.mubr.f32.mxu1 %v4524_v21  ;;  %v4526_v14 = vmul.f32 %v8295_v22, %v12757_v46 }
 0xa33   : > { %v8297_v11 = vpop.eup %8296  ;;  %7657 = vmatprep.subr.mxu1 %v12758_v45 }
 0xa34   : > { %7658 = vmatpush3.msra.mxu1 %v12758_v45  ;;  %v4528_v3 = vmul.f32 %v8297_v11, %v12759_v49 }
 0xa35   : > { %v8299_v61 = vpop.eup %8298  ;;  %7659 = vmatprep.subr.mxu1 %v12760_v12  ;;  %7631 = vmatmul.mubr.f32.gmra.mxu1 %v4526_v14 }
 0xa36   : > { %7660 = vmatpush3.msra.mxu1 %v12760_v12  ;;  %7633 = vmatprep.mubr.f32.mxu1 %v4528_v3  ;;  %v4530_v1 = vmul.f32 %v8299_v61, %v12761_v34 }
 0xa37   : > { %v8301_v50 = vpop.eup %8300  ;;  %7661 = vmatprep.subr.mxu1 %v12762_v9 }
 0xa38   : > { %7662 = vmatpush3.msra.mxu1 %v12762_v9  ;;  %v4532_v26 = vmul.f32 %v8301_v50, %v12763_v23 }
 0xa39   : > { %v8303_v42 = vpop.eup %8302  ;;  %7663 = vmatprep.subr.mxu1 %v12764_v53  ;;  %7634 = vmatmul.mubr.f32.gmra.mxu1 %v4530_v1 }
 0xa3a   : > { %7664 = vmatpush3.msra.mxu1 %v12764_v53  ;;  %7636 = vmatprep.mubr.f32.mxu1 %v4532_v26  ;;  %v4534_v63 = vmul.f32 %v8303_v42, %v12765_v13 }
 0xa3b   : > { %7665 = vmatprep.subr.mxu1 %v12766_v56 }
 0xa3c   : > { %7666 = vmatpush3.msra.mxu1 %v12766_v56 }
 0xa3d   : > { %7667 = vmatprep.subr.mxu1 %v12767_v0  ;;  %7637 = vmatmul.mubr.f32.gmra.mxu1 %v4534_v63 }
 0xa3e   : > { %7668 = vmatpush3.msra.mxu1 %v12767_v0 }
 0xa3f   : > { %7669 = vmatprep.subr.mxu1 %v12768_v48 }
 0xa40   : > { %7670 = vmatpush3.msra.mxu1 %v12768_v48 }
 0xa68   : > { %v4442_v16 = vpop.xlane.xlu0 %4441 }
 0xa69   : > { %8304 = vrcp.f32 %v4442_v16 }
 0xa6a   : > { %v4440_v25 = vpop.xlane.xlu1 %4439 }
 0xa6b   : > { %8306 = vrcp.f32 %v4440_v25 }
 0xa6d   : > { %v4474_v62 = vpop.xlane.xlu0 %4473 }
 0xa6e   : > { %8308 = vrcp.f32 %v4474_v62 }
 0xa71   : > { %v4472_v59 = vpop.xlane.xlu0 %4471 }
 0xa72   : > { %8310 = vrcp.f32 %v4472_v59 }
 0xa73   : > { %v4444_v60 = vpop.xlane.xlu1 %4443 }
 0xa74   : > { %8312 = vrcp.f32 %v4444_v60 }
 0xa75   : > { %v4446_v36 = vpop.xlane.xlu0 %4445 }
 0xa76   : > { %8314 = vrcp.f32 %v4446_v36  ;;  %v8305_v17 = vpop.eup %8304 }
 0xa77   : > { %v4476_v40 = vpop.xlane.xlu1 %4475  ;;  %v4538_v46 = vmul.f32 %v8305_v17, %v11741_v20 }
 0xa78   : > { %v8307_v21 = vpop.eup %8306  ;;  %8316 = vrcp.f32 %v4476_v40 }
 0xa79   : > { %v4478_v22 = vpop.xlane.xlu0 %4477  ;;  %v4536_v4 = vmul.f32 %v8307_v21, %v11745_v52 }
 0xa7a   : > { %8318 = vrcp.f32 %v4478_v22 }
 0xa7b   : > { %v4448_v14 = vpop.xlane.xlu1 %4447  ;;  %7671 = vmatprep.mubr.f32.mxu1 %v4536_v4  ;;  %v8309_v45 = vpop.eup %8308 }
 0xa7c   : > { %8320 = vrcp.f32 %v4448_v14  ;;  %7672 = vmatmul.mubr.f32.vlgmr.msra.gmra.mxu1 %v4538_v46  ;;  %v4570_v1 = vmul.f32 %v8309_v45, %v11750_v5 }
 0xa7d   : > { %v4450_v11 = vpop.xlane.xlu0 %4449 }
 0xa7e   : > { %8322 = vrcp.f32 %v4450_v11 }
 0xa7f   : > { %v8311_v49 = vpop.eup %8310  ;;  %v4480_v3 = vpop.xlane.xlu1 %4479 }
 0xa80   : > { %8324 = vrcp.f32 %v4480_v3  ;;  %v4568_v61 = vmul.f32 %v8311_v49, %v11755_v39 }
 0xa81   : > { %v8313_v12 = vpop.eup %8312  ;;  %v4482_v34 = vpop.xlane.xlu0 %4481 }
 0xa82   : > { %8326 = vrcp.f32 %v4482_v34  ;;  %7727 = vmatprep.mubr.f32.mxu0 %v4568_v61  ;;  %v4540_v20 = vmul.f32 %v8313_v12, %v11759_v54 }
 0xa83   : > { %v8315_v52 = vpop.eup %8314  ;;  %7728 = vmatmul.mubr.f32.vlgmr.msra.gmra.mxu0 %v4570_v1  ;;  %v4452_v50 = vpop.xlane.xlu1 %4451 }
 0xa84   : > { %8328 = vrcp.f32 %v4452_v50  ;;  %7674 = vmatprep.mubr.f32.mxu1 %v4540_v20  ;;  %v4542_v9 = vmul.f32 %v8315_v52, %v11763_v29 }
 0xa85   : > { %v8317_v23 = vpop.eup %8316  ;;  %v4454_v26 = vpop.xlane.xlu0 %4453 }
 0xa86   : > { %8330 = vrcp.f32 %v4454_v26  ;;  %7675 = vmatmul.mubr.f32.gmra.mxu1 %v4542_v9  ;;  %v4572_v39 = vmul.f32 %v8317_v23, %v11767_v7 }
 0xa87   : > { %v8319_v42 = vpop.eup %8318  ;;  %v4484_v53 = vpop.xlane.xlu1 %4483 }
 0xa88   : > { %8332 = vrcp.f32 %v4484_v53  ;;  %7730 = vmatprep.mubr.f32.mxu0 %v4572_v39  ;;  %v4574_v5 = vmul.f32 %v8319_v42, %v11771_v18 }
 0xa89   : > { %v8321_v54 = vpop.eup %8320  ;;  %v4486_v13 = vpop.xlane.xlu0 %4485 }
 0xa8a   : > { %8334 = vrcp.f32 %v4486_v13  ;;  %7731 = vmatmul.mubr.f32.gmra.mxu0 %v4574_v5  ;;  %v4544_v63 = vmul.f32 %v8321_v54, %v11775_v28 }
 0xa8b   : > { %v8323_v56 = vpop.eup %8322  ;;  %v4456_v29 = vpop.xlane.xlu1 %4455 }
 0xa8c   : > { %8336 = vrcp.f32 %v4456_v29  ;;  %7677 = vmatprep.mubr.f32.mxu1 %v4544_v63  ;;  %v4546_v0 = vmul.f32 %v8323_v56, %v11779_v10 }
 0xa8d   : > { %v8325_v48 = vpop.eup %8324  ;;  %v4458_v7 = vpop.xlane.xlu0 %4457 }
 0xa8e   : > { %8338 = vrcp.f32 %v4458_v7  ;;  %7678 = vmatmul.mubr.f32.gmra.mxu1 %v4546_v0  ;;  %v4576_v16 = vmul.f32 %v8325_v48, %v11783_v58  ;;  %v12769_v48 = vmov 0.0  }
 0xa8f   : > { %v8327_v25 = vpop.eup %8326  ;;  %v4488_v18 = vpop.xlane.xlu1 %4487 }
 0xa90   : > { %8340 = vrcp.f32 %v4488_v18  ;;  %7733 = vmatprep.mubr.f32.mxu0 %v4576_v16  ;;  %v4578_v62 = vmul.f32 %v8327_v25, %v11787_v43 }
 0xa91   : > { %v8329_v59 = vpop.eup %8328  ;;  %v4490_v28 = vpop.xlane.xlu0 %4489 }
 0xa92   : > { %8342 = vrcp.f32 %v4490_v28  ;;  %7734 = vmatmul.mubr.f32.gmra.mxu0 %v4578_v62  ;;  %v4548_v60 = vmul.f32 %v8329_v59, %v11791_v38 }
 0xa93   : > { %v8331_v36 = vpop.eup %8330  ;;  %v4460_v10 = vpop.xlane.xlu1 %4459 }
 0xa94   : > { %8344 = vrcp.f32 %v4460_v10  ;;  %7680 = vmatprep.mubr.f32.mxu1 %v4548_v60  ;;  %v4550_v17 = vmul.f32 %v8331_v36, %v11795_v2 }
 0xa95   : > { %v8333_v40 = vpop.eup %8332  ;;  %v4462_v58 = vpop.xlane.xlu0 %4461 }
 0xa96   : > { %8346 = vrcp.f32 %v4462_v58  ;;  %7681 = vmatmul.mubr.f32.gmra.mxu1 %v4550_v17  ;;  %v4580_v21 = vmul.f32 %v8333_v40, %v11799_v27  ;;  %v5341_v17 = vld [vmem:[#allocation11 + $0x10] sm:$0xff]  ;;  %v5340_v40 = vld [vmem:[#allocation11 + $0x8] sm:$0xff] }
 0xa97   : > { %v8335_v22 = vpop.eup %8334  ;;  %v4492_v43 = vpop.xlane.xlu1 %4491  ;;  %7751 = vmatprep.subr.mxu1 %v5341_v17 }
 0xa98   : > { %8348 = vrcp.f32 %v4492_v43  ;;  %7736 = vmatprep.mubr.f32.mxu0 %v4580_v21  ;;  %v4582_v4 = vmul.f32 %v8335_v22, %v11803_v55  ;;  %7752 = vmatpush3.msra.mxu1 %v5341_v17  ;;  %v5339_v21 = vld [vmem:[#allocation11] sm:$0xff] }
 0xa99   : > { %v8337_v46 = vpop.eup %8336  ;;  %v4494_v38 = vpop.xlane.xlu0 %4493  ;;  %7753 = vmatprep.subr.mxu1 %v5340_v40 }
 0xa9a   : > { %8350 = vrcp.f32 %v4494_v38  ;;  %7737 = vmatmul.mubr.f32.gmra.mxu0 %v4582_v4  ;;  %v4552_v14 = vmul.f32 %v8337_v46, %v11807_v41  ;;  %7754 = vmatpush3.msra.mxu1 %v5340_v40 }
 0xa9b   : > { %v8339_v11 = vpop.eup %8338  ;;  %v4464_v2 = vpop.xlane.xlu1 %4463  ;;  %7755 = vmatprep.subr.mxu1 %v5339_v21 }
 0xa9c   : > { %8352 = vrcp.f32 %v4464_v2  ;;  %7683 = vmatprep.mubr.f32.mxu1 %v4552_v14  ;;  %v4554_v45 = vmul.f32 %v8339_v11, %v11811_v31  ;;  %7756 = vmatpush3.msra.mxu1 %v5339_v21 }
 0xa9d   : > { %v8341_v49 = vpop.eup %8340  ;;  %v4466_v27 = vpop.xlane.xlu0 %4465  ;;  %7808 = vmatprep.subr.mxu1 %v12769_v48 }
 0xa9e   : > { %8354 = vrcp.f32 %v4466_v27  ;;  %7684 = vmatmul.mubr.f32.gmra.mxu1 %v4554_v45  ;;  %v4584_v3 = vmul.f32 %v8341_v49, %v11815_v8 }
 0xa9f   : > { %v8343_v61 = vpop.eup %8342  ;;  %v4496_v55 = vpop.xlane.xlu1 %4495 }
 0xaa0   : > { %8356 = vrcp.f32 %v4496_v55  ;;  %7739 = vmatprep.mubr.f32.mxu0 %v4584_v3  ;;  %v4586_v12 = vmul.f32 %v8343_v61, %v11819_v6 }
 0xaa1   : > { %v8345_v34 = vpop.eup %8344  ;;  %v4498_v41 = vpop.xlane.xlu0 %4497 }
 0xaa2   : > { %8358 = vrcp.f32 %v4498_v41  ;;  %7740 = vmatmul.mubr.f32.gmra.mxu0 %v4586_v12  ;;  %v4556_v1 = vmul.f32 %v8345_v34, %v11823_v33 }
 0xaa3   : > { %v8347_v20 = vpop.eup %8346  ;;  %v4468_v31 = vpop.xlane.xlu1 %4467 }
 0xaa4   : > { %8360 = vrcp.f32 %v4468_v31  ;;  %7686 = vmatprep.mubr.f32.mxu1 %v4556_v1  ;;  %v4558_v52 = vmul.f32 %v8347_v20, %v11826_v19 }
 0xaa5   : > { %v8349_v50 = vpop.eup %8348  ;;  %v4470_v8 = vpop.xlane.xlu0 %4469 }
 0xaa6   : > { %8362 = vrcp.f32 %v4470_v8  ;;  %7687 = vmatmul.mubr.f32.gmra.mxu1 %v4558_v52  ;;  %v4588_v9 = vmul.f32 %v8349_v50, %v11831_v24 }
 0xaa7   : > { %v8351_v23 = vpop.eup %8350  ;;  %v4500_v6 = vpop.xlane.xlu1 %4499 }
 0xaa8   : > { %8364 = vrcp.f32 %v4500_v6  ;;  %7742 = vmatprep.mubr.f32.mxu0 %v4588_v9  ;;  %v4590_v26 = vmul.f32 %v8351_v23, %v11834_v57 }
 0xaa9   : > { %v8353_v39 = vpop.eup %8352 }
 0xaaa   : > { %7743 = vmatmul.mubr.f32.gmra.mxu0 %v4590_v26  ;;  %v4560_v33 = vmul.f32 %v8353_v39, %v11837_v32 }
 0xaab   : > { %v8355_v42 = vpop.eup %8354  ;;  %v4502_v53 = vpop.xlane.xlu1 %4501 }
 0xaac   : > { %8366 = vrcp.f32 %v4502_v53  ;;  %7689 = vmatprep.mubr.f32.mxu1 %v4560_v33  ;;  %v4562_v19 = vmul.f32 %v8355_v42, %v11840_v30 }
 0xaad   : > { %v8357_v5 = vpop.eup %8356 }
 0xaae   : > { %7690 = vmatmul.mubr.f32.gmra.mxu1 %v4562_v19  ;;  %v4592_v24 = vmul.f32 %v8357_v5, %v11843_v37  ;;  %v12770_v5 = vld [vmem:[#allocation57_spill] sm:$0xff] }
 0xaaf   : > { %v8359_v54 = vpop.eup %8358 }
 0xab0   : > { %7745 = vmatprep.mubr.f32.mxu0 %v4592_v24  ;;  %v4594_v13 = vmul.f32 %v8359_v54, %v11846_v35 }
 0xab1   : > { %v8361_v63 = vpop.eup %8360 }
 0xab2   : > { %7746 = vmatmul.mubr.f32.gmra.mxu0 %v4594_v13  ;;  %v4564_v57 = vmul.f32 %v8361_v63, %v11849_v44 }
 0xab3   : > { %v8363_v56 = vpop.eup %8362 }
 0xab4   : > { %7692 = vmatprep.mubr.f32.mxu1 %v4564_v57  ;;  %v4566_v32 = vmul.f32 %v8363_v56, %v11852_v15 }
 0xab5   : > { %v8365_v29 = vpop.eup %8364 }
 0xab6   : > { %7693 = vmatmul.mubr.f32.gmra.mxu1 %v4566_v32  ;;  %v4596_v30 = vmul.f32 %v8365_v29, %v11855_v47 }
 0xab8   : > { %7748 = vmatprep.mubr.f32.mxu0 %v4596_v30 }
 0xab9   : > { %v8367_v0 = vpop.eup %8366 }
 0xaba   : > { %v4598_v37 = vmul.f32 %v8367_v0, %v11860_v51 }
 0xabc   : > { %7749 = vmatmul.mubr.f32.gmra.mxu0 %v4598_v37 }
 0xabd   : > { %7799 = vmatprep.mubr.msk.f32.mxu0 %vm8888_vm1, %v12769_v48 }
 0xae1   : > { %v11942_v35 = vpop.f32.mrf.mxu1 }
 0xae3   : > { %v11944_v7 = vpop.f32.mrf.mxu1 }
 0xae5   : > { %v11946_v44 = vpop.f32.mrf.mxu1 }
 0xae7   : > { %v11948_v16 = vpop.f32.mrf.mxu1 }
 0xae9   : > { %v11950_v15 = vpop.f32.mrf.mxu1 }
 0xaeb   : > { %v11952_v25 = vpop.f32.mrf.mxu1 }
 0xaed   : > { %v11954_v47 = vpop.f32.mrf.mxu1 }
 0xaef   : > { %v11956_v18 = vpop.f32.mrf.mxu1 }
 0xaf1   : > { %v11958_v51 = vpop.f32.mrf.mxu1 }
 0xaf3   : > { %v11960_v62 = vpop.f32.mrf.mxu1 }
 0xaf5   : > { %v11962_v59 = vpop.f32.mrf.mxu1 }
 0xaf7   : > { %v11964_v28 = vpop.f32.mrf.mxu1 }
 0xaf9   : > { %v11966_v60 = vpop.f32.mrf.mxu1 }
 0xafb   : > { %v11968_v36 = vpop.f32.mrf.mxu1 }
 0xafd   : > { %v11970_v10 = vpop.f32.mrf.mxu1 }
 0xaff   : > { %v11972_v58 = vpop.f32.mrf.mxu1 }
 0xb3c   : > { %v7673_v22 = vpop.f32.mrf.mxu1 }
 0xb3d   : > { %5196 = vrot.lane.b32.xlu1 %v7673_v22, %s8890_s28 }
 0xb3e   : > { %v4906_v43 = vpop.f32.mrf.mxu1 }
 0xb3f   : > { %5194 = vrot.lane.b32.xlu0 %v4906_v43, %s8890_s28 }
 0xb43   : > { %v7729_v4 = vpop.f32.mrf.mxu0 }
 0xb44   : > { %5260 = vrot.lane.b32.xlu1 %v7729_v4, %s8891_s18 }
 0xb45   : > { %v5099_v38 = vpop.f32.mrf.mxu0 }
 0xb46   : > { %v7676_v46 = vpop.f32.mrf.mxu1 }
 0xb48   : > { %5258 = vrot.lane.b32.xlu1 %v5099_v38, %s8891_s18  ;;  %v4916_v14 = vpop.f32.mrf.mxu1 }
 0xb49   : > { %5198 = vrot.lane.b32.xlu0 %v4916_v14, %s8890_s28 }
 0xb4a   : > { %v7732_v11 = vpop.f32.mrf.mxu0 }
 0xb4c   : > { %5200 = vrot.lane.b32.xlu1 %v7676_v46, %s8890_s28  ;;  %v5109_v2 = vpop.f32.mrf.mxu0 }
 0xb4d   : > { %5262 = vrot.lane.b32.xlu0 %v5109_v2, %s8891_s18 }
 0xb4e   : > { %v7679_v45 = vpop.f32.mrf.mxu1 }
 0xb50   : > { %5264 = vrot.lane.b32.xlu1 %v7732_v11, %s8891_s18  ;;  %v4926_v49 = vpop.f32.mrf.mxu1 }
 0xb51   : > { %5202 = vrot.lane.b32.xlu0 %v4926_v49, %s8890_s28 }
 0xb52   : > { %v7735_v27 = vpop.f32.mrf.mxu0 }
 0xb54   : > { %5204 = vrot.lane.b32.xlu1 %v7679_v45, %s8890_s28  ;;  %v5119_v3 = vpop.f32.mrf.mxu0 }
 0xb55   : > { %5266 = vrot.lane.b32.xlu0 %v5119_v3, %s8891_s18 }
 0xb56   : > { %v7682_v61 = vpop.f32.mrf.mxu1 }
 0xb58   : > { %5268 = vrot.lane.b32.xlu1 %v7735_v27, %s8891_s18  ;;  %v4936_v55 = vpop.f32.mrf.mxu1 }
 0xb59   : > { %5206 = vrot.lane.b32.xlu0 %v4936_v55, %s8890_s28 }
 0xb5a   : > { %v7738_v12 = vpop.f32.mrf.mxu0 }
 0xb5c   : > { %5208 = vrot.lane.b32.xlu1 %v7682_v61, %s8890_s28  ;;  %v5129_v34 = vpop.f32.mrf.mxu0 }
 0xb5d   : > { %5270 = vrot.lane.b32.xlu0 %v5129_v34, %s8891_s18 }
 0xb5e   : > { %v7685_v41 = vpop.f32.mrf.mxu1 }
 0xb60   : > { %5272 = vrot.lane.b32.xlu1 %v7738_v12, %s8891_s18  ;;  %v4946_v1 = vpop.f32.mrf.mxu1 }
 0xb61   : > { %5210 = vrot.lane.b32.xlu0 %v4946_v1, %s8890_s28 }
 0xb62   : > { %v7741_v20 = vpop.f32.mrf.mxu0 }
 0xb64   : > { %5212 = vrot.lane.b32.xlu1 %v7685_v41, %s8890_s28  ;;  %v5139_v31 = vpop.f32.mrf.mxu0 }
 0xb65   : > { %5274 = vrot.lane.b32.xlu0 %v5139_v31, %s8891_s18 }
 0xb66   : > { %v7688_v52 = vpop.f32.mrf.mxu1 }
 0xb68   : > { %5276 = vrot.lane.b32.xlu1 %v7741_v20, %s8891_s18  ;;  %v4956_v50 = vpop.f32.mrf.mxu1 }
 0xb69   : > { %5214 = vrot.lane.b32.xlu0 %v4956_v50, %s8890_s28 }
 0xb6a   : > { %v7744_v8 = vpop.f32.mrf.mxu0 }
 0xb6c   : > { %5216 = vrot.lane.b32.xlu1 %v7688_v52, %s8890_s28  ;;  %v5149_v9 = vpop.f32.mrf.mxu0 }
 0xb6d   : > { %5278 = vrot.lane.b32.xlu0 %v5149_v9, %s8891_s18 }
 0xb6e   : > { %v7691_v23 = vpop.f32.mrf.mxu1 }
 0xb70   : > { %5280 = vrot.lane.b32.xlu1 %v7744_v8, %s8891_s18  ;;  %v4966_v6 = vpop.f32.mrf.mxu1 }
 0xb71   : > { %5218 = vrot.lane.b32.xlu0 %v4966_v6, %s8890_s28 }
 0xb72   : > { %v7747_v26 = vpop.f32.mrf.mxu0 }
 0xb74   : > { %5220 = vrot.lane.b32.xlu1 %v7691_v23, %s8890_s28  ;;  %v5159_v39 = vpop.f32.mrf.mxu0 }
 0xb75   : > { %5282 = vrot.lane.b32.xlu0 %v5159_v39, %s8891_s18 }
 0xb76   : > { %v7694_v33 = vpop.f32.mrf.mxu1 }
 0xb78   : > { %5284 = vrot.lane.b32.xlu1 %v7747_v26, %s8891_s18  ;;  %v4976_v42 = vpop.f32.mrf.mxu1 }
 0xb79   : > { %5222 = vrot.lane.b32.xlu0 %v4976_v42, %s8890_s28 }
 0xb7c   : > { %5224 = vrot.lane.b32.xlu1 %v7694_v33, %s8890_s28  ;;  %v7750_v53 = vpop.f32.mrf.mxu0 }
 0xb7e   : > { %v5169_v19 = vpop.f32.mrf.mxu0 }
 0xb7f   : > { %5286 = vrot.lane.b32.xlu0 %v5169_v19, %s8891_s18 }
 0xb80   : > { %5288 = vrot.lane.b32.xlu1 %v7750_v53, %s8891_s18 }
 0xb83   : > { %5342 = vrot.lane.b32.xlu0 %v12770_v5, %s8892_s26  ;;  %s12609_s26 = sshll.u32 %s9004_s25, 4 }
 0xbaf   : > { %v5197_v24 = vpop.permute.xlu1 %5196 }
 0xbb0   : > { %v5307_v56 = vsel %vm3475_vm2, %v11942_v35, %v5197_v24 }
 0xbb1   : > { %v5195_v13 = vpop.permute.xlu0 %5194 }
 0xbb2   : > { %v5306_v63 = vsel %vm3475_vm2, %v11944_v7, %v5195_v13 }
 0xbb6   : > { %v5261_v54 = vpop.permute.xlu1 %5260 }
 0xbb7   : > { %v5324_v30 = vsel %vm5322_vm7, %v5307_v56, %v5261_v54 }
 0xbba   : > { %v5259_v57 = vpop.permute.xlu1 %5258 }
 0xbbb   : > { %v5323_v32 = vsel %vm5322_vm7, %v5306_v63, %v5259_v57  ;;  %v5199_v29 = vpop.permute.xlu0 %5198 }
 0xbbc   : > { %7757 = vmatprep.mubr.msk.f32.mxu1 %vm3169_vm3, %v5323_v32  ;;  %v5308_v37 = vsel %vm3475_vm2, %v11948_v16, %v5199_v29  ;;  %v12771_v29 = vld [vmem:[#allocation52_spill] sm:$0xff] }
 0xbbd   : > { %7758 = vmatmul.mubr.msk.f32.vlgmr.msra.gmra.mxu1 %vm3169_vm3, %v5324_v30 }
 0xbbe   : > { %v5201_v0 = vpop.permute.xlu1 %5200 }
 0xbbf   : > { %v5263_v17 = vpop.permute.xlu0 %5262  ;;  %v5309_v35 = vsel %vm3475_vm2, %v11946_v44, %v5201_v0  ;;  %v12772_v0 = vld [vmem:[#allocation50_spill] sm:$0xff] }
 0xbc0   : > { %v5325_v7 = vsel %vm5322_vm7, %v5308_v37, %v5263_v17 }
 0xbc1   : > { %7760 = vmatprep.mubr.msk.f32.mxu1 %vm3169_vm3, %v5325_v7 }
 0xbc2   : > { %v5265_v40 = vpop.permute.xlu1 %5264 }
 0xbc3   : > { %v5326_v21 = vsel %vm5322_vm7, %v5309_v35, %v5265_v40  ;;  %v5203_v22 = vpop.permute.xlu0 %5202 }
 0xbc4   : > { %7761 = vmatmul.mubr.msk.f32.gmra.mxu1 %vm3169_vm3, %v5326_v21  ;;  %v5310_v4 = vsel %vm3475_vm2, %v11952_v25, %v5203_v22 }
 0xbc6   : > { %v5205_v43 = vpop.permute.xlu1 %5204 }
 0xbc7   : > { %v5267_v46 = vpop.permute.xlu0 %5266  ;;  %v5311_v38 = vsel %vm3475_vm2, %v11950_v15, %v5205_v43  ;;  %v12773_v43 = vld [vmem:[#allocation53_spill] sm:$0xff] }
 0xbc8   : > { %v5327_v16 = vsel %vm5322_vm7, %v5310_v4, %v5267_v46  ;;  %v12774_v46 = vld [vmem:[#allocation48_spill] sm:$0xff] }
 0xbc9   : > { %7763 = vmatprep.mubr.msk.f32.mxu1 %vm3169_vm3, %v5327_v16 }
 0xbca   : > { %v5269_v14 = vpop.permute.xlu1 %5268 }
 0xbcb   : > { %v5328_v44 = vsel %vm5322_vm7, %v5311_v38, %v5269_v14  ;;  %v5207_v11 = vpop.permute.xlu0 %5206 }
 0xbcc   : > { %7764 = vmatmul.mubr.msk.f32.gmra.mxu1 %vm3169_vm3, %v5328_v44  ;;  %v5312_v45 = vsel %vm3475_vm2, %v11956_v18, %v5207_v11 }
 0xbce   : > { %v5209_v2 = vpop.permute.xlu1 %5208 }
 0xbcf   : > { %v5271_v49 = vpop.permute.xlu0 %5270  ;;  %v5313_v27 = vsel %vm3475_vm2, %v11954_v47, %v5209_v2  ;;  %v12775_v2 = vld [vmem:[#allocation51_spill] sm:$0xff] }
 0xbd0   : > { %v5329_v25 = vsel %vm5322_vm7, %v5312_v45, %v5271_v49 }
 0xbd1   : > { %7766 = vmatprep.mubr.msk.f32.mxu1 %vm3169_vm3, %v5329_v25 }
 0xbd2   : > { %v5273_v3 = vpop.permute.xlu1 %5272 }
 0xbd3   : > { %v5330_v15 = vsel %vm5322_vm7, %v5313_v27, %v5273_v3  ;;  %v5211_v61 = vpop.permute.xlu0 %5210  ;;  %v12776_v27 = vld [vmem:[#allocation49_spill] sm:$0xff] }
 0xbd4   : > { %7767 = vmatmul.mubr.msk.f32.gmra.mxu1 %vm3169_vm3, %v5330_v15  ;;  %v5314_v12 = vsel %vm3475_vm2, %v11960_v62, %v5211_v61 }
 0xbd6   : > { %v5213_v55 = vpop.permute.xlu1 %5212 }
 0xbd7   : > { %v5275_v34 = vpop.permute.xlu0 %5274  ;;  %v5315_v41 = vsel %vm3475_vm2, %v11958_v51, %v5213_v55 }
 0xbd8   : > { %v5331_v18 = vsel %vm5322_vm7, %v5314_v12, %v5275_v34 }
 0xbd9   : > { %7769 = vmatprep.mubr.msk.f32.mxu1 %vm3169_vm3, %v5331_v18  ;;  %v12777_v18 = vld [vmem:[#allocation46_spill] sm:$0xff] }
 0xbda   : > { %v5277_v1 = vpop.permute.xlu1 %5276 }
 0xbdb   : > { %v5332_v47 = vsel %vm5322_vm7, %v5315_v41, %v5277_v1  ;;  %v5215_v20 = vpop.permute.xlu0 %5214 }
 0xbdc   : > { %7770 = vmatmul.mubr.msk.f32.gmra.mxu1 %vm3169_vm3, %v5332_v47  ;;  %v5316_v52 = vsel %vm3475_vm2, %v11964_v28, %v5215_v20  ;;  %v12778_v47 = vld [vmem:[#allocation45_spill] sm:$0xff] }
 0xbde   : > { %v5217_v31 = vpop.permute.xlu1 %5216 }
 0xbdf   : > { %v5279_v50 = vpop.permute.xlu0 %5278  ;;  %v5317_v8 = vsel %vm3475_vm2, %v11962_v59, %v5217_v31 }
 0xbe0   : > { %v5333_v62 = vsel %vm5322_vm7, %v5316_v52, %v5279_v50 }
 0xbe1   : > { %7772 = vmatprep.mubr.msk.f32.mxu1 %vm3169_vm3, %v5333_v62 }
 0xbe2   : > { %v5281_v9 = vpop.permute.xlu1 %5280 }
 0xbe3   : > { %v5334_v51 = vsel %vm5322_vm7, %v5317_v8, %v5281_v9  ;;  %v5219_v23 = vpop.permute.xlu0 %5218  ;;  %v12779_v9 = vld [vmem:[#allocation47_spill] sm:$0xff] }
 0xbe4   : > { %7773 = vmatmul.mubr.msk.f32.gmra.mxu1 %vm3169_vm3, %v5334_v51  ;;  %v5318_v26 = vsel %vm3475_vm2, %v11968_v36, %v5219_v23 }
 0xbe6   : > { %v5221_v6 = vpop.permute.xlu1 %5220 }
 0xbe7   : > { %v5283_v39 = vpop.permute.xlu0 %5282  ;;  %v5319_v33 = vsel %vm3475_vm2, %v11966_v60, %v5221_v6  ;;  %v12780_v6 = vld [vmem:[#allocation44_spill] sm:$0xff] }
 0xbe8   : > { %v5335_v28 = vsel %vm5322_vm7, %v5318_v26, %v5283_v39 }
 0xbe9   : > { %7775 = vmatprep.mubr.msk.f32.mxu1 %vm3169_vm3, %v5335_v28 }
 0xbea   : > { %v5285_v42 = vpop.permute.xlu1 %5284 }
 0xbeb   : > { %v5336_v59 = vsel %vm5322_vm7, %v5319_v33, %v5285_v42  ;;  %v5223_v53 = vpop.permute.xlu0 %5222 }
 0xbec   : > { %7776 = vmatmul.mubr.msk.f32.gmra.mxu1 %vm3169_vm3, %v5336_v59  ;;  %v5320_v24 = vsel %vm3475_vm2, %v11972_v58, %v5223_v53  ;;  %v12781_v53 = vld [vmem:[#allocation43_spill] sm:$0xff] }
 0xbee   : > { %v5225_v19 = vpop.permute.xlu1 %5224 }
 0xbef   : > { %v5321_v36 = vsel %vm3475_vm2, %v11970_v10, %v5225_v19 }
 0xbf1   : > { %v5287_v54 = vpop.permute.xlu0 %5286 }
 0xbf2   : > { %v5337_v13 = vsel %vm5322_vm7, %v5320_v24, %v5287_v54  ;;  %v5289_v63 = vpop.permute.xlu1 %5288  ;;  %v12782_v54 = vld [vmem:[#allocation41_spill] sm:$0xff] }
 0xbf3   : > { %v5338_v57 = vsel %vm5322_vm7, %v5321_v36, %v5289_v63  ;;  %7778 = vmatprep.mubr.msk.f32.mxu1 %vm3169_vm3, %v5337_v13 }
 0xbf4   : > { %7779 = vmatmul.mubr.msk.f32.gmra.mxu1 %vm3169_vm3, %v5338_v57 }
 0xbf5   : > { %7826 = vmatprep.mubr.msk.f32.mxu1 %vm8888_vm1, %v12769_v48  ;;  %v12074_v60 = vpop.permute.xlu0 %5342 }
 0xc7d   : > { %v7759_v56 = vpop.f32.mrf.mxu1 }
 0xc7e   : > { %v5465_v58 = vadd.f32 %v7759_v56, %v12074_v60 }
 0xc7f   : > { %v5459_v32 = vpop.f32.mrf.mxu1 }
 0xc80   : > { %v12078_v10 = vadd.f32 %v5465_v58, %v12771_v29  ;;  %v5460_v30 = vadd.f32 %v5459_v32, %v12074_v60  ;;  %v12783_v32 = vld [vmem:[#allocation54_spill] sm:$0xff] }
 0xc82   : > { %v12082_v37 = vadd.f32 %v5460_v30, %v12772_v0  ;;  %v5557_v17 = vsel %vm3169_vm3, %v12078_v10, 0.0  ;;  %v12784_v0 = vld [vmem:[#allocation42_spill] sm:$0xff] }
 0xc83   : > { %5558 = vadd.xlane.f32.xlu0 %v5557_v17 }
 0xc84   : > { %v7762_v7 = vpop.f32.mrf.mxu1  ;;  %v5554_v35 = vsel %vm3169_vm3, %v12082_v37, 0.0 }
 0xc85   : > { %5555 = vadd.xlane.f32.xlu1 %v5554_v35  ;;  %v5475_v21 = vadd.f32 %v7762_v7, %v12074_v60 }
 0xc86   : > { %v5469_v40 = vpop.f32.mrf.mxu1 }
 0xc87   : > { %v5470_v22 = vadd.f32 %v5469_v40, %v12074_v60  ;;  %v12094_v16 = vadd.f32 %v5475_v21, %v12774_v46 }
 0xc89   : > { %v12091_v4 = vadd.f32 %v5470_v22, %v12773_v43  ;;  %v5563_v25 = vsel %vm3169_vm3, %v12094_v16, 0.0  ;;  %v12785_v22 = vld [vmem:[#allocation56_spill] sm:$0xff] }
 0xc8b   : > { %v5560_v38 = vsel %vm3169_vm3, %v12091_v4, 0.0 }
 0xc8c   : > { %5561 = vadd.xlane.f32.xlu0 %v5560_v38  ;;  %v7765_v14 = vpop.f32.mrf.mxu1 }
 0xc8d   : > { %v5485_v44 = vadd.f32 %v7765_v14, %v12074_v60 }
 0xc8e   : > { %v5479_v11 = vpop.f32.mrf.mxu1 }
 0xc8f   : > { %v12100_v45 = vadd.f32 %v5485_v44, %v12775_v2  ;;  %v5480_v49 = vadd.f32 %v5479_v11, %v12074_v60  ;;  %v12786_v44 = vld [vmem:[#allocation55_spill] sm:$0xff] }
 0xc90   : > { %5564 = vadd.xlane.f32.xlu0 %v5563_v25 }
 0xc91   : > { %v12106_v3 = vadd.f32 %v5480_v49, %v12776_v27  ;;  %v5569_v15 = vsel %vm3169_vm3, %v12100_v45, 0.0 }
 0xc93   : > { %v5566_v61 = vsel %vm3169_vm3, %v12106_v3, 0.0 }
 0xc94   : > { %5570 = vadd.xlane.f32.xlu0 %v5569_v15  ;;  %5567 = vadd.xlane.f32.xlu1 %v5566_v61  ;;  %v7768_v55 = vpop.f32.mrf.mxu1 }
 0xc95   : > { %v5495_v12 = vadd.f32 %v7768_v55, %v12074_v60 }
 0xc96   : > { %v5489_v34 = vpop.f32.mrf.mxu1 }
 0xc97   : > { %v12114_v41 = vadd.f32 %v5495_v12, %v12777_v18  ;;  %v5490_v1 = vadd.f32 %v5489_v34, %v12074_v60 }
 0xc99   : > { %v12118_v20 = vadd.f32 %v5490_v1, %v12778_v47  ;;  %v5575_v31 = vsel %vm3169_vm3, %v12114_v41, 0.0 }
 0xc9a   : > { %5576 = vadd.xlane.f32.xlu0 %v5575_v31 }
 0xc9b   : > { %v5572_v52 = vsel %vm3169_vm3, %v12118_v20, 0.0 }
 0xc9c   : > { %5573 = vadd.xlane.f32.xlu1 %v5572_v52  ;;  %v7771_v50 = vpop.f32.mrf.mxu1 }
 0xc9d   : > { %v5505_v62 = vadd.f32 %v7771_v50, %v12074_v60 }
 0xc9e   : > { %v5499_v8 = vpop.f32.mrf.mxu1 }
 0xc9f   : > { %v12126_v51 = vadd.f32 %v5505_v62, %v12779_v9  ;;  %v5500_v23 = vadd.f32 %v5499_v8, %v12074_v60 }
 0xca1   : > { %v12130_v26 = vadd.f32 %v5500_v23, %v12780_v6  ;;  %v5581_v39 = vsel %vm3169_vm3, %v12126_v51, 0.0 }
 0xca2   : > { %5582 = vadd.xlane.f32.xlu0 %v5581_v39 }
 0xca3   : > { %v5578_v28 = vsel %vm3169_vm3, %v12130_v26, 0.0 }
 0xca4   : > { %5579 = vadd.xlane.f32.xlu1 %v5578_v28  ;;  %v7774_v33 = vpop.f32.mrf.mxu1 }
 0xca5   : > { %v5515_v42 = vadd.f32 %v7774_v33, %v12074_v60 }
 0xca6   : > { %v5509_v59 = vpop.f32.mrf.mxu1 }
 0xca7   : > { %v12138_v19 = vadd.f32 %v5515_v42, %v12781_v53  ;;  %v5510_v24 = vadd.f32 %v5509_v59, %v12074_v60 }
 0xca9   : > { %v12142_v36 = vadd.f32 %v5510_v24, %v12782_v54  ;;  %v5587_v13 = vsel %vm3169_vm3, %v12138_v19, 0.0 }
 0xcaa   : > { %5588 = vadd.xlane.f32.xlu0 %v5587_v13 }
 0xcab   : > { %v5584_v63 = vsel %vm3169_vm3, %v12142_v36, 0.0 }
 0xcac   : > { %5585 = vadd.xlane.f32.xlu1 %v5584_v63  ;;  %v7777_v57 = vpop.f32.mrf.mxu1 }
 0xcad   : > { %v5525_v56 = vadd.f32 %v7777_v57, %v12074_v60 }
 0xcae   : > { %v5519_v58 = vpop.f32.mrf.mxu1 }
 0xcaf   : > { %v12150_v29 = vadd.f32 %v5525_v56, %v12783_v32  ;;  %v5520_v30 = vadd.f32 %v5519_v58, %v12074_v60 }
 0xcb1   : > { %v12154_v17 = vadd.f32 %v5520_v30, %v12784_v0  ;;  %v5593_v7 = vsel %vm3169_vm3, %v12150_v29, 0.0 }
 0xcb2   : > { %5594 = vadd.xlane.f32.xlu0 %v5593_v7 }
 0xcb3   : > { %v5590_v35 = vsel %vm3169_vm3, %v12154_v17, 0.0 }
 0xcb4   : > { %5591 = vadd.xlane.f32.xlu1 %v5590_v35  ;;  %v7780_v40 = vpop.f32.mrf.mxu1 }
 0xcb5   : > { %v5535_v21 = vadd.f32 %v7780_v40, %v12074_v60 }
 0xcb6   : > { %v5529_v38 = vpop.f32.mrf.mxu1 }
 0xcb7   : > { %v12162_v43 = vadd.f32 %v5535_v21, %v12785_v22  ;;  %v5530_v14 = vadd.f32 %v5529_v38, %v12074_v60 }
 0xcb9   : > { %v5599_v46 = vsel %vm3169_vm3, %v12162_v43, 0.0  ;;  %v12169_v11 = vadd.f32 %v5530_v14, %v12786_v44 }
 0xcba   : > { %5600 = vadd.xlane.f32.xlu0 %v5599_v46 }
 0xcbb   : > { %v5596_v2 = vsel %vm3169_vm3, %v12169_v11, 0.0 }
 0xcc5   : > { %5763 = vrot.lane.b32.xlu1 %v12770_v5, %s8893_s23 }
 0xce9   : > { %5597 = vadd.xlane.f32.xlu1 %v5596_v2 }
 0xd0c   : > { %v5559_v49 = vpop.xlane.xlu0 %5558 }
 0xd0d   : > { %v5604_v25 = vmul.f32 0.041666668, %v5559_v49 }
 0xd0e   : > { %v5556_v27 = vpop.xlane.xlu1 %5555 }
 0xd0f   : > { %v12174_v15 = vsub.f32 %v12078_v10, %v5604_v25  ;;  %v5603_v61 = vmul.f32 0.041666668, %v5556_v27 }
 0xd11   : > { %v12177_v55 = vsub.f32 %v12082_v37, %v5603_v61  ;;  %v5636_v60 = vmul.f32 %v12174_v15, %v12174_v15 }
 0xd13   : > { %v5654_v12 = vsel %vm3169_vm3, %v5636_v60, 0.0  ;;  %v5635_v34 = vmul.f32 %v12177_v55, %v12177_v55 }
 0xd14   : > { %5655 = vadd.xlane.f32.xlu0 %v5654_v12 }
 0xd15   : > { %v5562_v18 = vpop.xlane.xlu0 %5561  ;;  %v5651_v1 = vsel %vm3169_vm3, %v5635_v34, 0.0 }
 0xd16   : > { %v5605_v47 = vmul.f32 0.041666668, %v5562_v18  ;;  %5652 = vadd.xlane.f32.xlu1 %v5651_v1 }
 0xd18   : > { %v12186_v10 = vsub.f32 %v12091_v4, %v5605_v47 }
 0xd19   : > { %v5565_v31 = vpop.xlane.xlu0 %5564 }
 0xd1a   : > { %v5606_v37 = vmul.f32 0.041666668, %v5565_v31  ;;  %v5637_v52 = vmul.f32 %v12186_v10, %v12186_v10 }
 0xd1c   : > { %v12191_v50 = vsub.f32 %v12094_v16, %v5606_v37  ;;  %v5657_v62 = vsel %vm3169_vm3, %v5637_v52, 0.0 }
 0xd1d   : > { %v5571_v8 = vpop.xlane.xlu0 %5570  ;;  %5658 = vadd.xlane.f32.xlu1 %v5657_v62  ;;  %v5568_v9 = vpop.xlane.xlu1 %5567 }
 0xd1e   : > { %v5608_v23 = vmul.f32 0.041666668, %v5571_v8  ;;  %v5607_v6 = vmul.f32 0.041666668, %v5568_v9  ;;  %v5638_v39 = vmul.f32 %v12191_v50, %v12191_v50  ;;  %v12263_v9 = vld [vmem:[#allocation20] sm:$0x7] }
 0xd20   : > { %v12197_v4 = vsub.f32 %v12100_v45, %v5608_v23  ;;  %v12200_v28 = vsub.f32 %v12106_v3, %v5607_v6  ;;  %v5660_v33 = vsel %vm3169_vm3, %v5638_v39, 0.0  ;;  %v12787_v23 = vld [vmem:[#allocation40_spill] sm:$0xff] }
 0xd21   : > { %5661 = vadd.xlane.f32.xlu0 %v5660_v33  ;;  %v12788_v6 = vsub.s32 1, %v12787_v23 }
 0xd22   : > { %v5640_v16 = vmul.f32 %v12197_v4, %v12197_v4  ;;  %v5639_v42 = vmul.f32 %v12200_v28, %v12200_v28 }
 0xd23   : > { %v5577_v59 = vpop.xlane.xlu0 %5576  ;;  %v12268_v39 = vrot.slane %v12263_v9, %v12788_v6 }
 0xd24   : > { %v5610_v53 = vmul.f32 0.041666668, %v5577_v59  ;;  %v5666_v24 = vsel %vm3169_vm3, %v5640_v16, 0.0  ;;  %v5663_v54 = vsel %vm3169_vm3, %v5639_v42, 0.0 }
 0xd25   : > { %5667 = vadd.xlane.f32.xlu0 %v5666_v24  ;;  %5664 = vadd.xlane.f32.xlu1 %v5663_v54  ;;  %v5574_v45 = vpop.xlane.xlu1 %5573 }
 0xd26   : > { %v12210_v3 = vsub.f32 %v12114_v41, %v5610_v53  ;;  %v5609_v13 = vmul.f32 0.041666668, %v5574_v45 }
 0xd28   : > { %v12213_v63 = vsub.f32 %v12118_v20, %v5609_v13  ;;  %v5642_v57 = vmul.f32 %v12210_v3, %v12210_v3 }
 0xd2a   : > { %v5672_v56 = vsel %vm3169_vm3, %v5642_v57, 0.0  ;;  %v5641_v58 = vmul.f32 %v12213_v63, %v12213_v63 }
 0xd2b   : > { %v5583_v32 = vpop.xlane.xlu0 %5582  ;;  %5673 = vadd.xlane.f32.xlu0 %v5672_v56 }
 0xd2c   : > { %v5612_v30 = vmul.f32 0.041666668, %v5583_v32  ;;  %v5669_v0 = vsel %vm3169_vm3, %v5641_v58, 0.0 }
 0xd2d   : > { %5670 = vadd.xlane.f32.xlu1 %v5669_v0  ;;  %v5580_v41 = vpop.xlane.xlu1 %5579 }
 0xd2e   : > { %v12222_v7 = vsub.f32 %v12126_v51, %v5612_v30  ;;  %v5611_v20 = vmul.f32 0.041666668, %v5580_v41 }
 0xd30   : > { %v12225_v35 = vsub.f32 %v12130_v26, %v5611_v20  ;;  %v5644_v40 = vmul.f32 %v12222_v7, %v12222_v7 }
 0xd32   : > { %v5678_v21 = vsel %vm3169_vm3, %v5644_v40, 0.0  ;;  %v5643_v22 = vmul.f32 %v12225_v35, %v12225_v35 }
 0xd33   : > { %v5589_v46 = vpop.xlane.xlu0 %5588  ;;  %5679 = vadd.xlane.f32.xlu0 %v5678_v21 }
 0xd34   : > { %v5614_v38 = vmul.f32 0.041666668, %v5589_v46  ;;  %v5675_v14 = vsel %vm3169_vm3, %v5643_v22, 0.0 }
 0xd35   : > { %5676 = vadd.xlane.f32.xlu1 %v5675_v14  ;;  %v5586_v51 = vpop.xlane.xlu1 %5585 }
 0xd36   : > { %v12234_v44 = vsub.f32 %v12138_v19, %v5614_v38  ;;  %v5613_v26 = vmul.f32 0.041666668, %v5586_v51 }
 0xd38   : > { %v12237_v2 = vsub.f32 %v12142_v36, %v5613_v26  ;;  %v5646_v49 = vmul.f32 %v12234_v44, %v12234_v44 }
 0xd3a   : > { %v5684_v25 = vsel %vm3169_vm3, %v5646_v49, 0.0  ;;  %v5645_v27 = vmul.f32 %v12237_v2, %v12237_v2 }
 0xd3b   : > { %v5595_v61 = vpop.xlane.xlu0 %5594  ;;  %5685 = vadd.xlane.f32.xlu0 %v5684_v25 }
 0xd3c   : > { %v5616_v60 = vmul.f32 0.041666668, %v5595_v61  ;;  %v5681_v12 = vsel %vm3169_vm3, %v5645_v27, 0.0 }
 0xd3d   : > { %5682 = vadd.xlane.f32.xlu1 %v5681_v12  ;;  %v5592_v19 = vpop.xlane.xlu1 %5591 }
 0xd3e   : > { %v12246_v34 = vsub.f32 %v12150_v29, %v5616_v60  ;;  %v5615_v36 = vmul.f32 0.041666668, %v5592_v19 }
 0xd40   : > { %v12249_v18 = vsub.f32 %v12154_v17, %v5615_v36  ;;  %v5648_v1 = vmul.f32 %v12246_v34, %v12246_v34 }
 0xd42   : > { %v5690_v47 = vsel %vm3169_vm3, %v5648_v1, 0.0  ;;  %v5647_v31 = vmul.f32 %v12249_v18, %v12249_v18 }
 0xd43   : > { %5691 = vadd.xlane.f32.xlu0 %v5690_v47  ;;  %v5601_v37 = vpop.xlane.xlu0 %5600 }
 0xd44   : > { %v5618_v52 = vmul.f32 0.041666668, %v5601_v37  ;;  %v5687_v62 = vsel %vm3169_vm3, %v5647_v31, 0.0 }
 0xd45   : > { %5688 = vadd.xlane.f32.xlu1 %v5687_v62 }
 0xd46   : > { %v12258_v29 = vsub.f32 %v12162_v43, %v5618_v52  ;;  %v12274_v43 = vpop.permute.xlu1 %5763 }
 0xd48   : > { %v5650_v17 = vmul.f32 %v12258_v29, %v12258_v29 }
 0xd4a   : > { %v5696_v8 = vsel %vm3169_vm3, %v5650_v17, 0.0 }
 0xd4b   : > { %5697 = vadd.xlane.f32.xlu0 %v5696_v8 }
 0xd56   : > { %5788 = vrot.lane.b32.xlu1 %v12268_v39, %s8890_s28 }
 0xd61   : > { %5786 = vrot.lane.b32.xlu0 %v12770_v5, %s8890_s28 }
 0xd72   : > { %v5598_v33 = vpop.xlane.xlu1 %5597 }
 0xd73   : > { %v5617_v16 = vmul.f32 0.041666668, %v5598_v33 }
 0xd75   : > { %v12277_v42 = vsub.f32 %v12169_v11, %v5617_v16 }
 0xd77   : > { %v5649_v59 = vmul.f32 %v12277_v42, %v12277_v42 }
 0xd79   : > { %v5693_v53 = vsel %vm3169_vm3, %v5649_v59, 0.0 }
 0xd7a   : > { %5694 = vadd.xlane.f32.xlu1 %v5693_v53 }
 0xd9d   : > { %v5656_v24 = vpop.xlane.xlu0 %5655 }
 0xd9e   : > { %v5700_v56 = vmul.f32 0.041666668, %v5656_v24 }
 0xd9f   : > { %v5653_v54 = vpop.xlane.xlu1 %5652 }
 0xda0   : > { %v5699_v13 = vmul.f32 0.041666668, %v5653_v54  ;;  %v5716_v30 = vadd.f32 1e-05, %v5700_v56 }
 0xda2   : > { %v5715_v5 = vadd.f32 1e-05, %v5699_v13 }
 0xda4   : > { %8368 = vrsqrt.f32 %v5715_v5 }
 0xda5   : > { %8370 = vrsqrt.f32 %v5716_v30 }
 0xda6   : > { %v5659_v57 = vpop.xlane.xlu1 %5658 }
 0xda7   : > { %v5701_v0 = vmul.f32 0.041666668, %v5659_v57 }
 0xda9   : > { %v5717_v20 = vadd.f32 1e-05, %v5701_v0 }
 0xdaa   : > { %v5662_v45 = vpop.xlane.xlu0 %5661 }
 0xdab   : > { %v5702_v40 = vmul.f32 0.041666668, %v5662_v45  ;;  %8372 = vrsqrt.f32 %v5717_v20 }
 0xdad   : > { %v5718_v46 = vadd.f32 1e-05, %v5702_v40 }
 0xdae   : > { %v5668_v58 = vpop.xlane.xlu0 %5667  ;;  %v5665_v32 = vpop.xlane.xlu1 %5664 }
 0xdaf   : > { %v5703_v38 = vmul.f32 0.041666668, %v5665_v32  ;;  %8374 = vrsqrt.f32 %v5718_v46  ;;  %v5704_v26 = vmul.f32 0.041666668, %v5668_v58 }
 0xdb1   : > { %v5719_v49 = vadd.f32 1e-05, %v5703_v38  ;;  %v8369_v27 = vpop.eup %8368  ;;  %v5720_v12 = vadd.f32 1e-05, %v5704_v26 }
 0xdb2   : > { %v5747_v60 = vmul.f32 %v8369_v27, %v12177_v55  ;;  %v8371_v1 = vpop.eup %8370 }
 0xdb3   : > { %8376 = vrsqrt.f32 %v5719_v49  ;;  %v5748_v31 = vmul.f32 %v8371_v1, %v12174_v15 }
 0xdb4   : > { %v5674_v11 = vpop.xlane.xlu0 %5673  ;;  %8378 = vrsqrt.f32 %v5720_v12  ;;  %v5766_v17 = vmul.f32 %v12274_v43, %v5747_v60 }
 0xdb5   : > { %v5706_v47 = vmul.f32 0.041666668, %v5674_v11  ;;  %v5767_v15 = vmul.f32 %v12274_v43, %v5748_v31 }
 0xdb6   : > { %v5671_v41 = vpop.xlane.xlu1 %5670 }
 0xdb7   : > { %v5705_v19 = vmul.f32 0.041666668, %v5671_v41  ;;  %v5722_v33 = vadd.f32 1e-05, %v5706_v47 }
 0xdb8   : > { %v8373_v8 = vpop.eup %8372 }
 0xdb9   : > { %v5721_v37 = vadd.f32 1e-05, %v5705_v19  ;;  %v5749_v16 = vmul.f32 %v8373_v8, %v12186_v10 }
 0xdbb   : > { %8380 = vrsqrt.f32 %v5721_v37  ;;  %v5768_v57 = vmul.f32 %v12274_v43, %v5749_v16 }
 0xdbc   : > { %v5680_v21 = vpop.xlane.xlu0 %5679  ;;  %v8375_v53 = vpop.eup %8374  ;;  %8382 = vrsqrt.f32 %v5722_v33 }
 0xdbd   : > { %v5750_v54 = vmul.f32 %v8375_v53, %v12191_v50  ;;  %v5708_v45 = vmul.f32 0.041666668, %v5680_v21 }
 0xdbe   : > { %v5677_v22 = vpop.xlane.xlu1 %5676 }
 0xdbf   : > { %v5707_v59 = vmul.f32 0.041666668, %v5677_v22  ;;  %v5724_v32 = vadd.f32 1e-05, %v5708_v45  ;;  %v5769_v30 = vmul.f32 %v12274_v43, %v5750_v54 }
 0xdc0   : > { %v8377_v56 = vpop.eup %8376 }
 0xdc1   : > { %v5723_v13 = vadd.f32 1e-05, %v5707_v59  ;;  %v5751_v58 = vmul.f32 %v8377_v56, %v12200_v28  ;;  %v8379_v0 = vpop.eup %8378 }
 0xdc2   : > { %v5752_v20 = vmul.f32 %v8379_v0, %v12197_v4 }
 0xdc3   : > { %8384 = vrsqrt.f32 %v5723_v13  ;;  %v5770_v40 = vmul.f32 %v12274_v43, %v5751_v58 }
 0xdc4   : > { %v5686_v14 = vpop.xlane.xlu0 %5685  ;;  %8386 = vrsqrt.f32 %v5724_v32 }
 0xdc5   : > { %v5710_v11 = vmul.f32 0.041666668, %v5686_v14  ;;  %v5771_v14 = vmul.f32 %v12274_v43, %v5752_v20 }
 0xdc6   : > { %v5683_v51 = vpop.xlane.xlu1 %5682 }
 0xdc7   : > { %v5709_v5 = vmul.f32 0.041666668, %v5683_v51  ;;  %v5726_v22 = vadd.f32 1e-05, %v5710_v11 }
 0xdc8   : > { %v8381_v21 = vpop.eup %8380 }
 0xdc9   : > { %v5725_v41 = vadd.f32 1e-05, %v5709_v5  ;;  %v8383_v38 = vpop.eup %8382  ;;  %v5753_v51 = vmul.f32 %v8381_v21, %v12213_v63  ;;  %v729_v21 = vld [vmem:[#allocation19 + $0xf0] sm:$0xff] }
 0xdca   : > { %v5754_v27 = vmul.f32 %v8383_v38, %v12210_v3 }
 0xdcb   : > { %8388 = vrsqrt.f32 %v5725_v41  ;;  %v5772_v60 = vmul.f32 %v12274_v43, %v5753_v51 }
 0xdcc   : > { %v5692_v25 = vpop.xlane.xlu0 %5691  ;;  %8390 = vrsqrt.f32 %v5726_v22  ;;  %v5773_v1 = vmul.f32 %v12274_v43, %v5754_v27  ;;  %v728_v22 = vld [vmem:[#allocation19 + $0xe8] sm:$0xff] }
 0xdcd   : > { %v5712_v26 = vmul.f32 0.041666668, %v5692_v25 }
 0xdce   : > { %v5689_v61 = vpop.xlane.xlu1 %5688 }
 0xdcf   : > { %v5711_v28 = vmul.f32 0.041666668, %v5689_v61  ;;  %v5728_v61 = vadd.f32 1e-05, %v5712_v26 }
 0xdd0   : > { %v8385_v12 = vpop.eup %8384 }
 0xdd1   : > { %v5727_v49 = vadd.f32 1e-05, %v5711_v28  ;;  %v5755_v63 = vmul.f32 %v8385_v12, %v12225_v35  ;;  %v8387_v47 = vpop.eup %8386  ;;  %v12789_v28 = vlaneseq }
 0xdd2   : > { %v5789_v52 = vpop.permute.xlu1 %5788  ;;  %v5756_v3 = vmul.f32 %v8387_v47, %v12222_v7 }
 0xdd3   : > { %8392 = vrsqrt.f32 %v5727_v49  ;;  %v5774_v37 = vmul.f32 %v12274_v43, %v5755_v63 }
 0xdd4   : > { %v12283_v36 = vpop.xlane.xlu0 %5697  ;;  %8394 = vrsqrt.f32 %v5728_v61  ;;  %v5775_v35 = vmul.f32 %v12274_v43, %v5756_v3  ;;  %v5850_v3 = vld [vmem:[#allocation13 + $0x10] sm:$0xff] }
 0xdd5   : > { %v5714_v8 = vmul.f32 0.041666668, %v12283_v36 }
 0xdd7   : > { %v5730_v59 = vadd.f32 1e-05, %v5714_v8 }
 0xdd8   : > { %v5787_v62 = vpop.permute.xlu0 %5786  ;;  %v8389_v31 = vpop.eup %8388 }
 0xdd9   : > { %v12288_v6 = vsel %vm3475_vm2, %v5787_v62, %v5789_v52  ;;  %v5757_v52 = vmul.f32 %v8389_v31, %v12237_v2  ;;  %8396 = vrsqrt.f32 %v5730_v59  ;;  %v5849_v31 = vld [vmem:[#allocation13 + $0x8] sm:$0xff] }
 0xdda   : > { %v5792_v55 = vadd.f32 %v12288_v6, %v5766_v17  ;;  %v5793_v24 = vadd.f32 %v12288_v6, %v5767_v15  ;;  %v5794_v10 = vadd.f32 %v12288_v6, %v5768_v57  ;;  %v5795_v50 = vadd.f32 %v12288_v6, %v5769_v30  ;;  %v8391_v17 = vpop.eup %8390 }
 0xddb   : > { %v5796_v46 = vadd.f32 %v12288_v6, %v5770_v40  ;;  %v5797_v4 = vadd.f32 %v12288_v6, %v5771_v14  ;;  %v5798_v19 = vadd.f32 %v12288_v6, %v5772_v60  ;;  %v5799_v25 = vadd.f32 %v12288_v6, %v5773_v1 }
 0xddc   : > { %5808 = vxpose.xlu1.b32.start [1/16] (narrow) %v5792_v55, 24  ;;  %v5800_v62 = vadd.f32 %v12288_v6, %v5774_v37  ;;  %v5758_v55 = vmul.f32 %v8391_v17, %v12234_v44  ;;  %v5801_v33 = vadd.f32 %v12288_v6, %v5775_v35  ;;  %v5776_v16 = vmul.f32 %v12274_v43, %v5757_v52 }
 0xdde   : > { %v5802_v2 = vadd.f32 %v12288_v6, %v5776_v16  ;;  %v5777_v53 = vmul.f32 %v12274_v43, %v5758_v55 }
 0xde0   : > { %5809 = vxpose.xlu1.b32.cont [2/16] (narrow) %v5793_v24, 24  ;;  %v8393_v7 = vpop.eup %8392  ;;  %v5803_v13 = vadd.f32 %v12288_v6, %v5777_v53 }
 0xde1   : > { %v5759_v15 = vmul.f32 %v8393_v7, %v12249_v18  ;;  %v8395_v24 = vpop.eup %8394 }
 0xde2   : > { %v5760_v44 = vmul.f32 %v8395_v24, %v12246_v34 }
 0xde3   : > { %v5778_v57 = vmul.f32 %v12274_v43, %v5759_v15 }
 0xde4   : > { %5810 = vxpose.xlu1.b32.cont [3/16] (narrow) %v5794_v10, 24  ;;  %v5779_v56 = vmul.f32 %v12274_v43, %v5760_v44 }
 0xde5   : > { %v5804_v18 = vadd.f32 %v12288_v6, %v5778_v57 }
 0xde6   : > { %v5805_v5 = vadd.f32 %v12288_v6, %v5779_v56  ;;  %v8397_v10 = vpop.eup %8396 }
 0xde7   : > { %v5762_v32 = vmul.f32 %v8397_v10, %v12258_v29  ;;  %v727_v29 = vld [vmem:[#allocation19 + $0xe0] sm:$0xff] }
 0xde8   : > { %5811 = vxpose.xlu1.b32.cont [4/16] (narrow) %v5795_v50, 24 }
 0xde9   : > { %v5781_v11 = vmul.f32 %v12274_v43, %v5762_v32 }
 0xdeb   : > { %v5807_v41 = vadd.f32 %v12288_v6, %v5781_v11 }
 0xdec   : > { %5812 = vxpose.xlu1.b32.cont [5/16] (narrow) %v5796_v46, 24  ;;  %v5841_v46 = vand.u32 127, %v12789_v28 }
 0xdee   : > { %vm5845_vm10 = vcmp.lt.s32.totalorder %v5841_v46, 127  ;;  %vm5842_vm12 = vcmp.gt.s32.totalorder %v5841_v46, 0 }
 0xdef   : > { %v12344_v51 = vsel %vm5845_vm10, 1.0, %v12769_v48  ;;  %v12354_v12 = vsel %vm5842_vm12, 1.0, %v12769_v48 }
 0xdf0   : > { %5813 = vxpose.xlu1.b32.cont [6/16] (narrow) %v5797_v4, 24 }
 0xdf4   : > { %5814 = vxpose.xlu1.b32.cont [7/16] (narrow) %v5798_v19, 24 }
 0xdf8   : > { %5815 = vxpose.xlu1.b32.cont [8/16] (narrow) %v5799_v25, 24  ;;  %v5848_v25 = vld [vmem:[#allocation13] sm:$0xff] }
 0xdfc   : > { %5816 = vxpose.xlu1.b32.cont [9/16] (narrow) %v5800_v62, 24 }
 0xe00   : > { %5817 = vxpose.xlu1.b32.cont [10/16] (narrow) %v5801_v33, 24 }
 0xe03   : > { %v5695_v54 = vpop.xlane.xlu1 %5694 }
 0xe04   : > { %v5713_v45 = vmul.f32 0.041666668, %v5695_v54  ;;  %5818 = vxpose.xlu1.b32.cont [11/16] (narrow) %v5802_v2, 24 }
 0xe06   : > { %v5729_v36 = vadd.f32 1e-05, %v5713_v45 }
 0xe08   : > { %8398 = vrsqrt.f32 %v5729_v36  ;;  %5819 = vxpose.xlu1.b32.cont [12/16] (narrow) %v5803_v13, 24 }
 0xe0c   : > { %5820 = vxpose.xlu1.b32.cont [13/16] (narrow) %v5804_v18, 24 }
 0xe10   : > { %5821 = vxpose.xlu1.b32.cont [14/16] (narrow) %v5805_v5, 24 }
 0xe15   : > { %v8399_v58 = vpop.eup %8398 }
 0xe16   : > { %v5761_v34 = vmul.f32 %v8399_v58, %v12277_v42  ;;  %v730_v42 = vld [vmem:[#allocation19 + $0xf8] sm:$0xff] }
 0xe18   : > { %v5780_v30 = vmul.f32 %v12274_v43, %v5761_v34  ;;  %v726_v43 = vld [vmem:[#allocation19 + $0xd8] sm:$0xff] }
 0xe1a   : > { %v5806_v0 = vadd.f32 %v12288_v6, %v5780_v30  ;;  %v725_v6 = vld [vmem:[#allocation19 + $0xd0] sm:$0xff] }
 0xe1c   : > { %5822 = vxpose.xlu1.b32.cont [15/16] (narrow) %v5806_v0, 24 }
 0xe20   : > { %5823 = vxpose.xlu1.b32.end [16/16] (narrow) %v5807_v41, 24 }
 0xe60   : > { %v5824_v50 = vpop.trf.xlu1 }
 0xe64   : > { %v5825_v20 = vpop.trf.xlu1 }
 0xe65   : > { %5862 = vrot.lane.b32.xlu0 %v5825_v20, %s8870_s15 }
 0xe68   : > { %v5826_v40 = vpop.trf.xlu1 }
 0xe69   : > { %5864 = vrot.lane.b32.xlu0 %v5826_v40, %s8870_s15 }
 0xe6d   : > { %5860 = vrot.lane.b32.xlu0 %v5824_v50, %s8870_s15 }
 0xe71   : > { %5853 = vrot.lane.b32.xlu0 %v5825_v20, %s8894_s24 }
 0xe75   : > { %5855 = vrot.lane.b32.xlu0 %v5826_v40, %s8894_s24 }
 0xe79   : > { %5851 = vrot.lane.b32.xlu0 %v5824_v50, %s8894_s24 }
 0xe7d   : > { %5971 = vperm.xlu0 %8064, %v727_v29   ;;  %v734_v29 = vld [vmem:[#allocation19 + $0x118] sm:$0xff] }
 0xe81   : > { %5966 = vperm.xlu0 %8064, %v726_v43   ;;  %v733_v43 = vld [vmem:[#allocation19 + $0x110] sm:$0xff] }
 0xe85   : > { %5989 = vperm.xlu0 %8064, %v730_v42   ;;  %v735_v42 = vld [vmem:[#allocation19 + $0x120] sm:$0xff] }
 0xe89   : > { %5961 = vperm.xlu0 %8064, %v725_v6   ;;  %v736_v6 = vld [vmem:[#allocation19 + $0x128] sm:$0xff] }
 0xe8d   : > { %5984 = vperm.xlu0 %8064, %v729_v21  }
 0xe91   : > { %5979 = vperm.xlu0 %8064, %v728_v22  }
 0xed7   : > { %v5863_v38 = vpop.permute.xlu0 %5862 }
 0xed8   : > { %v5867_v49 = vmul.f32 %v12344_v51, %v5863_v38 }
 0xedb   : > { %v5865_v14 = vpop.permute.xlu0 %5864 }
 0xedc   : > { %v5868_v26 = vmul.f32 %v12344_v51, %v5865_v14 }
 0xede   : > { %7782 = vmatpush3.msra.mxu0 %v5868_v26 }
 0xedf   : > { %7783 = vmatprep.subr.mxu0 %v12769_v48  ;;  %v5861_v4 = vpop.permute.xlu0 %5860 }
 0xee0   : > { %v5866_v27 = vmul.f32 %v12344_v51, %v5861_v4  ;;  %7784 = vmatpush3.msra.mxu0 %v5867_v49 }
 0xee1   : > { %7785 = vmatprep.subr.mxu0 %v12769_v48 }
 0xee2   : > { %7786 = vmatpush3.msra.mxu0 %v5866_v27 }
 0xee3   : > { %7787 = vmatprep.subr.mxu0 %v12769_v48  ;;  %v5854_v60 = vpop.permute.xlu0 %5853 }
 0xee4   : > { %7788 = vmatpush3.msra.mxu0 %v5826_v40  ;;  %v5858_v63 = vmul.f32 %v12354_v12, %v5854_v60  ;;  %v732_v40 = vld [vmem:[#allocation19 + $0x108] sm:$0xff] }
 0xee5   : > { %7789 = vmatprep.subr.mxu0 %v12769_v48 }
 0xee6   : > { %7790 = vmatpush3.msra.mxu0 %v5825_v20  ;;  %v731_v20 = vld [vmem:[#allocation19 + $0x100] sm:$0xff] }
 0xee7   : > { %7791 = vmatprep.subr.mxu0 %v12769_v48  ;;  %v5856_v61 = vpop.permute.xlu0 %5855 }
 0xee8   : > { %v5859_v19 = vmul.f32 %v12354_v12, %v5856_v61  ;;  %7792 = vmatpush3.msra.mxu0 %v5824_v50  ;;  %v6013_v61 = vld [vmem:[#allocation14] sm:$0xff] }
 0xee9   : > { %7793 = vmatprep.subr.mxu0 %v12769_v48 }
 0xeea   : > { %7794 = vmatpush3.msra.mxu0 %v5859_v19  ;;  %v6014_v19 = vld [vmem:[#allocation14 + $0x8] sm:$0xff] }
 0xeeb   : > { %7795 = vmatprep.subr.mxu0 %v12769_v48  ;;  %v5852_v1 = vpop.permute.xlu0 %5851 }
 0xeec   : > { %v5857_v47 = vmul.f32 %v12354_v12, %v5852_v1  ;;  %7796 = vmatpush3.msra.mxu0 %v5858_v63  ;;  %v6015_v63 = vld [vmem:[#allocation14 + $0x10] sm:$0xff] }
 0xeed   : > { %7797 = vmatprep.subr.mxu0 %v12769_v48 }
 0xeee   : > { %7798 = vmatpush3.msra.mxu0 %v5857_v47 }
 0xeef   : > { %7800 = vmatmul.mubr.msk.f32.vlgmr.msra.gmra.mxu0 %vm5869_vm11, %v5848_v25  ;;  %7835 = vmatprep.subr.mxu0 %v12769_v48 }
 0xef0   : > { %7802 = vmatprep.mubr.msk.f32.mxu0 %vm8888_vm1, %v12769_v48 }
 0xef3   : > { %7803 = vmatmul.mubr.msk.f32.gmra.mxu0 %vm5869_vm11, %v5849_v31 }
 0xef4   : > { %7805 = vmatprep.mubr.msk.f32.mxu0 %vm8888_vm1, %v12769_v48 }
 0xef7   : > { %7806 = vmatmul.mubr.msk.f32.gmra.mxu0 %vm5869_vm11, %v5850_v3 }
 0xef8   : > { %7841 = vmatprep.mubr.msk.f32.mxu0 %vm8888_vm1, %v12769_v48  ;;  %v5972_v37 = vpop.permute.xlu0 %5971 }
 0xefc   : > { %v5967_v52 = vpop.permute.xlu0 %5966 }
 0xf00   : > { %v5990_v62 = vpop.permute.xlu0 %5989 }
 0xf04   : > { %v5962_v17 = vpop.permute.xlu0 %5961 }
 0xf08   : > { %v5985_v35 = vpop.permute.xlu0 %5984 }
 0xf0c   : > { %v5980_v16 = vpop.permute.xlu0 %5979 }
 0xfaf   : > { %v5945_v8 = vpop.f32.mrf.mxu0 }
 0xfb0   : > { %v5974_v55 = vmul.f32 %v5962_v17, %v5945_v8 }
 0xfb1   : > { %v7801_v33 = vpop.f32.mrf.mxu0 }
 0xfb2   : > { %v5992_v7 = vadd.f32 %v5980_v16, %v5974_v55 }
 0xfb3   : > { %v5950_v59 = vpop.f32.mrf.mxu0 }
 0xfb4   : > { %v5975_v15 = vmul.f32 %v5967_v52, %v5950_v59  ;;  %v5998_v24 = vmin.f32 %v5992_v7, 0.0  ;;  %vm5995_vm13 = vcmp.gt.f32.partialorder %v5992_v7, 0.0 }
 0xfb5   : > { %v7804_v2 = vpop.f32.mrf.mxu0 }
 0xfb6   : > { %v5993_v53 = vadd.f32 %v5985_v35, %v5975_v15  ;;  %v6001_v18 = vmul.f32 1.442695, %v5998_v24 }
 0xfb7   : > { %v5955_v54 = vpop.f32.mrf.mxu0 }
 0xfb8   : > { %v5999_v45 = vmin.f32 %v5993_v53, 0.0  ;;  %v5976_v44 = vmul.f32 %v5972_v37, %v5955_v54  ;;  %vm5996_vm5 = vcmp.gt.f32.partialorder %v5993_v53, 0.0 }
 0xfb9   : > { %v7807_v36 = vpop.f32.mrf.mxu0 }
 0xfba   : > { %v6003_v13 = vmul.f32 1.442695, %v5999_v45  ;;  %v5994_v57 = vadd.f32 %v5990_v62, %v5976_v44 }
 0xfbc   : > { %8400 = vpow2.f32 %v6003_v13  ;;  %v6000_v56 = vmin.f32 %v5994_v57, 0.0  ;;  %vm5997_vm0 = vcmp.gt.f32.partialorder %v5994_v57, 0.0 }
 0xfbd   : > { %8402 = vpow2.f32 %v6001_v18 }
 0xfbe   : > { %v6005_v5 = vmul.f32 1.442695, %v6000_v56 }
 0xfc0   : > { %8404 = vpow2.f32 %v6005_v5 }
 0xfc9   : > { %v8401_v10 = vpop.eup %8400 }
 0xfca   : > { %v7006_v58 = vadd.f32 -1.0, %v8401_v10  ;;  %v8403_v32 = vpop.eup %8402 }
 0xfcb   : > { %v7005_v41 = vadd.f32 -1.0, %v8403_v32 }
 0xfcc   : > { %v6011_v34 = vsel %vm5996_vm5, %v5993_v53, %v7006_v58 }
 0xfcd   : > { %v8405_v30 = vpop.eup %8404  ;;  %6027 = vrot.lane.b32.xlu0 %v6011_v34, %s8870_s15  ;;  %v6010_v50 = vsel %vm5995_vm13, %v5992_v7, %v7005_v41 }
 0xfce   : > { %v7007_v0 = vadd.f32 -1.0, %v8405_v30  ;;  %v6220_v30 = vld [vmem:[#allocation16 + $0x8] sm:$0xff] }
 0xfd0   : > { %v6012_v11 = vsel %vm5997_vm0, %v5994_v57, %v7007_v0  ;;  %v6219_v0 = vld [vmem:[#allocation16] sm:$0xff] }
 0xfd1   : > { %6029 = vrot.lane.b32.xlu0 %v6012_v11, %s8870_s15 }
 0xfd5   : > { %6025 = vrot.lane.b32.xlu0 %v6010_v50, %s8870_s15  ;;  %s8895_s15 = smov 48  }
 0xfd9   : > { %6018 = vrot.lane.b32.xlu0 %v6011_v34, %s8894_s24 }
 0xfdd   : > { %6020 = vrot.lane.b32.xlu0 %v6012_v11, %s8894_s24 }
 0xfe1   : > { %6016 = vrot.lane.b32.xlu0 %v6010_v50, %s8894_s24 }
 0xfe5   : > { %6125 = vperm.xlu0 %8064, %v731_v20  }
 0xfe9   : > { %6130 = vperm.xlu0 %8064, %v732_v40  }
 0xfed   : > { %6143 = vperm.xlu0 %8064, %v734_v29  }
 0xff1   : > { %6135 = vperm.xlu0 %8064, %v733_v43  }
 0xff5   : > { %6148 = vperm.xlu0 %8064, %v735_v42   ;;  %v6312_v42 = vld [vmem:[#allocation17 + $0x18] sm:$0xff] }
 0xff9   : > { %6153 = vperm.xlu0 %8064, %v736_v6   ;;  %v6311_v6 = vld [vmem:[#allocation17 + $0x10] sm:$0xff] }
0x103f   : > { %v6028_v21 = vpop.permute.xlu0 %6027 }
0x1040   : > { %v6032_v46 = vmul.f32 %v12344_v51, %v6028_v21  ;;  %v6310_v21 = vld [vmem:[#allocation17 + $0x8] sm:$0xff] }
0x1043   : > { %v6030_v22 = vpop.permute.xlu0 %6029 }
0x1044   : > { %v6033_v28 = vmul.f32 %v12344_v51, %v6030_v22  ;;  %v6309_v22 = vld [vmem:[#allocation17] sm:$0xff] }
0x1046   : > { %7809 = vmatpush3.msra.mxu1 %v6033_v28 }
0x1047   : > { %7810 = vmatprep.subr.mxu1 %v12769_v48  ;;  %v6026_v38 = vpop.permute.xlu0 %6025 }
0x1048   : > { %v6031_v14 = vmul.f32 %v12344_v51, %v6026_v38  ;;  %7811 = vmatpush3.msra.mxu1 %v6032_v46 }
0x1049   : > { %7812 = vmatprep.subr.mxu1 %v12769_v48 }
0x104a   : > { %7813 = vmatpush3.msra.mxu1 %v6031_v14 }
0x104b   : > { %7814 = vmatprep.subr.mxu1 %v12769_v48  ;;  %v6019_v26 = vpop.permute.xlu0 %6018 }
0x104c   : > { %7815 = vmatpush3.msra.mxu1 %v6012_v11  ;;  %v6023_v51 = vmul.f32 %v12354_v12, %v6019_v26 }
0x104d   : > { %7816 = vmatprep.subr.mxu1 %v12769_v48 }
0x104e   : > { %7817 = vmatpush3.msra.mxu1 %v6011_v34  ;;  %v6221_v34 = vld [vmem:[#allocation16 + $0x10] sm:$0xff] }
0x104f   : > { %7818 = vmatprep.subr.mxu1 %v12769_v48  ;;  %v6021_v49 = vpop.permute.xlu0 %6020  ;;  %7836 = vmatpush3.msra.mxu0 %v6221_v34 }
0x1050   : > { %v6024_v4 = vmul.f32 %v12354_v12, %v6021_v49  ;;  %7819 = vmatpush3.msra.mxu1 %v6010_v50  ;;  %7837 = vmatprep.subr.mxu0 %v12769_v48 }
0x1051   : > { %7820 = vmatprep.subr.mxu1 %v12769_v48  ;;  %7838 = vmatpush3.msra.mxu0 %v6220_v30 }
0x1052   : > { %7821 = vmatpush3.msra.mxu1 %v6024_v4  ;;  %7839 = vmatprep.subr.mxu0 %v12769_v48 }
0x1053   : > { %7822 = vmatprep.subr.mxu1 %v12769_v48  ;;  %v6017_v27 = vpop.permute.xlu0 %6016  ;;  %7840 = vmatpush3.msra.mxu0 %v6219_v0 }
0x1054   : > { %v6022_v60 = vmul.f32 %v12354_v12, %v6017_v27  ;;  %7823 = vmatpush3.msra.mxu1 %v6023_v51  ;;  %7855 = vmatprep.subr.mxu0 %v12769_v48 }
0x1055   : > { %7824 = vmatprep.subr.mxu1 %v12769_v48 }
0x1056   : > { %7825 = vmatpush3.msra.mxu1 %v6022_v60 }
0x1057   : > { %7827 = vmatmul.mubr.msk.f32.vlgmr.msra.gmra.mxu1 %vm5869_vm11, %v6013_v61  ;;  %7844 = vmatprep.subr.mxu1 %v12769_v48 }
0x1058   : > { %7829 = vmatprep.mubr.msk.f32.mxu1 %vm8888_vm1, %v12769_v48  ;;  %7845 = vmatpush3.msra.mxu1 %v6312_v42 }
0x1059   : > { %7846 = vmatprep.subr.mxu1 %v12769_v48 }
0x105a   : > { %7847 = vmatpush3.msra.mxu1 %v6311_v6 }
0x105b   : > { %7830 = vmatmul.mubr.msk.f32.gmra.mxu1 %vm5869_vm11, %v6014_v19  ;;  %7848 = vmatprep.subr.mxu1 %v12769_v48 }
0x105c   : > { %7832 = vmatprep.mubr.msk.f32.mxu1 %vm8888_vm1, %v12769_v48  ;;  %7849 = vmatpush3.msra.mxu1 %v6310_v21 }
0x105d   : > { %7850 = vmatprep.subr.mxu1 %v12769_v48 }
0x105e   : > { %7851 = vmatpush3.msra.mxu1 %v6309_v22 }
0x105f   : > { %7833 = vmatmul.mubr.msk.f32.gmra.mxu1 %vm5869_vm11, %v6015_v63 }
0x1060   : > { %7852 = vmatprep.mubr.msk.f32.mxu1 %vm8888_vm1, %v12769_v48  ;;  %v6126_v12 = vpop.permute.xlu0 %6125 }
0x1064   : > { %v6131_v1 = vpop.permute.xlu0 %6130 }
0x1068   : > { %v6144_v47 = vpop.permute.xlu0 %6143 }
0x106c   : > { %v6136_v25 = vpop.permute.xlu0 %6135 }
0x1070   : > { %v6149_v62 = vpop.permute.xlu0 %6148 }
0x1074   : > { %v6154_v2 = vpop.permute.xlu0 %6153 }
0x1117   : > { %v6109_v31 = vpop.f32.mrf.mxu1 }
0x1118   : > { %v6138_v3 = vmul.f32 %v6126_v12, %v6109_v31 }
0x1119   : > { %v7828_v37 = vpop.f32.mrf.mxu1 }
0x111a   : > { %v6156_v52 = vadd.f32 %v6144_v47, %v6138_v3 }
0x111b   : > { %v6114_v17 = vpop.f32.mrf.mxu1 }
0x111c   : > { %v6162_v35 = vmin.f32 %v6156_v52, 0.0  ;;  %v6139_v8 = vmul.f32 %v6131_v1, %v6114_v17  ;;  %vm6159_vm14 = vcmp.gt.f32.partialorder %v6156_v52, 0.0 }
0x111d   : > { %v7831_v55 = vpop.f32.mrf.mxu1 }
0x111e   : > { %v6165_v33 = vmul.f32 1.442695, %v6162_v35  ;;  %v6157_v16 = vadd.f32 %v6149_v62, %v6139_v8  ;;  %v6425_v35 = vld [vmem:[%s12527_s12] sm:$0xff] }
0x111f   : > { %v6119_v7 = vpop.f32.mrf.mxu1 }
0x1120   : > { %8406 = vpow2.f32 %v6165_v33  ;;  %v6163_v59 = vmin.f32 %v6157_v16, 0.0  ;;  %v6140_v15 = vmul.f32 %v6136_v25, %v6119_v7  ;;  %vm6160_vm9 = vcmp.gt.f32.partialorder %v6157_v16, 0.0 }
0x1121   : > { %v7834_v53 = vpop.f32.mrf.mxu1  ;;  %v12790_v25 = vsub.s32 2, %v12787_v23  ;;  %v6426_v23 = vld [vmem:[%s12527_s12 + $0x8] sm:$0xff] }
0x1122   : > { %v6167_v24 = vmul.f32 1.442695, %v6163_v59  ;;  %v6158_v54 = vadd.f32 %v6154_v2, %v6140_v15 }
0x1123   : > { %v6407_v31 = vrot.slane %v12263_v9, %v12790_v25  ;;  %v6427_v9 = vld [vmem:[%s12527_s12 + $0x10] sm:$0xff] }
0x1124   : > { %8408 = vpow2.f32 %v6167_v24  ;;  %v6164_v45 = vmin.f32 %v6158_v54, 0.0  ;;  %vm6161_vm6 = vcmp.gt.f32.partialorder %v6158_v54, 0.0 }
0x1126   : > { %v6169_v44 = vmul.f32 1.442695, %v6164_v45 }
0x1128   : > { %8410 = vpow2.f32 %v6169_v44 }
0x112d   : > { %v8407_v36 = vpop.eup %8406 }
0x112e   : > { %v7011_v13 = vadd.f32 -1.0, %v8407_v36 }
0x1130   : > { %v6174_v57 = vsel %vm6159_vm14, %v6156_v52, %v7011_v13 }
0x1131   : > { %v8409_v18 = vpop.eup %8408  ;;  %6177 = vadd.xlane.f32.xlu0 %v6174_v57 }
0x1132   : > { %v7012_v56 = vadd.f32 -1.0, %v8409_v18 }
0x1134   : > { %v6175_v5 = vsel %vm6160_vm9, %v6157_v16, %v7012_v56 }
0x1135   : > { %v8411_v10 = vpop.eup %8410  ;;  %6179 = vadd.xlane.f32.xlu1 %v6175_v5 }
0x1136   : > { %v7013_v58 = vadd.f32 -1.0, %v8411_v10 }
0x1138   : > { %v6176_v32 = vsel %vm6161_vm6, %v6158_v54, %v7013_v58 }
0x1139   : > { %6181 = vadd.xlane.f32.xlu0 %v6176_v32 }
0x1146   : > { %6295 = vrot.lane.b32.xlu1 %v12268_v39, %s8885_s29 }
0x114a   : > { %6299 = vrot.lane.b32.xlu1 %v12268_v39, %s8883_s20 }
0x114e   : > { %6313 = vrot.lane.b32.xlu1 %v12268_v39, %s8895_s15  ;;  %s12791_s15 = sld [smem:[#allocation75_spill]] }
0x1154   : > { %s6536_s27 = scalar_lea.hbm %s12791_s15, %s12609_s26 }
0x11ba   : > { %v6178_v11 = vpop.xlane.xlu0 %6177 }
0x11bb   : > { %v6184_v41 = vmul.f32 0.0078125, %v6178_v11 }
0x11bd   : > { %6187 = vxpose.xlu0.b32.start [1/3] (short) (narrow) %v6184_v41, 8 }
0x11be   : > { %v6180_v50 = vpop.xlane.xlu1 %6179 }
0x11bf   : > { %v6185_v20 = vmul.f32 0.0078125, %v6180_v50 }
0x11c1   : > { %6188 = vxpose.xlu0.b32.cont [2/3] (short) (narrow) %v6185_v20, 8 }
0x11c2   : > { %v6182_v40 = vpop.xlane.xlu0 %6181  ;;  %v6296_v28 = vpop.permute.xlu1 %6295 }
0x11c3   : > { %v6186_v29 = vmul.f32 0.0078125, %v6182_v40 }
0x11c5   : > { %6189 = vxpose.xlu0.b32.end [3/3] (short) (narrow) %v6186_v29, 8 }
0x11c6   : > { %v6300_v38 = vpop.permute.xlu1 %6299 }
0x11ca   : > { %v6314_v19 = vpop.permute.xlu1 %6313 }
0x1239   : > { %v6203_v43 = vpop.trf.xlu0 }
0x123a   : > { %7842 = vmatmul.mubr.msk.f32.vlgmr.msra.gmra.mxu0 %vm3169_vm3, %v6203_v43 }
0x123b   : > { %7863 = vmatprep.mubr.msk.f32.mxu0 %vm8888_vm1, %v12769_v48  ;;  %vm6389_vm1 = vcmask 253952  }
0x12fa   : > { %v6291_v46 = vpop.f32.mrf.mxu0 }
0x12fb   : > { %v6298_v14 = vmul.f32 %v6296_v28, %v6291_v46 }
0x12fc   : > { %v7843_v26 = vpop.f32.mrf.mxu0 }
0x12fd   : > { %v6302_v49 = vadd.f32 %v6300_v38, %v6298_v14 }
0x12ff   : > { %v6304_v4 = vmin.f32 %v6302_v49, 0.0  ;;  %vm6303_vm15 = vcmp.gt.f32.partialorder %v6302_v49, 0.0 }
0x1301   : > { %v6305_v51 = vmul.f32 1.442695, %v6304_v4 }
0x1303   : > { %8412 = vpow2.f32 %v6305_v51 }
0x1310   : > { %v8413_v27 = vpop.eup %8412 }
0x1311   : > { %v7015_v60 = vadd.f32 -1.0, %v8413_v27 }
0x1313   : > { %v6308_v61 = vsel %vm6303_vm15, %v6302_v49, %v7015_v60 }
0x1314   : > { %7853 = vmatmul.mubr.msk.f32.vlgmr.msra.gmra.mxu1 %vm2255_vm8, %v6308_v61  ;;  %6507 = vst.msk [vmem:[%s694_s17] sm:$0x1] %vm6389_vm1, %v6308_v61 }
0x13d4   : > { %v6385_v63 = vpop.f32.mrf.mxu1 }
0x13d5   : > { %v6386_v12 = vadd.f32 %v6385_v63, %v6314_v19 }
0x13d6   : > { %v7854_v1 = vpop.f32.mrf.mxu1 }
0x13d7   : > { %v6390_v47 = vsel %vm6389_vm1, %v6386_v12, 0.0 }
0x13d8   : > { %6391 = vadd.xlane.f32.xlu1 %v6390_v47 }
0x13e9   : > { %6408 = vrot.lane.b32.xlu1 %v12268_v39, %s8891_s18  ;;  %v6428_v39 = vld [vmem:[%s12527_s12 + $0x18] sm:$0xff] }
0x13ea   : > { %7856 = vmatpush3.msra.mxu0 %v6428_v39 }
0x13eb   : > { %7857 = vmatprep.subr.mxu0 %v12769_v48 }
0x13ec   : > { %7858 = vmatpush3.msra.mxu0 %v6427_v9 }
0x13ed   : > { %6410 = vrot.lane.b32.xlu1 %v6407_v31, %s8891_s18  ;;  %7859 = vmatprep.subr.mxu0 %v12769_v48 }
0x13ee   : > { %7860 = vmatpush3.msra.mxu0 %v6426_v23 }
0x13ef   : > { %7861 = vmatprep.subr.mxu0 %v12769_v48 }
0x13f0   : > { %7862 = vmatpush3.msra.mxu0 %v6425_v35 }
0x13f1   : > { %6415 = vrot.lane.b32.xlu1 %v6407_v31, %s8885_s29 }
0x13f5   : > { %6429 = vrot.lane.b32.xlu1 %v6407_v31, %s8883_s20  ;;  %s8896_s20 = smov [#allocation23]  }
0x13f6   : > { %s8735_s29 = sshll.u32 %s8896_s20, 4  ;;  %s8736_s29 = int_to_ptr.vmem [resolvable:$false] %s8735_s29 }
0x13f7   : > { %s8737_s28 = scalar_lea.vmem %s8736_s29, 32  ;;  %p8738_p10 = scmp.lt.s32.totalorder %s6539_s19, %s8736_s29 }
0x13f8   : > { %p8739_p11 = scmp.lt.s32.totalorder %s8737_s28, %s8731_s30 }
0x13fa   : > { %p8740_p3 = por %p8739_p11, %p8738_p10 }
0x13fc   : > { %p8741_p9 = pnand %p8740_p3, %p8734_p12 }
0x1461   : > { %v6392_v3 = vpop.xlane.xlu1 %6391 }
0x1462   : > { %v6394_v37 = vmul.f32 0.03125, %v6392_v3 }
0x1464   : > { %v6395_v52 = vsub.f32 %v6386_v12, %v6394_v37 }
0x1465   : > { %v6409_v16 = vpop.permute.xlu1 %6408 }
0x1466   : > { %v6396_v62 = vmul.f32 %v6395_v52, %v6395_v52 }
0x1468   : > { %v6397_v17 = vsel %vm6389_vm1, %v6396_v62, 0.0 }
0x1469   : > { %6398 = vadd.xlane.f32.xlu0 %v6397_v17  ;;  %v6411_v7 = vpop.permute.xlu1 %6410 }
0x146a   : > { %v6412_v2 = vsel %vm5322_vm7, %v6409_v16, %v6411_v7 }
0x146d   : > { %v6416_v53 = vpop.permute.xlu1 %6415 }
0x14f2   : > { %v6399_v8 = vpop.xlane.xlu0 %6398 }
0x14f3   : > { %v6400_v55 = vmul.f32 0.03125, %v6399_v8 }
0x14f5   : > { %v6401_v33 = vadd.f32 1e-05, %v6400_v55 }
0x14f7   : > { %8414 = vrsqrt.f32 %v6401_v33 }
0x1504   : > { %v8415_v59 = vpop.eup %8414 }
0x1505   : > { %v6403_v15 = vmul.f32 %v8415_v59, %v6395_v52 }
0x1507   : > { %v6414_v24 = vmul.f32 %v6412_v2, %v6403_v15 }
0x1509   : > { %v6418_v54 = vadd.f32 %v6416_v53, %v6414_v24 }
0x150b   : > { %v6420_v48 = vmin.f32 %v6418_v54, 0.0  ;;  %vm6419_vm4 = vcmp.gt.f32.partialorder %v6418_v54, 0.0 }
0x150d   : > { %v6421_v45 = vmul.f32 1.442695, %v6420_v48 }
0x150f   : > { %8416 = vpow2.f32 %v6421_v45 }
0x151c   : > { %v8417_v44 = vpop.eup %8416 }
0x151d   : > { %v7017_v36 = vadd.f32 -1.0, %v8417_v44 }
0x151f   : > { %v6424_v13 = vsel %vm6419_vm4, %v6418_v54, %v7017_v36 }
0x1520   : > { %7864 = vmatmul.mubr.msk.f32.vlgmr.msra.gmra.mxu0 %vm2255_vm8, %v6424_v13 }
0x1521   : > { %8744 = shalt.err (!%p8741_p9)
}
0x1522   : > { %s8745_s18 = scalar_lea.hbm %s6536_s27, 16  ;;  %s8749_s24 = scalar_lea.hbm %s12791_s15, 32 }
0x1523   : > { %p8746_p4 = scmp.ne.s32.totalorder %s6536_s27, %s8745_s18  ;;  %p8750_p13 = scmp.lt.s32.totalorder %s6536_s27, %s12791_s15 }
0x1524   : > { %p8751_p8 = scmp.lt.s32.totalorder %s8749_s24, %s8745_s18 }
0x1525   : > { %p8747_p7 = pnand %p8746_p4, %p9021_p5 }
0x1526   : > { %p8752_p0 = por %p8751_p8, %p8750_p13 }
0x1527   : > { %p8748_p2 = pneg %p8747_p7 }
0x1529   : > { %p8753_p1 = pnand %p8752_p0, %p8748_p2 }
0x152b   : > { %8756 = shalt.err (!%p8753_p1)
}
0x152c   : > { %7915 = dma.vmem_to_hbm [thread:$0]  (%p9021_p5), %s6539_s19, 16, %s6536_s27, %s6513_s16   ;;  %v6430_v57 = vpop.permute.xlu1 %6429  ;;  %vm6505_vm8 = vcmask 24576  }
0x152d   : > { %s688_s30 = scalar_lea.vmem [#allocation22], %s12418_s21  ;;  %s12792_s29 = sshll.u32 %s9004_s25, 4 }
0x152e   : > { %s6525_s20 = sshll.u32 %s688_s30, 4  ;;  %s12793_s28 = sld [smem:[#allocation74_spill]]  ;;  %s6526_s20 = int_to_ptr.vmem [resolvable:$true] %s6525_s20 }
0x152f   : > { %s6509_s17 = scalar_lea.sflag [#allocation4], %s12418_s21  ;;  %s8757_s23 = scalar_lea.vmem %s6526_s20, 16 }
0x1530   : > { %p8758_p12 = scmp.ne.s32.totalorder %s6526_s20, %s8757_s23  ;;  %s8897_s27 = smov [#allocation22]  }
0x1531   : > { %s8761_s19 = sshll.u32 %s8897_s27, 4  ;;  %s8762_s19 = int_to_ptr.vmem [resolvable:$false] %s8761_s19 }
0x1532   : > { %p8759_p10 = pnand %p8758_p12, %p9021_p5  ;;  %s8763_s16 = scalar_lea.vmem %s8762_s19, 32 }
0x1533   : > { %p8764_p3 = scmp.lt.s32.totalorder %s6526_s20, %s8762_s19  ;;  %p8765_p9 = scmp.lt.s32.totalorder %s8763_s16, %s8757_s23 }
0x1534   : > { %s12479_s18 = scalar_lea.hbm %s12793_s28, %s12792_s29  ;;  %p8760_p11 = pneg %p8759_p10 }
0x1535   : > { %p8766_p4 = por %p8765_p9, %p8764_p3 }
0x1537   : > { %p8767_p7 = pnand %p8766_p4, %p8760_p11 }
0x15e0   : > { %v6501_v18 = vpop.f32.mrf.mxu0 }
0x15e1   : > { %v6502_v56 = vadd.f32 %v6501_v18, %v6430_v57 }
0x15e2   : > { %v7865_v5 = vpop.f32.mrf.mxu0 }
0x15e3   : > { %6506 = vst.msk [vmem:[%s688_s30] sm:$0x1] %vm6505_vm8, %v6502_v56 }
0x15e4   : > { %8770 = shalt.err (!%p8767_p7)
}
0x15e5   : > { %s8771_s25 = scalar_lea.hbm %s12479_s18, 16  ;;  %s8775_s30 = scalar_lea.hbm %s12793_s28, 32 }
0x15e6   : > { %p8772_p2 = scmp.ne.s32.totalorder %s12479_s18, %s8771_s25  ;;  %p8776_p0 = scmp.lt.s32.totalorder %s12479_s18, %s12793_s28 }
0x15e7   : > { %p8777_p1 = scmp.lt.s32.totalorder %s8775_s30, %s8771_s25 }
0x15e8   : > { %p8773_p13 = pnand %p8772_p2, %p9021_p5 }
0x15e9   : > { %p8778_p12 = por %p8777_p1, %p8776_p0 }
0x15ea   : > { %p8774_p8 = pneg %p8773_p13 }
0x15ec   : > { %p8779_p10 = pnand %p8778_p12, %p8774_p8 }
0x15ee   : > { %8782 = shalt.err (!%p8779_p10)
}
0x15ef   : > { %7914 = dma.vmem_to_hbm [thread:$0]  (%p9021_p5), %s6526_s20, 16, %s12479_s18, %s6509_s17  }
0x15f0 PF: > { %s12794_s26 = sld [smem:[#allocation36_spill]] }
0x15f1   : > { %s12795_s23 = sld [smem:[#allocation34_spill]] }
0x15f6   : > { %p7986_p11 = scmp.ge.s32.totalorder %s12794_s26, 2 }
0x15f7   : > { %s6550_s19 = sand.u32 1, %s12795_s23  }
0x15f8   : > { %p7956_p3 = pnand %p7986_p11, %p9025_p6  ;;  %s6551_s16 = scalar_lea.sflag [#allocation4], %s6550_s19 }
0x15fa   : > { %p7957_p9 = pneg %p7956_p3 }
0x15fc   : > { %8828 = dma.done.wait (%p7957_p9), %s6551_s16, 16  }
0x15fd   : > { %8830 = vsyncadd (%p7957_p9), %s6551_s16, 4294967280  ;;  %s6559_s25 = scalar_lea.sflag [#allocation24], %s6550_s19 }
0x15fe   : > { %8832 = dma.done.wait (%p7957_p9), %s6559_s25, 16  }
0x15ff   : > { %8834 = vsyncadd (%p7957_p9), %s6559_s25, 4294967280  ;;  %s12797_s24 = sld [smem:[#allocation37_spill]]  ;;  %s12800_s21 = smov %s8841_s22 }
0x1600   : > { %s12798_s0 = sld [smem:[#allocation35_spill]] }
0x1601   : > { %s12799_s23 = sld [smem:[#allocation38_spill]] }
0x1605   : > { %p37_p5 = scmp.ge.s32.totalorder %s12797_s24, 4  }
0x1606   : > { %s12801_s22 = smov %s12798_s0 }
0x1607   :  { %39 = sbr.rel (!%p37_p5) target bundleno = 17 (0x11), region = 181 }
0x160c   :  { %6563 = vsyncpa [#allocation3], 1 }
0x160d   :  { %6565 = vsyncpa [#allocation3 + $0x1], 1 }
0x160e   :  { %6566 = vsyncpa [#allocation6], 1 }
0x160f   :  { %6567 = vsyncpa [#allocation9], 1 }
0x1610   :  { %6568 = vsyncpa [#allocation12], 1 }
0x1611   :  { %6569 = vsyncpa [#allocation15], 1 }
0x1612   :  { %6570 = vsyncpa [#allocation18], 1 }
0x1613   :  { %6571 = vsyncpa [#allocation21], 1 }
0x1614   :  { %6572 = vsyncpa [#allocation4], 1 }
0x1615   :  { %6574 = vsyncpa [#allocation4 + $0x1], 1 }
0x1616   :  { %6575 = vsyncpa [#allocation24], 1 }
0x1617   :  { %6577 = vsyncpa [#allocation24 + $0x1], 1 }

</bundles_post_ra>
